<compile_context>
chip_gen: v5e
topology: v5e:2x2
jax: 0.10.0
libtpu: 0.0.40
codegen_flags: <defaults>
</compile_context>

<pallas_src>
import jax
import jax.numpy as jnp
import numpy as np
from jax.experimental import pallas as pl
from jax.experimental.pallas import tpu as pltpu

# ---------------- small synthetic config ----------------
N = 16          # number of atoms per system
FEAT = 8        # config.feat_dim
HID = 32        # config.hidden_dim
HALF = HID // 2
NTYPES = 100    # atom embedding vocab
NBOND = 100     # bond_emb vocab (MLPEdgeEncoder)
NFILT = HID     # SchNet num_filters
NINTER = 3      # SchNet num_interactions
CUTOFF = 10.0   # config.edge_cutoff
EMAX = 256      # padded number of edges per system (>= N*(N-1) here)
B = 2           # number of independent reaction systems (grid axis)

NBLOCKS = 14    # (HID, HID) weight blocks packed into one slab
NBIAS = 16      # bias rows packed into one (NBIAS, 128) slab

_LOG2 = 0.6931471805599453


def get_beta_schedule(beta_schedule, *, beta_start, beta_end, num_diffusion_timesteps):
    # mirrors the PyTorch __init__ (linear schedule); not used in forward.
    assert beta_schedule == "linear"
    return np.linspace(beta_start, beta_end, num_diffusion_timesteps, dtype=np.float64)


# ---------------- the Pallas kernel ----------------
def _eps_kernel(node_in_ref, edge_in_ref, src_oh_ref, dst_oh_ref, dst_ohT_ref,
                wslab_ref, wwide_ref, wdw_ref, wm1f_ref, wm2b_ref, bias_ref,
                out_ref):
    f32 = jnp.float32
    bf16 = jnp.bfloat16
    relu = lambda v: jnp.maximum(v, 0.0)

    def ssp(v):   # numerically stable shifted softplus (f32 elementwise)
        return jnp.maximum(v, 0.0) + jnp.log(1.0 + jnp.exp(-jnp.abs(v))) - _LOG2

    def mm(a, b):  # bf16 x bf16 MXU matmul, f32 accumulation
        return jnp.dot(a.astype(bf16), b, preferred_element_type=f32)

    def W(i):      # (HID, HID) bf16 weight block (static slice of packed slab)
        return wslab_ref[i]

    def WW(i):     # (2*HID, HID) bf16 wide weight block
        return wwide_ref[i]

    def brow(r, w):   # f32 bias row r, first w lanes, shape (1, w)
        return bias_ref[r:r + 1, :w]

    # ---- node embedding: z = [a_emb | r_feat | p_feat] @ [I ; A_r ; A_p] ----
    z = mm(node_in_ref[...], WW(0))                                   # (N, HID) f32

    # ---- merged edge slab: lanes 0..63=[bond_r|bond_p], 64..66=diff, 67=mask ----
    edge_in = edge_in_ref[...]                                        # (E, 128) f32
    bond_cat = edge_in[:, :2 * HID]
    d = edge_in[:, 2 * HID:2 * HID + 3]
    mask = edge_in[:, 2 * HID + 3:2 * HID + 4]
    elen = jnp.sqrt(jnp.sum(d * d, axis=-1, keepdims=True))           # (E, 1)

    # ---- condensed edge embedding: edge_cat(cat([enc(len,t_r), enc(len,t_p)])) ----
    dh = relu(elen * brow(0, HID) + brow(1, HID))                     # MLP(length) layer 1
    d_emb2 = mm(dh, wdw_ref[...]) + brow(2, 2 * HID)                  # (E, 2*HID) = [d_emb|d_emb]
    ea_cat = d_emb2 * bond_cat                                        # (E, 2*HID) f32
    h_ec = relu(mm(ea_cat, WW(1)) + brow(3, HID))                     # fused K=64 edge_cat layer 1
    edge_attr = mm(h_ec, W(0)) + brow(4, HID)

    # ---- SchNet CFConv filters: loop-invariant, fused across interactions ----
    C = (elen <= CUTOFF).astype(f32) * mask                           # cutoff + pad mask
    wf = ssp(mm(edge_attr, wm1f_ref[...]) + brow(5, NINTER * NFILT))
    wf = mm(wf, wm2b_ref[...]) + brow(6, NINTER * NFILT)
    wf = wf * C                                                       # (E, NINTER*NFILT)

    src_oh = src_oh_ref[...]                                          # (E, N) bf16
    dst_ohT = dst_ohT_ref[...]                                        # (N, E) bf16

    # ---- SchNet encoder (residual interactions) ----
    h = z
    for k in range(NINTER):
        xl = mm(h, W(1 + k))                                                       # lin1 (N, F)
        xj = jnp.dot(src_oh, xl.astype(bf16), preferred_element_type=f32)          # gather x_j (E, F)
        msg = xj * wf[:, k * NFILT:(k + 1) * NFILT]
        agg = jnp.dot(dst_ohT, msg.astype(bf16), preferred_element_type=f32)       # scatter-add (N, F)
        x = ssp(mm(agg, W(4 + k)) + brow(7 + k, HID))
        x = mm(x, W(7 + k)) + brow(10 + k, HID)
        h = h + x

    # ---- assemble_atom_pair_feature + grad_dist_mlp (split weights, no concat) ----
    h_bf = h.astype(bf16)
    h_row = jnp.dot(src_oh, h_bf, preferred_element_type=f32)
    h_col = jnp.dot(dst_oh_ref[...], h_bf, preferred_element_type=f32)
    g = relu(mm(h_row * h_col, W(10)) + mm(edge_attr, W(11)) + brow(13, HID))
    g = relu(mm(g, W(12)) + brow(14, HID))          # lanes >= HALF are 0 (padded weight/bias)
    inv = mm(g, W(13)) + brow(15, HID)              # lanes 0..2 = edge_inv

    # TODO(synk): output stays (E, HID) with 4 meaningful lanes; a lane-dense (8, E)
    # transposed store would shave masked vst cost on v5e but needs an XLU transpose.
    lane = jax.lax.broadcasted_iota(jnp.int32, (1, HID), 1)
    out_ref[...] = inv * mask + elen * (lane == 3).astype(f32)


# ---------------- per-system graph construction + packing (vmapped) ----------------
def _prep_system(aemb_tab, bond_tab, atom_type, r_feat, p_feat, pos,
                 bond_index, bond_type, batch):
    f32 = jnp.float32
    bf16 = jnp.bfloat16
    n = pos.shape[0]

    same = batch[:, None] == batch[None, :]
    diff_nn = pos[:, None, :] - pos[None, :, :]
    dist = jnp.sqrt(jnp.sum(diff_nn * diff_nn, axis=-1))
    not_self = ~jnp.eye(n, dtype=bool)
    radius_adj = same & not_self & (dist <= CUTOFF)
    bond_adj = jnp.zeros((n, n), jnp.int32).at[bond_index[0], bond_index[1]].set(bond_type)
    # TODO(synk): higher-order (edge_order > 1) bond-graph extension and the separate
    # r/p bond-type decoding of extend_ts_graph_order_radius are not reproduced;
    # radius-only edges get type 0 (matching the -1 -> 0 clamp).
    adj = radius_adj | (bond_adj > 0)

    flat = adj.reshape(-1)
    count = jnp.sum(flat.astype(jnp.int32))
    # vmap-friendly "nonzero": stable bring-valid-to-front via an integer priority key
    pri = jnp.where(flat, 0, 1) * (n * n) + jnp.arange(n * n)
    order = jnp.argsort(pri)[:EMAX]
    valid = jnp.arange(EMAX) < count
    idx = jnp.where(valid, order, 0)                  # padded slots point at (0, 0)
    src = idx // n
    dst = idx % n
    et_r = bond_adj[src, dst]
    et_p = bond_adj[src, dst]

    emask = valid.astype(f32)[:, None]
    emask_b = emask.astype(bf16)
    src_oh = jax.nn.one_hot(src, n, dtype=bf16) * emask_b
    dst_oh = jax.nn.one_hot(dst, n, dtype=bf16) * emask_b
    dst_ohT = dst_oh.T

    # node slab: lanes 0..HALF-1 = a_emb, HID..HID+FEAT-1 = r_feat, next FEAT = p_feat
    a_emb = jnp.take(aemb_tab, atom_type, axis=0)
    node_in = jnp.zeros((n, 2 * HID), f32)
    node_in = node_in.at[:, :HALF].set(a_emb)
    node_in = node_in.at[:, HID:HID + FEAT].set(r_feat.astype(f32))
    node_in = node_in.at[:, HID + FEAT:HID + 2 * FEAT].set(p_feat.astype(f32))
    node_in = node_in.astype(bf16)

    # edge slab: lanes 0..63 = [bond_r | bond_p], 64..66 = diff xyz, 67 = mask
    diff = (jnp.take(pos, src, axis=0) - jnp.take(pos, dst, axis=0)).astype(f32)
    bond_r = jnp.take(bond_tab, et_r, axis=0) * emask
    bond_p = jnp.take(bond_tab, et_p, axis=0) * emask
    edge_in = jnp.zeros((EMAX, 128), f32)
    edge_in = edge_in.at[:, :HID].set(bond_r)
    edge_in = edge_in.at[:, HID:2 * HID].set(bond_p)
    edge_in = edge_in.at[:, 2 * HID:2 * HID + 3].set(diff)
    edge_in = edge_in.at[:, 2 * HID + 3].set(emask[:, 0])

    edge_index = jnp.stack([jnp.where(valid, src, -1), jnp.where(valid, dst, -1)], 0)
    return node_in, edge_in, src_oh, dst_oh, dst_ohT, edge_index


# ---------------- parameters (deterministic synthetic init) ----------------
def init_params(key):
    ks = jax.random.split(key, 32)
    nrm = lambda k, shape, s=0.1: (s * jax.random.normal(k, shape)).astype(jnp.float32)
    p = {}
    p["aemb"] = nrm(ks[0], (NTYPES, HALF))            # atom_embedding
    p["afeat"] = nrm(ks[1], (FEAT, HALF))             # atom_feat_embedding (no bias)
    p["bond"] = nrm(ks[2], (NBOND, HID))              # edge_encoder.bond_emb
    p["we1"] = nrm(ks[3], (1, HID)); p["be1"] = nrm(ks[4], (1, HID))          # edge_encoder.mlp
    p["we2"] = nrm(ks[5], (HID, HID)); p["be2"] = nrm(ks[6], (1, HID))
    p["wc1"] = nrm(ks[7], (2 * HID, HID)); p["bc1"] = nrm(ks[8], (1, HID))    # edge_cat
    p["wc2"] = nrm(ks[9], (HID, HID)); p["bc2"] = nrm(ks[10], (1, HID))
    p["wm1"] = nrm(ks[11], (NINTER, HID, NFILT)); p["bm1"] = nrm(ks[12], (NINTER, 1, NFILT))
    p["wm2"] = nrm(ks[13], (NINTER, NFILT, NFILT)); p["bm2"] = nrm(ks[14], (NINTER, 1, NFILT))
    p["wl1"] = nrm(ks[15], (NINTER, HID, NFILT))
    p["wl2"] = nrm(ks[16], (NINTER, NFILT, HID)); p["bl2"] = nrm(ks[17], (NINTER, 1, HID))
    p["wlin"] = nrm(ks[18], (NINTER, HID, HID)); p["blin"] = nrm(ks[19], (NINTER, 1, HID))
    p["wg1"] = nrm(ks[20], (2 * HID, HID)); p["bg1"] = nrm(ks[21], (1, HID))  # grad_dist_mlp
    p["wg2"] = nrm(ks[22], (HID, HALF)); p["bg2"] = nrm(ks[23], (1, HALF))
    p["wg3"] = nrm(ks[24], (HALF, 3)); p["bg3"] = nrm(ks[25], (1, 3))
    return p


def _pack_params(p):
    """Pack module parameters into the bf16 slabs the kernel expects."""
    f32 = jnp.float32
    bf16 = jnp.bfloat16
    afeat = p["afeat"].astype(f32)

    # wide block 0: z = [a_emb | r_feat | p_feat] @ [I ; afeat|-afeat ; 0|afeat]
    w0 = jnp.zeros((2 * HID, HID), f32)
    w0 = w0.at[:HALF, :HALF].set(jnp.eye(HALF, dtype=f32))
    w0 = w0.at[HID:HID + FEAT, :HALF].set(afeat)
    w0 = w0.at[HID:HID + FEAT, HALF:].set(-afeat)
    w0 = w0.at[HID + FEAT:HID + 2 * FEAT, HALF:].set(afeat)
    wwide = jnp.stack([w0, p["wc1"]], axis=0).astype(bf16)            # (2, 2*HID, HID)

    wg2p = jnp.zeros((HID, HID), f32).at[:, :HALF].set(p["wg2"])
    wg3p = jnp.zeros((HID, HID), f32).at[:HALF, :3].set(p["wg3"])
    blocks = [p["wc2"]]
    blocks += [p["wl1"][k] for k in range(NINTER)]
    blocks += [p["wl2"][k] for k in range(NINTER)]
    blocks += [p["wlin"][k] for k in range(NINTER)]
    blocks += [p["wg1"][:HID], p["wg1"][HID:], wg2p, wg3p]
    wslab = jnp.stack(blocks, axis=0).astype(bf16)                    # (NBLOCKS, HID, HID)

    # duplicated length-MLP second layer -> d_emb comes out already replicated [r|p]
    wd_wide = jnp.concatenate([p["we2"], p["we2"]], axis=1).astype(bf16)   # (HID, 2*HID)

    # fused CFConv filter-network weights (block-diagonal second layer)
    wm1f = jnp.concatenate([p["wm1"][k] for k in range(NINTER)], axis=1).astype(bf16)
    wm2b = jnp.zeros((NINTER * NFILT, NINTER * NFILT), f32)
    for k in range(NINTER):
        wm2b = wm2b.at[k * NFILT:(k + 1) * NFILT, k * NFILT:(k + 1) * NFILT].set(p["wm2"][k])
    wm2b = wm2b.astype(bf16)

    bias = jnp.zeros((NBIAS, 128), f32)

    def setrow(slab, r, vec):
        v = jnp.asarray(vec).reshape(-1)
        return slab.at[r, :v.shape[0]].set(v)

    bias = setrow(bias, 0, p["we1"])    # Linear(1, HID) weight acts as a broadcast row
    bias = setrow(bias, 1, p["be1"])
    bias = setrow(bias, 2, jnp.concatenate([p["be2"], p["be2"]], axis=1))
    bias = setrow(bias, 3, p["bc1"])
    bias = setrow(bias, 4, p["bc2"])
    bias = setrow(bias, 5, jnp.concatenate([p["bm1"][k] for k in range(NINTER)], axis=1))
    bias = setrow(bias, 6, jnp.concatenate([p["bm2"][k] for k in range(NINTER)], axis=1))
    for k in range(NINTER):
        bias = setrow(bias, 7 + k, p["bl2"][k])
        bias = setrow(bias, 10 + k, p["blin"][k])
    bias = setrow(bias, 13, p["bg1"])
    bias = setrow(bias, 14, p["bg2"])   # lanes >= HALF stay zero (padding of wg2)
    bias = setrow(bias, 15, p["bg3"])   # lanes >= 3 stay zero (padding of wg3)
    return wslab, wwide, wd_wide, wm1f, wm2b, bias


# ---------------- wrapper (forward pass) ----------------
@jax.jit
def condense_encoder_eps_forward(params, atom_type, r_feat, p_feat, rtsp,
                                 pos, bond_index, bond_type, batch):
    # mode == 'ts' -> rtsp forced to 0 (single encoder); argument kept for API parity.
    del rtsp
    bsz, n = atom_type.shape

    wslab, wwide, wd_wide, wm1f, wm2b, bias_slab = _pack_params(params)

    prep = jax.vmap(_prep_system, in_axes=(None, None, 0, 0, 0, 0, 0, 0, 0))
    node_in, edge_in, src_oh, dst_oh, dst_ohT, edge_index = prep(
        params["aemb"], params["bond"], atom_type, r_feat, p_feat, pos,
        bond_index, bond_type, batch)

    def _bspec(*tail):
        nt = len(tail)
        return pl.BlockSpec((None,) + tuple(tail), lambda b, _nt=nt: (b,) + (0,) * _nt)

    def _wspec(*shape):
        nd = len(shape)
        return pl.BlockSpec(tuple(shape), lambda b, _nd=nd: (0,) * _nd)

    out = pl.pallas_call(
        _eps_kernel,
        out_shape=jax.ShapeDtypeStruct((bsz, EMAX, HID), jnp.float32),
        grid=(bsz,),
        in_specs=[
            _bspec(n, 2 * HID),        # node_in (bf16): [a_emb | r_feat | p_feat]
            _bspec(EMAX, 128),         # edge_in (f32): [bond_r | bond_p | diff | mask]
            _bspec(EMAX, n),           # src_oh (bf16)
            _bspec(EMAX, n),           # dst_oh (bf16)
            _bspec(n, EMAX),           # dst_oh^T (bf16), pre-transposed scatter operand
            _wspec(NBLOCKS, HID, HID),               # bf16 weight slab
            _wspec(2, 2 * HID, HID),                 # bf16 wide blocks (z, edge_cat layer 1)
            _wspec(HID, 2 * HID),                    # bf16 duplicated length-MLP layer 2
            _wspec(HID, NINTER * NFILT),             # bf16 fused filter layer 1
            _wspec(NINTER * NFILT, NINTER * NFILT),  # bf16 block-diagonal filter layer 2
            _wspec(NBIAS, 128),                      # f32 bias slab
        ],
        out_specs=pl.BlockSpec((None, EMAX, HID), lambda b: (b, 0, 0)),
        compiler_params=pltpu.CompilerParams(dimension_semantics=("parallel",)),
    )(node_in, edge_in, src_oh, dst_oh, dst_ohT,
      wslab, wwide, wd_wide, wm1f, wm2b, bias_slab)

    edge_inv = out[:, :, 0:3]          # (B, EMAX, 3), masked for padded edges
    edge_length = out[:, :, 3:4]       # (B, EMAX, 1)
    return edge_inv, edge_index, edge_length


# ---------------- main ----------------
def _make_system(key, n=N, feat=FEAT):
    k1, k2, k3, k4, k5 = jax.random.split(key, 5)
    atom_type = jax.random.randint(k1, (n,), 1, 10, dtype=jnp.int32)
    r_feat = jax.random.normal(k2, (n, feat), dtype=jnp.float32)
    p_feat = jax.random.normal(k3, (n, feat), dtype=jnp.float32)
    pos = jax.random.normal(k4, (n, 3), dtype=jnp.float32) * 2.0
    batch = jnp.concatenate([jnp.zeros(n // 2, jnp.int32), jnp.ones(n // 2, jnp.int32)])
    src_list, dst_list = [], []
    for g in range(2):
        base = g * (n // 2)
        for i in range(n // 2 - 1):
            src_list += [base + i, base + i + 1]
            dst_list += [base + i + 1, base + i]
    bond_index = jnp.array([src_list, dst_list], dtype=jnp.int32)     # (2, 28)
    bond_type = jax.random.randint(k5, (bond_index.shape[1],), 1, 4, dtype=jnp.int32)
    return atom_type, r_feat, p_feat, pos, bond_index, bond_type, batch


if __name__ == "__main__":
    key = jax.random.PRNGKey(0)
    ksys, kp = jax.random.split(key, 2)
    sys_keys = jax.random.split(ksys, B)

    systems = [_make_system(sys_keys[b]) for b in range(B)]
    atom_type = jnp.stack([s[0] for s in systems])     # (B, N)
    r_feat = jnp.stack([s[1] for s in systems])        # (B, N, FEAT)
    p_feat = jnp.stack([s[2] for s in systems])        # (B, N, FEAT)
    pos = jnp.stack([s[3] for s in systems])           # (B, N, 3)
    bond_index = jnp.stack([s[4] for s in systems])    # (B, 2, 28)
    bond_type = jnp.stack([s[5] for s in systems])     # (B, 28)
    batch = jnp.stack([s[6] for s in systems])         # (B, N)

    # (diffusion schedule, as in __init__; unused by forward)
    betas = jnp.asarray(get_beta_schedule("linear", beta_start=1e-4, beta_end=0.02,
                                          num_diffusion_timesteps=100), dtype=jnp.float32)
    alphas = jnp.cumprod(1.0 - betas)

    params = init_params(kp)
    edge_inv, edge_index, edge_length = condense_encoder_eps_forward(
        params, atom_type, r_feat, p_feat, 0, pos, bond_index, bond_type, batch)
    jax.block_until_ready((edge_inv, edge_index, edge_length))
    assert edge_inv.shape == (B, EMAX, 3)
    assert edge_index.shape == (B, 2, EMAX)
    assert edge_length.shape == (B, EMAX, 1)
    assert bool(jnp.all(jnp.isfinite(edge_inv))) and bool(jnp.all(jnp.isfinite(edge_length)))
    print("KERNEL_OK")
</pallas_src>

<mosaic_0001>
module attributes {stable_mosaic.version = 11 : i64} {
  func.func @_eps_kernel(%arg0: i32, %arg1: memref<1x16x64xbf16, #tpu.memory_space<vmem>>, %arg2: memref<1x256x128xf32, #tpu.memory_space<vmem>>, %arg3: memref<1x256x16xbf16, #tpu.memory_space<vmem>>, %arg4: memref<1x256x16xbf16, #tpu.memory_space<vmem>>, %arg5: memref<1x16x256xbf16, #tpu.memory_space<vmem>>, %arg6: memref<14x32x32xbf16, #tpu.memory_space<vmem>>, %arg7: memref<2x64x32xbf16, #tpu.memory_space<vmem>>, %arg8: memref<32x64xbf16, #tpu.memory_space<vmem>>, %arg9: memref<32x96xbf16, #tpu.memory_space<vmem>>, %arg10: memref<96x96xbf16, #tpu.memory_space<vmem>>, %arg11: memref<16x128xf32, #tpu.memory_space<vmem>>, %arg12: memref<1x256x32xf32, #tpu.memory_space<vmem>>) attributes {dimension_semantics = [#tpu.dimension_semantics<parallel>], iteration_bounds = array<i64: 2>, scalar_prefetch = 0 : i64, scratch_operands = 0 : i64, tpu.core_type = #tpu.core_type<tc>, window_params = [{transform_indices = @transform_0, window_bounds = array<i64: 1, 16, 64>}, {transform_indices = @transform_1, window_bounds = array<i64: 1, 256, 128>}, {transform_indices = @transform_2, window_bounds = array<i64: 1, 256, 16>}, {transform_indices = @transform_3, window_bounds = array<i64: 1, 256, 16>}, {transform_indices = @transform_4, window_bounds = array<i64: 1, 16, 256>}, {pipeline_mode = #tpu.pipeline_mode<synchronous>, transform_indices = @transform_5, window_bounds = array<i64: 14, 32, 32>}, {pipeline_mode = #tpu.pipeline_mode<synchronous>, transform_indices = @transform_6, window_bounds = array<i64: 2, 64, 32>}, {pipeline_mode = #tpu.pipeline_mode<synchronous>, transform_indices = @transform_7, window_bounds = array<i64: 32, 64>}, {pipeline_mode = #tpu.pipeline_mode<synchronous>, transform_indices = @transform_8, window_bounds = array<i64: 32, 96>}, {pipeline_mode = #tpu.pipeline_mode<synchronous>, transform_indices = @transform_9, window_bounds = array<i64: 96, 96>}, {pipeline_mode = #tpu.pipeline_mode<synchronous>, transform_indices = @transform_10, window_bounds = array<i64: 16, 128>}, {transform_indices = @transform_11, window_bounds = array<i64: 1, 256, 32>}]} {
    %c0 = arith.constant 0 : index
    %c0_0 = arith.constant 0 : index
    %c0_1 = arith.constant 0 : index
    %0 = vector.load %arg1[%c0, %c0_0, %c0_1] : memref<1x16x64xbf16, #tpu.memory_space<vmem>>, vector<1x16x64xbf16>
    %1 = vector.shape_cast %0 : vector<1x16x64xbf16> to vector<16x64xbf16>
    %c0_2 = arith.constant 0 : index
    %c0_3 = arith.constant 0 : index
    %c0_4 = arith.constant 0 : index
    %2 = vector.load %arg7[%c0_2, %c0_3, %c0_4] : memref<2x64x32xbf16, #tpu.memory_space<vmem>>, vector<1x64x32xbf16>
    %3 = vector.shape_cast %2 : vector<1x64x32xbf16> to vector<64x32xbf16>
    %cst = arith.constant dense<0.000000e+00> : vector<16x32xf32>
    %4 = tpu.matmul %1, %3, %cst {dimension_numbers = #tpu.dot_dimension_numbers<[1], [0], [0], [1], [0, 0, 1, 1], [], []>} : vector<16x64xbf16>, vector<64x32xbf16>, vector<16x32xf32> -> vector<16x32xf32>
    %c0_5 = arith.constant 0 : index
    %c0_6 = arith.constant 0 : index
    %c0_7 = arith.constant 0 : index
    %5 = vector.load %arg2[%c0_5, %c0_6, %c0_7] : memref<1x256x128xf32, #tpu.memory_space<vmem>>, vector<1x256x128xf32>
    %6 = vector.shape_cast %5 : vector<1x256x128xf32> to vector<256x128xf32>
    %7 = vector.extract_strided_slice %6 {offsets = [0, 0], sizes = [256, 64], strides = [1, 1]} : vector<256x128xf32> to vector<256x64xf32>
    %8 = vector.extract_strided_slice %6 {offsets = [0, 64], sizes = [256, 3], strides = [1, 1]} : vector<256x128xf32> to vector<256x3xf32>
    %9 = vector.extract_strided_slice %6 {offsets = [0, 67], sizes = [256, 1], strides = [1, 1]} : vector<256x128xf32> to vector<256x1xf32>
    %10 = arith.mulf %8, %8 : vector<256x3xf32>
    %cst_8 = arith.constant dense<0.000000e+00> : vector<256xf32>
    %11 = vector.multi_reduction <add>, %10, %cst_8 [1] : vector<256x3xf32> to vector<256xf32>
    %12 = vector.shape_cast %11 : vector<256xf32> to vector<256x1xf32>
    %13 = math.sqrt %12 : vector<256x1xf32>
    %c0_9 = arith.constant 0 : index
    %c0_10 = arith.constant 0 : index
    %14 = vector.load %arg11[%c0_9, %c0_10] : memref<16x128xf32, #tpu.memory_space<vmem>>, vector<1x32xf32>
    %15 = vector.broadcast %13 : vector<256x1xf32> to vector<256x32xf32>
    %16 = vector.broadcast %14 : vector<1x32xf32> to vector<256x32xf32>
    %17 = arith.mulf %15, %16 : vector<256x32xf32>
    %c1 = arith.constant 1 : index
    %c0_11 = arith.constant 0 : index
    %18 = vector.load %arg11[%c1, %c0_11] : memref<16x128xf32, #tpu.memory_space<vmem>>, vector<1x32xf32>
    %19 = vector.broadcast %18 : vector<1x32xf32> to vector<256x32xf32>
    %20 = arith.addf %17, %19 : vector<256x32xf32>
    %cst_12 = arith.constant 0.000000e+00 : f32
    %21 = vector.broadcast %cst_12 : f32 to vector<256x32xf32>
    %22 = arith.maximumf %20, %21 : vector<256x32xf32>
    %c0_13 = arith.constant 0 : index
    %c0_14 = arith.constant 0 : index
    %23 = vector.load %arg8[%c0_13, %c0_14] : memref<32x64xbf16, #tpu.memory_space<vmem>>, vector<32x64xbf16>
    %24 = arith.truncf %22 : vector<256x32xf32> to vector<256x32xbf16>
    %cst_15 = arith.constant dense<0.000000e+00> : vector<256x64xf32>
    %25 = tpu.matmul %24, %23, %cst_15 {dimension_numbers = #tpu.dot_dimension_numbers<[1], [0], [0], [1], [0, 0, 1, 1], [], []>} : vector<256x32xbf16>, vector<32x64xbf16>, vector<256x64xf32> -> vector<256x64xf32>
    %c2 = arith.constant 2 : index
    %c0_16 = arith.constant 0 : index
    %26 = vector.load %arg11[%c2, %c0_16] : memref<16x128xf32, #tpu.memory_space<vmem>>, vector<1x64xf32>
    %27 = vector.broadcast %26 : vector<1x64xf32> to vector<256x64xf32>
    %28 = arith.addf %25, %27 : vector<256x64xf32>
    %29 = arith.mulf %28, %7 : vector<256x64xf32>
    %c1_17 = arith.constant 1 : index
    %c0_18 = arith.constant 0 : index
    %c0_19 = arith.constant 0 : index
    %30 = vector.load %arg7[%c1_17, %c0_18, %c0_19] : memref<2x64x32xbf16, #tpu.memory_space<vmem>>, vector<1x64x32xbf16>
    %31 = vector.shape_cast %30 : vector<1x64x32xbf16> to vector<64x32xbf16>
    %32 = arith.truncf %29 : vector<256x64xf32> to vector<256x64xbf16>
    %cst_20 = arith.constant dense<0.000000e+00> : vector<256x32xf32>
    %33 = tpu.matmul %32, %31, %cst_20 {dimension_numbers = #tpu.dot_dimension_numbers<[1], [0], [0], [1], [0, 0, 1, 1], [], []>} : vector<256x64xbf16>, vector<64x32xbf16>, vector<256x32xf32> -> vector<256x32xf32>
    %c3 = arith.constant 3 : index
    %c0_21 = arith.constant 0 : index
    %34 = vector.load %arg11[%c3, %c0_21] : memref<16x128xf32, #tpu.memory_space<vmem>>, vector<1x32xf32>
    %35 = vector.broadcast %34 : vector<1x32xf32> to vector<256x32xf32>
    %36 = arith.addf %33, %35 : vector<256x32xf32>
    %cst_22 = arith.constant 0.000000e+00 : f32
    %37 = vector.broadcast %cst_22 : f32 to vector<256x32xf32>
    %38 = arith.maximumf %36, %37 : vector<256x32xf32>
    %c0_23 = arith.constant 0 : index
    %c0_24 = arith.constant 0 : index
    %c0_25 = arith.constant 0 : index
    %39 = vector.load %arg6[%c0_23, %c0_24, %c0_25] : memref<14x32x32xbf16, #tpu.memory_space<vmem>>, vector<1x32x32xbf16>
    %40 = vector.shape_cast %39 : vector<1x32x32xbf16> to vector<32x32xbf16>
    %41 = arith.truncf %38 : vector<256x32xf32> to vector<256x32xbf16>
    %cst_26 = arith.constant dense<0.000000e+00> : vector<256x32xf32>
    %42 = tpu.matmul %41, %40, %cst_26 {dimension_numbers = #tpu.dot_dimension_numbers<[1], [0], [0], [1], [0, 0, 1, 1], [], []>} : vector<256x32xbf16>, vector<32x32xbf16>, vector<256x32xf32> -> vector<256x32xf32>
    %c4 = arith.constant 4 : index
    %c0_27 = arith.constant 0 : index
    %43 = vector.load %arg11[%c4, %c0_27] : memref<16x128xf32, #tpu.memory_space<vmem>>, vector<1x32xf32>
    %44 = vector.broadcast %43 : vector<1x32xf32> to vector<256x32xf32>
    %45 = arith.addf %42, %44 : vector<256x32xf32>
    %cst_28 = arith.constant 1.000000e+01 : f32
    %46 = vector.broadcast %cst_28 : f32 to vector<256x1xf32>
    %47 = arith.cmpf ole, %13, %46 : vector<256x1xf32>
    %48 = arith.extui %47 : vector<256x1xi1> to vector<256x1xi32>
    %49 = arith.sitofp %48 : vector<256x1xi32> to vector<256x1xf32>
    %50 = arith.mulf %49, %9 : vector<256x1xf32>
    %c0_29 = arith.constant 0 : index
    %c0_30 = arith.constant 0 : index
    %51 = vector.load %arg9[%c0_29, %c0_30] : memref<32x96xbf16, #tpu.memory_space<vmem>>, vector<32x96xbf16>
    %52 = arith.truncf %45 : vector<256x32xf32> to vector<256x32xbf16>
    %cst_31 = arith.constant dense<0.000000e+00> : vector<256x96xf32>
    %53 = tpu.matmul %52, %51, %cst_31 {dimension_numbers = #tpu.dot_dimension_numbers<[1], [0], [0], [1], [0, 0, 1, 1], [], []>} : vector<256x32xbf16>, vector<32x96xbf16>, vector<256x96xf32> -> vector<256x96xf32>
    %c5 = arith.constant 5 : index
    %c0_32 = arith.constant 0 : index
    %54 = vector.load %arg11[%c5, %c0_32] : memref<16x128xf32, #tpu.memory_space<vmem>>, vector<1x96xf32>
    %55 = vector.broadcast %54 : vector<1x96xf32> to vector<256x96xf32>
    %56 = arith.addf %53, %55 : vector<256x96xf32>
    %cst_33 = arith.constant 0.000000e+00 : f32
    %57 = vector.broadcast %cst_33 : f32 to vector<256x96xf32>
    %58 = arith.maximumf %56, %57 : vector<256x96xf32>
    %59 = math.absf %56 : vector<256x96xf32>
    %cst_34 = arith.constant 0.000000e+00 : f32
    %60 = vector.broadcast %cst_34 : f32 to vector<256x96xf32>
    %61 = arith.subf %60, %59 : vector<256x96xf32>
    %62 = math.exp %61 : vector<256x96xf32>
    %cst_35 = arith.constant 1.000000e+00 : f32
    %63 = vector.broadcast %cst_35 : f32 to vector<256x96xf32>
    %64 = arith.addf %63, %62 : vector<256x96xf32>
    %65 = math.log %64 : vector<256x96xf32>
    %66 = arith.addf %58, %65 : vector<256x96xf32>
    %cst_36 = arith.constant 0.693147182 : f32
    %67 = vector.broadcast %cst_36 : f32 to vector<256x96xf32>
    %68 = arith.subf %66, %67 : vector<256x96xf32>
    %c0_37 = arith.constant 0 : index
    %c0_38 = arith.constant 0 : index
    %69 = vector.load %arg10[%c0_37, %c0_38] : memref<96x96xbf16, #tpu.memory_space<vmem>>, vector<96x96xbf16>
    %70 = arith.truncf %68 : vector<256x96xf32> to vector<256x96xbf16>
    %cst_39 = arith.constant dense<0.000000e+00> : vector<256x96xf32>
    %71 = tpu.matmul %70, %69, %cst_39 {dimension_numbers = #tpu.dot_dimension_numbers<[1], [0], [0], [1], [0, 0, 1, 1], [], []>} : vector<256x96xbf16>, vector<96x96xbf16>, vector<256x96xf32> -> vector<256x96xf32>
    %c6 = arith.constant 6 : index
    %c0_40 = arith.constant 0 : index
    %72 = vector.load %arg11[%c6, %c0_40] : memref<16x128xf32, #tpu.memory_space<vmem>>, vector<1x96xf32>
    %73 = vector.broadcast %72 : vector<1x96xf32> to vector<256x96xf32>
    %74 = arith.addf %71, %73 : vector<256x96xf32>
    %75 = vector.broadcast %50 : vector<256x1xf32> to vector<256x96xf32>
    %76 = arith.mulf %74, %75 : vector<256x96xf32>
    %c0_41 = arith.constant 0 : index
    %c0_42 = arith.constant 0 : index
    %c0_43 = arith.constant 0 : index
    %77 = vector.load %arg3[%c0_41, %c0_42, %c0_43] : memref<1x256x16xbf16, #tpu.memory_space<vmem>>, vector<1x256x16xbf16>
    %78 = vector.shape_cast %77 : vector<1x256x16xbf16> to vector<256x16xbf16>
    %c0_44 = arith.constant 0 : index
    %c0_45 = arith.constant 0 : index
    %c0_46 = arith.constant 0 : index
    %79 = vector.load %arg5[%c0_44, %c0_45, %c0_46] : memref<1x16x256xbf16, #tpu.memory_space<vmem>>, vector<1x16x256xbf16>
    %80 = vector.shape_cast %79 : vector<1x16x256xbf16> to vector<16x256xbf16>
    %c1_47 = arith.constant 1 : index
    %c0_48 = arith.constant 0 : index
    %c0_49 = arith.constant 0 : index
    %81 = vector.load %arg6[%c1_47, %c0_48, %c0_49] : memref<14x32x32xbf16, #tpu.memory_space<vmem>>, vector<1x32x32xbf16>
    %82 = vector.shape_cast %81 : vector<1x32x32xbf16> to vector<32x32xbf16>
    %83 = arith.truncf %4 : vector<16x32xf32> to vector<16x32xbf16>
    %cst_50 = arith.constant dense<0.000000e+00> : vector<16x32xf32>
    %84 = tpu.matmul %83, %82, %cst_50 {dimension_numbers = #tpu.dot_dimension_numbers<[1], [0], [0], [1], [0, 0, 1, 1], [], []>} : vector<16x32xbf16>, vector<32x32xbf16>, vector<16x32xf32> -> vector<16x32xf32>
    %85 = arith.truncf %84 : vector<16x32xf32> to vector<16x32xbf16>
    %cst_51 = arith.constant dense<0.000000e+00> : vector<256x32xf32>
    %86 = tpu.matmul %78, %85, %cst_51 {dimension_numbers = #tpu.dot_dimension_numbers<[1], [0], [0], [1], [0, 0, 1, 1], [], []>} : vector<256x16xbf16>, vector<16x32xbf16>, vector<256x32xf32> -> vector<256x32xf32>
    %87 = vector.extract_strided_slice %76 {offsets = [0, 0], sizes = [256, 32], strides = [1, 1]} : vector<256x96xf32> to vector<256x32xf32>
    %88 = arith.mulf %86, %87 : vector<256x32xf32>
    %89 = arith.truncf %88 : vector<256x32xf32> to vector<256x32xbf16>
    %cst_52 = arith.constant dense<0.000000e+00> : vector<16x32xf32>
    %90 = tpu.matmul %80, %89, %cst_52 {dimension_numbers = #tpu.dot_dimension_numbers<[1], [0], [0], [1], [0, 0, 1, 1], [], []>} : vector<16x256xbf16>, vector<256x32xbf16>, vector<16x32xf32> -> vector<16x32xf32>
    %c4_53 = arith.constant 4 : index
    %c0_54 = arith.constant 0 : index
    %c0_55 = arith.constant 0 : index
    %91 = vector.load %arg6[%c4_53, %c0_54, %c0_55] : memref<14x32x32xbf16, #tpu.memory_space<vmem>>, vector<1x32x32xbf16>
    %92 = vector.shape_cast %91 : vector<1x32x32xbf16> to vector<32x32xbf16>
    %93 = arith.truncf %90 : vector<16x32xf32> to vector<16x32xbf16>
    %cst_56 = arith.constant dense<0.000000e+00> : vector<16x32xf32>
    %94 = tpu.matmul %93, %92, %cst_56 {dimension_numbers = #tpu.dot_dimension_numbers<[1], [0], [0], [1], [0, 0, 1, 1], [], []>} : vector<16x32xbf16>, vector<32x32xbf16>, vector<16x32xf32> -> vector<16x32xf32>
    %c7 = arith.constant 7 : index
    %c0_57 = arith.constant 0 : index
    %95 = vector.load %arg11[%c7, %c0_57] : memref<16x128xf32, #tpu.memory_space<vmem>>, vector<1x32xf32>
    %96 = vector.broadcast %95 : vector<1x32xf32> to vector<16x32xf32>
    %97 = arith.addf %94, %96 : vector<16x32xf32>
    %cst_58 = arith.constant 0.000000e+00 : f32
    %98 = vector.broadcast %cst_58 : f32 to vector<16x32xf32>
    %99 = arith.maximumf %97, %98 : vector<16x32xf32>
    %100 = math.absf %97 : vector<16x32xf32>
    %cst_59 = arith.constant 0.000000e+00 : f32
    %101 = vector.broadcast %cst_59 : f32 to vector<16x32xf32>
    %102 = arith.subf %101, %100 : vector<16x32xf32>
    %103 = math.exp %102 : vector<16x32xf32>
    %cst_60 = arith.constant 1.000000e+00 : f32
    %104 = vector.broadcast %cst_60 : f32 to vector<16x32xf32>
    %105 = arith.addf %104, %103 : vector<16x32xf32>
    %106 = math.log %105 : vector<16x32xf32>
    %107 = arith.addf %99, %106 : vector<16x32xf32>
    %cst_61 = arith.constant 0.693147182 : f32
    %108 = vector.broadcast %cst_61 : f32 to vector<16x32xf32>
    %109 = arith.subf %107, %108 : vector<16x32xf32>
    %c7_62 = arith.constant 7 : index
    %c0_63 = arith.constant 0 : index
    %c0_64 = arith.constant 0 : index
    %110 = vector.load %arg6[%c7_62, %c0_63, %c0_64] : memref<14x32x32xbf16, #tpu.memory_space<vmem>>, vector<1x32x32xbf16>
    %111 = vector.shape_cast %110 : vector<1x32x32xbf16> to vector<32x32xbf16>
    %112 = arith.truncf %109 : vector<16x32xf32> to vector<16x32xbf16>
    %cst_65 = arith.constant dense<0.000000e+00> : vector<16x32xf32>
    %113 = tpu.matmul %112, %111, %cst_65 {dimension_numbers = #tpu.dot_dimension_numbers<[1], [0], [0], [1], [0, 0, 1, 1], [], []>} : vector<16x32xbf16>, vector<32x32xbf16>, vector<16x32xf32> -> vector<16x32xf32>
    %c10 = arith.constant 10 : index
    %c0_66 = arith.constant 0 : index
    %114 = vector.load %arg11[%c10, %c0_66] : memref<16x128xf32, #tpu.memory_space<vmem>>, vector<1x32xf32>
    %115 = vector.broadcast %114 : vector<1x32xf32> to vector<16x32xf32>
    %116 = arith.addf %113, %115 : vector<16x32xf32>
    %117 = arith.addf %4, %116 : vector<16x32xf32>
    %c2_67 = arith.constant 2 : index
    %c0_68 = arith.constant 0 : index
    %c0_69 = arith.constant 0 : index
    %118 = vector.load %arg6[%c2_67, %c0_68, %c0_69] : memref<14x32x32xbf16, #tpu.memory_space<vmem>>, vector<1x32x32xbf16>
    %119 = vector.shape_cast %118 : vector<1x32x32xbf16> to vector<32x32xbf16>
    %120 = arith.truncf %117 : vector<16x32xf32> to vector<16x32xbf16>
    %cst_70 = arith.constant dense<0.000000e+00> : vector<16x32xf32>
    %121 = tpu.matmul %120, %119, %cst_70 {dimension_numbers = #tpu.dot_dimension_numbers<[1], [0], [0], [1], [0, 0, 1, 1], [], []>} : vector<16x32xbf16>, vector<32x32xbf16>, vector<16x32xf32> -> vector<16x32xf32>
    %122 = arith.truncf %121 : vector<16x32xf32> to vector<16x32xbf16>
    %cst_71 = arith.constant dense<0.000000e+00> : vector<256x32xf32>
    %123 = tpu.matmul %78, %122, %cst_71 {dimension_numbers = #tpu.dot_dimension_numbers<[1], [0], [0], [1], [0, 0, 1, 1], [], []>} : vector<256x16xbf16>, vector<16x32xbf16>, vector<256x32xf32> -> vector<256x32xf32>
    %124 = vector.extract_strided_slice %76 {offsets = [0, 32], sizes = [256, 32], strides = [1, 1]} : vector<256x96xf32> to vector<256x32xf32>
    %125 = arith.mulf %123, %124 : vector<256x32xf32>
    %126 = arith.truncf %125 : vector<256x32xf32> to vector<256x32xbf16>
    %cst_72 = arith.constant dense<0.000000e+00> : vector<16x32xf32>
    %127 = tpu.matmul %80, %126, %cst_72 {dimension_numbers = #tpu.dot_dimension_numbers<[1], [0], [0], [1], [0, 0, 1, 1], [], []>} : vector<16x256xbf16>, vector<256x32xbf16>, vector<16x32xf32> -> vector<16x32xf32>
    %c5_73 = arith.constant 5 : index
    %c0_74 = arith.constant 0 : index
    %c0_75 = arith.constant 0 : index
    %128 = vector.load %arg6[%c5_73, %c0_74, %c0_75] : memref<14x32x32xbf16, #tpu.memory_space<vmem>>, vector<1x32x32xbf16>
    %129 = vector.shape_cast %128 : vector<1x32x32xbf16> to vector<32x32xbf16>
    %130 = arith.truncf %127 : vector<16x32xf32> to vector<16x32xbf16>
    %cst_76 = arith.constant dense<0.000000e+00> : vector<16x32xf32>
    %131 = tpu.matmul %130, %129, %cst_76 {dimension_numbers = #tpu.dot_dimension_numbers<[1], [0], [0], [1], [0, 0, 1, 1], [], []>} : vector<16x32xbf16>, vector<32x32xbf16>, vector<16x32xf32> -> vector<16x32xf32>
    %c8 = arith.constant 8 : index
    %c0_77 = arith.constant 0 : index
    %132 = vector.load %arg11[%c8, %c0_77] : memref<16x128xf32, #tpu.memory_space<vmem>>, vector<1x32xf32>
    %133 = vector.broadcast %132 : vector<1x32xf32> to vector<16x32xf32>
    %134 = arith.addf %131, %133 : vector<16x32xf32>
    %cst_78 = arith.constant 0.000000e+00 : f32
    %135 = vector.broadcast %cst_78 : f32 to vector<16x32xf32>
    %136 = arith.maximumf %134, %135 : vector<16x32xf32>
    %137 = math.absf %134 : vector<16x32xf32>
    %cst_79 = arith.constant 0.000000e+00 : f32
    %138 = vector.broadcast %cst_79 : f32 to vector<16x32xf32>
    %139 = arith.subf %138, %137 : vector<16x32xf32>
    %140 = math.exp %139 : vector<16x32xf32>
    %cst_80 = arith.constant 1.000000e+00 : f32
    %141 = vector.broadcast %cst_80 : f32 to vector<16x32xf32>
    %142 = arith.addf %141, %140 : vector<16x32xf32>
    %143 = math.log %142 : vector<16x32xf32>
    %144 = arith.addf %136, %143 : vector<16x32xf32>
    %cst_81 = arith.constant 0.693147182 : f32
    %145 = vector.broadcast %cst_81 : f32 to vector<16x32xf32>
    %146 = arith.subf %144, %145 : vector<16x32xf32>
    %c8_82 = arith.constant 8 : index
    %c0_83 = arith.constant 0 : index
    %c0_84 = arith.constant 0 : index
    %147 = vector.load %arg6[%c8_82, %c0_83, %c0_84] : memref<14x32x32xbf16, #tpu.memory_space<vmem>>, vector<1x32x32xbf16>
    %148 = vector.shape_cast %147 : vector<1x32x32xbf16> to vector<32x32xbf16>
    %149 = arith.truncf %146 : vector<16x32xf32> to vector<16x32xbf16>
    %cst_85 = arith.constant dense<0.000000e+00> : vector<16x32xf32>
    %150 = tpu.matmul %149, %148, %cst_85 {dimension_numbers = #tpu.dot_dimension_numbers<[1], [0], [0], [1], [0, 0, 1, 1], [], []>} : vector<16x32xbf16>, vector<32x32xbf16>, vector<16x32xf32> -> vector<16x32xf32>
    %c11 = arith.constant 11 : index
    %c0_86 = arith.constant 0 : index
    %151 = vector.load %arg11[%c11, %c0_86] : memref<16x128xf32, #tpu.memory_space<vmem>>, vector<1x32xf32>
    %152 = vector.broadcast %151 : vector<1x32xf32> to vector<16x32xf32>
    %153 = arith.addf %150, %152 : vector<16x32xf32>
    %154 = arith.addf %117, %153 : vector<16x32xf32>
    %c3_87 = arith.constant 3 : index
    %c0_88 = arith.constant 0 : index
    %c0_89 = arith.constant 0 : index
    %155 = vector.load %arg6[%c3_87, %c0_88, %c0_89] : memref<14x32x32xbf16, #tpu.memory_space<vmem>>, vector<1x32x32xbf16>
    %156 = vector.shape_cast %155 : vector<1x32x32xbf16> to vector<32x32xbf16>
    %157 = arith.truncf %154 : vector<16x32xf32> to vector<16x32xbf16>
    %cst_90 = arith.constant dense<0.000000e+00> : vector<16x32xf32>
    %158 = tpu.matmul %157, %156, %cst_90 {dimension_numbers = #tpu.dot_dimension_numbers<[1], [0], [0], [1], [0, 0, 1, 1], [], []>} : vector<16x32xbf16>, vector<32x32xbf16>, vector<16x32xf32> -> vector<16x32xf32>
    %159 = arith.truncf %158 : vector<16x32xf32> to vector<16x32xbf16>
    %cst_91 = arith.constant dense<0.000000e+00> : vector<256x32xf32>
    %160 = tpu.matmul %78, %159, %cst_91 {dimension_numbers = #tpu.dot_dimension_numbers<[1], [0], [0], [1], [0, 0, 1, 1], [], []>} : vector<256x16xbf16>, vector<16x32xbf16>, vector<256x32xf32> -> vector<256x32xf32>
    %161 = vector.extract_strided_slice %76 {offsets = [0, 64], sizes = [256, 32], strides = [1, 1]} : vector<256x96xf32> to vector<256x32xf32>
    %162 = arith.mulf %160, %161 : vector<256x32xf32>
    %163 = arith.truncf %162 : vector<256x32xf32> to vector<256x32xbf16>
    %cst_92 = arith.constant dense<0.000000e+00> : vector<16x32xf32>
    %164 = tpu.matmul %80, %163, %cst_92 {dimension_numbers = #tpu.dot_dimension_numbers<[1], [0], [0], [1], [0, 0, 1, 1], [], []>} : vector<16x256xbf16>, vector<256x32xbf16>, vector<16x32xf32> -> vector<16x32xf32>
    %c6_93 = arith.constant 6 : index
    %c0_94 = arith.constant 0 : index
    %c0_95 = arith.constant 0 : index
    %165 = vector.load %arg6[%c6_93, %c0_94, %c0_95] : memref<14x32x32xbf16, #tpu.memory_space<vmem>>, vector<1x32x32xbf16>
    %166 = vector.shape_cast %165 : vector<1x32x32xbf16> to vector<32x32xbf16>
    %167 = arith.truncf %164 : vector<16x32xf32> to vector<16x32xbf16>
    %cst_96 = arith.constant dense<0.000000e+00> : vector<16x32xf32>
    %168 = tpu.matmul %167, %166, %cst_96 {dimension_numbers = #tpu.dot_dimension_numbers<[1], [0], [0], [1], [0, 0, 1, 1], [], []>} : vector<16x32xbf16>, vector<32x32xbf16>, vector<16x32xf32> -> vector<16x32xf32>
    %c9 = arith.constant 9 : index
    %c0_97 = arith.constant 0 : index
    %169 = vector.load %arg11[%c9, %c0_97] : memref<16x128xf32, #tpu.memory_space<vmem>>, vector<1x32xf32>
    %170 = vector.broadcast %169 : vector<1x32xf32> to vector<16x32xf32>
    %171 = arith.addf %168, %170 : vector<16x32xf32>
    %cst_98 = arith.constant 0.000000e+00 : f32
    %172 = vector.broadcast %cst_98 : f32 to vector<16x32xf32>
    %173 = arith.maximumf %171, %172 : vector<16x32xf32>
    %174 = math.absf %171 : vector<16x32xf32>
    %cst_99 = arith.constant 0.000000e+00 : f32
    %175 = vector.broadcast %cst_99 : f32 to vector<16x32xf32>
    %176 = arith.subf %175, %174 : vector<16x32xf32>
    %177 = math.exp %176 : vector<16x32xf32>
    %cst_100 = arith.constant 1.000000e+00 : f32
    %178 = vector.broadcast %cst_100 : f32 to vector<16x32xf32>
    %179 = arith.addf %178, %177 : vector<16x32xf32>
    %180 = math.log %179 : vector<16x32xf32>
    %181 = arith.addf %173, %180 : vector<16x32xf32>
    %cst_101 = arith.constant 0.693147182 : f32
    %182 = vector.broadcast %cst_101 : f32 to vector<16x32xf32>
    %183 = arith.subf %181, %182 : vector<16x32xf32>
    %c9_102 = arith.constant 9 : index
    %c0_103 = arith.constant 0 : index
    %c0_104 = arith.constant 0 : index
    %184 = vector.load %arg6[%c9_102, %c0_103, %c0_104] : memref<14x32x32xbf16, #tpu.memory_space<vmem>>, vector<1x32x32xbf16>
    %185 = vector.shape_cast %184 : vector<1x32x32xbf16> to vector<32x32xbf16>
    %186 = arith.truncf %183 : vector<16x32xf32> to vector<16x32xbf16>
    %cst_105 = arith.constant dense<0.000000e+00> : vector<16x32xf32>
    %187 = tpu.matmul %186, %185, %cst_105 {dimension_numbers = #tpu.dot_dimension_numbers<[1], [0], [0], [1], [0, 0, 1, 1], [], []>} : vector<16x32xbf16>, vector<32x32xbf16>, vector<16x32xf32> -> vector<16x32xf32>
    %c12 = arith.constant 12 : index
    %c0_106 = arith.constant 0 : index
    %188 = vector.load %arg11[%c12, %c0_106] : memref<16x128xf32, #tpu.memory_space<vmem>>, vector<1x32xf32>
    %189 = vector.broadcast %188 : vector<1x32xf32> to vector<16x32xf32>
    %190 = arith.addf %187, %189 : vector<16x32xf32>
    %191 = arith.addf %154, %190 : vector<16x32xf32>
    %192 = arith.truncf %191 : vector<16x32xf32> to vector<16x32xbf16>
    %cst_107 = arith.constant dense<0.000000e+00> : vector<256x32xf32>
    %193 = tpu.matmul %78, %192, %cst_107 {dimension_numbers = #tpu.dot_dimension_numbers<[1], [0], [0], [1], [0, 0, 1, 1], [], []>} : vector<256x16xbf16>, vector<16x32xbf16>, vector<256x32xf32> -> vector<256x32xf32>
    %c0_108 = arith.constant 0 : index
    %c0_109 = arith.constant 0 : index
    %c0_110 = arith.constant 0 : index
    %194 = vector.load %arg4[%c0_108, %c0_109, %c0_110] : memref<1x256x16xbf16, #tpu.memory_space<vmem>>, vector<1x256x16xbf16>
    %195 = vector.shape_cast %194 : vector<1x256x16xbf16> to vector<256x16xbf16>
    %cst_111 = arith.constant dense<0.000000e+00> : vector<256x32xf32>
    %196 = tpu.matmul %195, %192, %cst_111 {dimension_numbers = #tpu.dot_dimension_numbers<[1], [0], [0], [1], [0, 0, 1, 1], [], []>} : vector<256x16xbf16>, vector<16x32xbf16>, vector<256x32xf32> -> vector<256x32xf32>
    %197 = arith.mulf %193, %196 : vector<256x32xf32>
    %c10_112 = arith.constant 10 : index
    %c0_113 = arith.constant 0 : index
    %c0_114 = arith.constant 0 : index
    %198 = vector.load %arg6[%c10_112, %c0_113, %c0_114] : memref<14x32x32xbf16, #tpu.memory_space<vmem>>, vector<1x32x32xbf16>
    %199 = vector.shape_cast %198 : vector<1x32x32xbf16> to vector<32x32xbf16>
    %200 = arith.truncf %197 : vector<256x32xf32> to vector<256x32xbf16>
    %cst_115 = arith.constant dense<0.000000e+00> : vector<256x32xf32>
    %201 = tpu.matmul %200, %199, %cst_115 {dimension_numbers = #tpu.dot_dimension_numbers<[1], [0], [0], [1], [0, 0, 1, 1], [], []>} : vector<256x32xbf16>, vector<32x32xbf16>, vector<256x32xf32> -> vector<256x32xf32>
    %c11_116 = arith.constant 11 : index
    %c0_117 = arith.constant 0 : index
    %c0_118 = arith.constant 0 : index
    %202 = vector.load %arg6[%c11_116, %c0_117, %c0_118] : memref<14x32x32xbf16, #tpu.memory_space<vmem>>, vector<1x32x32xbf16>
    %203 = vector.shape_cast %202 : vector<1x32x32xbf16> to vector<32x32xbf16>
    %204 = arith.truncf %45 : vector<256x32xf32> to vector<256x32xbf16>
    %cst_119 = arith.constant dense<0.000000e+00> : vector<256x32xf32>
    %205 = tpu.matmul %204, %203, %cst_119 {dimension_numbers = #tpu.dot_dimension_numbers<[1], [0], [0], [1], [0, 0, 1, 1], [], []>} : vector<256x32xbf16>, vector<32x32xbf16>, vector<256x32xf32> -> vector<256x32xf32>
    %206 = arith.addf %201, %205 : vector<256x32xf32>
    %c13 = arith.constant 13 : index
    %c0_120 = arith.constant 0 : index
    %207 = vector.load %arg11[%c13, %c0_120] : memref<16x128xf32, #tpu.memory_space<vmem>>, vector<1x32xf32>
    %208 = vector.broadcast %207 : vector<1x32xf32> to vector<256x32xf32>
    %209 = arith.addf %206, %208 : vector<256x32xf32>
    %cst_121 = arith.constant 0.000000e+00 : f32
    %210 = vector.broadcast %cst_121 : f32 to vector<256x32xf32>
    %211 = arith.maximumf %209, %210 : vector<256x32xf32>
    %c12_122 = arith.constant 12 : index
    %c0_123 = arith.constant 0 : index
    %c0_124 = arith.constant 0 : index
    %212 = vector.load %arg6[%c12_122, %c0_123, %c0_124] : memref<14x32x32xbf16, #tpu.memory_space<vmem>>, vector<1x32x32xbf16>
    %213 = vector.shape_cast %212 : vector<1x32x32xbf16> to vector<32x32xbf16>
    %214 = arith.truncf %211 : vector<256x32xf32> to vector<256x32xbf16>
    %cst_125 = arith.constant dense<0.000000e+00> : vector<256x32xf32>
    %215 = tpu.matmul %214, %213, %cst_125 {dimension_numbers = #tpu.dot_dimension_numbers<[1], [0], [0], [1], [0, 0, 1, 1], [], []>} : vector<256x32xbf16>, vector<32x32xbf16>, vector<256x32xf32> -> vector<256x32xf32>
    %c14 = arith.constant 14 : index
    %c0_126 = arith.constant 0 : index
    %216 = vector.load %arg11[%c14, %c0_126] : memref<16x128xf32, #tpu.memory_space<vmem>>, vector<1x32xf32>
    %217 = vector.broadcast %216 : vector<1x32xf32> to vector<256x32xf32>
    %218 = arith.addf %215, %217 : vector<256x32xf32>
    %cst_127 = arith.constant 0.000000e+00 : f32
    %219 = vector.broadcast %cst_127 : f32 to vector<256x32xf32>
    %220 = arith.maximumf %218, %219 : vector<256x32xf32>
    %c13_128 = arith.constant 13 : index
    %c0_129 = arith.constant 0 : index
    %c0_130 = arith.constant 0 : index
    %221 = vector.load %arg6[%c13_128, %c0_129, %c0_130] : memref<14x32x32xbf16, #tpu.memory_space<vmem>>, vector<1x32x32xbf16>
    %222 = vector.shape_cast %221 : vector<1x32x32xbf16> to vector<32x32xbf16>
    %223 = arith.truncf %220 : vector<256x32xf32> to vector<256x32xbf16>
    %cst_131 = arith.constant dense<0.000000e+00> : vector<256x32xf32>
    %224 = tpu.matmul %223, %222, %cst_131 {dimension_numbers = #tpu.dot_dimension_numbers<[1], [0], [0], [1], [0, 0, 1, 1], [], []>} : vector<256x32xbf16>, vector<32x32xbf16>, vector<256x32xf32> -> vector<256x32xf32>
    %c15 = arith.constant 15 : index
    %c0_132 = arith.constant 0 : index
    %225 = vector.load %arg11[%c15, %c0_132] : memref<16x128xf32, #tpu.memory_space<vmem>>, vector<1x32xf32>
    %226 = vector.broadcast %225 : vector<1x32xf32> to vector<256x32xf32>
    %227 = arith.addf %224, %226 : vector<256x32xf32>
    %228 = tpu.iota {dimensions = array<i32: 1>} : vector<1x32xi32>
    %229 = vector.broadcast %9 : vector<256x1xf32> to vector<256x32xf32>
    %230 = arith.mulf %227, %229 : vector<256x32xf32>
    %c3_i32 = arith.constant 3 : i32
    %231 = vector.broadcast %c3_i32 : i32 to vector<1x32xi32>
    %232 = arith.cmpi eq, %228, %231 : vector<1x32xi32>
    %233 = arith.extui %232 : vector<1x32xi1> to vector<1x32xi32>
    %234 = arith.sitofp %233 : vector<1x32xi32> to vector<1x32xf32>
    %235 = vector.broadcast %13 : vector<256x1xf32> to vector<256x32xf32>
    %236 = vector.broadcast %234 : vector<1x32xf32> to vector<256x32xf32>
    %237 = arith.mulf %235, %236 : vector<256x32xf32>
    %238 = arith.addf %230, %237 : vector<256x32xf32>
    %c0_133 = arith.constant 0 : index
    %c0_134 = arith.constant 0 : index
    %c0_135 = arith.constant 0 : index
    %239 = vector.load %arg12[%c0_133, %c0_134, %c0_135] : memref<1x256x32xf32, #tpu.memory_space<vmem>>, vector<1x256x32xf32>
    %240 = vector.shape_cast %239 : vector<1x256x32xf32> to vector<256x32xf32>
    %241 = vector.shape_cast %238 : vector<256x32xf32> to vector<1x256x32xf32>
    tpu.vector_store %arg12[%c0_133, %c0_134, %c0_135], %241 {strides = array<i32>} : memref<1x256x32xf32, #tpu.memory_space<vmem>>, vector<1x256x32xf32>,
    return
  }
  func.func @transform_0(%arg0: i32) -> (i32, i32, i32) {
    %c0_i32 = arith.constant 0 : i32
    %c0_i32_0 = arith.constant 0 : i32
    %c0_i32_1 = arith.constant 0 : i32
    return %arg0, %c0_i32, %c0_i32_0 : i32, i32, i32
  }
  func.func @transform_1(%arg0: i32) -> (i32, i32, i32) {
    %c0_i32 = arith.constant 0 : i32
    %c0_i32_0 = arith.constant 0 : i32
    %c0_i32_1 = arith.constant 0 : i32
    return %arg0, %c0_i32, %c0_i32_0 : i32, i32, i32
  }
  func.func @transform_2(%arg0: i32) -> (i32, i32, i32) {
    %c0_i32 = arith.constant 0 : i32
    %c0_i32_0 = arith.constant 0 : i32
    %c0_i32_1 = arith.constant 0 : i32
    return %arg0, %c0_i32, %c0_i32_0 : i32, i32, i32
  }
  func.func @transform_3(%arg0: i32) -> (i32, i32, i32) {
    %c0_i32 = arith.constant 0 : i32
    %c0_i32_0 = arith.constant 0 : i32
    %c0_i32_1 = arith.constant 0 : i32
    return %arg0, %c0_i32, %c0_i32_0 : i32, i32, i32
  }
  func.func @transform_4(%arg0: i32) -> (i32, i32, i32) {
    %c0_i32 = arith.constant 0 : i32
    %c0_i32_0 = arith.constant 0 : i32
    %c0_i32_1 = arith.constant 0 : i32
    return %arg0, %c0_i32, %c0_i32_0 : i32, i32, i32
  }
  func.func @transform_5(%arg0: i32) -> (i32, i32, i32) {
    %c0_i32 = arith.constant 0 : i32
    %c0_i32_0 = arith.constant 0 : i32
    %c0_i32_1 = arith.constant 0 : i32
    %c0_i32_2 = arith.constant 0 : i32
    return %c0_i32, %c0_i32_0, %c0_i32_1 : i32, i32, i32
  }
  func.func @transform_6(%arg0: i32) -> (i32, i32, i32) {
    %c0_i32 = arith.constant 0 : i32
    %c0_i32_0 = arith.constant 0 : i32
    %c0_i32_1 = arith.constant 0 : i32
    %c0_i32_2 = arith.constant 0 : i32
    return %c0_i32, %c0_i32_0, %c0_i32_1 : i32, i32, i32
  }
  func.func @transform_7(%arg0: i32) -> (i32, i32) {
    %c0_i32 = arith.constant 0 : i32
    %c0_i32_0 = arith.constant 0 : i32
    %c0_i32_1 = arith.constant 0 : i32
    return %c0_i32, %c0_i32_0 : i32, i32
  }
  func.func @transform_8(%arg0: i32) -> (i32, i32) {
    %c0_i32 = arith.constant 0 : i32
    %c0_i32_0 = arith.constant 0 : i32
    %c0_i32_1 = arith.constant 0 : i32
    return %c0_i32, %c0_i32_0 : i32, i32
  }
  func.func @transform_9(%arg0: i32) -> (i32, i32) {
    %c0_i32 = arith.constant 0 : i32
    %c0_i32_0 = arith.constant 0 : i32
    %c0_i32_1 = arith.constant 0 : i32
    return %c0_i32, %c0_i32_0 : i32, i32
  }
  func.func @transform_10(%arg0: i32) -> (i32, i32) {
    %c0_i32 = arith.constant 0 : i32
    %c0_i32_0 = arith.constant 0 : i32
    %c0_i32_1 = arith.constant 0 : i32
    return %c0_i32, %c0_i32_0 : i32, i32
  }
  func.func @transform_11(%arg0: i32) -> (i32, i32, i32) {
    %c0_i32 = arith.constant 0 : i32
    %c0_i32_0 = arith.constant 0 : i32
    %c0_i32_1 = arith.constant 0 : i32
    return %arg0, %c0_i32, %c0_i32_0 : i32, i32, i32
  }
}

</mosaic_0001>

<bundles_post_ra>
// kernel: condense_encoder_eps_forward.1
= control target key start
LH: loop header
LB: loop body
LE: loop exit
PB: predicated region body
PF: predicated region fallthrough
CT: control target
= control target key end

     0   :  { %s6886_s17 = smov 0   ;;  %s9386_s0 = inlined_call_operand.vmem [shape: bf16[2,16,64], index: 0, kind: input, shape index: {}]   ;;  %s9387_s1 = inlined_call_operand.vmem [shape: f32[2,256,128], index: 1, kind: input, shape index: {}]   ;;  %s9388_s2 = inlined_call_operand.vmem [shape: bf16[2,256,16], index: 2, kind: input, shape index: {}]   ;;  %s9389_s3 = inlined_call_operand.vmem [shape: bf16[2,256,16], index: 3, kind: input, shape index: {}]   ;;  %s9390_s4 = inlined_call_operand.vmem [shape: bf16[2,16,256], index: 4, kind: input, shape index: {}]   ;;  %s9391_s5 = inlined_call_operand.vmem [shape: bf16[14,32,32], index: 5, kind: input, shape index: {}]   ;;  %s9392_s6 = inlined_call_operand.vmem [shape: bf16[2,64,32], index: 6, kind: input, shape index: {}]   ;;  %s9393_s7 = inlined_call_operand.vmem [shape: bf16[32,64], index: 7, kind: input, shape index: {}]   ;;  %s9394_s8 = inlined_call_operand.vmem [shape: bf16[32,96], index: 8, kind: input, shape index: {}]   ;;  %s9395_s9 = inlined_call_operand.vmem [shape: bf16[96,96], index: 9, kind: input, shape index: {}]   ;;  %s9396_s10 = inlined_call_operand.vmem [shape: f32[16,128], index: 10, kind: input, shape index: {}]   ;;  %s9397_s11 = inlined_call_operand.vmem [shape: f32[2,256,32], index: 11, kind: output, shape index: {}]  }
   0x1 LB: > { %s5681_s18 = sadd.s32 4294967295, %s6820_s17   ;;  %p5685_p0 = scmp.ge.s32.totalorder %s6820_s17, 1  ;;  %s6820_s17 = sphi %s6886_s17, %s21_s17  }
   0x2   : > { %p377_p1 = scmp.lt.s32.totalorder %s6820_s17, 3 }
   0x4   : > { %p378_p2 = pnand %p5685_p0, %p377_p1 }
   0x6   : > { %381 = sbr.rel (%p378_p2) target bundleno = 4971 (0x136b), region = 64 }
   0xb   : > { %p437_p3 = scmp.lt.s32.totalorder %s5681_s18, 1  ;;  %s6822_s23 = smov 64   ;;  %vm717_vm0 = vcmask 23552   ;;  %vm1332_vm9 = vcmask 261120  }
   0xd   : > { %s9663_s18 = smov (!%p437_p3, %s5681_s18), 1 }
   0xe   : > { %s6390_s19 = sshll.u32 %s9663_s18, 8  ;;  %s6389_s24 = sshll.u32 %s9663_s18, 3 }
   0xf   : > { %s6902_s22 = scalar_lea.vmem %s9387_s1, %s6390_s19  ;;  %s441_s29 = scalar_lea.vmem %s9386_s0, %s6389_s24 }
  0x10   : > { %v529_v0 = vld [vmem:[%s6902_s22 + $0x20] sm:$0xff]  ;;  %v527_v1 = vld [vmem:[%s6902_s22 + $0x10] sm:$0xff]  ;;  %v528_v6 = vld [vmem:[%s6902_s22 + $0x18] sm:$0xff]  ;;  %s6391_s13 = sshll.u32 %s9663_s18, 7  ;;  %s6825_s24 = smov 96  }
  0x11   : > { %v561_v2 = vmul.f32 %v529_v0, %v529_v0  ;;  %v559_v3 = vmul.f32 %v527_v1, %v527_v1  ;;  %v531_v4 = vld [vmem:[%s6902_s22 + $0x30] sm:$0xff]  ;;  %v530_v7 = vld [vmem:[%s6902_s22 + $0x28] sm:$0xff]  ;;  %v532_v8 = vld [vmem:[%s6902_s22 + $0x38] sm:$0xff]  ;;  %v560_v9 = vmul.f32 %v528_v6, %v528_v6  ;;  %s8016_s16 = scalar_lea.vmem %s9388_s2, %s6391_s13  ;;  %s6393_s27 = sshll.u32 %s9663_s18, 4 }
  0x12   : > { %v563_v5 = vmul.f32 %v531_v4, %v531_v4  ;;  %v562_v10 = vmul.f32 %v530_v7, %v530_v7  ;;  %v564_v11 = vmul.f32 %v532_v8, %v532_v8  ;;  %v535_v12 = vld [vmem:[%s6902_s22 + $0x50] sm:$0xff]  ;;  %v536_v13 = vld [vmem:[%s6902_s22 + $0x58] sm:$0xff]  ;;  %v533_v14 = vld [vmem:[%s6902_s22 + $0x40] sm:$0xff]  ;;  %s8519_s30 = scalar_lea.vmem %s9390_s4, %s6393_s27  ;;  %s9203_s27 = scalar_lea.vmem %s9397_s11, %s6390_s19 }
  0x13   : > { %629 = vrot.lane.b32.xlu1 %v561_v2, %s6822_s23  ;;  %625 = vrot.lane.b32.xlu0 %v559_v3, %s6822_s23  ;;  %v567_v15 = vmul.f32 %v535_v12, %v535_v12  ;;  %v568_v16 = vmul.f32 %v536_v13, %v536_v13  ;;  %v565_v17 = vmul.f32 %v533_v14, %v533_v14  ;;  %v537_v18 = vld [vmem:[%s6902_s22 + $0x60] sm:$0xff]  ;;  %v538_v19 = vld [vmem:[%s6902_s22 + $0x68] sm:$0xff] }
  0x14   : > { %633 = vrot.lane.b32.xlu2 %v563_v5, %s6822_s23  ;;  %v534_v20 = vld [vmem:[%s6902_s22 + $0x48] sm:$0xff]  ;;  %v569_v21 = vmul.f32 %v537_v18, %v537_v18  ;;  %v570_v22 = vmul.f32 %v538_v19, %v538_v19  ;;  %v525_v24 = vld [vmem:[%s6902_s22] sm:$0xff]  ;;  %v539_v28 = vld [vmem:[%s6902_s22 + $0x70] sm:$0xff] }
  0x15   : > { %v566_v23 = vmul.f32 %v534_v20, %v534_v20  ;;  %v526_v25 = vld [vmem:[%s6902_s22 + $0x8] sm:$0xff]  ;;  %v557_v26 = vmul.f32 %v525_v24, %v525_v24  ;;  %v571_v29 = vmul.f32 %v539_v28, %v539_v28  ;;  %v540_v30 = vld [vmem:[%s6902_s22 + $0x78] sm:$0xff]  ;;  %v541_v55 = vld [vmem:[%s6902_s22 + $0x80] sm:$0xff] }
  0x16   : > { %v558_v27 = vmul.f32 %v526_v25, %v526_v25  ;;  %v572_v31 = vmul.f32 %v540_v30, %v540_v30  ;;  %v573_v56 = vmul.f32 %v541_v55, %v541_v55  ;;  %v544_v58 = vld [vmem:[%s6902_s22 + $0x98] sm:$0xff]  ;;  %v542_v61 = vld [vmem:[%s6902_s22 + $0x88] sm:$0xff]  ;;  %v543_v0 = vld [vmem:[%s6902_s22 + $0x90] sm:$0xff] }
  0x17   : > { %v576_v60 = vmul.f32 %v544_v58, %v544_v58  ;;  %v574_v62 = vmul.f32 %v542_v61, %v542_v61  ;;  %v575_v2 = vmul.f32 %v543_v0, %v543_v0  ;;  %v545_v6 = vld [vmem:[%s6902_s22 + $0xa0] sm:$0xff] }
  0x18   : > { %v577_v7 = vmul.f32 %v545_v6, %v545_v6 }
  0x1b   : > { %627 = vrot.lane.b32.xlu0 %v560_v9, %s6822_s23  ;;  %631 = vrot.lane.b32.xlu1 %v562_v10, %s6822_s23  ;;  %v6965_v10 = vld [vmem:[%s9393_s7 + $0x8] sm:$0xff] }
  0x1c   : > { %635 = vrot.lane.b32.xlu2 %v564_v11, %s6822_s23  ;;  %v546_v11 = vld [vmem:[%s6902_s22 + $0xa8] sm:$0xff]  ;;  %6476 = vmatpush.bf16.msra.mxu1 %v6965_v10 }
  0x1d   : > { %v578_v14 = vmul.f32 %v546_v11, %v546_v11  ;;  %6477 = vmatpush.bf16.msra.mxu3 %v6965_v10 }
  0x23   : > { %641 = vrot.lane.b32.xlu1 %v567_v15, %s6822_s23  ;;  %643 = vrot.lane.b32.xlu0 %v568_v16, %s6822_s23  ;;  %v6977_v15 = vld [vmem:[%s9393_s7] sm:$0xff] }
  0x24   : > { %637 = vrot.lane.b32.xlu2 %v565_v17, %s6822_s23  ;;  %6478 = vmatpush.bf16.msra.mxu1 %v6977_v15  ;;  %v547_v17 = vld [vmem:[%s6902_s22 + $0xb0] sm:$0xff] }
  0x25   : > { %6479 = vmatpush.bf16.msra.mxu3 %v6977_v15 }
  0x2b   : > { %645 = vrot.lane.b32.xlu1 %v569_v21, %s6822_s23  ;;  %647 = vrot.lane.b32.xlu0 %v570_v22, %s6822_s23  ;;  %v579_v22 = vmul.f32 %v547_v17, %v547_v17 }
  0x2c   : > { %639 = vrot.lane.b32.xlu2 %v566_v23, %s6822_s23 }
  0x33   : > { %621 = vrot.lane.b32.xlu0 %v557_v26, %s6822_s23 }
  0x34   : > { %623 = vrot.lane.b32.xlu2 %v558_v27, %s6822_s23 }
  0x3b   : > { %649 = vrot.lane.b32.xlu0 %v571_v29, %s6822_s23 }
  0x43   : > { %651 = vrot.lane.b32.xlu0 %v572_v31, %s6822_s23 }
  0x6e   : > { %v634_v32 = vpop.permute.xlu2 %633 }
  0x6f   : > { %v736_v42 = vsel %vm717_vm0, %v634_v32, 0.0 }
  0x76   : > { %v636_v33 = vpop.permute.xlu2 %635 }
  0x77   : > { %v739_v47 = vsel %vm717_vm0, %v636_v33, 0.0 }
  0x7e   : > { %v638_v38 = vpop.permute.xlu2 %637 }
  0x7f   : > { %v742_v51 = vsel %vm717_vm0, %v638_v38, 0.0 }
  0x85   : > { %v630_v34 = vpop.permute.xlu1 %629  ;;  %v626_v35 = vpop.permute.xlu0 %625 }
  0x86   : > { %v730_v36 = vsel %vm717_vm0, %v630_v34, 0.0  ;;  %v724_v37 = vsel %vm717_vm0, %v626_v35, 0.0  ;;  %v640_v44 = vpop.permute.xlu2 %639 }
  0x87   : > { %731 = vadd.xlane.f32.xlu2 %v730_v36  ;;  %725 = vadd.xlane.f32.xlu0 %v724_v37  ;;  %v745_v45 = vsel %vm717_vm0, %v640_v44, 0.0  ;;  %v6997_v44 = vld [vmem:[%s9396_s10] ss:$0 sm:$0xff] }
  0x8d   : > { %v628_v39 = vpop.permute.xlu0 %627  ;;  %v632_v40 = vpop.permute.xlu1 %631 }
  0x8e   : > { %v727_v41 = vsel %vm717_vm0, %v628_v39, 0.0  ;;  %v733_v43 = vsel %vm717_vm0, %v632_v40, 0.0  ;;  %v624_v8 = vpop.permute.xlu2 %623 }
  0x8f   : > { %728 = vadd.xlane.f32.xlu1 %v727_v41  ;;  %737 = vadd.xlane.f32.xlu2 %v736_v42  ;;  %v721_v9 = vsel %vm717_vm0, %v624_v8, 0.0 }
  0x90   : > { %734 = vadd.xlane.f32.xlu0 %v733_v43 }
  0x95   : > { %v642_v46 = vpop.permute.xlu1 %641  ;;  %v644_v50 = vpop.permute.xlu0 %643 }
  0x96   : > { %v748_v48 = vsel %vm717_vm0, %v642_v46, 0.0  ;;  %v751_v53 = vsel %vm717_vm0, %v644_v50, 0.0 }
  0x97   : > { %746 = vadd.xlane.f32.xlu1 %v745_v45  ;;  %740 = vadd.xlane.f32.xlu2 %v739_v47 }
  0x98   : > { %749 = vadd.xlane.f32.xlu0 %v748_v48 }
  0x9d   : > { %v646_v49 = vpop.permute.xlu1 %645  ;;  %v648_v54 = vpop.permute.xlu0 %647 }
  0x9e   : > { %v754_v52 = vsel %vm717_vm0, %v646_v49, 0.0  ;;  %v757_v57 = vsel %vm717_vm0, %v648_v54, 0.0 }
  0x9f   : > { %743 = vadd.xlane.f32.xlu2 %v742_v51 }
  0xa0   : > { %755 = vadd.xlane.f32.xlu0 %v754_v52 }
  0xa5   : > { %v622_v59 = vpop.permute.xlu0 %621 }
  0xa6   : > { %v718_v63 = vsel %vm717_vm0, %v622_v59, 0.0 }
  0xa7   : > { %752 = vadd.xlane.f32.xlu2 %v751_v53 }
  0xad   : > { %v650_v1 = vpop.permute.xlu0 %649 }
  0xae   : > { %v760_v3 = vsel %vm717_vm0, %v650_v1, 0.0 }
  0xaf   : > { %758 = vadd.xlane.f32.xlu2 %v757_v57 }
  0xb0   : > { %653 = vrot.lane.b32.xlu1 %v573_v56, %s6822_s23  ;;  %v7009_v56 = vld [vmem:[%s9396_s10 + $0x1] ss:$0 sm:$0xff] }
  0xb4   : > { %659 = vrot.lane.b32.xlu0 %v576_v60, %s6822_s23 }
  0xb5   : > { %v652_v4 = vpop.permute.xlu0 %651 }
  0xb6   : > { %v763_v5 = vsel %vm717_vm0, %v652_v4, 0.0 }
  0xb7   : > { %719 = vadd.xlane.f32.xlu2 %v718_v63 }
  0xb8   : > { %655 = vrot.lane.b32.xlu1 %v574_v62, %s6822_s23 }
  0xbc   : > { %661 = vrot.lane.b32.xlu0 %v577_v7, %s6822_s23 }
  0xbf   : > { %761 = vadd.xlane.f32.xlu2 %v760_v3 }
  0xc0   : > { %657 = vrot.lane.b32.xlu1 %v575_v2, %s6822_s23 }
  0xc7   : > { %764 = vadd.xlane.f32.xlu2 %v763_v5 }
  0xdf   : > { %663 = vrot.lane.b32.xlu2 %v578_v14, %s6822_s23 }
  0xe7   : > { %665 = vrot.lane.b32.xlu2 %v579_v22, %s6822_s23 }
  0xea   : > { %722 = vadd.xlane.f32.xlu1 %v721_v9 }
  0xfa   : > { %v6968_v12 = vpop.xlane.xlu2 %731  ;;  %v726_v13 = vpop.xlane.xlu0 %725 }
  0xfb   : > { %6515 = vrsqrt.f32 %v6968_v12  ;;  %vm845_vm1 = vcmp.eq.f32.partialorder %v726_v13, inf  ;;  %v848_v42 = vand.u32 2147483648, %v726_v13  ;;  %vm847_vm2 = vcmp.eq.f32.partialorder %v726_v13, 0.0 }
  0xfc   : > { %6517 = vrsqrt.f32 %v726_v13  ;;  %vm869_vm5 = vcmp.eq.f32.partialorder %v6968_v12, inf  ;;  %vm871_vm7 = vcmp.eq.f32.partialorder %v6968_v12, 0.0  ;;  %v872_v4 = vand.u32 2147483648, %v6968_v12 }
 0x101   : > { %v6516_v16 = vpop.eup %6515 }
 0x102   : > { %v6518_v18 = vpop.eup %6517  ;;  %v863_v19 = vmul.f32 %v6516_v16, %v6968_v12  ;;  %v729_v20 = vpop.xlane.xlu1 %728 }
 0x103   : > { %v6983_v21 = vpop.xlane.xlu2 %737  ;;  %v839_v23 = vmul.f32 %v6518_v18, %v726_v13  ;;  %6519 = vrsqrt.f32 %v729_v20  ;;  %v6985_v24 = vpop.xlane.xlu0 %734  ;;  %vm857_vm3 = vcmp.eq.f32.partialorder %v729_v20, inf  ;;  %vm859_vm4 = vcmp.eq.f32.partialorder %v729_v20, 0.0 }
 0x104   : > { %6521 = vrsqrt.f32 %v6985_v24  ;;  %v864_v26 = vmul.f32 %v6516_v16, %v863_v19  ;;  %v860_v58 = vand.u32 2147483648, %v729_v20  ;;  %vm881_vm6 = vcmp.eq.f32.partialorder %v6985_v24, inf }
 0x105   : > { %v840_v25 = vmul.f32 %v6518_v18, %v839_v23  ;;  %vm883_vm8 = vcmp.eq.f32.partialorder %v6985_v24, 0.0  ;;  %v884_v5 = vand.u32 2147483648, %v6985_v24  ;;  %vm893_vm11 = vcmp.eq.f32.partialorder %v6983_v21, inf }
 0x106   : > { %v865_v32 = vmul.f32 0.5, %v864_v26  ;;  %vm895_vm13 = vcmp.eq.f32.partialorder %v6983_v21, 0.0 }
 0x107   : > { %v841_v27 = vmul.f32 0.5, %v840_v25 }
 0x108   : > { %v866_v40 = vsub.f32 1.5, %v865_v32 }
 0x109   : > { %v6520_v28 = vpop.eup %6519  ;;  %v842_v29 = vsub.f32 1.5, %v841_v27 }
 0x10a   : > { %v851_v30 = vmul.f32 %v6520_v28, %v729_v20  ;;  %v6522_v33 = vpop.eup %6521  ;;  %v867_v50 = vmul.f32 %v6516_v16, %v866_v40  ;;  %v7027_v7 = vpop.xlane.xlu1 %746 }
 0x10b   : > { %v6989_v31 = vpop.xlane.xlu2 %740  ;;  %v843_v34 = vmul.f32 %v6518_v18, %v842_v29  ;;  %v875_v36 = vmul.f32 %v6522_v33, %v6985_v24  ;;  %v7001_v49 = vpop.xlane.xlu0 %749  ;;  %vm929_vm15 = vcmp.eq.f32.partialorder %v7027_v7, inf }
 0x10c   : > { %v852_v35 = vmul.f32 %v6520_v28, %v851_v30  ;;  %6523 = vrsqrt.f32 %v6989_v31  ;;  %v868_v61 = vmul.f32 %v867_v50, %v6968_v12  ;;  %vm905_vm10 = vcmp.eq.f32.partialorder %v6989_v31, inf }
 0x10d   : > { %6525 = vrsqrt.f32 %v6983_v21  ;;  %v844_v37 = vmul.f32 %v843_v34, %v726_v13  ;;  %v876_v38 = vmul.f32 %v6522_v33, %v875_v36  ;;  %vm907_vm12 = vcmp.eq.f32.partialorder %v6989_v31, 0.0 }
 0x10e   : > { %v853_v39 = vmul.f32 0.5, %v852_v35  ;;  %v870_v9 = vsel %vm869_vm5, %v6968_v12, %v868_v61  ;;  %vm943_vm5 = vcmp.eq.f32.partialorder %v7001_v49, 0.0 }
 0x10f   : > { %v846_v41 = vsel %vm845_vm1, %v726_v13, %v844_v37  ;;  %v877_v45 = vmul.f32 0.5, %v876_v38  ;;  %v7038_v18 = vsel %vm871_vm7, %v872_v4, %v870_v9  ;;  %vm507_vm7 = vcmask 523264  }
 0x110   : > { %v854_v43 = vsub.f32 1.5, %v853_v39  ;;  %v6999_v46 = vsel %vm847_vm2, %v848_v42, %v846_v41  ;;  %9484 = vst [vmem:[#allocation4_spill] sm:$0xff] %v7038_v18  ;;  %v1204_v23 = vmul.f32 %v6997_v44, %v7038_v18  ;;  %vm931_vm2 = vcmp.eq.f32.partialorder %v7027_v7, 0.0 }
 0x111   : > { %9482 = vst [vmem:[#allocation2_spill] sm:$0xff] %v6999_v46  ;;  %v878_v51 = vsub.f32 1.5, %v877_v45  ;;  %v1202_v55 = vmul.f32 %v6997_v44, %v6999_v46 }
 0x112   : > { %v6524_v47 = vpop.eup %6523  ;;  %v855_v48 = vmul.f32 %v6520_v28, %v854_v43 }
 0x113   : > { %v6526_v52 = vpop.eup %6525  ;;  %v899_v53 = vmul.f32 %v6524_v47, %v6989_v31  ;;  %v879_v57 = vmul.f32 %v6522_v33, %v878_v51  ;;  %v7018_v1 = vpop.xlane.xlu2 %743  ;;  %v1236_v3 = vadd.f32 %v7009_v56, %v1202_v55  ;;  %v1238_v33 = vadd.f32 %v7009_v56, %v1204_v23 }
 0x114   : > { %v856_v54 = vmul.f32 %v855_v48, %v729_v20  ;;  %v887_v59 = vmul.f32 %v6526_v52, %v6983_v21  ;;  %6527 = vrsqrt.f32 %v7018_v1  ;;  %v7033_v16 = vpop.xlane.xlu0 %755  ;;  %v908_v55 = vand.u32 2147483648, %v6989_v31 }
 0x115   : > { %v880_v62 = vmul.f32 %v879_v57, %v6985_v24  ;;  %v900_v0 = vmul.f32 %v6524_v47, %v899_v53  ;;  %v1268_v13 = vmax.f32 %v1236_v3, 0.0  ;;  %6529 = vrsqrt.f32 %v7027_v7 }
 0x116   : > { %v858_v60 = vsel %vm857_vm3, %v729_v20, %v856_v54  ;;  %v888_v6 = vmul.f32 %v6526_v52, %v887_v59  ;;  %v1270_v40 = vmax.f32 %v1238_v33, 0.0  ;;  %6531 = vrsqrt.f32 %v7001_v49 }
 0x117   : > { %v7014_v63 = vsel %vm859_vm4, %v860_v58, %v858_v60  ;;  %v882_v11 = vsel %vm881_vm6, %v6985_v24, %v880_v62  ;;  %v901_v17 = vmul.f32 0.5, %v900_v0  ;;  %v896_v60 = vand.u32 2147483648, %v6983_v21 }
 0x118   : > { %9483 = vst [vmem:[#allocation3_spill] sm:$0xff] %v7014_v63  ;;  %v1203_v2 = vmul.f32 %v6997_v44, %v7014_v63  ;;  %v7040_v19 = vsel %vm883_vm8, %v884_v5, %v882_v11  ;;  %v889_v22 = vmul.f32 0.5, %v888_v6  ;;  %vm917_vm14 = vcmp.eq.f32.partialorder %v7018_v1, inf }
 0x119   : > { %9485 = vst [vmem:[#allocation5_spill] sm:$0xff] %v7040_v19  ;;  %v1205_v24 = vmul.f32 %v6997_v44, %v7040_v19  ;;  %v902_v25 = vsub.f32 1.5, %v901_v17  ;;  %vm919_vm1 = vcmp.eq.f32.partialorder %v7018_v1, 0.0  ;;  %vm941_vm3 = vcmp.eq.f32.partialorder %v7001_v49, inf }
 0x11a   : > { %v1237_v8 = vadd.f32 %v7009_v56, %v1203_v2  ;;  %v6528_v26 = vpop.eup %6527  ;;  %v890_v12 = vsub.f32 1.5, %v889_v22  ;;  %v6399_v2 = vld [vmem:[%s9392_s6 + $0x18] sm:$0xff]  ;;  %vm965_vm8 = vcmp.eq.f32.partialorder %v7033_v16, inf }
 0x11b   : > { %v7047_v28 = vpop.xlane.xlu2 %752  ;;  %v6530_v29 = vpop.eup %6529  ;;  %v911_v32 = vmul.f32 %v6528_v26, %v7018_v1  ;;  %v1239_v34 = vadd.f32 %v7009_v56, %v1205_v24  ;;  %v903_v35 = vmul.f32 %v6524_v47, %v902_v25  ;;  %515 = vmatpush.bf16.msra.mxu0 %v6399_v2  ;;  %v549_v25 = vld [vmem:[%s6902_s22 + $0xc0] sm:$0xff] }
 0x11c   : > { %v1269_v14 = vmax.f32 %v1237_v8, 0.0  ;;  %v923_v36 = vmul.f32 %v6530_v29, %v7027_v7  ;;  %v891_v38 = vmul.f32 %v6526_v52, %v890_v12  ;;  %6533 = vrsqrt.f32 %v7047_v28  ;;  %v6532_v59 = vpop.eup %6531 }
 0x11d   : > { %v912_v39 = vmul.f32 %v6528_v26, %v911_v32  ;;  %v1271_v41 = vmax.f32 %v1239_v34, 0.0  ;;  %v904_v42 = vmul.f32 %v903_v35, %v6989_v31  ;;  %6535 = vrsqrt.f32 %v7033_v16 }
 0x11e   : > { %v1303_v20 = vpack.c.bf16 %v1269_v14, %v1268_v13  ;;  %v924_v45 = vmul.f32 %v6530_v29, %v923_v36  ;;  %v892_v50 = vmul.f32 %v891_v38, %v6983_v21  ;;  %v581_v33 = vmul.f32 %v549_v25, %v549_v25 }
 0x11f   : > { %v1304_v51 = vpack.c.bf16 %v1271_v41, %v1270_v40  ;;  %v906_v53 = vsel %vm905_vm10, %v6989_v31, %v904_v42  ;;  %v913_v54 = vmul.f32 0.5, %v912_v39  ;;  %v935_v31 = vmul.f32 %v6532_v59, %v7001_v49 }
 0x120   : > { %5728 = vmatmul.msk.bf16.vlgmr.msra.gmra.mxu1 %vm1332_vm9, %v1303_v20  ;;  %v894_v57 = vsel %vm893_vm11, %v6983_v21, %v892_v50  ;;  %v925_v58 = vmul.f32 0.5, %v924_v45  ;;  %v7069_v61 = vsel %vm907_vm12, %v908_v55, %v906_v53  ;;  %v920_v34 = vand.u32 2147483648, %v7018_v1 }
 0x121   : > { %9486 = vst [vmem:[#allocation6_spill] sm:$0xff] %v7069_v61  ;;  %v914_v0 = vsub.f32 1.5, %v913_v54  ;;  %v7076_v3 = vsel %vm895_vm13, %v896_v60, %v894_v57  ;;  %v1207_v4 = vmul.f32 %v6997_v44, %v7069_v61  ;;  %v936_v14 = vmul.f32 %v6532_v59, %v935_v31 }
 0x122   : > { %v654_v27 = vpop.permute.xlu1 %653  ;;  %v6534_v62 = vpop.eup %6533  ;;  %9487 = vst [vmem:[#allocation7_spill] sm:$0xff] %v7076_v3  ;;  %v926_v6 = vsub.f32 1.5, %v925_v58  ;;  %v1206_v9 = vmul.f32 %v6997_v44, %v7076_v3  ;;  %v550_v58 = vld [vmem:[%s6902_s22 + $0xc8] sm:$0xff]  ;;  %vm953_vm4 = vcmp.eq.f32.partialorder %v7047_v28, inf  ;;  %vm955_vm6 = vcmp.eq.f32.partialorder %v7047_v28, 0.0 }
 0x123   : > { %v766_v30 = vsel %vm717_vm0, %v654_v27, 0.0  ;;  %v7061_v52 = vpop.xlane.xlu2 %758  ;;  %v947_v8 = vmul.f32 %v6534_v62, %v7047_v28  ;;  %v915_v11 = vmul.f32 %v6528_v26, %v914_v0  ;;  %v1241_v17 = vadd.f32 %v7009_v56, %v1207_v4  ;;  %v7098_v35 = vpop.eup %6535 }
 0x124   : > { %767 = vadd.xlane.f32.xlu0 %v766_v30  ;;  %v927_v20 = vmul.f32 %v6530_v29, %v926_v6  ;;  %v1240_v23 = vadd.f32 %v7009_v56, %v1206_v9  ;;  %6537 = vrsqrt.f32 %v7061_v52  ;;  %v937_v12 = vmul.f32 0.5, %v936_v14 }
 0x125   : > { %v948_v22 = vmul.f32 %v6534_v62, %v947_v8  ;;  %v916_v24 = vmul.f32 %v915_v11, %v7018_v1  ;;  %v1273_v27 = vmax.f32 %v1241_v17, 0.0  ;;  %v582_v2 = vmul.f32 %v550_v58, %v550_v58 }
 0x126   : > { %v660_v37 = vpop.permute.xlu0 %659  ;;  %v928_v26 = vmul.f32 %v927_v20, %v7027_v7  ;;  %v1272_v32 = vmax.f32 %v1240_v23, 0.0  ;;  %v938_v40 = vsub.f32 1.5, %v937_v12  ;;  %v944_v6 = vand.u32 2147483648, %v7001_v49  ;;  %v6396_v23 = vld [vmem:[%s9392_s6] sm:$0xff] }
 0x127   : > { %v775_v43 = vsel %vm717_vm0, %v660_v37, 0.0  ;;  %v949_v30 = vmul.f32 0.5, %v948_v22  ;;  %v918_v29 = vsel %vm917_vm14, %v7018_v1, %v916_v24  ;;  %v548_v37 = vld [vmem:[%s6902_s22 + $0xb8] sm:$0xff]  ;;  %v959_v1 = vmul.f32 %v7098_v35, %v7033_v16 }
 0x128   : > { %v1305_v36 = vpack.c.bf16 %v1273_v27, %v1272_v32  ;;  %v930_v38 = vsel %vm929_vm15, %v7027_v7, %v928_v26  ;;  %v7107_v42 = vsel %vm919_vm1, %v920_v34, %v918_v29  ;;  %v939_v53 = vmul.f32 %v6532_v59, %v938_v40  ;;  %v6395_v29 = vld [vmem:[%s441_s29] sm:$0xff] }
 0x129   : > { %9488 = vst [vmem:[#allocation8_spill] sm:$0xff] %v7107_v42  ;;  %v950_v45 = vsub.f32 1.5, %v949_v30  ;;  %v960_v57 = vmul.f32 %v7098_v35, %v959_v1  ;;  %v956_v11 = vand.u32 2147483648, %v7047_v28  ;;  %vm977_vm10 = vcmp.eq.f32.partialorder %v7061_v52, inf }
 0x12a   : > { %v656_v48 = vpop.permute.xlu1 %655  ;;  %v7105_v41 = vpop.eup %6537  ;;  %vm967_vm11 = vcmp.eq.f32.partialorder %v7033_v16, 0.0  ;;  %vm979_vm12 = vcmp.eq.f32.partialorder %v7061_v52, 0.0 }
 0x12b   : > { %v769_v47 = vsel %vm717_vm0, %v656_v48, 0.0  ;;  %v7085_v13 = vpop.xlane.xlu2 %719  ;;  %v580_v48 = vmul.f32 %v548_v37, %v548_v37  ;;  %v951_v54 = vmul.f32 %v6534_v62, %v950_v45  ;;  %v940_v62 = vmul.f32 %v939_v53, %v7001_v49 }
 0x12c   : > { %770 = vadd.xlane.f32.xlu1 %v769_v47  ;;  %776 = vadd.xlane.f32.xlu0 %v775_v43  ;;  %v932_v43 = vand.u32 2147483648, %v7027_v7  ;;  %v971_v47 = vmul.f32 %v7105_v41, %v7061_v52  ;;  %v6398_v7 = vld [vmem:[%s9392_s6 + $0x10] sm:$0xff]  ;;  %6539 = vrsqrt.f32 %v7085_v13  ;;  %v961_v8 = vmul.f32 0.5, %v960_v57 }
 0x12d   : > { %516 = vmatpush.bf16.msra.mxu0 %v6398_v7  ;;  %v952_v0 = vmul.f32 %v951_v54, %v7047_v28  ;;  %v942_v9 = vsel %vm941_vm3, %v7001_v49, %v940_v62  ;;  %v980_v7 = vand.u32 2147483648, %v7061_v52  ;;  %vm821_vm13 = vcmp.eq.f32.partialorder %v7085_v13, inf }
 0x12e   : > { %v7115_v50 = vsel %vm931_vm2, %v932_v43, %v930_v38  ;;  %v972_v60 = vmul.f32 %v7105_v41, %v971_v47  ;;  %v7160_v24 = vsel %vm943_vm5, %v944_v6, %v942_v9  ;;  %v962_v25 = vsub.f32 1.5, %v961_v8 }
 0x12f   : > { %9489 = vst [vmem:[#allocation9_spill] sm:$0xff] %v7115_v50  ;;  %v1209_v55 = vmul.f32 %v6997_v44, %v7115_v50  ;;  %v954_v20 = vsel %vm953_vm4, %v7047_v28, %v952_v0  ;;  %v1210_v49 = vmul.f32 %v6997_v44, %v7160_v24  ;;  %vm823_vm14 = vcmp.eq.f32.partialorder %v7085_v13, 0.0 }
 0x130   : > { %5729 = vmatmul.msk.bf16.gmra.mxu1 %vm1332_vm9, %v1304_v51  ;;  %v1208_v51 = vmul.f32 %v6997_v44, %v7107_v42  ;;  %v973_v14 = vmul.f32 0.5, %v972_v60  ;;  %9490 = vst [vmem:[#allocation10_spill] sm:$0xff] %v7160_v24  ;;  %v7163_v12 = vsel %vm955_vm6, %v956_v11, %v954_v20 }
 0x131   : > { %v1243_v31 = vadd.f32 %v7009_v56, %v1209_v55  ;;  %9491 = vst [vmem:[#allocation11_spill] sm:$0xff] %v7163_v12  ;;  %v1211_v34 = vmul.f32 %v6997_v44, %v7163_v12  ;;  %v1244_v45 = vadd.f32 %v7009_v56, %v1210_v49 }
 0x132   : > { %v658_v5 = vpop.permute.xlu1 %657  ;;  %v1242_v59 = vadd.f32 %v7009_v56, %v1208_v51  ;;  %v6540_v17 = vpop.eup %6539  ;;  %v974_v30 = vsub.f32 1.5, %v973_v14 }
 0x133   : > { %v772_v21 = vsel %vm717_vm0, %v658_v5, 0.0  ;;  %v7103_v39 = vpop.xlane.xlu2 %761  ;;  %v6397_v5 = vld [vmem:[%s9392_s6 + $0x8] sm:$0xff]  ;;  %v1275_v22 = vmax.f32 %v1243_v31, 0.0  ;;  %v815_v28 = vmul.f32 %v6540_v17, %v7085_v13  ;;  %v1245_v1 = vadd.f32 %v7009_v56, %v1211_v34 }
 0x134   : > { %773 = vadd.xlane.f32.xlu2 %v772_v21  ;;  %6541 = vrsqrt.f32 %v7103_v39  ;;  %v1274_v21 = vmax.f32 %v1242_v59, 0.0  ;;  %517 = vmatpush.bf16.msra.mxu0 %v6397_v5  ;;  %vm989_vm15 = vcmp.eq.f32.partialorder %v7103_v39, inf  ;;  %vm991_vm2 = vcmp.eq.f32.partialorder %v7103_v39, 0.0 }
 0x135   : > { %v816_v38 = vmul.f32 %v6540_v17, %v815_v28  ;;  %v1277_v54 = vmax.f32 %v1245_v1, 0.0 }
 0x136   : > { %v1306_v26 = vpack.c.bf16 %v1275_v22, %v1274_v21  ;;  %v7201_v21 = vld [vmem:[%s6902_s22 + $0xd8] sm:$0xff] }
 0x137   : > { %v584_v9 = vmul.f32 %v7201_v21, %v7201_v21 }
 0x138   : > { %518 = vmatpush.bf16.msra.mxu0 %v6396_v23 }
 0x13a   : > { %v6542_v27 = vpop.eup %6541 }
 0x13b   : > { %v7138_v4 = vpop.xlane.xlu2 %764  ;;  %5718 = vmatmul.msk.bf16.vlgmr.msra.gmra.mxu0 %vm507_vm7, %v6395_v29  ;;  %v983_v40 = vmul.f32 %v6542_v27, %v7103_v39 }
 0x13c   : > { %6543 = vrsqrt.f32 %v7138_v4  ;;  %1387 = vmatpush.bf16.msrb.mxu0 %v6965_v10  ;;  %v975_v10 = vmul.f32 %v7105_v41, %v974_v30  ;;  %v1276_v41 = vmax.f32 %v1244_v45, 0.0  ;;  %vm1001_vm1 = vcmp.eq.f32.partialorder %v7138_v4, inf }
 0x13d   : > { %v984_v47 = vmul.f32 %v6542_v27, %v983_v40  ;;  %vm1003_vm3 = vcmp.eq.f32.partialorder %v7138_v4, 0.0 }
 0x13e   : > { %v976_v53 = vmul.f32 %v975_v10, %v7061_v52  ;;  %v1307_v0 = vpack.c.bf16 %v1277_v54, %v1276_v41  ;;  %v662_v41 = vpop.permute.xlu0 %661 }
 0x13f   : > { %v985_v60 = vmul.f32 0.5, %v984_v47 }
 0x140   : > { %5730 = vmatmul.msk.bf16.gmra.mxu1 %vm1332_vm9, %v1305_v36  ;;  %669 = vrot.lane.b32.xlu0 %v581_v33, %s6822_s23  ;;  %v551_v33 = vld [vmem:[%s6902_s22 + $0xd0] sm:$0xff]  ;;  %v963_v36 = vmul.f32 %v7098_v35, %v962_v25  ;;  %v817_v35 = vmul.f32 0.5, %v816_v38  ;;  %v978_v58 = vsel %vm977_vm10, %v7061_v52, %v976_v53  ;;  %v992_v38 = vand.u32 2147483648, %v7103_v39 }
 0x141   : > { %v583_v37 = vmul.f32 %v551_v33, %v551_v33  ;;  %1388 = vmatpush.bf16.msrb.mxu0 %v6977_v15  ;;  %v968_v15 = vand.u32 2147483648, %v7033_v16  ;;  %v7193_v31 = vsel %vm979_vm12, %v980_v7, %v978_v58  ;;  %v986_v6 = vsub.f32 1.5, %v985_v60 }
 0x142   : > { %v6544_v32 = vpop.eup %6543  ;;  %v818_v57 = vsub.f32 1.5, %v817_v35  ;;  %9493 = vst [vmem:[#allocation13_spill] sm:$0xff] %v7193_v31  ;;  %v1213_v52 = vmul.f32 %v6997_v44, %v7193_v31 }
 0x143   : > { %v995_v43 = vmul.f32 %v6544_v32, %v7138_v4  ;;  %v987_v14 = vmul.f32 %v6542_v27, %v986_v6  ;;  %v664_v28 = vpop.permute.xlu2 %663 }
 0x144   : > { %v819_v5 = vmul.f32 %v6540_v17, %v818_v57  ;;  %v1247_v23 = vadd.f32 %v7009_v56, %v1213_v52  ;;  %v781_v49 = vsel %vm717_vm0, %v664_v28, 0.0  ;;  %v778_v57 = vsel %vm717_vm0, %v662_v41, 0.0 }
 0x145   : > { %667 = vrot.lane.b32.xlu1 %v580_v48, %s6822_s23  ;;  %v964_v48 = vmul.f32 %v963_v36, %v7033_v16  ;;  %v996_v51 = vmul.f32 %v6544_v32, %v995_v43  ;;  %v988_v27 = vmul.f32 %v987_v14, %v7103_v39 }
 0x146   : > { %v820_v11 = vmul.f32 %v819_v5, %v7085_v13  ;;  %v1279_v34 = vmax.f32 %v1247_v23, 0.0 }
 0x147   : > { %v966_v55 = vsel %vm965_vm8, %v7033_v16, %v964_v48  ;;  %v997_v59 = vmul.f32 0.5, %v996_v51  ;;  %v990_v40 = vsel %vm989_vm15, %v7103_v39, %v988_v27 }
 0x148   : > { %v822_v30 = vsel %vm821_vm13, %v7085_v13, %v820_v11  ;;  %v7228_v48 = vsel %vm991_vm2, %v992_v38, %v990_v40  ;;  %v7250_v11 = vld [vmem:[%s6902_s22 + $0xe8] sm:$0xff] }
 0x149   : > { %v998_v16 = vsub.f32 1.5, %v997_v59  ;;  %9495 = vst [vmem:[#allocation15_spill] sm:$0xff] %v7228_v48  ;;  %v1214_v39 = vmul.f32 %v6997_v44, %v7228_v48  ;;  %v586_v14 = vmul.f32 %v7250_v11, %v7250_v11 }
 0x14b   : > { %v999_v17 = vmul.f32 %v6544_v32, %v998_v16  ;;  %v1248_v58 = vadd.f32 %v7009_v56, %v1214_v39 }
 0x14c   : > { %673 = vrot.lane.b32.xlu2 %v583_v37, %s6822_s23 }
 0x14d   : > { %671 = vrot.lane.b32.xlu1 %v582_v2, %s6822_s23  ;;  %v7191_v2 = vsel %vm967_vm11, %v968_v15, %v966_v55  ;;  %v1000_v32 = vmul.f32 %v999_v17, %v7138_v4  ;;  %v1280_v5 = vmax.f32 %v1248_v58, 0.0  ;;  %v7256_v17 = vld [vmem:[%s6902_s22 + $0xe0] sm:$0xff] }
 0x14e   : > { %9492 = vst [vmem:[#allocation12_spill] sm:$0xff] %v7191_v2  ;;  %v1212_v8 = vmul.f32 %v6997_v44, %v7191_v2 }
 0x14f   : > { %v1002_v43 = vsel %vm1001_vm1, %v7138_v4, %v1000_v32 }
 0x150   : > { %5731 = vmatmul.msk.bf16.gmra.mxu1 %vm1332_vm9, %v1306_v26  ;;  %v1246_v22 = vadd.f32 %v7009_v56, %v1212_v8  ;;  %v824_v26 = vand.u32 2147483648, %v7085_v13  ;;  %v1004_v13 = vand.u32 2147483648, %v7138_v4  ;;  %v666_v8 = vpop.permute.xlu2 %665 }
 0x151   : > { %v784_v52 = vsel %vm717_vm0, %v666_v8, 0.0 }
 0x152   : > { %v1278_v33 = vmax.f32 %v1246_v22, 0.0  ;;  %v7218_v37 = vsel %vm823_vm14, %v824_v26, %v822_v30  ;;  %v7230_v35 = vsel %vm1003_vm3, %v1004_v13, %v1002_v43 }
 0x153   : > { %9494 = vst [vmem:[#allocation14_spill] sm:$0xff] %v7218_v37  ;;  %v1200_v1 = vmul.f32 %v6997_v44, %v7218_v37  ;;  %v1215_v4 = vmul.f32 %v6997_v44, %v7230_v35 }
 0x154   : > { %675 = vrot.lane.b32.xlu2 %v584_v9, %s6822_s23  ;;  %9496 = vst [vmem:[#allocation16_spill] sm:$0xff] %v7230_v35  ;;  %v1308_v47 = vpack.c.bf16 %v1279_v34, %v1278_v33 }
 0x155   : > { %v1234_v54 = vadd.f32 %v7009_v56, %v1200_v1  ;;  %v1249_v60 = vadd.f32 %v7009_v56, %v1215_v4 }
 0x157   : > { %v1281_v6 = vmax.f32 %v1249_v60, 0.0 }
 0x159   : > { %v1309_v9 = vpack.c.bf16 %v1281_v6, %v1280_v5 }
 0x15d   : > { %v723_v62 = vpop.xlane.xlu1 %722 }
 0x15e   : > { %6545 = vrsqrt.f32 %v723_v62  ;;  %vm833_vm4 = vcmp.eq.f32.partialorder %v723_v62, inf  ;;  %v836_v51 = vand.u32 2147483648, %v723_v62  ;;  %vm835_vm5 = vcmp.eq.f32.partialorder %v723_v62, 0.0 }
 0x160   : > { %5732 = vmatmul.msk.bf16.gmra.mxu1 %vm1332_vm9, %v1307_v0  ;;  %v1266_v0 = vmax.f32 %v1234_v54, 0.0 }
 0x164   : > { %v6546_v20 = vpop.eup %6545 }
 0x165   : > { %v827_v25 = vmul.f32 %v6546_v20, %v723_v62 }
 0x167   : > { %v828_v29 = vmul.f32 %v6546_v20, %v827_v25 }
 0x169   : > { %v829_v36 = vmul.f32 0.5, %v828_v29 }
 0x16a   : > { %782 = vadd.xlane.f32.xlu0 %v781_v49 }
 0x16b   : > { %v830_v10 = vsub.f32 1.5, %v829_v36 }
 0x16d   : > { %v831_v45 = vmul.f32 %v6546_v20, %v830_v10  ;;  %v585_v20 = vmul.f32 %v7256_v17, %v7256_v17 }
 0x16f   : > { %v832_v53 = vmul.f32 %v831_v45, %v723_v62 }
 0x170   : > { %5733 = vmatmul.msk.bf16.gmra.mxu1 %vm1332_vm9, %v1308_v47 }
 0x171   : > { %v834_v15 = vsel %vm833_vm4, %v723_v62, %v832_v53 }
 0x172   : > { %v7238_v55 = vsel %vm835_vm5, %v836_v51, %v834_v15 }
 0x173   : > { %9497 = vst [vmem:[#allocation17_spill] sm:$0xff] %v7238_v55  ;;  %v1201_v7 = vmul.f32 %v6997_v44, %v7238_v55 }
 0x175   : > { %v1235_v59 = vadd.f32 %v7009_v56, %v1201_v7 }
 0x177   : > { %779 = vadd.xlane.f32.xlu1 %v778_v57  ;;  %v1267_v62 = vmax.f32 %v1235_v59, 0.0 }
 0x179   : > { %v1302_v16 = vpack.c.bf16 %v1267_v62, %v1266_v0 }
 0x17b   : > { %5727 = vmatmul.msk.bf16.vlgmr.msrb.gmra.mxu0 %vm1332_vm9, %v1302_v16 }
 0x17e   : > { %679 = vrot.lane.b32.xlu0 %v586_v14, %s6822_s23 }
 0x17f   : > { %785 = vadd.xlane.f32.xlu1 %v784_v52 }
 0x180   : > { %5734 = vmatmul.msk.bf16.gmra.mxu1 %vm1332_vm9, %v1309_v9 }
 0x197   : > { %v768_v22 = vpop.xlane.xlu0 %767 }
 0x198   : > { %6547 = vrsqrt.f32 %v768_v22  ;;  %677 = vrot.lane.b32.xlu1 %v585_v20, %s6822_s23  ;;  %vm1013_vm6 = vcmp.eq.f32.partialorder %v768_v22, inf  ;;  %v1016_v10 = vand.u32 2147483648, %v768_v22  ;;  %vm1015_vm8 = vcmp.eq.f32.partialorder %v768_v22, 0.0 }
 0x19e   : > { %v6548_v23 = vpop.eup %6547 }
 0x19f   : > { %v1007_v25 = vmul.f32 %v6548_v23, %v768_v22  ;;  %v771_v26 = vpop.xlane.xlu1 %770  ;;  %v7261_v28 = vpop.xlane.xlu0 %776 }
 0x1a0   : > { %6549 = vrsqrt.f32 %v771_v26  ;;  %vm1025_vm10 = vcmp.eq.f32.partialorder %v771_v26, inf  ;;  %v1028_v7 = vand.u32 2147483648, %v771_v26  ;;  %vm1027_vm11 = vcmp.eq.f32.partialorder %v771_v26, 0.0 }
 0x1a1   : > { %v1008_v30 = vmul.f32 %v6548_v23, %v1007_v25  ;;  %6551 = vrsqrt.f32 %v7261_v28  ;;  %vm1049_vm14 = vcmp.eq.f32.partialorder %v7261_v28, inf  ;;  %vm1051_vm15 = vcmp.eq.f32.partialorder %v7261_v28, 0.0 }
 0x1a3   : > { %v1009_v27 = vmul.f32 0.5, %v1008_v30 }
 0x1a5   : > { %v1010_v32 = vsub.f32 1.5, %v1009_v27 }
 0x1a6   : > { %v6550_v29 = vpop.eup %6549 }
 0x1a7   : > { %v6552_v49 = vpop.eup %6551  ;;  %v1019_v33 = vmul.f32 %v6550_v29, %v771_v26  ;;  %v1011_v34 = vmul.f32 %v6548_v23, %v1010_v32  ;;  %v774_v36 = vpop.xlane.xlu2 %773 }
 0x1a8   : > { %6553 = vrsqrt.f32 %v774_v36  ;;  %v1043_v40 = vmul.f32 %v6552_v49, %v7261_v28  ;;  %vm1037_vm12 = vcmp.eq.f32.partialorder %v774_v36, inf  ;;  %vm1039_vm13 = vcmp.eq.f32.partialorder %v774_v36, 0.0 }
 0x1a9   : > { %v1020_v38 = vmul.f32 %v6550_v29, %v1019_v33  ;;  %v1012_v13 = vmul.f32 %v1011_v34, %v768_v22 }
 0x1aa   : > { %v1044_v53 = vmul.f32 %v6552_v49, %v1043_v40 }
 0x1ab   : > { %v1014_v43 = vsel %vm1013_vm6, %v768_v22, %v1012_v13  ;;  %v1021_v45 = vmul.f32 0.5, %v1020_v38  ;;  %v1052_v38 = vand.u32 2147483648, %v7261_v28 }
 0x1ac   : > { %v7265_v1 = vsel %vm1015_vm8, %v1016_v10, %v1014_v43  ;;  %v1045_v58 = vmul.f32 0.5, %v1044_v53 }
 0x1ad   : > { %9498 = vst [vmem:[#allocation18_spill] sm:$0xff] %v7265_v1  ;;  %v1022_v47 = vsub.f32 1.5, %v1021_v45  ;;  %v1216_v41 = vmul.f32 %v6997_v44, %v7265_v1 }
 0x1ae   : > { %v6554_v51 = vpop.eup %6553  ;;  %v1046_v6 = vsub.f32 1.5, %v1045_v58  ;;  %v6404_v58 = vld [vmem:[%s9392_s6 + $0x30] sm:$0xff] }
 0x1af   : > { %v1023_v39 = vmul.f32 %v6550_v29, %v1022_v47  ;;  %v1031_v4 = vmul.f32 %v6554_v51, %v774_v36  ;;  %v1250_v5 = vadd.f32 %v7009_v56, %v1216_v41  ;;  %v674_v52 = vpop.permute.xlu2 %673  ;;  %v1040_v29 = vand.u32 2147483648, %v774_v36 }
 0x1b0   : > { %v1047_v9 = vmul.f32 %v6552_v49, %v1046_v6  ;;  %v796_v32 = vsel %vm717_vm0, %v674_v52, 0.0 }
 0x1b1   : > { %v1024_v15 = vmul.f32 %v1023_v39, %v771_v26  ;;  %v1032_v54 = vmul.f32 %v6554_v51, %v1031_v4  ;;  %v1282_v25 = vmax.f32 %v1250_v5, 0.0  ;;  %v7296_v4 = vld [vmem:[%s6902_s22 + $0xf0] sm:$0xff] }
 0x1b2   : > { %v670_v57 = vpop.permute.xlu0 %669  ;;  %v587_v41 = vmul.f32 %v7296_v4, %v7296_v4 }
 0x1b3   : > { %v1026_v60 = vsel %vm1025_vm10, %v771_v26, %v1024_v15  ;;  %v1033_v59 = vmul.f32 0.5, %v1032_v54  ;;  %v790_v0 = vsel %vm717_vm0, %v670_v57, 0.0  ;;  %v1048_v26 = vmul.f32 %v1047_v9, %v7261_v28  ;;  %v7303_v15 = vld [vmem:[%s6902_s22 + $0xf8] sm:$0xff] }
 0x1b4   : > { %v7270_v62 = vsel %vm1027_vm11, %v1028_v7, %v1026_v60  ;;  %791 = vadd.xlane.f32.xlu0 %v790_v0  ;;  %v588_v54 = vmul.f32 %v7303_v15, %v7303_v15  ;;  %v6405_v7 = vld [vmem:[%s9392_s6 + $0x38] sm:$0xff]  ;;  %v7314_v60 = vpop.f32.mrf.mxu1 }
 0x1b5   : > { %9499 = vst [vmem:[#allocation19_spill] sm:$0xff] %v7270_v62  ;;  %v1217_v16 = vmul.f32 %v6997_v44, %v7270_v62  ;;  %v1034_v8 = vsub.f32 1.5, %v1033_v59  ;;  %v1050_v34 = vsel %vm1049_vm14, %v7261_v28, %v1048_v26  ;;  %1605 = vmatpush.bf16.msra.mxu2 %v6405_v7  ;;  %6480 = vmatpush.bf16.msrb.mxu3 %v6405_v7  ;;  %v6403_v59 = vld [vmem:[%s9392_s6 + $0x28] sm:$0xff] }
 0x1b6   : > { %v7286_v40 = vsel %vm1051_vm15, %v1052_v38, %v1050_v34 }
 0x1b7   : > { %v668_v14 = vpop.permute.xlu1 %667  ;;  %v1251_v20 = vadd.f32 %v7009_v56, %v1217_v16  ;;  %v1035_v22 = vmul.f32 %v6554_v51, %v1034_v8  ;;  %9501 = vst [vmem:[#allocation21_spill] sm:$0xff] %v7286_v40  ;;  %v1219_v10 = vmul.f32 %v6997_v44, %v7286_v40  ;;  %v6402_v16 = vld [vmem:[%s9392_s6 + $0x20] sm:$0xff] }
 0x1b8   : > { %v787_v23 = vsel %vm717_vm0, %v668_v14, 0.0  ;;  %v7319_v5 = vpop.f32.mrf.mxu0 }
 0x1b9   : > { %788 = vadd.xlane.f32.xlu2 %v787_v23  ;;  %v1283_v30 = vmax.f32 %v1251_v20, 0.0  ;;  %v1036_v27 = vmul.f32 %v1035_v22, %v774_v36  ;;  %v1253_v28 = vadd.f32 %v7009_v56, %v1219_v10  ;;  %1606 = vmatpush.bf16.msra.mxu2 %v6404_v58  ;;  %9502 = vst [vmem:[#allocation22_spill] sm:$0xff] %v7319_v5 }
 0x1ba   : > { %6481 = vmatpush.bf16.msrb.mxu3 %v6404_v58 }
 0x1bb   : > { %v1310_v49 = vpack.c.bf16 %v1283_v30, %v1282_v25  ;;  %v1038_v33 = vsel %vm1037_vm12, %v774_v36, %v1036_v27  ;;  %v1285_v53 = vmax.f32 %v1253_v28, 0.0 }
 0x1bc   : > { %797 = vadd.xlane.f32.xlu0 %v796_v32  ;;  %v7283_v13 = vsel %vm1039_vm13, %v1040_v29, %v1038_v33  ;;  %v1397_v14 = vpop.f32.mrf.mxu1 }
 0x1bd   : > { %9500 = vst [vmem:[#allocation20_spill] sm:$0xff] %v7283_v13  ;;  %5735 = vmatmul.msk.bf16.gmra.mxu1 %vm1332_vm9, %v1310_v49  ;;  %v1218_v43 = vmul.f32 %v6997_v44, %v7283_v13  ;;  %1607 = vmatpush.bf16.msra.mxu2 %v6403_v59 }
 0x1be   : > { %6482 = vmatpush.bf16.msrb.mxu3 %v6403_v59 }
 0x1bf   : > { %v672_v36 = vpop.permute.xlu1 %671  ;;  %v1252_v47 = vadd.f32 %v7009_v56, %v1218_v43 }
 0x1c0   : > { %v793_v45 = vsel %vm717_vm0, %v672_v36, 0.0  ;;  %v7324_v23 = vpop.f32.mrf.mxu0 }
 0x1c1   : > { %v1284_v51 = vmax.f32 %v1252_v47, 0.0  ;;  %1608 = vmatpush.bf16.msra.mxu2 %v6402_v16  ;;  %9503 = vst [vmem:[#allocation23_spill] sm:$0xff] %v7324_v23 }
 0x1c2   : > { %794 = vadd.xlane.f32.xlu1 %v793_v45  ;;  %6483 = vmatpush.bf16.msrb.mxu3 %v6402_v16 }
 0x1c3   : > { %v1311_v39 = vpack.c.bf16 %v1285_v53, %v1284_v51  ;;  %v7334_v53 = vld [vmem:[%s9396_s10 + $0x2] ss:$0 sm:$0xff] }
 0x1c4   : > { %v1400_v49 = vpop.f32.mrf.mxu1 }
 0x1cc   : > { %v1402_v7 = vpop.f32.mrf.mxu1 }
 0x1cd   : > { %5736 = vmatmul.msk.bf16.gmra.mxu1 %vm1332_vm9, %v1311_v39  ;;  %v676_v39 = vpop.permute.xlu2 %675 }
 0x1d1   : > { %681 = vrot.lane.b32.xlu2 %v587_v41, %s6822_s23 }
 0x1d9   : > { %683 = vrot.lane.b32.xlu2 %v588_v54, %s6822_s23 }
 0x1dd   : > { %v783_v57 = vpop.xlane.xlu0 %782 }
 0x1de   : > { %6555 = vrsqrt.f32 %v783_v57  ;;  %vm1073_vm1 = vcmp.eq.f32.partialorder %v783_v57, inf  ;;  %v1076_v27 = vand.u32 2147483648, %v783_v57  ;;  %vm1075_vm2 = vcmp.eq.f32.partialorder %v783_v57, 0.0 }
 0x1e4   : > { %v6556_v0 = vpop.eup %6555 }
 0x1e5   : > { %v1067_v6 = vmul.f32 %v6556_v0, %v783_v57 }
 0x1e7   : > { %v1068_v8 = vmul.f32 %v6556_v0, %v1067_v6 }
 0x1e9   : > { %v1069_v52 = vmul.f32 0.5, %v1068_v8  ;;  %v799_v8 = vsel %vm717_vm0, %v676_v39, 0.0 }
 0x1ea   : > { %v780_v9 = vpop.xlane.xlu1 %779 }
 0x1eb   : > { %6557 = vrsqrt.f32 %v780_v9  ;;  %v1070_v20 = vsub.f32 1.5, %v1069_v52  ;;  %vm1061_vm3 = vcmp.eq.f32.partialorder %v780_v9, inf  ;;  %v1064_v28 = vand.u32 2147483648, %v780_v9 }
 0x1ec   : > { %vm1063_vm4 = vcmp.eq.f32.partialorder %v780_v9, 0.0 }
 0x1ed   : > { %v1071_v22 = vmul.f32 %v6556_v0, %v1070_v20  ;;  %v7348_v20 = vld [vmem:[%s6902_s22] sm:$0xff] }
 0x1ee   : > { %9506 = vst [vmem:[#allocation26_spill] sm:$0xff] %v7348_v20 }
 0x1ef   : > { %v1072_v25 = vmul.f32 %v1071_v22, %v783_v57 }
 0x1f0   : > { %v680_v34 = vpop.permute.xlu0 %679 }
 0x1f1   : > { %v6558_v26 = vpop.eup %6557  ;;  %v1074_v29 = vsel %vm1073_vm1, %v783_v57, %v1072_v25  ;;  %v805_v43 = vsel %vm717_vm0, %v680_v34, 0.0  ;;  %v7352_v25 = vld [vmem:[%s6902_s22 + $0x8] sm:$0xff]  ;;  %v1396_v34 = vadd.f32 %v7334_v53, %v7314_v60  ;;  %v1403_v60 = vadd.f32 %v7334_v53, %v1402_v7 }
 0x1f2   : > { %v1055_v30 = vmul.f32 %v6558_v26, %v780_v9  ;;  %v7326_v38 = vsel %vm1075_vm2, %v1076_v27, %v1074_v29  ;;  %806 = vadd.xlane.f32.xlu0 %v805_v43  ;;  %v7340_v0 = vpop.xlane.xlu1 %785  ;;  %v7362_v43 = vld [vmem:[%s6902_s22 + $0x18] sm:$0xff] }
 0x1f3   : > { %9504 = vst [vmem:[#allocation24_spill] sm:$0xff] %v7326_v38  ;;  %v1221_v47 = vmul.f32 %v6997_v44, %v7326_v38  ;;  %6559 = vrsqrt.f32 %v7340_v0  ;;  %vm1085_vm5 = vcmp.eq.f32.partialorder %v7340_v0, inf  ;;  %vm1087_vm6 = vcmp.eq.f32.partialorder %v7340_v0, 0.0 }
 0x1f4   : > { %v1056_v32 = vmul.f32 %v6558_v26, %v1055_v30  ;;  %9507 = vst [vmem:[#allocation27_spill] sm:$0xff] %v7362_v43 }
 0x1f5   : > { %v1255_v54 = vadd.f32 %v7009_v56, %v1221_v47 }
 0x1f6   : > { %v1057_v33 = vmul.f32 0.5, %v1056_v32  ;;  %v1405_v32 = vpop.f32.mrf.mxu1 }
 0x1f8   : > { %v1390_v10 = vpop.f32.mrf.mxu0  ;;  %v1058_v36 = vsub.f32 1.5, %v1057_v33  ;;  %v1398_v33 = vadd.f32 %v7334_v53, %v1397_v14  ;;  %v1401_v14 = vadd.f32 %v7334_v53, %v1400_v49 }
 0x1f9   : > { %v1391_v57 = vadd.f32 %v7334_v53, %v1390_v10 }
 0x1fa   : > { %v1059_v45 = vmul.f32 %v6558_v26, %v1058_v36  ;;  %v1473_v10 = vmul.f32 %v7362_v43, %v1398_v33  ;;  %v7366_v36 = vld [vmem:[%s6902_s22 + $0x10] sm:$0xff] }
 0x1fb   : > { %v1470_v22 = vmul.f32 %v7348_v20, %v1391_v57 }
 0x1fc   : > { %v1060_v51 = vmul.f32 %v1059_v45, %v780_v9  ;;  %v1472_v45 = vmul.f32 %v7366_v36, %v1396_v34 }
 0x1fe   : > { %v1062_v41 = vsel %vm1061_vm3, %v780_v9, %v1060_v51  ;;  %v1287_v9 = vmax.f32 %v1255_v54, 0.0  ;;  %v1407_v47 = vpop.f32.mrf.mxu1  ;;  %v6560_v51 = vpop.eup %6559  ;;  %v7375_v54 = vld [vmem:[%s6902_s22 + $0x20] sm:$0xff] }
 0x1ff   : > { %v7338_v58 = vsel %vm1063_vm4, %v1064_v28, %v1062_v41  ;;  %v1512_v28 = vpack.c.bf16 %v1473_v10, %v1472_v45  ;;  %v1079_v41 = vmul.f32 %v6560_v51, %v7340_v0  ;;  %9508 = vst [vmem:[#allocation28_spill] sm:$0xff] %v7375_v54  ;;  %v1474_v57 = vmul.f32 %v7375_v54, %v1401_v14 }
 0x200   : > { %9505 = vst [vmem:[#allocation25_spill] sm:$0xff] %v7338_v58  ;;  %v1392_v59 = vpop.f32.mrf.mxu0  ;;  %v1220_v6 = vmul.f32 %v6997_v44, %v7338_v58 }
 0x201   : > { %v1393_v16 = vadd.f32 %v7334_v53, %v1392_v59  ;;  %v7379_v59 = vld [vmem:[%s6902_s22 + $0x28] sm:$0xff] }
 0x202   : > { %800 = vadd.xlane.f32.xlu2 %v799_v8  ;;  %v1254_v52 = vadd.f32 %v7009_v56, %v1220_v6  ;;  %v1475_v6 = vmul.f32 %v7379_v59, %v1403_v60 }
 0x203   : > { %v1471_v26 = vmul.f32 %v7352_v25, %v1393_v16  ;;  %v1080_v16 = vmul.f32 %v6560_v51, %v1079_v41 }
 0x204   : > { %v1286_v30 = vmax.f32 %v1254_v52, 0.0  ;;  %v1513_v8 = vpack.c.bf16 %v1475_v6, %v1474_v57 }
 0x205   : > { %v1511_v44 = vpack.c.bf16 %v1471_v26, %v1470_v22  ;;  %v1081_v7 = vmul.f32 0.5, %v1080_v16  ;;  %v1408_v26 = vadd.f32 %v7334_v53, %v1407_v47 }
 0x206   : > { %v1312_v27 = vpack.c.bf16 %v1287_v9, %v1286_v30  ;;  %v1410_v39 = vpop.f32.mrf.mxu1 }
 0x207   : > { %5767 = vmatmul.msk.bf16.vlgmr.msra.gmra.mxu2 %vm507_vm7, %v1511_v44  ;;  %v1082_v9 = vsub.f32 1.5, %v1081_v7  ;;  %v1406_v44 = vadd.f32 %v7334_v53, %v1405_v32 }
 0x208   : > { %5737 = vmatmul.msk.bf16.gmra.mxu1 %vm1332_vm9, %v1312_v27 }
 0x20a   : > { %v678_v56 = vpop.permute.xlu1 %677 }
 0x20b   : > { %v802_v29 = vsel %vm717_vm0, %v678_v56, 0.0  ;;  %v1083_v56 = vmul.f32 %v6560_v51, %v1082_v9  ;;  %v1088_v9 = vand.u32 2147483648, %v7340_v0 }
 0x20c   : > { %803 = vadd.xlane.f32.xlu1 %v802_v29  ;;  %v7390_v29 = vld [vmem:[%s6902_s22 + $0x38] sm:$0xff] }
 0x20d   : > { %9509 = vst [vmem:[#allocation29_spill] sm:$0xff] %v7390_v29  ;;  %v1477_v33 = vmul.f32 %v7390_v29, %v1408_v26  ;;  %v1084_v60 = vmul.f32 %v1083_v56, %v7340_v0 }
 0x20e   : > { %v1412_v49 = vpop.f32.mrf.mxu1 }
 0x216   : > { %v7393_v10 = vpop.f32.mrf.mxu1 }
 0x217   : > { %5768 = vmatmul.msk.bf16.gmra.mxu2 %vm507_vm7, %v1512_v28  ;;  %v7396_v28 = vld [vmem:[%s6902_s22 + $0x30] sm:$0xff] }
 0x218   : > { %9510 = vst [vmem:[#allocation30_spill] sm:$0xff] %v7396_v28  ;;  %v1476_v14 = vmul.f32 %v7396_v28, %v1406_v44  ;;  %v1086_v44 = vsel %vm1085_vm5, %v7340_v0, %v1084_v60 }
 0x21a   : > { %v1514_v51 = vpack.c.bf16 %v1477_v33, %v1476_v14  ;;  %v7410_v33 = vsel %vm1087_vm6, %v1088_v9, %v1086_v44  ;;  %v7428_v9 = vld [vmem:[%s6902_s22 + $0x48] sm:$0xff] }
 0x21b   : > { %9511 = vst [vmem:[#allocation31_spill] sm:$0xff] %v7410_v33 }
 0x21c   : > { %9512 = vst [vmem:[#allocation32_spill] sm:$0xff] %v7428_v9 }
 0x21e   : > { %v1417_v14 = vpop.f32.mrf.mxu1 }
 0x227   : > { %5769 = vmatmul.msk.bf16.gmra.mxu2 %vm507_vm7, %v1513_v8  ;;  %v7383_v52 = vpop.xlane.xlu0 %791 }
 0x228   : > { %6561 = vrsqrt.f32 %v7383_v52  ;;  %vm1109_vm8 = vcmp.eq.f32.partialorder %v7383_v52, inf }
 0x22c   : > { %v789_v22 = vpop.xlane.xlu2 %788 }
 0x22d   : > { %6563 = vrsqrt.f32 %v789_v22  ;;  %vm1097_vm10 = vcmp.eq.f32.partialorder %v789_v22, inf  ;;  %vm1099_vm11 = vcmp.eq.f32.partialorder %v789_v22, 0.0 }
 0x22e   : > { %v6562_v30 = vpop.eup %6561 }
 0x22f   : > { %v1103_v27 = vmul.f32 %v6562_v30, %v7383_v52 }
 0x231   : > { %v1104_v34 = vmul.f32 %v6562_v30, %v1103_v27 }
 0x233   : > { %v6564_v45 = vpop.eup %6563  ;;  %v1105_v47 = vmul.f32 0.5, %v1104_v34 }
 0x234   : > { %v1091_v41 = vmul.f32 %v6564_v45, %v789_v22  ;;  %v682_v32 = vpop.permute.xlu2 %681 }
 0x235   : > { %v808_v57 = vsel %vm717_vm0, %v682_v32, 0.0  ;;  %v7401_v6 = vpop.xlane.xlu1 %794  ;;  %v1106_v16 = vsub.f32 1.5, %v1105_v47  ;;  %v1413_v32 = vadd.f32 %v7334_v53, %v1412_v49  ;;  %v1100_v49 = vand.u32 2147483648, %v789_v22 }
 0x236   : > { %v1092_v8 = vmul.f32 %v6564_v45, %v1091_v41  ;;  %809 = vadd.xlane.f32.xlu1 %v808_v57  ;;  %6565 = vrsqrt.f32 %v7401_v6  ;;  %vm1121_vm12 = vcmp.eq.f32.partialorder %v7401_v6, inf  ;;  %vm1123_vm13 = vcmp.eq.f32.partialorder %v7401_v6, 0.0 }
 0x237   : > { %5770 = vmatmul.msk.bf16.gmra.mxu2 %vm507_vm7, %v1514_v51  ;;  %v1107_v7 = vmul.f32 %v6562_v30, %v1106_v16  ;;  %v1411_v30 = vadd.f32 %v7334_v53, %v1410_v39  ;;  %v7420_v51 = vld [vmem:[%s9396_s10] ss:$0 sm:$0xff]  ;;  %v1112_v39 = vand.u32 2147483648, %v7383_v52 }
 0x238   : > { %v1093_v26 = vmul.f32 0.5, %v1092_v8 }
 0x239   : > { %v1108_v56 = vmul.f32 %v1107_v7, %v7383_v52 }
 0x23a   : > { %v1094_v27 = vsub.f32 1.5, %v1093_v26  ;;  %v1479_v26 = vmul.f32 %v7428_v9, %v1413_v32 }
 0x23b   : > { %v1110_v8 = vsel %vm1109_vm8, %v7383_v52, %v1108_v56 }
 0x23c   : > { %v6566_v34 = vpop.eup %6565  ;;  %v1095_v47 = vmul.f32 %v6564_v45, %v1094_v27  ;;  %v684_v41 = vpop.permute.xlu2 %683  ;;  %v1222_v45 = vmul.f32 %v7420_v51, %v7410_v33 }
 0x23d   : > { %v1115_v60 = vmul.f32 %v6566_v34, %v7401_v6  ;;  %v811_v0 = vsel %vm717_vm0, %v684_v41, 0.0  ;;  %vm1111_vm0 = vcmp.eq.f32.partialorder %v7383_v52, 0.0  ;;  %v7438_v41 = vld [vmem:[%s9396_s10 + $0x1] ss:$0 sm:$0xff] }
 0x23e   : > { %v1096_v57 = vmul.f32 %v1095_v47, %v789_v22  ;;  %812 = vadd.xlane.f32.xlu0 %v811_v0  ;;  %v1256_v56 = vadd.f32 %v7438_v41, %v1222_v45  ;;  %v7441_v52 = vsel %vm1111_vm0, %v1112_v39, %v1110_v8  ;;  %v1124_v45 = vand.u32 2147483648, %v7401_v6 }
 0x23f   : > { %v1116_v16 = vmul.f32 %v6566_v34, %v1115_v60  ;;  %9514 = vst [vmem:[#allocation34_spill] sm:$0xff] %v7441_v52  ;;  %vm1917_vm0 = vcmp.le.f32.partialorder %v7441_v52, 10.0 }
 0x240   : > { %v1098_v7 = vsel %vm1097_vm10, %v789_v22, %v1096_v57  ;;  %v7444_v22 = vld [vmem:[%s6902_s22 + $0x40] sm:$0xff]  ;;  %v1288_v23 = vmax.f32 %v1256_v56, 0.0 }
 0x241   : > { %v1117_v44 = vmul.f32 0.5, %v1116_v16  ;;  %v7431_v27 = vsel %vm1099_vm11, %v1100_v49, %v1098_v7  ;;  %v1478_v60 = vmul.f32 %v7444_v22, %v1411_v30  ;;  %v1224_v49 = vmul.f32 %v7420_v51, %v7441_v52  ;;  %v1420_v7 = vpop.f32.mrf.mxu1 }
 0x242   : > { %9513 = vst [vmem:[#allocation33_spill] sm:$0xff] %v7431_v27  ;;  %v1223_v47 = vmul.f32 %v7420_v51, %v7431_v27  ;;  %vm1904_vm11 = vcmp.le.f32.partialorder %v7163_v12, 10.0 }
 0x243   : > { %v1118_v32 = vsub.f32 1.5, %v1117_v44  ;;  %v1515_v16 = vpack.c.bf16 %v1479_v26, %v1478_v60  ;;  %v1258_v8 = vadd.f32 %v7438_v41, %v1224_v49 }
 0x244   : > { %v1257_v0 = vadd.f32 %v7438_v41, %v1223_v47  ;;  %v1418_v47 = vadd.f32 %v7334_v53, %v1417_v14 }
 0x245   : > { %v1119_v57 = vmul.f32 %v6566_v34, %v1118_v32  ;;  %v1290_v60 = vmax.f32 %v1258_v8, 0.0  ;;  %v1416_v32 = vadd.f32 %v7334_v53, %v7393_v10 }
 0x246   : > { %v1289_v5 = vmax.f32 %v1257_v0, 0.0 }
 0x247   : > { %v1120_v39 = vmul.f32 %v1119_v57, %v7401_v6  ;;  %5771 = vmatmul.msk.bf16.gmra.mxu2 %vm507_vm7, %v1515_v16  ;;  %v7471_v16 = vld [vmem:[%s6902_s22 + $0x50] sm:$0xff] }
 0x248   : > { %v1313_v34 = vpack.c.bf16 %v1289_v5, %v1288_v23  ;;  %v1480_v49 = vmul.f32 %v7471_v16, %v1416_v32 }
 0x249   : > { %v1122_v30 = vsel %vm1121_vm12, %v7401_v6, %v1120_v39  ;;  %v1422_v23 = vpop.f32.mrf.mxu1  ;;  %v7467_v6 = vld [vmem:[%s6902_s22 + $0x58] sm:$0xff]  ;;  %v798_v39 = vpop.xlane.xlu0 %797  ;;  %vm1901_vm12 = vcmp.le.f32.partialorder %v7107_v42, 10.0 }
 0x24a   : > { %5738 = vmatmul.msk.bf16.gmra.mxu1 %vm1332_vm9, %v1313_v34  ;;  %v7458_v26 = vsel %vm1123_vm13, %v1124_v45, %v1122_v30  ;;  %v1481_v0 = vmul.f32 %v7467_v6, %v1418_v47  ;;  %v1423_v10 = vadd.f32 %v7334_v53, %v1422_v23  ;;  %v1421_v34 = vadd.f32 %v7334_v53, %v1420_v7  ;;  %v7479_v30 = vld [vmem:[%s6902_s22 + $0x68] sm:$0xff] }
 0x24b   : > { %9515 = vst [vmem:[#allocation35_spill] sm:$0xff] %v7458_v26  ;;  %v1225_v44 = vmul.f32 %v7420_v51, %v7458_v26  ;;  %6567 = vrsqrt.f32 %v798_v39  ;;  %vm1133_vm14 = vcmp.eq.f32.partialorder %v798_v39, inf  ;;  %vm1135_vm15 = vcmp.eq.f32.partialorder %v798_v39, 0.0 }
 0x24c   : > { %v1516_v14 = vpack.c.bf16 %v1481_v0, %v1480_v49  ;;  %v1483_v8 = vmul.f32 %v7479_v30, %v1423_v10  ;;  %v1136_v54 = vand.u32 2147483648, %v798_v39  ;;  %vm1914_vm13 = vcmp.le.f32.partialorder %v7326_v38, 10.0 }
 0x24d   : > { %v1259_v56 = vadd.f32 %v7438_v41, %v1225_v44  ;;  %v7483_v44 = vld [vmem:[%s6902_s22 + $0x60] sm:$0xff] }
 0x24e   : > { %v1482_v47 = vmul.f32 %v7483_v44, %v1421_v34  ;;  %v7497_v34 = vld [vmem:[%s6902_s22 + $0x78] sm:$0xff] }
 0x24f   : > { %v1291_v5 = vmax.f32 %v1259_v56, 0.0 }
 0x251   : > { %v1314_v57 = vpack.c.bf16 %v1291_v5, %v1290_v60  ;;  %v1425_v45 = vpop.f32.mrf.mxu1  ;;  %v1517_v60 = vpack.c.bf16 %v1483_v8, %v1482_v47  ;;  %v6568_v32 = vpop.eup %6567 }
 0x252   : > { %v1127_v5 = vmul.f32 %v6568_v32, %v798_v39  ;;  %v1426_v0 = vadd.f32 %v7334_v53, %v1425_v45  ;;  %v6823_v45 = vmov 67  }
 0x253   : > { %5739 = vmatmul.msk.bf16.vlgmr.msra.gmra.mxu3 %vm1332_vm9, %v1314_v57  ;;  %6498 = vset.pattern.permute.xlu2 %v6823_v45 }
 0x254   : > { %v1128_v49 = vmul.f32 %v6568_v32, %v1127_v5  ;;  %6496 = vset.pattern.permute.xlu1 %v6823_v45  ;;  %6497 = vset.pattern.permute.xlu0 %v6823_v45 }
 0x256   : > { %v1129_v47 = vmul.f32 0.5, %v1128_v49 }
 0x257   : > { %5772 = vmatmul.msk.bf16.gmra.mxu2 %vm507_vm7, %v1516_v14  ;;  %v7493_v14 = vld [vmem:[%s6902_s22 + $0x70] sm:$0xff] }
 0x258   : > { %v1484_v10 = vmul.f32 %v7493_v14, %v1426_v0  ;;  %v1130_v43 = vsub.f32 1.5, %v1129_v47 }
 0x259   : > { %v1427_v56 = vpop.f32.mrf.mxu1 }
 0x25a   : > { %v1428_v57 = vadd.f32 %v7334_v53, %v1427_v56  ;;  %v1131_v56 = vmul.f32 %v6568_v32, %v1130_v43  ;;  %v7505_v43 = vld [vmem:[%s6902_s22 + $0x88] sm:$0xff] }
 0x25c   : > { %v1485_v8 = vmul.f32 %v7497_v34, %v1428_v57  ;;  %v1132_v49 = vmul.f32 %v1131_v56, %v798_v39  ;;  %v7509_v56 = vld [vmem:[%s6902_s22 + $0x80] sm:$0xff] }
 0x25e   : > { %v1518_v20 = vpack.c.bf16 %v1485_v8, %v1484_v10 }
 0x261   : > { %v1430_v7 = vpop.f32.mrf.mxu1 }
 0x262   : > { %v1431_v62 = vadd.f32 %v7334_v53, %v1430_v7 }
 0x265   : > { %v7487_v23 = vpop.xlane.xlu0 %806 }
 0x266   : > { %6569 = vrsqrt.f32 %v7487_v23  ;;  %vm1169_vm3 = vcmp.eq.f32.partialorder %v7487_v23, inf  ;;  %vm1171_vm4 = vcmp.eq.f32.partialorder %v7487_v23, 0.0 }
 0x267   : > { %5773 = vmatmul.msk.bf16.gmra.mxu2 %vm507_vm7, %v1517_v60 }
 0x269   : > { %v1432_v1 = vpop.f32.mrf.mxu1 }
 0x26a   : > { %v1433_v57 = vadd.f32 %v7334_v53, %v1432_v1  ;;  %v1134_v1 = vsel %vm1133_vm14, %v798_v39, %v1132_v49 }
 0x26b   : > { %v7512_v18 = vsel %vm1135_vm15, %v1136_v54, %v1134_v1 }
 0x26c   : > { %v6570_v60 = vpop.eup %6569  ;;  %9516 = vst [vmem:[#allocation36_spill] sm:$0xff] %v7512_v18 }
 0x26d   : > { %v1163_v37 = vmul.f32 %v6570_v60, %v7487_v23 }
 0x26f   : > { %v1164_v5 = vmul.f32 %v6570_v60, %v1163_v37  ;;  %v1487_v37 = vmul.f32 %v7505_v43, %v1433_v57 }
 0x271   : > { %v1165_v10 = vmul.f32 0.5, %v1164_v5  ;;  %v1435_v8 = vpop.f32.mrf.mxu1  ;;  %v1486_v5 = vmul.f32 %v7509_v56, %v1431_v62 }
 0x273   : > { %v1166_v45 = vsub.f32 1.5, %v1165_v10  ;;  %v1519_v3 = vpack.c.bf16 %v1487_v37, %v1486_v5  ;;  %v1172_v37 = vand.u32 2147483648, %v7487_v23 }
 0x275   : > { %v801_v63 = vpop.xlane.xlu2 %800 }
 0x276   : > { %6571 = vrsqrt.f32 %v801_v63  ;;  %vm1145_vm1 = vcmp.eq.f32.partialorder %v801_v63, inf  ;;  %v1148_v39 = vand.u32 2147483648, %v801_v63  ;;  %vm1147_vm2 = vcmp.eq.f32.partialorder %v801_v63, 0.0 }
 0x277   : > { %5774 = vmatmul.msk.bf16.gmra.mxu2 %vm507_vm7, %v1518_v20 }
 0x279   : > { %v1437_v57 = vpop.f32.mrf.mxu1 }
 0x27c   : > { %v6572_v0 = vpop.eup %6571 }
 0x27d   : > { %v1139_v47 = vmul.f32 %v6572_v0, %v801_v63 }
 0x27f   : > { %v1140_v40 = vmul.f32 %v6572_v0, %v1139_v47  ;;  %v804_v20 = vpop.xlane.xlu1 %803  ;;  %v1167_v47 = vmul.f32 %v6570_v60, %v1166_v45 }
 0x280   : > { %6573 = vrsqrt.f32 %v804_v20  ;;  %vm1157_vm5 = vcmp.eq.f32.partialorder %v804_v20, inf  ;;  %vm1159_vm6 = vcmp.eq.f32.partialorder %v804_v20, 0.0 }
 0x281   : > { %v1141_v32 = vmul.f32 0.5, %v1140_v40  ;;  %v1226_v40 = vmul.f32 %v7420_v51, %v7512_v18  ;;  %v1168_v62 = vmul.f32 %v1167_v47, %v7487_v23 }
 0x283   : > { %v1142_v28 = vsub.f32 1.5, %v1141_v32  ;;  %v1260_v60 = vadd.f32 %v7438_v41, %v1226_v40  ;;  %v1170_v32 = vsel %vm1169_vm3, %v7487_v23, %v1168_v62  ;;  %v1160_v40 = vand.u32 2147483648, %v804_v20 }
 0x285   : > { %v1143_v7 = vmul.f32 %v6572_v0, %v1142_v28  ;;  %v1436_v0 = vadd.f32 %v7334_v53, %v1435_v8  ;;  %v1292_v45 = vmax.f32 %v1260_v60, 0.0  ;;  %v1440_v8 = vpop.f32.mrf.mxu1 }
 0x286   : > { %v6574_v29 = vpop.eup %6573 }
 0x287   : > { %v1144_v9 = vmul.f32 %v1143_v7, %v801_v63  ;;  %v1151_v61 = vmul.f32 %v6574_v29, %v804_v20  ;;  %5775 = vmatmul.msk.bf16.gmra.mxu2 %vm507_vm7, %v1519_v3  ;;  %v7531_v7 = vld [vmem:[%s6902_s22 + $0x90] sm:$0xff] }
 0x288   : > { %v1488_v47 = vmul.f32 %v7531_v7, %v1436_v0  ;;  %v9422_v0 = vmov 0.0  }
 0x289   : > { %v1152_v49 = vmul.f32 %v6574_v29, %v1151_v61  ;;  %v1146_v10 = vsel %vm1145_vm1, %v801_v63, %v1144_v9  ;;  %v1438_v61 = vadd.f32 %v7334_v53, %v1437_v57  ;;  %v7534_v57 = vsel %vm1171_vm4, %v1172_v37, %v1170_v32 }
 0x28a   : > { %v7518_v54 = vsel %vm1147_vm2, %v1148_v39, %v1146_v10  ;;  %9518 = vst [vmem:[#allocation38_spill] sm:$0xff] %v7534_v57  ;;  %v7537_v39 = vld [vmem:[%s6902_s22 + $0x98] sm:$0xff]  ;;  %vm1911_vm2 = vcmp.le.f32.partialorder %v7283_v13, 10.0  ;;  %vm1922_vm3 = vcmp.le.f32.partialorder %v7534_v57, 10.0 }
 0x28b   : > { %9517 = vst [vmem:[#allocation37_spill] sm:$0xff] %v7518_v54  ;;  %v1153_v28 = vmul.f32 0.5, %v1152_v49  ;;  %v1227_v3 = vmul.f32 %v7420_v51, %v7518_v54  ;;  %v1489_v49 = vmul.f32 %v7537_v39, %v1438_v61  ;;  %vm1920_vm10 = vcmp.le.f32.partialorder %v7518_v54, 10.0 }
 0x28d   : > { %v1154_v9 = vsub.f32 1.5, %v1153_v28  ;;  %v1261_v63 = vadd.f32 %v7438_v41, %v1227_v3  ;;  %v1520_v3 = vpack.c.bf16 %v1489_v49, %v1488_v47  ;;  %v7559_v49 = vld [vmem:[%s6902_s22 + $0xa0] sm:$0xff] }
 0x28f   : > { %v1293_v1 = vmax.f32 %v1261_v63, 0.0  ;;  %v1155_v5 = vmul.f32 %v6574_v29, %v1154_v9  ;;  %v1229_v29 = vmul.f32 %v7420_v51, %v7534_v57  ;;  %v1442_v63 = vpop.f32.mrf.mxu1 }
 0x290   : > { %v1443_v47 = vadd.f32 %v7334_v53, %v1442_v63 }
 0x291   : > { %v1315_v10 = vpack.c.bf16 %v1293_v1, %v1292_v45  ;;  %v1156_v62 = vmul.f32 %v1155_v5, %v804_v20  ;;  %v1263_v9 = vadd.f32 %v7438_v41, %v1229_v29  ;;  %v5834_v1 = vsel %vm1920_vm10, 1.0, %v9422_v0 }
 0x292   : > { %v1441_v5 = vadd.f32 %v7334_v53, %v1440_v8  ;;  %v5831_v29 = vsel %vm1917_vm0, 1.0, %v9422_v0  ;;  %v7568_v8 = vld [vmem:[%s6902_s22 + $0xc0] sm:$0xff]  ;;  %vm1907_vm10 = vcmp.le.f32.partialorder %v7228_v48, 10.0  ;;  %vm1919_vm0 = vcmp.le.f32.partialorder %v7512_v18, 10.0 }
 0x293   : > { %5740 = vmatmul.msk.bf16.gmra.mxu3 %vm1332_vm9, %v1315_v10  ;;  %v1158_v23 = vsel %vm1157_vm5, %v804_v20, %v1156_v62  ;;  %v1295_v45 = vmax.f32 %v1263_v9, 0.0  ;;  %v6754_v62 = vld [vmem:[%s6902_s22 + $0xa8] sm:$0xff] }
 0x294   : > { %v7543_v28 = vsel %vm1159_vm6, %v1160_v40, %v1158_v23  ;;  %v2016_v40 = vmul.f32 %v5834_v1, %v7201_v21  ;;  %v1490_v10 = vmul.f32 %v7559_v49, %v1441_v5  ;;  %v1491_v23 = vmul.f32 %v6754_v62, %v1443_v47 }
 0x295   : > { %9519 = vst [vmem:[#allocation39_spill] sm:$0xff] %v7543_v28  ;;  %vm1921_vm8 = vcmp.le.f32.partialorder %v7543_v28, 10.0  ;;  %v1228_v60 = vmul.f32 %v7420_v51, %v7543_v28  ;;  %v2013_v21 = vmul.f32 %v7568_v8, %v5831_v29  ;;  %v5828_v29 = vsel %vm1914_vm13, 1.0, %v9422_v0 }
 0x296   : > { %v5835_v61 = vsel %vm1921_vm8, 1.0, %v9422_v0  ;;  %vm1898_vm8 = vcmp.le.f32.partialorder %v7040_v19, 10.0  ;;  %vm1906_vm13 = vcmp.le.f32.partialorder %v7193_v31, 10.0  ;;  %v6416_v31 = vld [vmem:[%s8016_s16] sm:$0xff] }
 0x297   : > { %5776 = vmatmul.msk.bf16.gmra.mxu2 %vm507_vm7, %v1520_v3  ;;  %v2017_v20 = vmul.f32 %v5835_v61, %v7256_v17  ;;  %v1262_v37 = vadd.f32 %v7438_v41, %v1228_v60  ;;  %v1521_v3 = vpack.c.bf16 %v1491_v23, %v1490_v10  ;;  %v5818_v61 = vsel %vm1904_vm11, 1.0, %v9422_v0 }
 0x298   : > { %vm1895_vm11 = vcmp.le.f32.partialorder %v6999_v46, 10.0 }
 0x299   : > { %2858 = vperm.xlu2 %6498, %v2017_v20   ;;  %v1294_v32 = vmax.f32 %v1262_v37, 0.0  ;;  %v2000_v20 = vmul.f32 %v7467_v6, %v5818_v61 }
 0x29b   : > { %v1316_v17 = vpack.c.bf16 %v1295_v45, %v1294_v32  ;;  %v5815_v45 = vsel %vm1901_vm12, 1.0, %v9422_v0  ;;  %vm1908_vm12 = vcmp.le.f32.partialorder %v7230_v35, 10.0 }
 0x29c   : > { %v1997_v47 = vmul.f32 %v7444_v22, %v5815_v45 }
 0x2a1   : > { %2853 = vperm.xlu2 %6498, %v2016_v40  }
 0x2a3   : > { %5741 = vmatmul.msk.bf16.gmra.mxu3 %vm1332_vm9, %v1316_v17 }
 0x2a7   : > { %5777 = vmatmul.msk.bf16.gmra.mxu2 %vm507_vm7, %v1521_v3 }
 0x2a9   : > { %v810_v60 = vpop.xlane.xlu1 %809  ;;  %2838 = vperm.xlu2 %6498, %v2013_v21  }
 0x2aa   : > { %6575 = vrsqrt.f32 %v810_v60  ;;  %vm1181_vm14 = vcmp.eq.f32.partialorder %v810_v60, inf  ;;  %v1184_v3 = vand.u32 2147483648, %v810_v60  ;;  %vm1183_vm15 = vcmp.eq.f32.partialorder %v810_v60, 0.0 }
 0x2b0   : > { %v6576_v37 = vpop.eup %6575 }
 0x2b1   : > { %v1175_v9 = vmul.f32 %v6576_v37, %v810_v60  ;;  %2773 = vperm.xlu2 %6498, %v2000_v20   ;;  %v813_v63 = vpop.xlane.xlu0 %812 }
 0x2b2   : > { %6577 = vrsqrt.f32 %v813_v63  ;;  %vm1193_vm4 = vcmp.eq.f32.partialorder %v813_v63, inf  ;;  %vm1195_vm5 = vcmp.eq.f32.partialorder %v813_v63, 0.0 }
 0x2b3   : > { %v1176_v32 = vmul.f32 %v6576_v37, %v1175_v9 }
 0x2b5   : > { %v1177_v1 = vmul.f32 0.5, %v1176_v32  ;;  %v2010_v32 = vmul.f32 %v6754_v62, %v5828_v29  ;;  %v1196_v62 = vand.u32 2147483648, %v813_v63 }
 0x2b7   : > { %v1178_v5 = vsub.f32 1.5, %v1177_v1 }
 0x2b8   : > { %v6578_v40 = vpop.eup %6577 }
 0x2b9   : > { %v1187_v17 = vmul.f32 %v6578_v40, %v813_v63  ;;  %2758 = vperm.xlu2 %6498, %v1997_v47   ;;  %v1179_v6 = vmul.f32 %v6576_v37, %v1178_v5  ;;  %v5825_v5 = vsel %vm1911_vm2, 1.0, %v9422_v0  ;;  %vm1918_vm2 = vcmp.le.f32.partialorder %v7458_v26, 10.0 }
 0x2bb   : > { %v1188_v10 = vmul.f32 %v6578_v40, %v1187_v17  ;;  %v1180_v23 = vmul.f32 %v1179_v6, %v810_v60  ;;  %v5836_v17 = vsel %vm1922_vm3, 1.0, %v9422_v0  ;;  %vm1916_vm3 = vcmp.le.f32.partialorder %v7431_v27, 10.0 }
 0x2bd   : > { %v1189_v21 = vmul.f32 0.5, %v1188_v10  ;;  %v1182_v61 = vsel %vm1181_vm14, %v810_v60, %v1180_v23  ;;  %vm1894_vm14 = vcmp.le.f32.partialorder %v7238_v55, 10.0 }
 0x2be   : > { %v7579_v20 = vsel %vm1183_vm15, %v1184_v3, %v1182_v61  ;;  %v2018_v3 = vmul.f32 %v5836_v17, %v7250_v11  ;;  %v5821_v11 = vsel %vm1907_vm10, 1.0, %v9422_v0  ;;  %v6757_v17 = vld [vmem:[%s6902_s22 + $0xb8] sm:$0xff]  ;;  %vm1905_vm15 = vcmp.le.f32.partialorder %v7191_v2, 10.0 }
 0x2bf   : > { %9520 = vst [vmem:[#allocation40_spill] sm:$0xff] %v7579_v20  ;;  %v1190_v9 = vsub.f32 1.5, %v1189_v21  ;;  %vm1923_vm1 = vcmp.le.f32.partialorder %v7579_v20, 10.0  ;;  %v1230_v60 = vmul.f32 %v7420_v51, %v7579_v20 }
 0x2c0   : > { %v5837_v22 = vsel %vm1923_vm1, 1.0, %v9422_v0  ;;  %vm1903_vm1 = vcmp.le.f32.partialorder %v7160_v24, 10.0 }
 0x2c1   : > { %2823 = vperm.xlu2 %6498, %v2010_v32   ;;  %v2019_v37 = vmul.f32 %v5837_v22, %v7296_v4  ;;  %v1191_v45 = vmul.f32 %v6578_v40, %v1190_v9  ;;  %v2007_v4 = vmul.f32 %v7531_v7, %v5825_v5  ;;  %v1264_v10 = vadd.f32 %v7438_v41, %v1230_v60  ;;  %v7611_v22 = vld [vmem:[%s6902_s22 + $0xd0] sm:$0xff] }
 0x2c2   : > { %v2003_v32 = vmul.f32 %v7493_v14, %v5821_v11  ;;  %v5822_v14 = vsel %vm1908_vm12, 1.0, %v9422_v0  ;;  %v5820_v60 = vsel %vm1906_vm13, 1.0, %v9422_v0  ;;  %v5832_v11 = vsel %vm1918_vm2, 1.0, %v9422_v0 }
 0x2c3   : > { %2868 = vperm.xlu1 %6496, %v2019_v37   ;;  %v1192_v1 = vmul.f32 %v1191_v45, %v813_v63  ;;  %v1296_v7 = vmax.f32 %v1264_v10, 0.0  ;;  %v2002_v10 = vmul.f32 %v7479_v30, %v5820_v60 }
 0x2c5   : > { %v1194_v47 = vsel %vm1193_vm4, %v813_v63, %v1192_v1  ;;  %vm1915_vm4 = vcmp.le.f32.partialorder %v7410_v33, 10.0 }
 0x2c6   : > { %v7590_v6 = vsel %vm1195_vm5, %v1196_v62, %v1194_v47  ;;  %vm1913_vm5 = vcmp.le.f32.partialorder %v7338_v58, 10.0 }
 0x2c7   : > { %9521 = vst [vmem:[#allocation41_spill] sm:$0xff] %v7590_v6  ;;  %vm1924_vm6 = vcmp.le.f32.partialorder %v7590_v6, 10.0  ;;  %v1231_v40 = vmul.f32 %v7420_v51, %v7590_v6  ;;  %v1445_v23 = vpop.f32.mrf.mxu1  ;;  %v5812_v51 = vsel %vm1898_vm8, 1.0, %v9422_v0 }
 0x2c8   : > { %v5838_v29 = vsel %vm1924_vm6, 1.0, %v9422_v0  ;;  %v1446_v5 = vadd.f32 %v7334_v53, %v1445_v23  ;;  %vm1902_vm6 = vcmp.le.f32.partialorder %v7115_v50, 10.0  ;;  %v6417_v50 = vld [vmem:[%s8016_s16 + $0x8] sm:$0xff] }
 0x2c9   : > { %2808 = vperm.xlu2 %6498, %v2007_v4   ;;  %v2020_v63 = vmul.f32 %v5838_v29, %v7303_v15  ;;  %v1265_v21 = vadd.f32 %v7438_v41, %v1231_v40  ;;  %v5833_v15 = vsel %vm1919_vm0, 1.0, %v9422_v0  ;;  %v1994_v41 = vmul.f32 %v7379_v59, %v5812_v51  ;;  %v6758_v29 = vld [vmem:[%s6902_s22 + $0xb0] sm:$0xff] }
 0x2ca   : > { %v2015_v37 = vmul.f32 %v7611_v22, %v5833_v15  ;;  %v5809_v59 = vsel %vm1895_vm11, 1.0, %v9422_v0  ;;  %v2004_v40 = vmul.f32 %v7497_v34, %v5822_v14  ;;  %v9522_v14 = vld [vmem:[#allocation6_spill] sm:$0xff]  ;;  %v5816_v60 = vsel %vm1902_vm6, 1.0, %v9422_v0 }
 0x2cb   : > { %2863 = vperm.xlu1 %6496, %v2018_v3   ;;  %2873 = vperm.xlu0 %6497, %v2020_v63   ;;  %v1297_v61 = vmax.f32 %v1265_v21, 0.0  ;;  %v1991_v62 = vmul.f32 %v7366_v36, %v5809_v59  ;;  %v1492_v3 = vmul.f32 %v6758_v29, %v1446_v5  ;;  %v5808_v36 = vsel %vm1894_vm14, 1.0, %v9422_v0 }
 0x2cc   : > { %v5819_v63 = vsel %vm1905_vm15, 1.0, %v9422_v0  ;;  %v5817_v21 = vsel %vm1903_vm1, 1.0, %v9422_v0  ;;  %v1990_v30 = vmul.f32 %v7352_v25, %v5808_v36  ;;  %v5830_v25 = vsel %vm1916_vm3, 1.0, %v9422_v0 }
 0x2cd   : > { %v1317_v9 = vpack.c.bf16 %v1297_v61, %v1296_v7  ;;  %v2001_v34 = vmul.f32 %v7483_v44, %v5819_v63  ;;  %v1999_v7 = vmul.f32 %v7471_v16, %v5817_v21  ;;  %v6759_v44 = vld [vmem:[%s6902_s22 + $0xc8] sm:$0xff]  ;;  %v5827_v59 = vsel %vm1913_vm5, 1.0, %v9422_v0  ;;  %v9529_v21 = vld [vmem:[#allocation21_spill] sm:$0xff] }
 0x2ce   : > { %v2014_v16 = vmul.f32 %v6759_v44, %v5832_v11  ;;  %vm1900_vm8 = vcmp.le.f32.partialorder %v9522_v14, 10.0  ;;  %vm1912_vm11 = vcmp.le.f32.partialorder %v9529_v21, 10.0  ;;  %v9532_v11 = vld [vmem:[#allocation14_spill] sm:$0xff]  ;;  %vm3058_vm1 = vcmask 130048  }
 0x2cf   : > { %5742 = vmatmul.msk.bf16.gmra.mxu3 %vm1332_vm9, %v1317_v9  ;;  %v1447_v45 = vpop.f32.mrf.mxu1  ;;  %v5814_v5 = vsel %vm1900_vm8, 1.0, %v9422_v0  ;;  %vm1893_vm14 = vcmp.le.f32.partialorder %v9532_v11, 10.0 }
 0x2d0   : > { %v1448_v1 = vadd.f32 %v7334_v53, %v1447_v45  ;;  %v5829_v45 = vsel %vm1915_vm4, 1.0, %v9422_v0 }
 0x2d1   : > { %2743 = vperm.xlu2 %6498, %v1994_v41  }
 0x2d2   : > { %v1493_v4 = vmul.f32 %v6757_v17, %v1448_v1  ;;  %v2011_v1 = vmul.f32 %v6758_v29, %v5829_v45 }
 0x2d3   : > { %2788 = vperm.xlu1 %6496, %v2003_v32   ;;  %2848 = vperm.xlu0 %6497, %v2015_v37   ;;  %v2012_v32 = vmul.f32 %v6757_v17, %v5830_v25  ;;  %v9524_v17 = vld [vmem:[#allocation29_spill] sm:$0xff] }
 0x2d4   : > { %v1522_v23 = vpack.c.bf16 %v1493_v4, %v1492_v3  ;;  %v1996_v4 = vmul.f32 %v9524_v17, %v5814_v5  ;;  %v9527_v3 = vld [vmem:[#allocation30_spill] sm:$0xff] }
 0x2d6   : > { %v1450_v47 = vpop.f32.mrf.mxu3 }
 0x2d7   : > { %v1451_v51 = vadd.f32 %v7334_v53, %v1450_v47 }
 0x2d9   : > { %2728 = vperm.xlu2 %6498, %v1991_v62   ;;  %v1494_v15 = vmul.f32 %v7568_v8, %v1451_v51  ;;  %v2009_v8 = vmul.f32 %v7559_v49, %v5827_v59  ;;  %v9523_v62 = vld [vmem:[#allocation32_spill] sm:$0xff] }
 0x2da   : > { %v1998_v47 = vmul.f32 %v9523_v62, %v5816_v60  ;;  %v6760_v60 = vld [vmem:[%s6902_s22 + $0xd8] sm:$0xff] }
 0x2db   : > { %2793 = vperm.xlu1 %6496, %v2004_v40   ;;  %2783 = vperm.xlu0 %6497, %v2002_v10   ;;  %v9525_v40 = vld [vmem:[#allocation7_spill] sm:$0xff]  ;;  %v9526_v10 = vld [vmem:[#allocation4_spill] sm:$0xff] }
 0x2dc   : > { %vm1899_vm10 = vcmp.le.f32.partialorder %v9525_v40, 10.0  ;;  %vm1897_vm0 = vcmp.le.f32.partialorder %v9526_v10, 10.0 }
 0x2dd   : > { %v5813_v49 = vsel %vm1899_vm10, 1.0, %v9422_v0  ;;  %v5811_v29 = vsel %vm1897_vm0, 1.0, %v9422_v0 }
 0x2de   : > { %v1452_v61 = vpop.f32.mrf.mxu3  ;;  %v1995_v36 = vmul.f32 %v9527_v3, %v5813_v49  ;;  %v6761_v49 = vld [vmem:[%s6902_s22 + $0xe0] sm:$0xff] }
 0x2df   : > { %5778 = vmatmul.msk.bf16.vlgmr.msrb.gmra.mxu3 %vm507_vm7, %v1522_v23  ;;  %v1453_v9 = vadd.f32 %v7334_v53, %v1452_v61  ;;  %v9528_v23 = vld [vmem:[#allocation28_spill] sm:$0xff] }
 0x2e0   : > { %v1993_v63 = vmul.f32 %v9528_v23, %v5811_v29 }
 0x2e1   : > { %2723 = vperm.xlu2 %6498, %v1990_v30   ;;  %v1495_v41 = vmul.f32 %v6759_v44, %v1453_v9  ;;  %v9530_v30 = vld [vmem:[#allocation19_spill] sm:$0xff]  ;;  %v9531_v9 = vld [vmem:[#allocation18_spill] sm:$0xff] }
 0x2e2   : > { %vm1910_vm12 = vcmp.le.f32.partialorder %v9530_v30, 10.0  ;;  %vm1909_vm13 = vcmp.le.f32.partialorder %v9531_v9, 10.0 }
 0x2e3   : > { %2778 = vperm.xlu1 %6496, %v2001_v34   ;;  %2768 = vperm.xlu0 %6497, %v1999_v7   ;;  %v1523_v37 = vpack.c.bf16 %v1495_v41, %v1494_v15  ;;  %v5826_v34 = vsel %vm1912_vm11, 1.0, %v9422_v0  ;;  %v5824_v7 = vsel %vm1910_vm12, 1.0, %v9422_v0  ;;  %v5823_v25 = vsel %vm1909_vm13, 1.0, %v9422_v0  ;;  %v9533_v41 = vld [vmem:[#allocation26_spill] sm:$0xff] }
 0x2e4   : > { %v2008_v61 = vmul.f32 %v7537_v39, %v5826_v34  ;;  %v2006_v51 = vmul.f32 %v7505_v43, %v5824_v7  ;;  %v5807_v15 = vsel %vm1893_vm14, 1.0, %v9422_v0  ;;  %v2005_v44 = vmul.f32 %v7509_v56, %v5823_v25  ;;  %v9534_v39 = vld [vmem:[#allocation3_spill] sm:$0xff]  ;;  %v6406_v25 = vld [vmem:[%s9391_s5] sm:$0xff] }
 0x2e5   : > { %vm1896_vm15 = vcmp.le.f32.partialorder %v9534_v39, 10.0 }
 0x2eb   : > { %2843 = vperm.xlu1 %6496, %v2014_v16   ;;  %2833 = vperm.xlu0 %6497, %v2012_v32   ;;  %v1989_v16 = vmul.f32 %v9533_v41, %v5807_v15  ;;  %v5810_v32 = vsel %vm1896_vm15, 1.0, %v9422_v0 }
 0x2ef   : > { %5779 = vmatmul.msk.bf16.gmra.mxu3 %vm507_vm7, %v1523_v37  ;;  %v9535_v37 = vld [vmem:[#allocation27_spill] sm:$0xff] }
 0x2f0   : > { %v1992_v45 = vmul.f32 %v9535_v37, %v5810_v32  ;;  %v6763_v32 = vld [vmem:[%s6902_s22 + $0xf0] sm:$0xff] }
 0x2f3   : > { %2828 = vperm.xlu1 %6496, %v2011_v1   ;;  %2818 = vperm.xlu0 %6497, %v2009_v8  }
 0x2fb   : > { %2763 = vperm.xlu1 %6496, %v1998_v47   ;;  %2753 = vperm.xlu0 %6497, %v1996_v4  }
 0x303   : > { %2748 = vperm.xlu1 %6496, %v1995_v36   ;;  %2738 = vperm.xlu0 %6497, %v1993_v63   ;;  %v6762_v36 = vld [vmem:[%s6902_s22 + $0xe8] sm:$0xff]  ;;  %v1610_v63 = vpop.f32.mrf.mxu2 }
 0x30b   : > { %2813 = vperm.xlu1 %6496, %v2008_v61   ;;  %2803 = vperm.xlu0 %6497, %v2006_v51   ;;  %v6407_v61 = vld [vmem:[%s9391_s5 + $0x8] sm:$0xff] }
 0x30c   : > { %1810 = vmatpush.bf16.msra.mxu3 %v6407_v61 }
 0x310   : > { %1811 = vmatpush.bf16.msra.mxu3 %v6406_v25 }
 0x313   : > { %2798 = vperm.xlu1 %6496, %v2005_v44   ;;  %2718 = vperm.xlu0 %6497, %v1989_v16  }
 0x316   : > { %v1455_v43 = vpop.f32.mrf.mxu3 }
 0x317   : > { %v1456_v59 = vadd.f32 %v7334_v53, %v1455_v43 }
 0x319   : > { %v1496_v56 = vmul.f32 %v7611_v22, %v1456_v59  ;;  %v1612_v22 = vpop.f32.mrf.mxu2 }
 0x31b   : > { %2733 = vperm.xlu1 %6496, %v1992_v45   ;;  %v6764_v45 = vld [vmem:[%s6902_s22 + $0xf8] sm:$0xff] }
 0x31e   : > { %v1457_v1 = vpop.f32.mrf.mxu3 }
 0x31f   : > { %v1458_v8 = vadd.f32 %v7334_v53, %v1457_v1 }
 0x321   : > { %v1497_v5 = vmul.f32 %v6760_v60, %v1458_v8  ;;  %v1615_v7 = vpop.f32.mrf.mxu2 }
 0x323   : > { %v1524_v62 = vpack.c.bf16 %v1497_v5, %v1496_v56  ;;  %v7702_v56 = vld [vmem:[%s9396_s10 + $0x3] ss:$0 sm:$0xff] }
 0x324   : > { %v1613_v60 = vadd.f32 %v7702_v56, %v1612_v22  ;;  %v1611_v5 = vadd.f32 %v7702_v56, %v1610_v63 }
 0x325   : > { %5780 = vmatmul.msk.bf16.gmra.mxu3 %vm507_vm7, %v1524_v62 }
 0x326   : > { %v1460_v47 = vpop.f32.mrf.mxu3  ;;  %v1691_v62 = vmax.f32 %v1613_v60, 0.0 }
 0x327   : > { %v1461_v17 = vadd.f32 %v7334_v53, %v1460_v47  ;;  %v1690_v47 = vmax.f32 %v1611_v5, 0.0 }
 0x329   : > { %v1498_v29 = vmul.f32 %v6761_v49, %v1461_v17  ;;  %v1617_v51 = vpop.f32.mrf.mxu2  ;;  %v1726_v17 = vpack.c.bf16 %v1691_v62, %v1690_v47 }
 0x32e   : > { %v1462_v4 = vpop.f32.mrf.mxu3 }
 0x32f   : > { %v1463_v3 = vadd.f32 %v7334_v53, %v1462_v4  ;;  %v1618_v4 = vadd.f32 %v7702_v56, %v1617_v51 }
 0x331   : > { %v1499_v23 = vmul.f32 %v6762_v36, %v1463_v3  ;;  %v1620_v41 = vpop.f32.mrf.mxu2  ;;  %v1693_v3 = vmax.f32 %v1618_v4, 0.0 }
 0x332   : > { %v1621_v63 = vadd.f32 %v7702_v56, %v1620_v41 }
 0x333   : > { %v1525_v34 = vpack.c.bf16 %v1499_v23, %v1498_v29  ;;  %v1616_v29 = vadd.f32 %v7702_v56, %v1615_v7 }
 0x335   : > { %5781 = vmatmul.msk.bf16.gmra.mxu3 %vm507_vm7, %v1525_v34  ;;  %v1692_v36 = vmax.f32 %v1616_v29, 0.0 }
 0x337   : > { %v1727_v23 = vpack.c.bf16 %v1693_v3, %v1692_v36 }
 0x339   : > { %v1622_v8 = vpop.f32.mrf.mxu2 }
 0x33a   : > { %v1623_v22 = vadd.f32 %v7702_v56, %v1622_v8 }
 0x33c   : > { %v1695_v61 = vmax.f32 %v1623_v22, 0.0 }
 0x352   : > { %v1465_v15 = vpop.f32.mrf.mxu3 }
 0x353   : > { %v1466_v44 = vadd.f32 %v7334_v53, %v1465_v15  ;;  %v1694_v15 = vmax.f32 %v1621_v63, 0.0 }
 0x355   : > { %v1500_v37 = vmul.f32 %v6763_v32, %v1466_v44  ;;  %v1728_v44 = vpack.c.bf16 %v1695_v61, %v1694_v15 }
 0x35a   : > { %v1467_v16 = vpop.f32.mrf.mxu3 }
 0x35b   : > { %v1468_v43 = vadd.f32 %v7334_v53, %v1467_v16  ;;  %v1625_v53 = vpop.f32.mrf.mxu2 }
 0x35d   : > { %v1501_v59 = vmul.f32 %v6764_v45, %v1468_v43  ;;  %v1626_v43 = vadd.f32 %v7702_v56, %v1625_v53 }
 0x35f   : > { %v1526_v1 = vpack.c.bf16 %v1501_v59, %v1500_v37  ;;  %v1696_v37 = vmax.f32 %v1626_v43, 0.0 }
 0x361   : > { %5782 = vmatmul.msk.bf16.gmra.mxu3 %vm507_vm7, %v1526_v1  ;;  %vm2578_vm7 = vcmask 785408  }
 0x362   : > { %v7714_v7 = vpop.f32.mrf.mxu3 }
 0x363   : > { %v1627_v49 = vpop.f32.mrf.mxu2 }
 0x364   : > { %v1628_v16 = vadd.f32 %v7702_v56, %v1627_v49 }
 0x366   : > { %v1697_v32 = vmax.f32 %v1628_v16, 0.0 }
 0x368   : > { %v1729_v45 = vpack.c.bf16 %v1697_v32, %v1696_v37  ;;  %v6409_v37 = vld [vmem:[%s9394_s8 + $0x8] sm:$0xff] }
 0x369   : > { %2109 = vmatpush.bf16.msra.mxu0 %v6409_v37 }
 0x36a   : > { %v7718_v41 = vpop.f32.mrf.mxu3 }
 0x36b   : > { %v1630_v34 = vpop.f32.mrf.mxu2 }
 0x36c   : > { %v1631_v8 = vadd.f32 %v7702_v56, %v1630_v34 }
 0x36e   : > { %v1698_v47 = vmax.f32 %v1631_v8, 0.0 }
 0x371   : > { %5791 = vmatmul.msk.bf16.vlgmr.msra.gmra.mxu3 %vm1332_vm9, %v1726_v17 }
 0x372   : > { %v7722_v62 = vpop.f32.mrf.mxu3 }
 0x373   : > { %v1632_v25 = vpop.f32.mrf.mxu2 }
 0x374   : > { %v1633_v1 = vadd.f32 %v7702_v56, %v1632_v25 }
 0x376   : > { %v1699_v5 = vmax.f32 %v1633_v1, 0.0 }
 0x378   : > { %v1730_v17 = vpack.c.bf16 %v1699_v5, %v1698_v47 }
 0x37a   : > { %v7725_v4 = vpop.f32.mrf.mxu3 }
 0x37b   : > { %v1635_v51 = vpop.f32.mrf.mxu2 }
 0x37c   : > { %v1636_v29 = vadd.f32 %v7702_v56, %v1635_v51 }
 0x37e   : > { %v1700_v36 = vmax.f32 %v1636_v29, 0.0 }
 0x381   : > { %5792 = vmatmul.msk.bf16.gmra.mxu3 %vm1332_vm9, %v1727_v23 }
 0x383   : > { %v1637_v59 = vpop.f32.mrf.mxu2 }
 0x384   : > { %v1638_v49 = vadd.f32 %v7702_v56, %v1637_v59 }
 0x386   : > { %v1701_v3 = vmax.f32 %v1638_v49, 0.0 }
 0x388   : > { %v1731_v34 = vpack.c.bf16 %v1701_v3, %v1700_v36 }
 0x38b   : > { %v1640_v60 = vpop.f32.mrf.mxu2 }
 0x38c   : > { %v1641_v15 = vadd.f32 %v7702_v56, %v1640_v60 }
 0x38e   : > { %v1702_v16 = vmax.f32 %v1641_v15, 0.0 }
 0x391   : > { %5793 = vmatmul.msk.bf16.gmra.mxu3 %vm1332_vm9, %v1728_v44 }
 0x393   : > { %v1642_v53 = vpop.f32.mrf.mxu2 }
 0x394   : > { %v1643_v63 = vadd.f32 %v7702_v56, %v1642_v53 }
 0x396   : > { %v1703_v44 = vmax.f32 %v1643_v63, 0.0 }
 0x398   : > { %v1732_v43 = vpack.c.bf16 %v1703_v44, %v1702_v16 }
 0x39b   : > { %v1645_v23 = vpop.f32.mrf.mxu2 }
 0x39c   : > { %v1646_v59 = vadd.f32 %v7702_v56, %v1645_v23 }
 0x39e   : > { %v1704_v5 = vmax.f32 %v1646_v59, 0.0 }
 0x3a1   : > { %5794 = vmatmul.msk.bf16.gmra.mxu3 %vm1332_vm9, %v1729_v45 }
 0x3a3   : > { %v1647_v61 = vpop.f32.mrf.mxu2 }
 0x3a4   : > { %v1648_v45 = vadd.f32 %v7702_v56, %v1647_v61 }
 0x3a6   : > { %v1705_v1 = vmax.f32 %v1648_v45, 0.0 }
 0x3a8   : > { %v7729_v22 = vpop.f32.mrf.mxu3  ;;  %v1733_v47 = vpack.c.bf16 %v1705_v1, %v1704_v5  ;;  %v7762_v1 = vld [vmem:[%s9396_s10 + $0x4] ss:$0 sm:$0xff] }
 0x3ab   : > { %v1650_v51 = vpop.f32.mrf.mxu2 }
 0x3ac   : > { %v1651_v3 = vadd.f32 %v7702_v56, %v1650_v51 }
 0x3ae   : > { %v1706_v63 = vmax.f32 %v1651_v3, 0.0 }
 0x3b0   : > { %v7733_v25 = vpop.f32.mrf.mxu3 }
 0x3b1   : > { %5795 = vmatmul.msk.bf16.gmra.mxu3 %vm1332_vm9, %v1730_v17  ;;  %v6408_v17 = vld [vmem:[%s9394_s8] sm:$0xff] }
 0x3b2   : > { %2110 = vmatpush.bf16.msra.mxu0 %v6408_v17 }
 0x3b3   : > { %v1652_v8 = vpop.f32.mrf.mxu2 }
 0x3b4   : > { %v1653_v29 = vadd.f32 %v7702_v56, %v1652_v8 }
 0x3b6   : > { %v1707_v36 = vmax.f32 %v1653_v29, 0.0 }
 0x3b8   : > { %v7737_v32 = vpop.f32.mrf.mxu3  ;;  %v1734_v15 = vpack.c.bf16 %v1707_v36, %v1706_v63 }
 0x3bb   : > { %v1655_v49 = vpop.f32.mrf.mxu2 }
 0x3bc   : > { %v1656_v51 = vadd.f32 %v7702_v56, %v1655_v49 }
 0x3be   : > { %v1708_v17 = vmax.f32 %v1656_v51, 0.0 }
 0x3c0   : > { %v7744_v60 = vpop.f32.mrf.mxu3 }
 0x3c1   : > { %5796 = vmatmul.msk.bf16.gmra.mxu3 %vm1332_vm9, %v1731_v34 }
 0x3d1   : > { %5797 = vmatmul.msk.bf16.gmra.mxu3 %vm1332_vm9, %v1732_v43  ;;  %v1657_v43 = vpop.f32.mrf.mxu2 }
 0x3d2   : > { %v1658_v59 = vadd.f32 %v7702_v56, %v1657_v43 }
 0x3d4   : > { %v1709_v5 = vmax.f32 %v1658_v59, 0.0 }
 0x3d6   : > { %v1735_v3 = vpack.c.bf16 %v1709_v5, %v1708_v17  ;;  %v1668_v5 = vadd.f32 %v7702_v56, %v7718_v41  ;;  %v1673_v41 = vadd.f32 %v7702_v56, %v7725_v4  ;;  %v6435_v4 = vld [vmem:[%s9391_s5 + $0x18] sm:$0xff] }
 0x3d7   : > { %2969 = vmatpush.bf16.msrb.mxu3 %v6435_v4 }
 0x3d9   : > { %v1660_v8 = vpop.f32.mrf.mxu2 }
 0x3da   : > { %v1661_v63 = vadd.f32 %v7702_v56, %v1660_v8  ;;  %v1666_v8 = vadd.f32 %v7702_v56, %v7714_v7  ;;  %v1671_v7 = vadd.f32 %v7702_v56, %v7722_v62 }
 0x3e1   : > { %5798 = vmatmul.msk.bf16.gmra.mxu3 %vm1332_vm9, %v1733_v47  ;;  %v1662_v49 = vpop.f32.mrf.mxu2 }
 0x3e4   : > { %v1685_v53 = vpop.f32.mrf.mxu3 }
 0x3e5   : > { %v1686_v23 = vadd.f32 %v7702_v56, %v1685_v53 }
 0x3e7   : > { %v1720_v44 = vmax.f32 %v1686_v23, 0.0 }
 0x3ec   : > { %v1687_v34 = vpop.f32.mrf.mxu3 }
 0x3ed   : > { %v1688_v61 = vadd.f32 %v7702_v56, %v1687_v34  ;;  %v1663_v34 = vadd.f32 %v7702_v56, %v1662_v49 }
 0x3ef   : > { %v1721_v16 = vmax.f32 %v1688_v61, 0.0  ;;  %v1711_v61 = vmax.f32 %v1663_v34, 0.0 }
 0x3f1   : > { %v7754_v37 = vpack.c.bf16 %v1721_v16, %v1720_v44  ;;  %5799 = vmatmul.msk.bf16.gmra.mxu3 %vm1332_vm9, %v1734_v15  ;;  %v1710_v44 = vmax.f32 %v1661_v63, 0.0  ;;  %v1715_v63 = vmax.f32 %v1673_v41, 0.0 }
 0x3f4   : > { %v1813_v45 = vpop.f32.mrf.mxu3 }
 0x3f5   : > { %v1814_v53 = vadd.f32 %v7762_v1, %v1813_v45  ;;  %v1736_v45 = vpack.c.bf16 %v1711_v61, %v1710_v44 }
 0x3fc   : > { %v1815_v47 = vpop.f32.mrf.mxu3 }
 0x3fd   : > { %v1816_v29 = vadd.f32 %v7762_v1, %v1815_v47  ;;  %v1713_v47 = vmax.f32 %v1668_v5, 0.0  ;;  %v1676_v5 = vadd.f32 %v7702_v56, %v7729_v22  ;;  %v1681_v22 = vadd.f32 %v7702_v56, %v7737_v32 }
 0x3ff   : > { %v7766_v36 = vpack.c.bf16 %v1816_v29, %v1814_v53  ;;  %v1712_v53 = vmax.f32 %v1666_v8, 0.0 }
 0x401   : > { %9536 = vst [vmem:[#allocation32_spill] sm:$0xff] %v7766_v36  ;;  %5800 = vmatmul.msk.bf16.gmra.mxu3 %vm1332_vm9, %v1735_v3  ;;  %5847 = vmatmul.msk.bf16.vlgmr.msra.gmra.mxu0 %vm1332_vm9, %v7766_v36  ;;  %v1737_v49 = vpack.c.bf16 %v1713_v47, %v1712_v53 }
 0x404   : > { %v1818_v23 = vpop.f32.mrf.mxu3 }
 0x405   : > { %v1819_v16 = vadd.f32 %v7762_v1, %v1818_v23 }
 0x40c   : > { %v1820_v15 = vpop.f32.mrf.mxu3 }
 0x40d   : > { %v1821_v43 = vadd.f32 %v7762_v1, %v1820_v15  ;;  %v1714_v15 = vmax.f32 %v1671_v7, 0.0 }
 0x40f   : > { %v7775_v59 = vpack.c.bf16 %v1821_v43, %v1819_v16  ;;  %v1738_v43 = vpack.c.bf16 %v1715_v63, %v1714_v15  ;;  %v1718_v63 = vmax.f32 %v1681_v22, 0.0 }
 0x411   : > { %9537 = vst [vmem:[#allocation29_spill] sm:$0xff] %v7775_v59  ;;  %5801 = vmatmul.msk.bf16.gmra.mxu3 %vm1332_vm9, %v1736_v45  ;;  %5848 = vmatmul.msk.bf16.gmra.mxu0 %vm1332_vm9, %v7775_v59  ;;  %v8324_v59 = vld [vmem:[%s8016_s16 + $0x68] sm:$0xff] }
 0x412   : > { %9567 = vst [vmem:[#allocation65_spill] sm:$0xff] %v8324_v59 }
 0x414   : > { %v1823_v51 = vpop.f32.mrf.mxu3 }
 0x415   : > { %v1824_v29 = vadd.f32 %v7762_v1, %v1823_v51  ;;  %v1678_v51 = vadd.f32 %v7702_v56, %v7733_v25  ;;  %v1683_v25 = vadd.f32 %v7702_v56, %v7744_v60 }
 0x417   : > { %v1717_v8 = vmax.f32 %v1678_v51, 0.0  ;;  %v1719_v41 = vmax.f32 %v1683_v25, 0.0 }
 0x41c   : > { %v1825_v17 = vpop.f32.mrf.mxu3 }
 0x41d   : > { %v1826_v3 = vadd.f32 %v7762_v1, %v1825_v17  ;;  %v1716_v17 = vmax.f32 %v1676_v5, 0.0 }
 0x41f   : > { %v7786_v23 = vpack.c.bf16 %v1826_v3, %v1824_v29  ;;  %v1739_v3 = vpack.c.bf16 %v1717_v8, %v1716_v17  ;;  %v9543_v17 = vld [vmem:[#allocation22_spill] sm:$0xff] }
 0x421   : > { %9538 = vst [vmem:[#allocation30_spill] sm:$0xff] %v7786_v23  ;;  %5802 = vmatmul.msk.bf16.gmra.mxu3 %vm1332_vm9, %v1737_v49  ;;  %5849 = vmatmul.msk.bf16.gmra.mxu0 %vm1332_vm9, %v7786_v23 }
 0x424   : > { %v1828_v34 = vpop.f32.mrf.mxu3 }
 0x425   : > { %v1829_v44 = vadd.f32 %v7762_v1, %v1828_v34 }
 0x42c   : > { %v1830_v61 = vpop.f32.mrf.mxu3 }
 0x42d   : > { %v1831_v16 = vadd.f32 %v7762_v1, %v1830_v61 }
 0x42f   : > { %v7797_v45 = vpack.c.bf16 %v1831_v16, %v1829_v44  ;;  %v1740_v44 = vpack.c.bf16 %v1719_v41, %v1718_v63 }
 0x431   : > { %9539 = vst [vmem:[#allocation28_spill] sm:$0xff] %v7797_v45  ;;  %5803 = vmatmul.msk.bf16.gmra.mxu3 %vm1332_vm9, %v1738_v43  ;;  %5850 = vmatmul.msk.bf16.gmra.mxu0 %vm1332_vm9, %v7797_v45  ;;  %v6434_v43 = vld [vmem:[%s9391_s5 + $0x10] sm:$0xff] }
 0x432   : > { %2970 = vmatpush.bf16.msrb.mxu3 %v6434_v43 }
 0x434   : > { %v1833_v62 = vpop.f32.mrf.mxu3 }
 0x435   : > { %v1834_v53 = vadd.f32 %v7762_v1, %v1833_v62 }
 0x43c   : > { %v1835_v47 = vpop.f32.mrf.mxu3 }
 0x43d   : > { %v1836_v29 = vadd.f32 %v7762_v1, %v1835_v47 }
 0x43f   : > { %v7811_v49 = vpack.c.bf16 %v1836_v29, %v1834_v53  ;;  %v9544_v53 = vld [vmem:[#allocation23_spill] sm:$0xff] }
 0x440   : > { %v2947_v29 = vpack.c.bf16 %v9544_v53, %v9543_v17 }
 0x441   : > { %9540 = vst [vmem:[#allocation26_spill] sm:$0xff] %v7811_v49  ;;  %5804 = vmatmul.msk.bf16.gmra.mxu3 %vm1332_vm9, %v1739_v3  ;;  %5851 = vmatmul.msk.bf16.gmra.mxu0 %vm1332_vm9, %v7811_v49 }
 0x444   : > { %v1838_v34 = vpop.f32.mrf.mxu3 }
 0x445   : > { %v1839_v61 = vadd.f32 %v7762_v1, %v1838_v34  ;;  %v7850_v34 = vld [vmem:[%s9396_s10 + $0x5] ss:$0 sm:$0xff] }
 0x44c   : > { %v1840_v7 = vpop.f32.mrf.mxu3 }
 0x44d   : > { %v1841_v15 = vadd.f32 %v7762_v1, %v1840_v7 }
 0x44f   : > { %v7822_v16 = vpack.c.bf16 %v1841_v15, %v1839_v61 }
 0x451   : > { %9541 = vst [vmem:[#allocation27_spill] sm:$0xff] %v7822_v16  ;;  %5805 = vmatmul.msk.bf16.gmra.mxu3 %vm1332_vm9, %v1740_v44  ;;  %5852 = vmatmul.msk.bf16.gmra.mxu0 %vm1332_vm9, %v7822_v16 }
 0x454   : > { %v1843_v56 = vpop.f32.mrf.mxu3 }
 0x455   : > { %v1844_v60 = vadd.f32 %v7762_v1, %v1843_v56 }
 0x45c   : > { %v1845_v32 = vpop.f32.mrf.mxu3 }
 0x45d   : > { %v1846_v4 = vadd.f32 %v7762_v1, %v1845_v32 }
 0x45f   : > { %v7832_v62 = vpack.c.bf16 %v1846_v4, %v1844_v60 }
 0x461   : > { %9542 = vst [vmem:[#allocation42_spill] sm:$0xff] %v7832_v62  ;;  %5806 = vmatmul.msk.bf16.gmra.mxu3 %vm1332_vm9, %v7754_v37  ;;  %5853 = vmatmul.msk.bf16.gmra.mxu0 %vm1332_vm9, %v7832_v62 }
 0x464   : > { %v1848_v51 = vpop.f32.mrf.mxu3 }
 0x465   : > { %v1849_v8 = vadd.f32 %v7762_v1, %v1848_v51 }
 0x46c   : > { %v1850_v5 = vpop.f32.mrf.mxu3 }
 0x46d   : > { %v1851_v47 = vadd.f32 %v7762_v1, %v1850_v5  ;;  %v6415_v5 = vld [vmem:[%s9395_s9 + $0x28] sm:$0xff] }
 0x46e   : > { %2629 = vmatpush.bf16.msrb.mxu1 %v6415_v5 }
 0x46f   : > { %v7842_v3 = vpack.c.bf16 %v1851_v47, %v1849_v8 }
 0x471   : > { %9545 = vst [vmem:[#allocation43_spill] sm:$0xff] %v7842_v3  ;;  %5854 = vmatmul.msk.bf16.gmra.mxu0 %vm1332_vm9, %v7842_v3  ;;  %5947 = vmatmul.msk.bf16.vlgmr.msrb.gmra.mxu3 %vm1332_vm9, %v2947_v29 }
 0x474   : > { %v1853_v37 = vpop.f32.mrf.mxu3 }
 0x475   : > { %v1854_v22 = vadd.f32 %v7762_v1, %v1853_v37 }
 0x47c   : > { %v1855_v25 = vpop.f32.mrf.mxu3 }
 0x47d   : > { %v1856_v41 = vadd.f32 %v7762_v1, %v1855_v25 }
 0x47e   : > { %v2112_v7 = vpop.f32.mrf.mxu0 }
 0x47f   : > { %v7854_v63 = vpack.c.bf16 %v1856_v41, %v1854_v22  ;;  %v2113_v61 = vadd.f32 %v7850_v34, %v2112_v7  ;;  %v6414_v22 = vld [vmem:[%s9395_s9 + $0x20] sm:$0xff] }
 0x480   : > { %2630 = vmatpush.bf16.msrb.mxu1 %v6414_v22 }
 0x481   : > { %9546 = vst [vmem:[#allocation44_spill] sm:$0xff] %v7854_v63  ;;  %v2224_v15 = vand.u32 2147483647, %v2113_v61  ;;  %5855 = vmatmul.msk.bf16.gmra.mxu0 %vm1332_vm9, %v7854_v63 }
 0x483   : > { %v2256_v44 = vsub.f32 0.0, %v2224_v15 }
 0x484   : > { %v1858_v43 = vpop.f32.mrf.mxu3 }
 0x485   : > { %v2288_v56 = vmul.f32 1.442695, %v2256_v44  ;;  %v1859_v29 = vadd.f32 %v7762_v1, %v1858_v43 }
 0x486   : > { %v2114_v32 = vpop.f32.mrf.mxu0 }
 0x487   : > { %6579 = vpow2.f32 %v2288_v56  ;;  %v2115_v60 = vadd.f32 %v7850_v34, %v2114_v32  ;;  %v6413_v32 = vld [vmem:[%s9395_s9 + $0x18] sm:$0xff] }
 0x488   : > { %2631 = vmatpush.bf16.msrb.mxu1 %v6413_v32 }
 0x489   : > { %v2225_v4 = vand.u32 2147483647, %v2115_v60 }
 0x48b   : > { %v2257_v51 = vsub.f32 0.0, %v2225_v4 }
 0x48c   : > { %v1860_v8 = vpop.f32.mrf.mxu3 }
 0x48d   : > { %v6580_v47 = vpop.eup %6579  ;;  %v2290_v37 = vmul.f32 1.442695, %v2257_v51  ;;  %v1861_v25 = vadd.f32 %v7762_v1, %v1860_v8  ;;  %v6412_v8 = vld [vmem:[%s9395_s9 + $0x10] sm:$0xff] }
 0x48e   : > { %v2352_v41 = vadd.f32 1.0, %v6580_v47  ;;  %v2117_v7 = vpop.f32.mrf.mxu0  ;;  %2632 = vmatpush.bf16.msrb.mxu1 %v6412_v8 }
 0x48f   : > { %6581 = vpow2.f32 %v2290_v37  ;;  %v7868_v15 = vpack.c.bf16 %v1861_v25, %v1859_v29  ;;  %v7871_v44 = vadd.f32 %v7850_v34, %v2117_v7 }
 0x490   : > { %6583 = vlog2.f32 %v2352_v41 }
 0x491   : > { %9547 = vst [vmem:[#allocation45_spill] sm:$0xff] %v7868_v15  ;;  %v2226_v56 = vand.u32 2147483647, %v7871_v44  ;;  %5856 = vmatmul.msk.bf16.gmra.mxu0 %vm1332_vm9, %v7868_v15 }
 0x493   : > { %v2258_v43 = vsub.f32 0.0, %v2226_v56  ;;  %v6411_v56 = vld [vmem:[%s9395_s9 + $0x8] sm:$0xff] }
 0x494   : > { %v1863_v4 = vpop.f32.mrf.mxu3  ;;  %2633 = vmatpush.bf16.msrb.mxu1 %v6411_v56 }
 0x495   : > { %v6582_v51 = vpop.eup %6581  ;;  %v2292_v5 = vmul.f32 1.442695, %v2258_v43  ;;  %v2192_v43 = vmax.f32 %v2113_v61, 0.0 }
 0x496   : > { %v2353_v47 = vadd.f32 1.0, %v6582_v51  ;;  %v2119_v29 = vpop.f32.mrf.mxu0  ;;  %v6584_v37 = vpop.eup %6583  ;;  %v1864_v51 = vadd.f32 %v7762_v1, %v1863_v4 }
 0x497   : > { %6585 = vpow2.f32 %v2292_v5  ;;  %v7883_v25 = vadd.f32 %v7850_v34, %v2119_v29  ;;  %v2385_v41 = vmul.f32 0.6931472, %v6584_v37  ;;  %v2193_v37 = vmax.f32 %v2115_v60, 0.0 }
 0x498   : > { %6587 = vlog2.f32 %v2353_v47  ;;  %v6410_v47 = vld [vmem:[%s9395_s9] sm:$0xff] }
 0x499   : > { %v2227_v22 = vand.u32 2147483647, %v7883_v25  ;;  %v2448_v29 = vadd.f32 %v2385_v41, %v2192_v43  ;;  %2634 = vmatpush.bf16.msrb.mxu1 %v6410_v47 }
 0x49b   : > { %v2259_v7 = vsub.f32 0.0, %v2227_v22  ;;  %v5863_v56 = vadd.f32 -0.6931472, %v2448_v29  ;;  %v2194_v29 = vmax.f32 %v7871_v44, 0.0 }
 0x49c   : > { %v1865_v32 = vpop.f32.mrf.mxu3 }
 0x49d   : > { %v6586_v0 = vpop.eup %6585  ;;  %v2294_v6 = vmul.f32 1.442695, %v2259_v7  ;;  %v1866_v5 = vadd.f32 %v7762_v1, %v1865_v32 }
 0x49e   : > { %v6588_v8 = vpop.eup %6587  ;;  %v2354_v22 = vadd.f32 1.0, %v6586_v0  ;;  %v2122_v20 = vpop.f32.mrf.mxu0 }
 0x49f   : > { %v2387_v57 = vmul.f32 0.6931472, %v6588_v8  ;;  %6589 = vpow2.f32 %v2294_v6  ;;  %v7894_v61 = vpack.c.bf16 %v1866_v5, %v1864_v51  ;;  %v7897_v28 = vadd.f32 %v7850_v34, %v2122_v20 }
 0x4a0   : > { %6591 = vlog2.f32 %v2354_v22 }
 0x4a1   : > { %9548 = vst [vmem:[#allocation46_spill] sm:$0xff] %v7894_v61  ;;  %v2449_v4 = vadd.f32 %v2387_v57, %v2193_v37  ;;  %v2228_v7 = vand.u32 2147483647, %v7897_v28  ;;  %5857 = vmatmul.msk.bf16.gmra.mxu0 %vm1332_vm9, %v7894_v61 }
 0x4a3   : > { %v5864_v41 = vadd.f32 -0.6931472, %v2449_v4  ;;  %v2260_v60 = vsub.f32 0.0, %v2228_v7 }
 0x4a4   : > { %v1868_v0 = vpop.f32.mrf.mxu3 }
 0x4a5   : > { %v6590_v43 = vpop.eup %6589  ;;  %v2296_v6 = vmul.f32 1.442695, %v2260_v60  ;;  %v2524_v32 = vpack.c.bf16 %v5864_v41, %v5863_v56  ;;  %v1869_v7 = vadd.f32 %v7762_v1, %v1868_v0 }
 0x4a6   : > { %v2355_v51 = vadd.f32 1.0, %v6590_v43  ;;  %v2124_v5 = vpop.f32.mrf.mxu0  ;;  %v6592_v20 = vpop.eup %6591 }
 0x4a7   : > { %6593 = vpow2.f32 %v2296_v6  ;;  %v2125_v57 = vadd.f32 %v7850_v34, %v2124_v5  ;;  %5919 = vmatmul.msk.bf16.vlgmr.msrb.gmra.mxu1 %vm2578_vm7, %v2524_v32  ;;  %v2389_v37 = vmul.f32 0.6931472, %v6592_v20  ;;  %v2195_v6 = vmax.f32 %v7883_v25, 0.0 }
 0x4a8   : > { %6595 = vlog2.f32 %v2355_v51 }
 0x4a9   : > { %v2229_v8 = vand.u32 2147483647, %v2125_v57  ;;  %v2450_v43 = vadd.f32 %v2389_v37, %v2194_v29 }
 0x4ab   : > { %v2261_v47 = vsub.f32 0.0, %v2229_v8  ;;  %v5865_v8 = vadd.f32 -0.6931472, %v2450_v43  ;;  %v2196_v43 = vmax.f32 %v7897_v28, 0.0 }
 0x4ac   : > { %v1870_v22 = vpop.f32.mrf.mxu3 }
 0x4ad   : > { %v6594_v4 = vpop.eup %6593  ;;  %v2298_v60 = vmul.f32 1.442695, %v2261_v47  ;;  %v1871_v56 = vadd.f32 %v7762_v1, %v1870_v22 }
 0x4ae   : > { %v6596_v41 = vpop.eup %6595  ;;  %v2356_v5 = vadd.f32 1.0, %v6594_v4  ;;  %v2127_v54 = vpop.f32.mrf.mxu0 }
 0x4af   : > { %v2391_v32 = vmul.f32 0.6931472, %v6596_v41  ;;  %6597 = vpow2.f32 %v2298_v60  ;;  %v7908_v51 = vpack.c.bf16 %v1871_v56, %v1869_v7  ;;  %v7911_v20 = vadd.f32 %v7850_v34, %v2127_v54 }
 0x4b0   : > { %6599 = vlog2.f32 %v2356_v5 }
 0x4b1   : > { %9549 = vst [vmem:[#allocation47_spill] sm:$0xff] %v7908_v51  ;;  %v2451_v44 = vadd.f32 %v2391_v32, %v2195_v6  ;;  %v2230_v0 = vand.u32 2147483647, %v7911_v20  ;;  %5858 = vmatmul.msk.bf16.gmra.mxu0 %vm1332_vm9, %v7908_v51 }
 0x4b3   : > { %v5866_v37 = vadd.f32 -0.6931472, %v2451_v44  ;;  %v2262_v47 = vsub.f32 0.0, %v2230_v0 }
 0x4b4   : > { %v1873_v25 = vpop.f32.mrf.mxu3 }
 0x4b5   : > { %v6598_v29 = vpop.eup %6597  ;;  %v2300_v22 = vmul.f32 1.442695, %v2262_v47  ;;  %v2525_v4 = vpack.c.bf16 %v5866_v37, %v5865_v8  ;;  %v1874_v0 = vadd.f32 %v7762_v1, %v1873_v25 }
 0x4b6   : > { %v2357_v60 = vadd.f32 1.0, %v6598_v29  ;;  %v2129_v7 = vpop.f32.mrf.mxu0  ;;  %v6600_v56 = vpop.eup %6599 }
 0x4b7   : > { %6601 = vpow2.f32 %v2300_v22  ;;  %v2130_v54 = vadd.f32 %v7850_v34, %v2129_v7  ;;  %5920 = vmatmul.msk.bf16.gmra.mxu1 %vm2578_vm7, %v2525_v4  ;;  %v2393_v6 = vmul.f32 0.6931472, %v6600_v56  ;;  %v2197_v22 = vmax.f32 %v2125_v57, 0.0 }
 0x4b8   : > { %6603 = vlog2.f32 %v2357_v60 }
 0x4b9   : > { %v2231_v41 = vand.u32 2147483647, %v2130_v54  ;;  %v2452_v29 = vadd.f32 %v2393_v6, %v2196_v43 }
 0x4bb   : > { %v2263_v5 = vsub.f32 0.0, %v2231_v41  ;;  %v5867_v25 = vadd.f32 -0.6931472, %v2452_v29  ;;  %v7934_v29 = vpop.permute.xlu0 %2873 }
 0x4bc   : > { %v1875_v32 = vpop.f32.mrf.mxu3 }
 0x4bd   : > { %v6602_v44 = vpop.eup %6601  ;;  %v2302_v47 = vmul.f32 1.442695, %v2263_v5  ;;  %v1876_v8 = vadd.f32 %v7762_v1, %v1875_v32 }
 0x4be   : > { %v6604_v37 = vpop.eup %6603  ;;  %v2358_v18 = vadd.f32 1.0, %v6602_v44  ;;  %v2132_v7 = vpop.f32.mrf.mxu0 }
 0x4bf   : > { %v2395_v26 = vmul.f32 0.6931472, %v6604_v37  ;;  %6605 = vpow2.f32 %v2302_v47  ;;  %v7921_v4 = vpack.c.bf16 %v1876_v8, %v1874_v0  ;;  %v7924_v60 = vadd.f32 %v7850_v34, %v2132_v7 }
 0x4c0   : > { %6607 = vlog2.f32 %v2358_v18 }
 0x4c1   : > { %9550 = vst [vmem:[#allocation48_spill] sm:$0xff] %v7921_v4  ;;  %v2453_v28 = vadd.f32 %v2395_v26, %v2197_v22  ;;  %v2232_v56 = vand.u32 2147483647, %v7924_v60  ;;  %5859 = vmatmul.msk.bf16.gmra.mxu0 %vm1332_vm9, %v7921_v4  ;;  %v2198_v22 = vmax.f32 %v7911_v20, 0.0  ;;  %v7944_v20 = vpop.permute.xlu1 %2868 }
 0x4c3   : > { %v5868_v41 = vadd.f32 -0.6931472, %v2453_v28  ;;  %v2264_v6 = vsub.f32 0.0, %v2232_v56 }
 0x4c4   : > { %v1878_v57 = vpop.f32.mrf.mxu3 }
 0x4c5   : > { %v6606_v5 = vpop.eup %6605  ;;  %v2304_v43 = vmul.f32 1.442695, %v2264_v6  ;;  %v2526_v32 = vpack.c.bf16 %v5868_v41, %v5867_v25  ;;  %v1879_v56 = vadd.f32 %v7762_v1, %v1878_v57 }
 0x4c6   : > { %v2359_v44 = vadd.f32 1.0, %v6606_v5  ;;  %v2134_v0 = vpop.f32.mrf.mxu0  ;;  %v6608_v47 = vpop.eup %6607 }
 0x4c7   : > { %6609 = vpow2.f32 %v2304_v43  ;;  %v7930_v8 = vadd.f32 %v7850_v34, %v2134_v0  ;;  %5921 = vmatmul.msk.bf16.gmra.mxu1 %vm2578_vm7, %v2526_v32  ;;  %v2397_v26 = vmul.f32 0.6931472, %v6608_v47  ;;  %v2199_v43 = vmax.f32 %v2130_v54, 0.0 }
 0x4c8   : > { %6611 = vlog2.f32 %v2359_v44 }
 0x4c9   : > { %v2233_v18 = vand.u32 2147483647, %v7930_v8  ;;  %v2454_v5 = vadd.f32 %v2397_v26, %v2198_v22 }
 0x4cb   : > { %v2265_v37 = vsub.f32 0.0, %v2233_v18  ;;  %v5869_v26 = vadd.f32 -0.6931472, %v2454_v5 }
 0x4cc   : > { %v1880_v7 = vpop.f32.mrf.mxu3 }
 0x4cd   : > { %v6610_v28 = vpop.eup %6609  ;;  %v2306_v25 = vmul.f32 1.442695, %v2265_v37  ;;  %v1881_v41 = vadd.f32 %v7762_v1, %v1880_v7 }
 0x4ce   : > { %v6612_v6 = vpop.eup %6611  ;;  %v2360_v32 = vadd.f32 1.0, %v6610_v28  ;;  %v2137_v44 = vpop.f32.mrf.mxu0 }
 0x4cf   : > { %v2399_v0 = vmul.f32 0.6931472, %v6612_v6  ;;  %6613 = vpow2.f32 %v2306_v25  ;;  %v7939_v47 = vpack.c.bf16 %v1881_v41, %v1879_v56  ;;  %v7942_v18 = vadd.f32 %v7850_v34, %v2137_v44  ;;  %v7949_v25 = vpop.permute.xlu0 %2848 }
 0x4d0   : > { %6615 = vlog2.f32 %v2360_v32 }
 0x4d1   : > { %9551 = vst [vmem:[#allocation49_spill] sm:$0xff] %v7939_v47  ;;  %v2455_v52 = vadd.f32 %v2399_v0, %v2199_v43  ;;  %v2234_v57 = vand.u32 2147483647, %v7942_v18  ;;  %5860 = vmatmul.msk.bf16.gmra.mxu0 %vm1332_vm9, %v7939_v47 }
 0x4d3   : > { %v5870_v54 = vadd.f32 -0.6931472, %v2455_v52  ;;  %v2266_v37 = vsub.f32 0.0, %v2234_v57  ;;  %v7956_v52 = vpop.permute.xlu1 %2863  ;;  %v2200_v57 = vmax.f32 %v7924_v60, 0.0 }
 0x4d4   : > { %v1883_v22 = vpop.f32.mrf.mxu3 }
 0x4d5   : > { %v6614_v7 = vpop.eup %6613  ;;  %v2308_v28 = vmul.f32 1.442695, %v2266_v37  ;;  %v2527_v56 = vpack.c.bf16 %v5870_v54, %v5869_v26  ;;  %v1884_v37 = vadd.f32 %v7762_v1, %v1883_v22 }
 0x4d6   : > { %v2361_v41 = vadd.f32 1.0, %v6614_v7  ;;  %v2139_v6 = vpop.f32.mrf.mxu0  ;;  %v6616_v44 = vpop.eup %6615 }
 0x4d7   : > { %6617 = vpow2.f32 %v2308_v28  ;;  %v7952_v43 = vadd.f32 %v7850_v34, %v2139_v6  ;;  %5922 = vmatmul.msk.bf16.gmra.mxu1 %vm2578_vm7, %v2527_v56  ;;  %v2401_v32 = vmul.f32 0.6931472, %v6616_v44  ;;  %v2201_v56 = vmax.f32 %v7930_v8, 0.0  ;;  %v7967_v60 = vpop.permute.xlu0 %2783 }
 0x4d8   : > { %6619 = vlog2.f32 %v2361_v41 }
 0x4d9   : > { %v2235_v5 = vand.u32 2147483647, %v7952_v43  ;;  %v2456_v27 = vadd.f32 %v2401_v32, %v2200_v57 }
 0x4db   : > { %v2267_v0 = vsub.f32 0.0, %v2235_v5  ;;  %v5871_v32 = vadd.f32 -0.6931472, %v2456_v27  ;;  %v7972_v57 = vpop.permute.xlu1 %2788 }
 0x4dc   : > { %v1885_v26 = vpop.f32.mrf.mxu3 }
 0x4dd   : > { %v6618_v54 = vpop.eup %6617  ;;  %v2310_v7 = vmul.f32 1.442695, %v2267_v0  ;;  %v1886_v28 = vadd.f32 %v7762_v1, %v1885_v26 }
 0x4de   : > { %v6620_v6 = vpop.eup %6619  ;;  %v2362_v41 = vadd.f32 1.0, %v6618_v54  ;;  %v2142_v33 = vpop.f32.mrf.mxu0 }
 0x4df   : > { %v2403_v38 = vmul.f32 0.6931472, %v6620_v6  ;;  %6621 = vpow2.f32 %v2310_v7  ;;  %v7962_v58 = vpack.c.bf16 %v1886_v28, %v1884_v37  ;;  %v7965_v44 = vadd.f32 %v7850_v34, %v2142_v33  ;;  %v7974_v33 = vpop.permute.xlu2 %2858 }
 0x4e0   : > { %6623 = vlog2.f32 %v2362_v41  ;;  %v7981_v41 = vpop.permute.xlu0 %2768 }
 0x4e1   : > { %9552 = vst [vmem:[#allocation50_spill] sm:$0xff] %v7962_v58  ;;  %v2457_v5 = vadd.f32 %v2403_v38, %v2201_v56  ;;  %v2236_v22 = vand.u32 2147483647, %v7965_v44  ;;  %5861 = vmatmul.msk.bf16.gmra.mxu0 %vm1332_vm9, %v7962_v58 }
 0x4e3   : > { %v5872_v8 = vadd.f32 -0.6931472, %v2457_v5  ;;  %v2268_v0 = vsub.f32 0.0, %v2236_v22  ;;  %v7986_v13 = vpop.permute.xlu1 %2793 }
 0x4e4   : > { %v1888_v26 = vpop.f32.mrf.mxu3 }
 0x4e5   : > { %v6622_v54 = vpop.eup %6621  ;;  %v2312_v37 = vmul.f32 1.442695, %v2268_v0  ;;  %v2528_v7 = vpack.c.bf16 %v5872_v8, %v5871_v32  ;;  %v2202_v32 = vmax.f32 %v7942_v18, 0.0 }
 0x4e6   : > { %v2363_v28 = vadd.f32 1.0, %v6622_v54  ;;  %v2144_v6 = vpop.f32.mrf.mxu0  ;;  %v6624_v38 = vpop.eup %6623  ;;  %v1889_v54 = vadd.f32 %v7762_v1, %v1888_v26 }
 0x4e7   : > { %6625 = vpow2.f32 %v2312_v37  ;;  %v7977_v56 = vadd.f32 %v7850_v34, %v2144_v6  ;;  %5923 = vmatmul.msk.bf16.gmra.mxu1 %vm2578_vm7, %v2528_v7  ;;  %v2405_v5 = vmul.f32 0.6931472, %v6624_v38 }
 0x4e8   : > { %6627 = vlog2.f32 %v2363_v28  ;;  %v2203_v28 = vmax.f32 %v7952_v43, 0.0 }
 0x4e9   : > { %v2237_v27 = vand.u32 2147483647, %v7977_v56  ;;  %v2458_v7 = vadd.f32 %v2405_v5, %v2202_v32  ;;  %v7999_v32 = vpop.permute.xlu0 %2833 }
 0x4eb   : > { %v2269_v22 = vsub.f32 0.0, %v2237_v27  ;;  %v7994_v27 = vpop.permute.xlu2 %2853  ;;  %v5873_v5 = vadd.f32 -0.6931472, %v2458_v7 }
 0x4ec   : > { %v1890_v8 = vpop.f32.mrf.mxu3 }
 0x4ed   : > { %v6626_v0 = vpop.eup %6625  ;;  %v2314_v21 = vmul.f32 1.442695, %v2269_v22  ;;  %v1891_v37 = vadd.f32 %v7762_v1, %v1890_v8 }
 0x4ee   : > { %v6628_v6 = vpop.eup %6627  ;;  %v2364_v30 = vadd.f32 1.0, %v6626_v0  ;;  %v2147_v9 = vpop.f32.mrf.mxu0 }
 0x4ef   : > { %v2407_v35 = vmul.f32 0.6931472, %v6628_v6  ;;  %6629 = vpow2.f32 %v2314_v21  ;;  %v7989_v38 = vpack.c.bf16 %v1891_v37, %v1889_v54  ;;  %v7992_v18 = vadd.f32 %v7850_v34, %v2147_v9  ;;  %v8005_v6 = vpop.permute.xlu1 %2778 }
 0x4f0   : > { %6631 = vlog2.f32 %v2364_v30 }
 0x4f1   : > { %9553 = vst [vmem:[#allocation51_spill] sm:$0xff] %v7989_v38  ;;  %v2459_v26 = vadd.f32 %v2407_v35, %v2203_v28  ;;  %v2238_v1 = vand.u32 2147483647, %v7992_v18  ;;  %5862 = vmatmul.msk.bf16.gmra.mxu0 %vm1332_vm9, %v7989_v38 }
 0x4f3   : > { %v5874_v43 = vadd.f32 -0.6931472, %v2459_v26  ;;  %v2270_v22 = vsub.f32 0.0, %v2238_v1  ;;  %v8009_v28 = vpop.permute.xlu2 %2838 }
 0x4f4   : > { %v2972_v21 = vpop.f32.mrf.mxu3 }
 0x4f5   : > { %v6630_v8 = vpop.eup %6629  ;;  %v2316_v9 = vmul.f32 1.442695, %v2270_v22  ;;  %v2529_v0 = vpack.c.bf16 %v5874_v43, %v5873_v5  ;;  %v2204_v5 = vmax.f32 %v7965_v44, 0.0 }
 0x4f6   : > { %v2365_v54 = vadd.f32 1.0, %v6630_v8  ;;  %v2149_v37 = vpop.f32.mrf.mxu0  ;;  %v6632_v35 = vpop.eup %6631 }
 0x4f7   : > { %6633 = vpow2.f32 %v2316_v9  ;;  %v8002_v30 = vadd.f32 %v7850_v34, %v2149_v37  ;;  %5924 = vmatmul.msk.bf16.gmra.mxu1 %vm2578_vm7, %v2529_v0  ;;  %v2409_v26 = vmul.f32 0.6931472, %v6632_v35  ;;  %v2205_v35 = vmax.f32 %v7977_v56, 0.0 }
 0x4f8   : > { %6635 = vlog2.f32 %v2365_v54  ;;  %v8019_v54 = vpop.permute.xlu0 %2818 }
 0x4f9   : > { %v2239_v7 = vand.u32 2147483647, %v8002_v30  ;;  %v2460_v37 = vadd.f32 %v2409_v26, %v2204_v5 }
 0x4fb   : > { %v2271_v1 = vsub.f32 0.0, %v2239_v7  ;;  %v5875_v26 = vadd.f32 -0.6931472, %v2460_v37 }
 0x4fc   : > { %v2974_v43 = vpop.f32.mrf.mxu3 }
 0x4fd   : > { %v6634_v22 = vpop.eup %6633  ;;  %v2318_v8 = vmul.f32 1.442695, %v2271_v1  ;;  %v2977_v9 = vpack.c.bf16 %v2974_v43, %v2972_v21  ;;  %v8027_v21 = vpop.permute.xlu1 %2843 }
 0x4fe   : > { %v6636_v0 = vpop.eup %6635  ;;  %v2366_v7 = vadd.f32 1.0, %v6634_v22  ;;  %v2152_v48 = vpop.f32.mrf.mxu0 }
 0x4ff   : > { %v2411_v2 = vmul.f32 0.6931472, %v6636_v0  ;;  %6637 = vpow2.f32 %v2318_v8  ;;  %v8024_v12 = vadd.f32 %v7850_v34, %v2152_v48  ;;  %3114 = vmatpush.bf16.msrb.mxu2 %v2977_v9  ;;  %v8030_v43 = vpop.permute.xlu2 %2773 }
 0x500   : > { %6639 = vlog2.f32 %v2366_v7 }
 0x501   : > { %v2461_v44 = vadd.f32 %v2411_v2, %v2205_v35  ;;  %v2240_v1 = vand.u32 2147483647, %v8024_v12  ;;  %v8034_v35 = vpop.permute.xlu0 %2753 }
 0x502   : > { %6012 = vmatmul.msk.bf16.vlgmr.msrb.gmra.mxu2 %vm3058_vm1, %v6416_v31 }
 0x503   : > { %v5876_v56 = vadd.f32 -0.6931472, %v2461_v44  ;;  %v2272_v5 = vsub.f32 0.0, %v2240_v1 }
 0x505   : > { %v6638_v22 = vpop.eup %6637  ;;  %v2320_v8 = vmul.f32 1.442695, %v2272_v5  ;;  %v2530_v0 = vpack.c.bf16 %v5876_v56, %v5875_v26  ;;  %v8036_v44 = vpop.permute.xlu1 %2828  ;;  %v2206_v26 = vmax.f32 %v7992_v18, 0.0 }
 0x506   : > { %v2367_v48 = vadd.f32 1.0, %v6638_v22  ;;  %v2154_v24 = vpop.f32.mrf.mxu0  ;;  %v6640_v9 = vpop.eup %6639 }
 0x507   : > { %6641 = vpow2.f32 %v2320_v8  ;;  %v2155_v2 = vadd.f32 %v7850_v34, %v2154_v24  ;;  %5925 = vmatmul.msk.bf16.gmra.mxu1 %vm2578_vm7, %v2530_v0  ;;  %v2413_v37 = vmul.f32 0.6931472, %v6640_v9  ;;  %v8039_v22 = vpop.permute.xlu2 %2758  ;;  %v2207_v24 = vmax.f32 %v8002_v30, 0.0 }
 0x508   : > { %6643 = vlog2.f32 %v2367_v48 }
 0x509   : > { %v2241_v31 = vand.u32 2147483647, %v2155_v2  ;;  %v2462_v42 = vadd.f32 %v2413_v37, %v2206_v26  ;;  %v8047_v40 = vpop.permute.xlu0 %2738 }
 0x50b   : > { %v2273_v7 = vsub.f32 0.0, %v2241_v31  ;;  %v5877_v18 = vadd.f32 -0.6931472, %v2462_v42 }
 0x50d   : > { %v6642_v1 = vpop.eup %6641  ;;  %v2322_v56 = vmul.f32 1.442695, %v2273_v7  ;;  %v8050_v37 = vpop.permute.xlu1 %2763 }
 0x50e   : > { %v6644_v5 = vpop.eup %6643  ;;  %v2368_v8 = vadd.f32 1.0, %v6642_v1  ;;  %v2157_v0 = vpop.f32.mrf.mxu0 }
 0x50f   : > { %v2415_v14 = vmul.f32 0.6931472, %v6644_v5  ;;  %6645 = vpow2.f32 %v2322_v56  ;;  %v8044_v48 = vadd.f32 %v7850_v34, %v2157_v0 }
 0x510   : > { %6647 = vlog2.f32 %v2368_v8 }
 0x511   : > { %v2463_v9 = vadd.f32 %v2415_v14, %v2207_v24  ;;  %v2242_v31 = vand.u32 2147483647, %v8044_v48  ;;  %v8056_v24 = vpop.permute.xlu2 %2823  ;;  %v8059_v0 = vpop.permute.xlu0 %2803 }
 0x512   : > { %6013 = vmatmul.msk.bf16.gmra.mxu2 %vm3058_vm1, %v6417_v50 }
 0x513   : > { %v5878_v7 = vadd.f32 -0.6931472, %v2463_v9  ;;  %v2274_v30 = vsub.f32 0.0, %v2242_v31  ;;  %v2208_v31 = vmax.f32 %v8024_v12, 0.0  ;;  %v8072_v12 = vld [vmem:[%s9396_s10 + $0x6] ss:$0 sm:$0xff] }
 0x515   : > { %v6646_v1 = vpop.eup %6645  ;;  %v2324_v19 = vmul.f32 1.442695, %v2274_v30  ;;  %v2531_v10 = vpack.c.bf16 %v5878_v7, %v5877_v18  ;;  %v2209_v7 = vmax.f32 %v2155_v2, 0.0  ;;  %v8066_v46 = vpop.permute.xlu1 %2748 }
 0x516   : > { %v2369_v26 = vadd.f32 1.0, %v6646_v1  ;;  %v2159_v56 = vpop.f32.mrf.mxu0  ;;  %v6648_v5 = vpop.eup %6647 }
 0x517   : > { %6649 = vpow2.f32 %v2324_v19  ;;  %v8053_v14 = vadd.f32 %v7850_v34, %v2159_v56  ;;  %5926 = vmatmul.msk.bf16.gmra.mxu1 %vm2578_vm7, %v2531_v10  ;;  %v2417_v50 = vmul.f32 0.6931472, %v6648_v5  ;;  %v6418_v56 = vld [vmem:[%s8016_s16 + $0x10] sm:$0xff] }
 0x518   : > { %6651 = vlog2.f32 %v2369_v26 }
 0x519   : > { %v2243_v42 = vand.u32 2147483647, %v8053_v14  ;;  %v2464_v10 = vadd.f32 %v2417_v50, %v2208_v31  ;;  %v8074_v2 = vpop.permute.xlu2 %2808 }
 0x51b   : > { %v2275_v8 = vsub.f32 0.0, %v2243_v42  ;;  %v5879_v50 = vadd.f32 -0.6931472, %v2464_v10 }
 0x51d   : > { %v6650_v9 = vpop.eup %6649  ;;  %v2326_v19 = vmul.f32 1.442695, %v2275_v8  ;;  %v8087_v10 = vpop.permute.xlu1 %2813 }
 0x51e   : > { %v6652_v18 = vpop.eup %6651  ;;  %v2370_v30 = vadd.f32 1.0, %v6650_v9  ;;  %v2162_v1 = vpop.f32.mrf.mxu0 }
 0x51f   : > { %v2419_v39 = vmul.f32 0.6931472, %v6652_v18  ;;  %6653 = vpow2.f32 %v2326_v19  ;;  %v8064_v26 = vadd.f32 %v7850_v34, %v2162_v1  ;;  %v2719_v1 = vpop.permute.xlu0 %2718 }
 0x520   : > { %6655 = vlog2.f32 %v2370_v30 }
 0x521   : > { %v2465_v5 = vadd.f32 %v2419_v39, %v2209_v7  ;;  %v2244_v42 = vand.u32 2147483647, %v8064_v26 }
 0x522   : > { %6014 = vmatmul.msk.bf16.gmra.mxu2 %vm3058_vm1, %v6418_v56 }
 0x523   : > { %v5880_v8 = vadd.f32 -0.6931472, %v2465_v5  ;;  %v2276_v9 = vsub.f32 0.0, %v2244_v42 }
 0x524   : > { %v2636_v31 = vpop.f32.mrf.mxu1 }
 0x525   : > { %v6654_v19 = vpop.eup %6653  ;;  %v2328_v18 = vmul.f32 1.442695, %v2276_v9  ;;  %v2637_v39 = vadd.f32 %v8072_v12, %v2636_v31  ;;  %v2532_v7 = vpack.c.bf16 %v5880_v8, %v5879_v50  ;;  %v8089_v50 = vpop.permute.xlu2 %2743  ;;  %v2210_v9 = vmax.f32 %v8044_v48, 0.0 }
 0x526   : > { %v2371_v55 = vadd.f32 1.0, %v6654_v19  ;;  %v2164_v11 = vpop.f32.mrf.mxu0  ;;  %v6656_v30 = vpop.eup %6655  ;;  %v2211_v19 = vmax.f32 %v8053_v14, 0.0 }
 0x527   : > { %6657 = vpow2.f32 %v2328_v18  ;;  %v8078_v38 = vmul.f32 %v2719_v1, %v2637_v39  ;;  %v8081_v58 = vadd.f32 %v7850_v34, %v2164_v11  ;;  %5927 = vmatmul.msk.bf16.gmra.mxu1 %vm2578_vm7, %v2532_v7  ;;  %v2421_v5 = vmul.f32 0.6931472, %v6656_v30  ;;  %v6419_v7 = vld [vmem:[%s8016_s16 + $0x18] sm:$0xff]  ;;  %v8101_v61 = vpop.permute.xlu1 %2798 }
 0x528   : > { %6659 = vlog2.f32 %v2371_v55 }
 0x529   : > { %9554 = vst [vmem:[#allocation52_spill] sm:$0xff] %v8078_v38  ;;  %v2245_v56 = vand.u32 2147483647, %v8081_v58  ;;  %3535 = vrot.lane.b32.xlu2 %v8078_v38, %s6825_s24  ;;  %v2466_v1 = vadd.f32 %v2421_v5, %v2210_v9 }
 0x52b   : > { %v2277_v42 = vsub.f32 0.0, %v2245_v56  ;;  %v5881_v48 = vadd.f32 -0.6931472, %v2466_v1  ;;  %v2212_v1 = vmax.f32 %v8064_v26, 0.0 }
 0x52c   : > { %v8091_v8 = vpop.f32.mrf.mxu1 }
 0x52d   : > { %v6658_v11 = vpop.eup %6657  ;;  %v2330_v31 = vmul.f32 1.442695, %v2277_v42 }
 0x52e   : > { %v6660_v55 = vpop.eup %6659  ;;  %v2372_v18 = vadd.f32 1.0, %v6658_v11  ;;  %v2167_v39 = vpop.f32.mrf.mxu0 }
 0x52f   : > { %v2423_v47 = vmul.f32 0.6931472, %v6660_v55  ;;  %6661 = vpow2.f32 %v2330_v31  ;;  %v8097_v30 = vadd.f32 %v7850_v34, %v2167_v39  ;;  %v2729_v31 = vpop.permute.xlu2 %2728 }
 0x530   : > { %6663 = vlog2.f32 %v2372_v18 }
 0x531   : > { %v2467_v56 = vadd.f32 %v2423_v47, %v2211_v19  ;;  %v2246_v4 = vand.u32 2147483647, %v8097_v30 }
 0x532   : > { %6015 = vmatmul.msk.bf16.gmra.mxu2 %vm3058_vm1, %v6419_v7 }
 0x533   : > { %v5882_v42 = vadd.f32 -0.6931472, %v2467_v56  ;;  %v2278_v51 = vsub.f32 0.0, %v2246_v4 }
 0x534   : > { %v2641_v14 = vpop.f32.mrf.mxu1 }
 0x535   : > { %v6662_v11 = vpop.eup %6661  ;;  %v2332_v15 = vmul.f32 1.442695, %v2278_v51  ;;  %v2642_v5 = vadd.f32 %v8072_v12, %v2641_v14  ;;  %v2533_v9 = vpack.c.bf16 %v5882_v42, %v5881_v48 }
 0x536   : > { %v2373_v55 = vadd.f32 1.0, %v6662_v11  ;;  %v2169_v39 = vpop.f32.mrf.mxu0  ;;  %v6664_v47 = vpop.eup %6663 }
 0x537   : > { %6665 = vpow2.f32 %v2332_v15  ;;  %v8104_v19 = vmul.f32 %v2729_v31, %v2642_v5  ;;  %v8107_v18 = vadd.f32 %v7850_v34, %v2169_v39  ;;  %5928 = vmatmul.msk.bf16.gmra.mxu1 %vm2578_vm7, %v2533_v9  ;;  %v2425_v51 = vmul.f32 0.6931472, %v6664_v47  ;;  %v2734_v11 = vpop.permute.xlu1 %2733  ;;  %v6420_v39 = vld [vmem:[%s8016_s16 + $0x20] sm:$0xff] }
 0x538   : > { %6667 = vlog2.f32 %v2373_v55  ;;  %v2213_v9 = vmax.f32 %v8081_v58, 0.0 }
 0x539   : > { %v2247_v4 = vand.u32 2147483647, %v8107_v18  ;;  %3539 = vrot.lane.b32.xlu0 %v8104_v19, %s6825_s24  ;;  %v2468_v5 = vadd.f32 %v2425_v51, %v2212_v1 }
 0x53b   : > { %v2279_v7 = vsub.f32 0.0, %v2247_v4  ;;  %v5883_v58 = vadd.f32 -0.6931472, %v2468_v5 }
 0x53c   : > { %v2643_v56 = vpop.f32.mrf.mxu1 }
 0x53d   : > { %v6666_v15 = vpop.eup %6665  ;;  %v2334_v48 = vmul.f32 1.442695, %v2279_v7  ;;  %v2644_v42 = vadd.f32 %v8072_v12, %v2643_v56 }
 0x53e   : > { %v6668_v14 = vpop.eup %6667  ;;  %v2374_v31 = vadd.f32 1.0, %v6666_v15  ;;  %v2172_v55 = vpop.f32.mrf.mxu0 }
 0x53f   : > { %v2427_v63 = vmul.f32 0.6931472, %v6668_v14  ;;  %6669 = vpow2.f32 %v2334_v48  ;;  %v8117_v3 = vmul.f32 %v2734_v11, %v2644_v42  ;;  %v8120_v47 = vadd.f32 %v7850_v34, %v2172_v55 }
 0x540   : > { %6671 = vlog2.f32 %v2374_v31 }
 0x541   : > { %9555 = vst [vmem:[#allocation53_spill] sm:$0xff] %v8117_v3  ;;  %v2469_v26 = vadd.f32 %v2427_v63, %v2213_v9  ;;  %v2248_v4 = vand.u32 2147483647, %v8120_v47  ;;  %3541 = vrot.lane.b32.xlu2 %v8117_v3, %s6825_s24 }
 0x542   : > { %6016 = vmatmul.msk.bf16.gmra.mxu2 %vm3058_vm1, %v6420_v39 }
 0x543   : > { %v5884_v51 = vadd.f32 -0.6931472, %v2469_v26  ;;  %v2280_v7 = vsub.f32 0.0, %v2248_v4  ;;  %v2214_v26 = vmax.f32 %v8097_v30, 0.0 }
 0x544   : > { %v2646_v1 = vpop.f32.mrf.mxu1 }
 0x545   : > { %v6670_v56 = vpop.eup %6669  ;;  %v2336_v15 = vmul.f32 1.442695, %v2280_v7  ;;  %v2647_v48 = vadd.f32 %v8072_v12, %v2646_v1  ;;  %v2534_v42 = vpack.c.bf16 %v5884_v51, %v5883_v58 }
 0x546   : > { %v2375_v14 = vadd.f32 1.0, %v6670_v56  ;;  %v2174_v11 = vpop.f32.mrf.mxu0  ;;  %v6672_v63 = vpop.eup %6671  ;;  %v2215_v56 = vmax.f32 %v8107_v18, 0.0 }
 0x547   : > { %6673 = vpow2.f32 %v2336_v15  ;;  %v8128_v9 = vmul.f32 %v8047_v40, %v2647_v48  ;;  %v8131_v31 = vadd.f32 %v7850_v34, %v2174_v11  ;;  %5929 = vmatmul.msk.bf16.gmra.mxu1 %vm2578_vm7, %v2534_v42  ;;  %v2429_v55 = vmul.f32 0.6931472, %v6672_v63  ;;  %v8141_v42 = vld [vmem:[%s8016_s16 + $0x28] sm:$0xff] }
 0x548   : > { %6675 = vlog2.f32 %v2375_v14  ;;  %9557 = vst [vmem:[#allocation55_spill] sm:$0xff] %v8141_v42 }
 0x549   : > { %9556 = vst [vmem:[#allocation54_spill] sm:$0xff] %v8128_v9  ;;  %v2249_v5 = vand.u32 2147483647, %v8131_v31  ;;  %3543 = vrot.lane.b32.xlu1 %v8128_v9, %s6825_s24  ;;  %v2470_v1 = vadd.f32 %v2429_v55, %v2214_v26 }
 0x54b   : > { %v2281_v39 = vsub.f32 0.0, %v2249_v5  ;;  %v5885_v18 = vadd.f32 -0.6931472, %v2470_v1 }
 0x54c   : > { %v2648_v4 = vpop.f32.mrf.mxu1 }
 0x54d   : > { %v6674_v58 = vpop.eup %6673  ;;  %v2338_v40 = vmul.f32 1.442695, %v2281_v39  ;;  %v2649_v51 = vadd.f32 %v8072_v12, %v2648_v4 }
 0x54e   : > { %v6676_v7 = vpop.eup %6675  ;;  %v2376_v15 = vadd.f32 1.0, %v6674_v58  ;;  %v2177_v48 = vpop.f32.mrf.mxu0 }
 0x54f   : > { %v2431_v14 = vmul.f32 0.6931472, %v6676_v7  ;;  %6677 = vpow2.f32 %v2338_v40  ;;  %v8144_v11 = vmul.f32 %v8089_v50, %v2649_v51  ;;  %v8147_v30 = vadd.f32 %v7850_v34, %v2177_v48 }
 0x550   : > { %6679 = vlog2.f32 %v2376_v15  ;;  %v8161_v15 = vld [vmem:[%s9396_s10 + $0x5] ss:$0 sm:$0xff] }
 0x551   : > { %v2471_v63 = vadd.f32 %v2431_v14, %v2215_v56  ;;  %v2250_v5 = vand.u32 2147483647, %v8147_v30  ;;  %3545 = vrot.lane.b32.xlu0 %v8144_v11, %s6825_s24 }
 0x552   : > { %6017 = vmatmul.msk.bf16.gmra.mxu2 %vm3058_vm1, %v8141_v42 }
 0x553   : > { %v5886_v55 = vadd.f32 -0.6931472, %v2471_v63  ;;  %v2282_v39 = vsub.f32 0.0, %v2250_v5  ;;  %v2216_v63 = vmax.f32 %v8120_v47, 0.0 }
 0x554   : > { %v2651_v26 = vpop.f32.mrf.mxu1 }
 0x555   : > { %v6678_v4 = vpop.eup %6677  ;;  %v2340_v50 = vmul.f32 1.442695, %v2282_v39  ;;  %v2652_v58 = vadd.f32 %v8072_v12, %v2651_v26  ;;  %v2535_v34 = vpack.c.bf16 %v5886_v55, %v5885_v18 }
 0x556   : > { %v2377_v40 = vadd.f32 1.0, %v6678_v4  ;;  %v2179_v51 = vpop.f32.mrf.mxu0  ;;  %v6680_v7 = vpop.eup %6679 }
 0x557   : > { %6681 = vpow2.f32 %v2340_v50  ;;  %v8156_v56 = vmul.f32 %v8066_v46, %v2652_v58  ;;  %v8164_v1 = vadd.f32 %v8161_v15, %v2179_v51  ;;  %5930 = vmatmul.msk.bf16.gmra.mxu1 %vm2578_vm7, %v2535_v34  ;;  %v2433_v14 = vmul.f32 0.6931472, %v6680_v7 }
 0x558   : > { %6683 = vlog2.f32 %v2377_v40  ;;  %v2217_v50 = vmax.f32 %v8131_v31, 0.0  ;;  %v8174_v40 = vld [vmem:[%s8016_s16 + $0x30] sm:$0xff] }
 0x559   : > { %v2251_v48 = vand.u32 2147483647, %v8164_v1  ;;  %3547 = vrot.lane.b32.xlu2 %v8156_v56, %s6825_s24  ;;  %v2472_v4 = vadd.f32 %v2433_v14, %v2216_v63  ;;  %9558 = vst [vmem:[#allocation56_spill] sm:$0xff] %v8174_v40 }
 0x55b   : > { %v2283_v46 = vsub.f32 0.0, %v2251_v48  ;;  %v5887_v31 = vadd.f32 -0.6931472, %v2472_v4 }
 0x55c   : > { %v2653_v5 = vpop.f32.mrf.mxu1 }
 0x55d   : > { %v6682_v18 = vpop.eup %6681  ;;  %v2342_v55 = vmul.f32 1.442695, %v2283_v46  ;;  %v2654_v39 = vadd.f32 %v8072_v12, %v2653_v5 }
 0x55e   : > { %v6684_v26 = vpop.eup %6683  ;;  %v2378_v58 = vadd.f32 1.0, %v6682_v18  ;;  %v2182_v34 = vpop.f32.mrf.mxu0 }
 0x55f   : > { %v2435_v51 = vmul.f32 0.6931472, %v6684_v26  ;;  %6685 = vpow2.f32 %v2342_v55  ;;  %v8177_v7 = vmul.f32 %v8034_v35, %v2654_v39  ;;  %v8180_v47 = vadd.f32 %v8161_v15, %v2182_v34 }
 0x560   : > { %6687 = vlog2.f32 %v2378_v58 }
 0x561   : > { %9559 = vst [vmem:[#allocation57_spill] sm:$0xff] %v8177_v7  ;;  %v2473_v48 = vadd.f32 %v2435_v51, %v2217_v50  ;;  %v2252_v46 = vand.u32 2147483647, %v8180_v47  ;;  %3549 = vrot.lane.b32.xlu1 %v8177_v7, %s6825_s24 }
 0x562   : > { %6018 = vmatmul.msk.bf16.gmra.mxu2 %vm3058_vm1, %v8174_v40 }
 0x563   : > { %v5888_v14 = vadd.f32 -0.6931472, %v2473_v48  ;;  %v2284_v63 = vsub.f32 0.0, %v2252_v46 }
 0x564   : > { %v2656_v5 = vpop.f32.mrf.mxu1 }
 0x565   : > { %v6686_v18 = vpop.eup %6685  ;;  %v2344_v35 = vmul.f32 1.442695, %v2284_v63  ;;  %v2657_v55 = vadd.f32 %v8072_v12, %v2656_v5  ;;  %v2536_v39 = vpack.c.bf16 %v5888_v14, %v5887_v31  ;;  %v2218_v31 = vmax.f32 %v8147_v30, 0.0 }
 0x566   : > { %v2379_v26 = vadd.f32 1.0, %v6686_v18  ;;  %v2184_v50 = vpop.f32.mrf.mxu0  ;;  %v6688_v58 = vpop.eup %6687 }
 0x567   : > { %6689 = vpow2.f32 %v2344_v35  ;;  %v8189_v34 = vmul.f32 %v8039_v22, %v2657_v55  ;;  %v2185_v51 = vadd.f32 %v8161_v15, %v2184_v50  ;;  %5931 = vmatmul.msk.bf16.gmra.mxu1 %vm2578_vm7, %v2536_v39  ;;  %v2437_v48 = vmul.f32 0.6931472, %v6688_v58 }
 0x568   : > { %6691 = vlog2.f32 %v2379_v26  ;;  %v2219_v55 = vmax.f32 %v8164_v1, 0.0  ;;  %v8199_v26 = vld [vmem:[%s8016_s16 + $0x38] sm:$0xff] }
 0x569   : > { %v2253_v4 = vand.u32 2147483647, %v2185_v51  ;;  %3551 = vrot.lane.b32.xlu1 %v8189_v34, %s6825_s24  ;;  %v2474_v35 = vadd.f32 %v2437_v48, %v2218_v31  ;;  %9560 = vst [vmem:[#allocation58_spill] sm:$0xff] %v8199_v26 }
 0x56b   : > { %v2285_v46 = vsub.f32 0.0, %v2253_v4  ;;  %v5889_v1 = vadd.f32 -0.6931472, %v2474_v35 }
 0x56c   : > { %v2658_v14 = vpop.f32.mrf.mxu1 }
 0x56d   : > { %v6690_v63 = vpop.eup %6689  ;;  %v2346_v5 = vmul.f32 1.442695, %v2285_v46  ;;  %v2659_v22 = vadd.f32 %v8072_v12, %v2658_v14 }
 0x56e   : > { %v6692_v18 = vpop.eup %6691  ;;  %v2380_v39 = vadd.f32 1.0, %v6690_v63  ;;  %v2187_v50 = vpop.f32.mrf.mxu0 }
 0x56f   : > { %v2439_v62 = vmul.f32 0.6931472, %v6692_v18  ;;  %6693 = vpow2.f32 %v2346_v5  ;;  %v8202_v58 = vmul.f32 %v8050_v37, %v2659_v22  ;;  %v8205_v30 = vadd.f32 %v8161_v15, %v2187_v50 }
 0x570   : > { %6695 = vlog2.f32 %v2380_v39 }
 0x571   : > { %v2475_v4 = vadd.f32 %v2439_v62, %v2219_v55  ;;  %v2254_v46 = vand.u32 2147483647, %v8205_v30  ;;  %3553 = vrot.lane.b32.xlu0 %v8202_v58, %s6825_s24 }
 0x572   : > { %6019 = vmatmul.msk.bf16.gmra.mxu2 %vm3058_vm1, %v8199_v26 }
 0x573   : > { %v5890_v48 = vadd.f32 -0.6931472, %v2475_v4  ;;  %v2286_v31 = vsub.f32 0.0, %v2254_v46 }
 0x574   : > { %v2661_v14 = vpop.f32.mrf.mxu1 }
 0x575   : > { %v6694_v63 = vpop.eup %6693  ;;  %v2348_v37 = vmul.f32 1.442695, %v2286_v31  ;;  %v2662_v5 = vadd.f32 %v8072_v12, %v2661_v14  ;;  %v2537_v22 = vpack.c.bf16 %v5890_v48, %v5889_v1  ;;  %v2220_v31 = vmax.f32 %v8180_v47, 0.0 }
 0x576   : > { %v2381_v18 = vadd.f32 1.0, %v6694_v63  ;;  %v2189_v62 = vpop.f32.mrf.mxu0  ;;  %v6696_v35 = vpop.eup %6695 }
 0x577   : > { %6697 = vpow2.f32 %v2348_v37  ;;  %v8214_v55 = vmul.f32 %v7981_v41, %v2662_v5  ;;  %v2190_v39 = vadd.f32 %v8161_v15, %v2189_v62  ;;  %5932 = vmatmul.msk.bf16.gmra.mxu1 %vm2578_vm7, %v2537_v22  ;;  %v2441_v4 = vmul.f32 0.6931472, %v6696_v35  ;;  %v8223_v5 = vld [vmem:[%s8016_s16 + $0x40] sm:$0xff] }
 0x578   : > { %6699 = vlog2.f32 %v2381_v18  ;;  %v2221_v15 = vmax.f32 %v2185_v51, 0.0  ;;  %9561 = vst [vmem:[#allocation59_spill] sm:$0xff] %v8223_v5 }
 0x579   : > { %v2255_v50 = vand.u32 2147483647, %v2190_v39  ;;  %3555 = vrot.lane.b32.xlu0 %v8214_v55, %s6825_s24  ;;  %v2476_v22 = vadd.f32 %v2441_v4, %v2220_v31 }
 0x57b   : > { %v2287_v46 = vsub.f32 0.0, %v2255_v50  ;;  %v5891_v47 = vadd.f32 -0.6931472, %v2476_v22 }
 0x57c   : > { %v2663_v1 = vpop.f32.mrf.mxu1 }
 0x57d   : > { %v6698_v48 = vpop.eup %6697  ;;  %v2350_v14 = vmul.f32 1.442695, %v2287_v46  ;;  %v2664_v41 = vadd.f32 %v8072_v12, %v2663_v1 }
 0x57e   : > { %v6700_v63 = vpop.eup %6699  ;;  %v2382_v37 = vadd.f32 1.0, %v6698_v48 }
 0x57f   : > { %v2443_v18 = vmul.f32 0.6931472, %v6700_v63  ;;  %6701 = vpow2.f32 %v2350_v14  ;;  %v8226_v62 = vmul.f32 %v8030_v43, %v2664_v41  ;;  %v2639_v41 = vadd.f32 %v8072_v12, %v8091_v8  ;;  %v2724_v63 = vpop.permute.xlu2 %2723 }
 0x580   : > { %6703 = vlog2.f32 %v2382_v37 }
 0x581   : > { %v2477_v35 = vadd.f32 %v2443_v18, %v2221_v15  ;;  %3557 = vrot.lane.b32.xlu2 %v8226_v62, %s6825_s24  ;;  %v8241_v37 = vmul.f32 %v2724_v63, %v2639_v41  ;;  %v2222_v18 = vmax.f32 %v8205_v30, 0.0 }
 0x582   : > { %6020 = vmatmul.msk.bf16.gmra.mxu2 %vm3058_vm1, %v8223_v5  ;;  %v8338_v5 = vld [vmem:[%s8016_s16 + $0x78] sm:$0xff] }
 0x583   : > { %v5892_v50 = vadd.f32 -0.6931472, %v2477_v35  ;;  %9562 = vst [vmem:[#allocation60_spill] sm:$0xff] %v8241_v37 }
 0x584   : > { %v2666_v51 = vpop.f32.mrf.mxu1  ;;  %9569 = vst [vmem:[#allocation67_spill] sm:$0xff] %v8338_v5 }
 0x585   : > { %v6702_v46 = vpop.eup %6701  ;;  %v2667_v1 = vadd.f32 %v8072_v12, %v2666_v51  ;;  %v3116_v4 = vpop.f32.mrf.mxu2  ;;  %v2538_v48 = vpack.c.bf16 %v5892_v50, %v5891_v47  ;;  %v8252_v51 = vld [vmem:[%s8016_s16 + $0x48] sm:$0xff] }
 0x586   : > { %v2383_v31 = vadd.f32 1.0, %v6702_v46  ;;  %v6704_v14 = vpop.eup %6703  ;;  %v8246_v50 = vmul.f32 %v3116_v4, %v8078_v38  ;;  %9563 = vst [vmem:[#allocation61_spill] sm:$0xff] %v8252_v51 }
 0x587   : > { %v8234_v43 = vmul.f32 %v8005_v6, %v2667_v1  ;;  %5933 = vmatmul.msk.bf16.gmra.mxu1 %vm2578_vm7, %v2538_v48  ;;  %v2445_v15 = vmul.f32 0.6931472, %v6704_v14  ;;  %v2223_v1 = vmax.f32 %v2190_v39, 0.0 }
 0x588   : > { %6705 = vlog2.f32 %v2383_v31 }
 0x589   : > { %3559 = vrot.lane.b32.xlu2 %v8234_v43, %s6825_s24  ;;  %v2478_v46 = vadd.f32 %v2445_v15, %v2222_v18 }
 0x58b   : > { %v5893_v4 = vadd.f32 -0.6931472, %v2478_v46 }
 0x58c   : > { %v2668_v22 = vpop.f32.mrf.mxu1 }
 0x58d   : > { %v2669_v6 = vadd.f32 %v8072_v12, %v2668_v22  ;;  %v3118_v35 = vpop.f32.mrf.mxu2 }
 0x58e   : > { %v6706_v47 = vpop.eup %6705  ;;  %v8249_v8 = vmul.f32 %v3118_v35, %v8241_v37 }
 0x58f   : > { %v2447_v48 = vmul.f32 0.6931472, %v6706_v47  ;;  %v8255_v31 = vmul.f32 %v7967_v60, %v2669_v6 }
 0x591   : > { %v2479_v14 = vadd.f32 %v2447_v48, %v2223_v1  ;;  %3561 = vrot.lane.b32.xlu1 %v8255_v31, %s6825_s24  ;;  %v8278_v1 = vld [vmem:[%s8016_s16 + $0x50] sm:$0xff]  ;;  %v8315_v48 = vld [vmem:[%s8016_s16 + $0x60] sm:$0xff] }
 0x592   : > { %6021 = vmatmul.msk.bf16.gmra.mxu2 %vm3058_vm1, %v8252_v51  ;;  %9564 = vst [vmem:[#allocation62_spill] sm:$0xff] %v8278_v1 }
 0x593   : > { %v5894_v41 = vadd.f32 -0.6931472, %v2479_v14  ;;  %9566 = vst [vmem:[#allocation64_spill] sm:$0xff] %v8315_v48 }
 0x594   : > { %v2671_v63 = vpop.f32.mrf.mxu1 }
 0x595   : > { %v2672_v39 = vadd.f32 %v8072_v12, %v2671_v63  ;;  %v3121_v15 = vpop.f32.mrf.mxu2  ;;  %v2539_v22 = vpack.c.bf16 %v5894_v41, %v5893_v4 }
 0x596   : > { %v8272_v47 = vmul.f32 %v3121_v15, %v8104_v19  ;;  %v8302_v15 = vld [vmem:[%s8016_s16 + $0x58] sm:$0xff] }
 0x597   : > { %v8265_v60 = vmul.f32 %v7972_v57, %v2672_v39  ;;  %5934 = vmatmul.msk.bf16.gmra.mxu1 %vm2578_vm7, %v2539_v22  ;;  %9565 = vst [vmem:[#allocation63_spill] sm:$0xff] %v8302_v15 }
 0x599   : > { %3563 = vrot.lane.b32.xlu1 %v8265_v60, %s6825_s24 }
 0x59c   : > { %v2673_v18 = vpop.f32.mrf.mxu1 }
 0x59d   : > { %v2674_v6 = vadd.f32 %v8072_v12, %v2673_v18  ;;  %v3123_v35 = vpop.f32.mrf.mxu2 }
 0x59e   : > { %v8275_v46 = vmul.f32 %v3123_v35, %v8117_v3 }
 0x59f   : > { %v8281_v57 = vmul.f32 %v7986_v13, %v2674_v6 }
 0x5a1   : > { %3565 = vrot.lane.b32.xlu0 %v8281_v57, %s6825_s24  ;;  %3537 = vrot.lane.b32.xlu1 %v8241_v37, %s6825_s24 }
 0x5a2   : > { %6022 = vmatmul.msk.bf16.gmra.mxu2 %vm3058_vm1, %v8278_v1 }
 0x5a4   : > { %v8291_v14 = vpop.f32.mrf.mxu1 }
 0x5a5   : > { %v3126_v4 = vpop.f32.mrf.mxu2 }
 0x5a6   : > { %v8296_v63 = vmul.f32 %v3126_v4, %v8128_v9 }
 0x5ac   : > { %v8293_v41 = vpop.f32.mrf.mxu1 }
 0x5ad   : > { %v3128_v13 = vpop.f32.mrf.mxu2 }
 0x5ae   : > { %v8299_v39 = vmul.f32 %v3128_v13, %v8144_v11 }
 0x5b2   : > { %6023 = vmatmul.msk.bf16.gmra.mxu2 %vm3058_vm1, %v8302_v15 }
 0x5b4   : > { %v8308_v18 = vpop.f32.mrf.mxu1 }
 0x5b5   : > { %v3131_v6 = vpop.f32.mrf.mxu2 }
 0x5b6   : > { %v3202_v4 = vmul.f32 %v3131_v6, %v8156_v56 }
 0x5bc   : > { %v8310_v35 = vpop.f32.mrf.mxu1 }
 0x5bd   : > { %v3133_v30 = vpop.f32.mrf.mxu2 }
 0x5be   : > { %v3203_v13 = vmul.f32 %v3133_v30, %v8177_v7 }
 0x5c0   : > { %v3231_v16 = vpack.c.bf16 %v3203_v13, %v3202_v4  ;;  %v8331_v13 = vld [vmem:[%s8016_s16 + $0x70] sm:$0xff] }
 0x5c1   : > { %9568 = vst [vmem:[#allocation66_spill] sm:$0xff] %v8331_v13 }
 0x5c2   : > { %6024 = vmatmul.msk.bf16.gmra.mxu2 %vm3058_vm1, %v8315_v48 }
 0x5c4   : > { %v8319_v22 = vpop.f32.mrf.mxu1 }
 0x5c5   : > { %v3136_v49 = vpop.f32.mrf.mxu2 }
 0x5cc   : > { %v8321_v45 = vpop.f32.mrf.mxu1 }
 0x5cd   : > { %v3138_v23 = vpop.f32.mrf.mxu2 }
 0x5d2   : > { %6025 = vmatmul.msk.bf16.gmra.mxu2 %vm3058_vm1, %v8324_v59 }
 0x5d4   : > { %v2691_v6 = vpop.f32.mrf.mxu1 }
 0x5d5   : > { %v3141_v30 = vpop.f32.mrf.mxu2 }
 0x5dc   : > { %v8328_v36 = vpop.f32.mrf.mxu1 }
 0x5dd   : > { %v3143_v4 = vpop.f32.mrf.mxu2 }
 0x5e2   : > { %6026 = vmatmul.msk.bf16.gmra.mxu2 %vm3058_vm1, %v8331_v13 }
 0x5e4   : > { %v2696_v48 = vpop.f32.mrf.mxu1 }
 0x5e5   : > { %v3146_v15 = vpop.f32.mrf.mxu2 }
 0x5ec   : > { %v8335_v1 = vpop.f32.mrf.mxu1 }
 0x5ed   : > { %v3148_v51 = vpop.f32.mrf.mxu2 }
 0x5f2   : > { %6027 = vmatmul.msk.bf16.gmra.mxu2 %vm3058_vm1, %v8338_v5 }
 0x5f4   : > { %v2701_v59 = vpop.f32.mrf.mxu1 }
 0x5f5   : > { %v2702_v26 = vadd.f32 %v8072_v12, %v2701_v59  ;;  %v3151_v40 = vpop.f32.mrf.mxu2  ;;  %v3209_v59 = vmul.f32 %v3148_v51, %v8255_v31 }
 0x5f6   : > { %v3210_v38 = vmul.f32 %v3151_v40, %v8265_v60 }
 0x5f7   : > { %v8344_v42 = vmul.f32 %v7949_v25, %v2702_v26  ;;  %v3208_v25 = vmul.f32 %v3146_v15, %v8234_v43  ;;  %v3207_v26 = vmul.f32 %v3143_v4, %v8226_v62 }
 0x5f9   : > { %3587 = vrot.lane.b32.xlu1 %v8344_v42, %s6825_s24 }
 0x5fc   : > { %v2703_v13 = vpop.f32.mrf.mxu1 }
 0x5fd   : > { %v2704_v53 = vadd.f32 %v8072_v12, %v2703_v13  ;;  %v3153_v17 = vpop.f32.mrf.mxu2  ;;  %v3234_v13 = vpack.c.bf16 %v3209_v59, %v3208_v25  ;;  %v9570_v59 = vpack.c.bf16 %v8299_v39, %v8296_v63  ;;  %v2689_v63 = vadd.f32 %v8072_v12, %v8321_v45 }
 0x5fe   : > { %v3211_v3 = vmul.f32 %v3153_v17, %v8281_v57  ;;  %v3206_v17 = vmul.f32 %v3141_v30, %v8214_v55  ;;  %v2697_v39 = vadd.f32 %v8072_v12, %v2696_v48  ;;  %v2677_v45 = vadd.f32 %v8072_v12, %v8291_v14 }
 0x5ff   : > { %v8352_v5 = vmul.f32 %v7994_v27, %v2704_v53  ;;  %v3204_v27 = vmul.f32 %v3136_v49, %v8189_v34 }
 0x600   : > { %v3235_v9 = vpack.c.bf16 %v3211_v3, %v3210_v38  ;;  %v3205_v3 = vmul.f32 %v3138_v23, %v8202_v58  ;;  %v3233_v38 = vpack.c.bf16 %v3207_v26, %v3206_v17  ;;  %v2692_v23 = vadd.f32 %v8072_v12, %v2691_v6 }
 0x601   : > { %3589 = vrot.lane.b32.xlu0 %v8352_v5, %s6825_s24  ;;  %v9572_v26 = vpack.c.bf16 %v8249_v8, %v8246_v50  ;;  %v2694_v50 = vadd.f32 %v8072_v12, %v8328_v36  ;;  %v2682_v36 = vadd.f32 %v8072_v12, %v8308_v18  ;;  %v2684_v18 = vadd.f32 %v8072_v12, %v8310_v35 }
 0x602   : > { %3254 = vmatpush.bf16.msrb.mxu0 %v3235_v9  ;;  %v3232_v9 = vpack.c.bf16 %v3205_v3, %v3204_v27  ;;  %v8386_v25 = vmul.f32 %v8036_v44, %v2692_v23  ;;  %v6433_v27 = vld [vmem:[%s8519_s30 + $0x4] sm:$0xf0] }
 0x603   : > { %v8426_v8 = vmul.f32 %v7999_v32, %v2694_v50  ;;  %v8463_v3 = vmul.f32 %v8087_v10, %v2684_v18  ;;  %v6432_v50 = vld [vmem:[%s8519_s30 + $0x4] sm:$0xf]  ;;  %v6785_v18 = vld [vmem:[%s6902_s22 + $0xb8] sm:$0xff] }
 0x604   : > { %v2706_v37 = vpop.f32.mrf.mxu1 }
 0x605   : > { %v2707_v40 = vadd.f32 %v8072_v12, %v2706_v37  ;;  %v8360_v7 = vpop.f32.mrf.mxu2 }
 0x606   : > { %3255 = vmatpush.bf16.msrb.mxu0 %v3234_v13  ;;  %v2897_v13 = vmul.f32 %v8056_v24, %v2689_v63  ;;  %v2699_v24 = vadd.f32 %v8072_v12, %v8335_v1  ;;  %v6766_v63 = vld [vmem:[%s6902_s22 + $0x10] sm:$0xff] }
 0x607   : > { %v8364_v53 = vmul.f32 %v7974_v33, %v2707_v40  ;;  %v2900_v40 = vmul.f32 %v8009_v28, %v2697_v39  ;;  %v6767_v39 = vld [vmem:[%s6902_s22] sm:$0xff] }
 0x608   : > { %v2901_v48 = vmul.f32 %v8027_v21, %v2699_v24  ;;  %v8444_v21 = vmul.f32 %v8074_v2, %v2682_v36  ;;  %v6032_v24 = vld [vmem:[%s8519_s30 + $0x8] sm:$0xf0]  ;;  %v6777_v36 = vld [vmem:[%s6902_s22 + $0x38] sm:$0xff] }
 0x609   : > { %3591 = vrot.lane.b32.xlu2 %v8364_v53, %s6825_s24 }
 0x60a   : > { %3256 = vmatpush.bf16.msrb.mxu0 %v3233_v38 }
 0x60c   : > { %v2708_v51 = vpop.f32.mrf.mxu1 }
 0x60d   : > { %v2709_v37 = vadd.f32 %v8072_v12, %v2708_v51  ;;  %v8371_v15 = vpop.f32.mrf.mxu2 }
 0x60e   : > { %3257 = vmatpush.bf16.msrb.mxu0 %v3232_v9 }
 0x60f   : > { %v8374_v30 = vmul.f32 %v7956_v52, %v2709_v37  ;;  %v9574_v37 = vld [vmem:[#allocation60_spill] sm:$0xff] }
 0x611   : > { %3593 = vrot.lane.b32.xlu1 %v8374_v30, %s6825_s24 }
 0x612   : > { %3258 = vmatpush.bf16.msrb.mxu0 %v3231_v16  ;;  %v9571_v16 = vpack.c.bf16 %v8275_v46, %v8272_v47  ;;  %v2687_v46 = vadd.f32 %v8072_v12, %v8319_v22 }
 0x614   : > { %v2711_v33 = vpop.f32.mrf.mxu1 }
 0x615   : > { %v2712_v49 = vadd.f32 %v8072_v12, %v2711_v33  ;;  %v8380_v4 = vpop.f32.mrf.mxu2  ;;  %v9575_v33 = vld [vmem:[#allocation54_spill] sm:$0xff] }
 0x616   : > { %3259 = vmatpush.bf16.msrb.mxu0 %v9570_v59 }
 0x617   : > { %v8389_v52 = vmul.f32 %v7944_v20, %v2712_v49 }
 0x619   : > { %3595 = vrot.lane.b32.xlu0 %v8389_v52, %s6825_s24  ;;  %3579 = vrot.lane.b32.xlu1 %v8386_v25, %s6825_s24 }
 0x61a   : > { %3260 = vmatpush.bf16.msrb.mxu0 %v9571_v16  ;;  %v9576_v16 = vld [vmem:[#allocation53_spill] sm:$0xff] }
 0x61c   : > { %v2713_v44 = vpop.f32.mrf.mxu1 }
 0x61d   : > { %v2714_v6 = vadd.f32 %v8072_v12, %v2713_v44  ;;  %v8402_v20 = vpop.f32.mrf.mxu2  ;;  %v6768_v44 = vld [vmem:[%s6902_s22 + $0x28] sm:$0xff] }
 0x61e   : > { %3261 = vmatpush.bf16.msrb.mxu0 %v9572_v26  ;;  %v3215_v26 = vmul.f32 %v8402_v20, %v8463_v3 }
 0x61f   : > { %v8410_v47 = vmul.f32 %v7934_v29, %v2714_v6  ;;  %v8423_v29 = vmul.f32 %v8101_v61, %v2677_v45  ;;  %v2896_v61 = vmul.f32 %v8019_v54, %v2687_v46  ;;  %v2679_v54 = vadd.f32 %v8072_v12, %v8293_v41  ;;  %v9577_v6 = vld [vmem:[#allocation52_spill] sm:$0xff]  ;;  %v6770_v45 = vld [vmem:[%s6902_s22 + $0x40] sm:$0xff]  ;;  %v6775_v46 = vld [vmem:[%s6902_s22 + $0x48] sm:$0xff] }
 0x621   : > { %3583 = vrot.lane.b32.xlu0 %v2900_v40, %s6825_s24  ;;  %3577 = vrot.lane.b32.xlu1 %v2897_v13, %s6825_s24  ;;  %v8460_v2 = vmul.f32 %v8059_v0, %v2679_v54  ;;  %v3212_v20 = vmul.f32 %v8360_v7, %v8423_v29  ;;  %v6773_v7 = vld [vmem:[%s6902_s22 + $0x58] sm:$0xff]  ;;  %v6784_v54 = vld [vmem:[%s6902_s22 + $0x90] sm:$0xff] }
 0x622   : > { %3597 = vrot.lane.b32.xlu2 %v8410_v47, %s6825_s24 }
 0x625   : > { %v3166_v28 = vpop.f32.mrf.mxu2 }
 0x626   : > { %v8439_v1 = vmul.f32 %v3166_v28, %v2896_v61  ;;  %v8566_v28 = vor.u32 %v6432_v50, %v6032_v24 }
 0x629   : > { %3581 = vrot.lane.b32.xlu0 %v8426_v8, %s6825_s24  ;;  %3567 = vrot.lane.b32.xlu1 %v8423_v29, %s6825_s24 }
 0x62a   : > { %3585 = vrot.lane.b32.xlu2 %v2901_v48, %s6825_s24 }
 0x62d   : > { %v3168_v32 = vpop.f32.mrf.mxu2 }
 0x62e   : > { %v8441_v14 = vmul.f32 %v3168_v32, %v2897_v13  ;;  %v6779_v32 = vld [vmem:[%s6902_s22 + $0x88] sm:$0xff] }
 0x630   : > { %v3238_v22 = vpack.c.bf16 %v8441_v14, %v8439_v1  ;;  %v6780_v1 = vld [vmem:[%s6902_s22 + $0x50] sm:$0xff]  ;;  %v6781_v14 = vld [vmem:[%s6902_s22 + $0x78] sm:$0xff] }
 0x631   : > { %3571 = vrot.lane.b32.xlu0 %v8444_v21, %s6825_s24  ;;  %3956 = vrot.lane.b32.xlu1 %v8265_v60, %s6822_s23 }
 0x632   : > { %3575 = vrot.lane.b32.xlu2 %v2896_v61, %s6825_s24 }
 0x635   : > { %v8457_v17 = vpop.f32.mrf.mxu2 }
 0x639   : > { %3569 = vrot.lane.b32.xlu0 %v8460_v2, %s6825_s24  ;;  %3982 = vrot.lane.b32.xlu1 %v8352_v5, %s6822_s23 }
 0x63a   : > { %3573 = vrot.lane.b32.xlu2 %v8463_v3, %s6825_s24  ;;  %s8992_s24 = scalar_lea.vmem %s9389_s3, %s6391_s13 }
 0x63d   : > { %v3173_v60 = vpop.f32.mrf.mxu2 }
 0x641   : > { %3984 = vrot.lane.b32.xlu0 %v8364_v53, %s6822_s23  ;;  %3976 = vrot.lane.b32.xlu1 %v2900_v40, %s6822_s23 }
 0x642   : > { %3988 = vrot.lane.b32.xlu2 %v8389_v52, %s6822_s23 }
 0x645   : > { %v3176_v0 = vpop.f32.mrf.mxu2 }
 0x646   : > { %v3220_v12 = vmul.f32 %v3176_v0, %v2900_v40  ;;  %v6790_v0 = vld [vmem:[%s6902_s22 + $0xc0] sm:$0xff] }
 0x649   : > { %3958 = vrot.lane.b32.xlu0 %v8281_v57, %s6822_s23  ;;  %3950 = vrot.lane.b32.xlu1 %v8226_v62, %s6822_s23  ;;  %v6030_v57 = vld [vmem:[%s8519_s30] sm:$0xf] }
 0x64a   : > { %3986 = vrot.lane.b32.xlu2 %v8374_v30, %s6822_s23  ;;  %v8525_v9 = vor.u32 %v6433_v27, %v6030_v57 }
 0x64c   : > { %3262 = vmatmul.bf16.vlgmr.msrb.gmra.mxu0 %v8525_v9 }
 0x64d   : > { %v3178_v10 = vpop.f32.mrf.mxu2 }
 0x64e   : > { %v3221_v41 = vmul.f32 %v3178_v10, %v2901_v48  ;;  %v6792_v10 = vld [vmem:[%s6902_s22 + $0xb0] sm:$0xff] }
 0x650   : > { %v3240_v35 = vpack.c.bf16 %v3221_v41, %v3220_v12  ;;  %v6791_v12 = vld [vmem:[%s6902_s22 + $0xe8] sm:$0xff]  ;;  %v6793_v41 = vld [vmem:[%s6902_s22 + $0xd8] sm:$0xff] }
 0x651   : > { %3952 = vrot.lane.b32.xlu0 %v8234_v43, %s6822_s23  ;;  %3944 = vrot.lane.b32.xlu1 %v8189_v34, %s6822_s23 }
 0x652   : > { %3980 = vrot.lane.b32.xlu2 %v8344_v42, %s6822_s23 }
 0x655   : > { %v3181_v38 = vpop.f32.mrf.mxu2 }
 0x656   : > { %v3222_v59 = vmul.f32 %v3181_v38, %v8344_v42  ;;  %v6795_v38 = vld [vmem:[%s6902_s22 + $0xf0] sm:$0xff] }
 0x659   : > { %3978 = vrot.lane.b32.xlu0 %v2901_v48, %s6822_s23  ;;  %3990 = vrot.lane.b32.xlu1 %v8410_v47, %s6822_s23  ;;  %v6776_v48 = vld [vmem:[%s6902_s22 + $0x70] sm:$0xff] }
 0x65a   : > { %3954 = vrot.lane.b32.xlu2 %v8255_v31, %s6822_s23 }
 0x65d   : > { %v3183_v62 = vpop.f32.mrf.mxu2 }
 0x65e   : > { %v3223_v49 = vmul.f32 %v3183_v62, %v8352_v5  ;;  %v3218_v5 = vmul.f32 %v8457_v17, %v8386_v25  ;;  %v6786_v17 = vld [vmem:[%s6902_s22 + $0x80] sm:$0xff] }
 0x65f   : > { %v6796_v62 = vld [vmem:[%s6902_s22 + $0xe0] sm:$0xff] }
 0x661   : > { %3972 = vrot.lane.b32.xlu0 %v8386_v25, %s6822_s23  ;;  %3970 = vrot.lane.b32.xlu1 %v2897_v13, %s6822_s23  ;;  %v3214_v25 = vmul.f32 %v8380_v4, %v8444_v21  ;;  %v3213_v13 = vmul.f32 %v8371_v15, %v8460_v2  ;;  %v6771_v4 = vld [vmem:[%s6902_s22 + $0x8] sm:$0xff] }
 0x662   : > { %3948 = vrot.lane.b32.xlu2 %v8214_v55, %s6822_s23 }
 0x663   : > { %v3237_v40 = vpack.c.bf16 %v3215_v26, %v3214_v25  ;;  %v3236_v15 = vpack.c.bf16 %v3213_v13, %v3212_v20 }
 0x665   : > { %v3186_v34 = vpop.f32.mrf.mxu2 }
 0x666   : > { %v3224_v23 = vmul.f32 %v3186_v34, %v8364_v53  ;;  %v3219_v53 = vmul.f32 %v3173_v60, %v8426_v8  ;;  %v6789_v60 = vld [vmem:[%s6902_s22 + $0x98] sm:$0xff] }
 0x667   : > { %v6797_v34 = vld [vmem:[%s6902_s22 + $0xf8] sm:$0xff] }
 0x668   : > { %v3239_v42 = vpack.c.bf16 %v3219_v53, %v3218_v5 }
 0x669   : > { %3946 = vrot.lane.b32.xlu0 %v8202_v58, %s6822_s23  ;;  %3964 = vrot.lane.b32.xlu1 %v8444_v21, %s6822_s23  ;;  %v9573_v58 = vld [vmem:[#allocation57_spill] sm:$0xff]  ;;  %v6782_v21 = vld [vmem:[%s6902_s22 + $0xa0] sm:$0xff] }
 0x66a   : > { %3974 = vrot.lane.b32.xlu2 %v8426_v8, %s6822_s23  ;;  %v6772_v8 = vld [vmem:[%s6902_s22 + $0x30] sm:$0xff] }
 0x66d   : > { %v3188_v43 = vpop.f32.mrf.mxu2 }
 0x671   : > { %3940 = vrot.lane.b32.xlu0 %v8156_v56, %s6822_s23  ;;  %3938 = vrot.lane.b32.xlu1 %v8144_v11, %s6822_s23 }
 0x672   : > { %3968 = vrot.lane.b32.xlu2 %v2896_v61, %s6822_s23  ;;  %v6778_v61 = vld [vmem:[%s6902_s22 + $0x60] sm:$0xff] }
 0x675   : > { %v3191_v55 = vpop.f32.mrf.mxu2 }
 0x676   : > { %v3226_v56 = vmul.f32 %v3191_v55, %v8389_v52  ;;  %v3241_v52 = vpack.c.bf16 %v3223_v49, %v3222_v59  ;;  %v6436_v55 = vld [vmem:[%s9391_s5 + $0x40] sm:$0xff]  ;;  %v6439_v59 = vld [vmem:[%s9391_s5 + $0x78] sm:$0xff] }
 0x679   : > { %3966 = vrot.lane.b32.xlu0 %v8463_v3, %s6822_s23  ;;  %3932 = vrot.lane.b32.xlu1 %v8104_v19, %s6822_s23  ;;  %v3225_v19 = vmul.f32 %v3188_v43, %v8374_v30  ;;  %v6788_v3 = vld [vmem:[%s6902_s22 + $0xd0] sm:$0xff]  ;;  %v6437_v43 = vld [vmem:[%s9391_s5 + $0x48] sm:$0xff] }
 0x67a   : > { %3942 = vrot.lane.b32.xlu2 %v9573_v58, %s6822_s23  ;;  %3311 = vmatpush.bf16.msra.mxu0 %v6437_v43  ;;  %v9582_v43 = vld [vmem:[#allocation58_spill] sm:$0xff] }
 0x67b   : > { %v3242_v30 = vpack.c.bf16 %v3225_v19, %v3224_v23 }
 0x67d   : > { %v3193_v11 = vpop.f32.mrf.mxu2 }
 0x67e   : > { %v3227_v31 = vmul.f32 %v3193_v11, %v8410_v47  ;;  %v6769_v47 = vld [vmem:[%s6902_s22 + $0x18] sm:$0xff]  ;;  %3312 = vmatpush.bf16.msra.mxu0 %v6436_v55 }
 0x680   : > { %v3243_v51 = vpack.c.bf16 %v3227_v31, %v3226_v56 }
 0x681   : > { %3960 = vrot.lane.b32.xlu0 %v8423_v29, %s6822_s23  ;;  %3930 = vrot.lane.b32.xlu1 %v9574_v37, %s6822_s23  ;;  %v6774_v29 = vld [vmem:[%s6902_s22 + $0x20] sm:$0xff] }
 0x682   : > { %3936 = vrot.lane.b32.xlu2 %v9575_v33, %s6822_s23  ;;  %3268 = vmatpush.bf16.msra.mxu3 %v3243_v51  ;;  %v6506_v51 = vld [vmem:[%s9396_s10 + $0x7] ss:$0 sm:$0xff] }
 0x686   : > { %3269 = vmatpush.bf16.msra.mxu3 %v3242_v30 }
 0x689   : > { %3934 = vrot.lane.b32.xlu0 %v9576_v16, %s6822_s23  ;;  %5299 = vperm.xlu1 %6496, %v6766_v63   ;;  %v6438_v63 = vld [vmem:[%s9391_s5 + $0x70] sm:$0xff] }
 0x68a   : > { %3962 = vrot.lane.b32.xlu2 %v8460_v2, %s6822_s23  ;;  %3270 = vmatpush.bf16.msra.mxu3 %v3241_v52  ;;  %v6787_v2 = vld [vmem:[%s6902_s22 + $0xa8] sm:$0xff] }
 0x68e   : > { %3271 = vmatpush.bf16.msra.mxu3 %v3240_v35  ;;  %v6794_v35 = vld [vmem:[%s6902_s22 + $0xc8] sm:$0xff] }
 0x691   : > { %5289 = vperm.xlu0 %6497, %v6767_v39   ;;  %5314 = vperm.xlu1 %6496, %v6768_v44  }
 0x692   : > { %3928 = vrot.lane.b32.xlu2 %v9577_v6, %s6822_s23  ;;  %3272 = vmatpush.bf16.msra.mxu3 %v3239_v42 }
 0x696   : > { %3273 = vmatpush.bf16.msra.mxu3 %v3238_v22  ;;  %v6783_v22 = vld [vmem:[%s6902_s22 + $0x68] sm:$0xff] }
 0x699   : > { %5304 = vperm.xlu0 %6497, %v6769_v47   ;;  %5329 = vperm.xlu1 %6496, %v6770_v45  }
 0x69a   : > { %5294 = vperm.xlu2 %6498, %v6771_v4   ;;  %3274 = vmatpush.bf16.msra.mxu3 %v3237_v40 }
 0x69e   : > { %3275 = vmatpush.bf16.msra.mxu3 %v3236_v15 }
 0x6a1   : > { %3276 = vmatmul.bf16.vlgmr.msra.gmra.mxu3 %v8566_v28  ;;  %5319 = vperm.xlu0 %6497, %v6772_v8  }
 0x6a2   : > { %5344 = vperm.xlu1 %6496, %v6773_v7   ;;  %5309 = vperm.xlu2 %6498, %v6774_v29   ;;  %v6441_v7 = vld [vmem:[%s9391_s5 + $0x28] sm:$0xff]  ;;  %v6440_v29 = vld [vmem:[%s9391_s5 + $0x20] sm:$0xff] }
 0x6a3   : > { %3368 = vmatpush.bf16.msrb.mxu3 %v6439_v59  ;;  %3405 = vmatpush.bf16.msrb.mxu0 %v6441_v7 }
 0x6a7   : > { %3369 = vmatpush.bf16.msrb.mxu3 %v6438_v63  ;;  %3406 = vmatpush.bf16.msrb.mxu0 %v6440_v29  ;;  %v9588_v29 = vld [vmem:[#allocation65_spill] sm:$0xff] }
 0x6a9   : > { %5334 = vperm.xlu0 %6497, %v6775_v46  }
 0x6aa   : > { %5359 = vperm.xlu1 %6496, %v6776_v48   ;;  %5324 = vperm.xlu2 %6498, %v6777_v36   ;;  %v6507_v48 = vld [vmem:[%s9396_s10 + $0xa] ss:$0 sm:$0xff] }
 0x6b1   : > { %5349 = vperm.xlu0 %6497, %v6778_v61  }
 0x6b2   : > { %5374 = vperm.xlu1 %6496, %v6779_v32   ;;  %5339 = vperm.xlu2 %6498, %v6780_v1   ;;  %v9578_v1 = vld [vmem:[#allocation22_spill] sm:$0xff] }
 0x6b9   : > { %5364 = vperm.xlu0 %6497, %v6781_v14  }
 0x6ba   : > { %5389 = vperm.xlu1 %6496, %v6782_v21   ;;  %5354 = vperm.xlu2 %6498, %v6783_v22   ;;  %v9579_v21 = vld [vmem:[#allocation23_spill] sm:$0xff] }
 0x6c1   : > { %5379 = vperm.xlu0 %6497, %v6784_v54  }
 0x6c2   : > { %5404 = vperm.xlu1 %6496, %v6785_v18   ;;  %5369 = vperm.xlu2 %6498, %v6786_v17  }
 0x6c9   : > { %5394 = vperm.xlu0 %6497, %v6787_v2   ;;  %v3263_v58 = vpop.f32.mrf.mxu0 }
 0x6ca   : > { %5419 = vperm.xlu1 %6496, %v6788_v3   ;;  %5384 = vperm.xlu2 %6498, %v6789_v60   ;;  %v8631_v3 = vld [vmem:[%s8016_s16] sm:$0xff]  ;;  %v8636_v60 = vld [vmem:[%s8016_s16 + $0x8] sm:$0xff] }
 0x6d1   : > { %5409 = vperm.xlu0 %6497, %v6790_v0   ;;  %v3265_v56 = vpop.f32.mrf.mxu0  ;;  %v8641_v0 = vld [vmem:[%s8016_s16 + $0x10] sm:$0xff] }
 0x6d2   : > { %5434 = vperm.xlu1 %6496, %v6791_v12   ;;  %5399 = vperm.xlu2 %6498, %v6792_v10   ;;  %v8646_v12 = vld [vmem:[%s8016_s16 + $0x18] sm:$0xff]  ;;  %v8651_v10 = vld [vmem:[%s8016_s16 + $0x20] sm:$0xff] }
 0x6d9   : > { %5424 = vperm.xlu0 %6497, %v6793_v41   ;;  %v9580_v41 = vld [vmem:[#allocation55_spill] sm:$0xff] }
 0x6da   : > { %5414 = vperm.xlu2 %6498, %v6794_v35   ;;  %v3544_v35 = vpop.permute.xlu1 %3543 }
 0x6e1   : > { %5439 = vperm.xlu0 %6497, %v6795_v38   ;;  %v9581_v38 = vld [vmem:[#allocation56_spill] sm:$0xff] }
 0x6e2   : > { %5429 = vperm.xlu2 %6498, %v6796_v62   ;;  %v3550_v62 = vpop.permute.xlu1 %3549 }
 0x6ea   : > { %5444 = vperm.xlu2 %6498, %v6797_v34   ;;  %v8659_v34 = vpop.permute.xlu1 %3551 }
 0x6f2   : > { %v8663_v55 = vpop.permute.xlu1 %3561 }
 0x724   : > { %v3277_v11 = vpop.f32.mrf.mxu3 }
 0x725   : > { %v3278_v57 = vadd.f32 %v3277_v11, %v3263_v58  ;;  %v9583_v58 = vld [vmem:[#allocation59_spill] sm:$0xff]  ;;  %v3564_v11 = vpop.permute.xlu1 %3563 }
 0x72c   : > { %v3279_v31 = vpop.f32.mrf.mxu3 }
 0x72d   : > { %v3280_v27 = vadd.f32 %v3279_v31, %v3265_v56  ;;  %v3536_v31 = vpop.permute.xlu2 %3535 }
 0x72f   : > { %v3287_v19 = vpack.c.bf16 %v3280_v27, %v3278_v57  ;;  %v3538_v57 = vpop.permute.xlu1 %3537 }
 0x731   : > { %6048 = vmatmul.msk.bf16.vlgmr.msra.gmra.mxu0 %vm1332_vm9, %v3287_v19 }
 0x7ae   : > { %v3314_v37 = vpop.f32.mrf.mxu0 }
 0x7af   : > { %v3315_v23 = vadd.f32 %v6506_v51, %v3314_v37 }
 0x7b1   : > { %v3321_v33 = vand.u32 2147483647, %v3315_v23  ;;  %v3319_v40 = vmax.f32 %v3315_v23, 0.0  ;;  %v9584_v23 = vld [vmem:[#allocation61_spill] sm:$0xff] }
 0x7b3   : > { %v3323_v49 = vsub.f32 0.0, %v3321_v33 }
 0x7b5   : > { %v3325_v30 = vmul.f32 1.442695, %v3323_v49  ;;  %v3542_v49 = vpop.permute.xlu2 %3541 }
 0x7b6   : > { %v3316_v52 = vpop.f32.mrf.mxu0 }
 0x7b7   : > { %6707 = vpow2.f32 %v3325_v30  ;;  %v3317_v16 = vadd.f32 %v6506_v51, %v3316_v52  ;;  %v3540_v30 = vpop.permute.xlu0 %3539 }
 0x7b9   : > { %v3322_v53 = vand.u32 2147483647, %v3317_v16  ;;  %v3320_v20 = vmax.f32 %v3317_v16, 0.0 }
 0x7bb   : > { %v3324_v5 = vsub.f32 0.0, %v3322_v53  ;;  %v9585_v53 = vld [vmem:[#allocation62_spill] sm:$0xff] }
 0x7bd   : > { %v6708_v42 = vpop.eup %6707  ;;  %v3327_v39 = vmul.f32 1.442695, %v3324_v5 }
 0x7be   : > { %v3329_v44 = vadd.f32 1.0, %v6708_v42 }
 0x7bf   : > { %6709 = vpow2.f32 %v3327_v39  ;;  %v3546_v42 = vpop.permute.xlu0 %3545 }
 0x7c0   : > { %6711 = vlog2.f32 %v3329_v44 }
 0x7c5   : > { %v6710_v6 = vpop.eup %6709 }
 0x7c6   : > { %v3330_v26 = vadd.f32 1.0, %v6710_v6  ;;  %v6712_v25 = vpop.eup %6711 }
 0x7c7   : > { %v3332_v13 = vmul.f32 0.6931472, %v6712_v25  ;;  %v9586_v25 = vld [vmem:[#allocation63_spill] sm:$0xff] }
 0x7c8   : > { %6713 = vlog2.f32 %v3330_v26 }
 0x7c9   : > { %v3335_v45 = vadd.f32 %v3332_v13, %v3319_v40  ;;  %v3548_v40 = vpop.permute.xlu2 %3547 }
 0x7cb   : > { %v6049_v24 = vadd.f32 -0.6931472, %v3335_v45 }
 0x7ce   : > { %v6714_v47 = vpop.eup %6713 }
 0x7cf   : > { %v3334_v4 = vmul.f32 0.6931472, %v6714_v47 }
 0x7d1   : > { %v3336_v50 = vadd.f32 %v3334_v4, %v3320_v20 }
 0x7d3   : > { %v6050_v15 = vadd.f32 -0.6931472, %v3336_v50  ;;  %v9587_v50 = vld [vmem:[#allocation64_spill] sm:$0xff] }
 0x7d5   : > { %v3344_v8 = vpack.c.bf16 %v6050_v15, %v6049_v24  ;;  %v3554_v24 = vpop.permute.xlu0 %3553 }
 0x7d7   : > { %6063 = vmatmul.msk.bf16.vlgmr.msrb.gmra.mxu3 %vm1332_vm9, %v3344_v8 }
 0x7dd   : > { %v3556_v8 = vpop.permute.xlu0 %3555 }
 0x85a   : > { %v3371_v46 = vpop.f32.mrf.mxu3 }
 0x85b   : > { %v3372_v36 = vadd.f32 %v6507_v48, %v3371_v46  ;;  %v3566_v46 = vpop.permute.xlu0 %3565 }
 0x85d   : > { %v8622_v14 = vadd.f32 %v3372_v36, %v9578_v1  ;;  %v6471_v36 = vld [vmem:[%s9391_s5 + $0xb8] sm:$0xff]  ;;  %v6470_v1 = vld [vmem:[%s9391_s5 + $0xb0] sm:$0xff] }
 0x862   : > { %v3373_v61 = vpop.f32.mrf.mxu3 }
 0x863   : > { %v3374_v32 = vadd.f32 %v6507_v48, %v3373_v61  ;;  %v8698_v61 = vpop.permute.xlu0 %3589 }
 0x865   : > { %v8625_v22 = vadd.f32 %v3374_v32, %v9579_v21  ;;  %v9589_v21 = vld [vmem:[#allocation66_spill] sm:$0xff] }
 0x867   : > { %v3383_v54 = vpack.c.bf16 %v8625_v22, %v8622_v14 }
 0x869   : > { %6076 = vmatmul.msk.bf16.vlgmr.msrb.gmra.mxu0 %vm1332_vm9, %v3383_v54  ;;  %v3558_v54 = vpop.permute.xlu2 %3557 }
 0x8e6   : > { %v3408_v18 = vpop.f32.mrf.mxu0 }
 0x8ee   : > { %v3410_v17 = vpop.f32.mrf.mxu0 }
 0x8ef   : > { %v3413_v2 = vpack.c.bf16 %v3410_v17, %v3408_v18  ;;  %v8705_v18 = vpop.permute.xlu0 %3595 }
 0x8f1   : > { %3421 = vmatpush.bf16.msra.mxu3 %v3413_v2  ;;  %v8707_v2 = vpop.permute.xlu1 %3587 }
 0x8f4   : > { %6077 = vmatmul.msk.bf16.vlgmr.msra.gmra.mxu3 %vm3058_vm1, %v8631_v3 }
 0x8f5   : > { %4611 = vmatpush.bf16.msrb.mxu3 %v6471_v36 }
 0x8f9   : > { %4612 = vmatpush.bf16.msrb.mxu3 %v6470_v1 }
 0x904   : > { %6078 = vmatmul.msk.bf16.gmra.mxu3 %vm3058_vm1, %v8636_v60 }
 0x914   : > { %6079 = vmatmul.msk.bf16.gmra.mxu3 %vm3058_vm1, %v8641_v0 }
 0x924   : > { %6080 = vmatmul.msk.bf16.gmra.mxu3 %vm3058_vm1, %v8646_v12 }
 0x934   : > { %6081 = vmatmul.msk.bf16.gmra.mxu3 %vm3058_vm1, %v8651_v10 }
 0x944   : > { %6082 = vmatmul.msk.bf16.gmra.mxu3 %vm3058_vm1, %v9580_v41 }
 0x954   : > { %6083 = vmatmul.msk.bf16.gmra.mxu3 %vm3058_vm1, %v9581_v38  ;;  %v3560_v38 = vpop.permute.xlu2 %3559 }
 0x964   : > { %6084 = vmatmul.msk.bf16.gmra.mxu3 %vm3058_vm1, %v9582_v43  ;;  %v9590_v43 = vld [vmem:[#allocation67_spill] sm:$0xff] }
 0x974   : > { %6085 = vmatmul.msk.bf16.gmra.mxu3 %vm3058_vm1, %v9583_v58 }
 0x977   : > { %v3423_v56 = vpop.f32.mrf.mxu3 }
 0x978   : > { %v8667_v19 = vmul.f32 %v3536_v31, %v3423_v56  ;;  %v8715_v56 = vpop.permute.xlu2 %3591 }
 0x97f   : > { %v3425_v27 = vpop.f32.mrf.mxu3 }
 0x980   : > { %v8669_v51 = vmul.f32 %v3538_v57, %v3425_v27 }
 0x982   : > { %v3663_v37 = vpack.c.bf16 %v8669_v51, %v8667_v19  ;;  %v9595_v51 = vld [vmem:[#allocation26_spill] sm:$0xff] }
 0x984   : > { %6086 = vmatmul.msk.bf16.gmra.mxu3 %vm3058_vm1, %v9584_v23 }
 0x987   : > { %v3428_v33 = vpop.f32.mrf.mxu3 }
 0x988   : > { %v8675_v52 = vmul.f32 %v3540_v30, %v3428_v33 }
 0x98f   : > { %v3430_v59 = vpop.f32.mrf.mxu3 }
 0x990   : > { %v8677_v16 = vmul.f32 %v3542_v49, %v3430_v59  ;;  %v8717_v49 = vpop.permute.xlu2 %3597 }
 0x992   : > { %v3664_v63 = vpack.c.bf16 %v8677_v16, %v8675_v52  ;;  %v9594_v16 = vld [vmem:[#allocation28_spill] sm:$0xff] }
 0x994   : > { %6087 = vmatmul.msk.bf16.gmra.mxu3 %vm3058_vm1, %v9585_v53 }
 0x997   : > { %v3433_v5 = vpop.f32.mrf.mxu3 }
 0x998   : > { %v8683_v44 = vmul.f32 %v3544_v35, %v3433_v5  ;;  %v8709_v35 = vpop.permute.xlu1 %3593 }
 0x99f   : > { %v3435_v39 = vpop.f32.mrf.mxu3 }
 0x9a0   : > { %v8685_v6 = vmul.f32 %v3546_v42, %v3435_v39  ;;  %v3580_v31 = vpop.permute.xlu1 %3579  ;;  %v9591_v42 = vld [vmem:[#allocation32_spill] sm:$0xff] }
 0x9a2   : > { %v3665_v26 = vpack.c.bf16 %v8685_v6, %v8683_v44 }
 0x9a4   : > { %6088 = vmatmul.msk.bf16.gmra.mxu3 %vm3058_vm1, %v9586_v25 }
 0x9a7   : > { %v3438_v13 = vpop.f32.mrf.mxu3 }
 0x9a8   : > { %v3637_v45 = vmul.f32 %v3548_v40, %v3438_v13  ;;  %v3578_v53 = vpop.permute.xlu1 %3577 }
 0x9af   : > { %v3440_v47 = vpop.f32.mrf.mxu3 }
 0x9b0   : > { %v3638_v20 = vmul.f32 %v3550_v62, %v3440_v47  ;;  %v8711_v62 = vpop.permute.xlu0 %3583 }
 0x9b2   : > { %v3666_v4 = vpack.c.bf16 %v3638_v20, %v3637_v45  ;;  %v3586_v20 = vpop.permute.xlu2 %3585 }
 0x9b4   : > { %6089 = vmatmul.msk.bf16.gmra.mxu3 %vm3058_vm1, %v9587_v50 }
 0x9b7   : > { %v3443_v15 = vpop.f32.mrf.mxu3 }
 0x9b8   : > { %v3582_v57 = vpop.permute.xlu0 %3581  ;;  %v3639_v50 = vmul.f32 %v8659_v34, %v3443_v15 }
 0x9bf   : > { %v3445_v7 = vpop.f32.mrf.mxu3 }
 0x9c0   : > { %v3572_v39 = vpop.permute.xlu0 %3571  ;;  %v3640_v45 = vmul.f32 %v3554_v24, %v3445_v7 }
 0x9c4   : > { %6090 = vmatmul.msk.bf16.gmra.mxu3 %vm3058_vm1, %v9588_v29  ;;  %v3667_v29 = vpack.c.bf16 %v3640_v45, %v3639_v50  ;;  %v9599_v45 = vld [vmem:[#allocation44_spill] sm:$0xff] }
 0x9c7   : > { %v3448_v48 = vpop.f32.mrf.mxu3 }
 0x9c8   : > { %v3641_v47 = vmul.f32 %v3556_v8, %v3448_v48  ;;  %v3576_v8 = vpop.permute.xlu2 %3575 }
 0x9cf   : > { %v3450_v32 = vpop.f32.mrf.mxu3 }
 0x9d0   : > { %v3642_v25 = vmul.f32 %v3558_v54, %v3450_v32  ;;  %v9592_v32 = vld [vmem:[#allocation29_spill] sm:$0xff]  ;;  %v3574_v34 = vpop.permute.xlu2 %3573  ;;  %v9593_v54 = vld [vmem:[#allocation30_spill] sm:$0xff] }
 0x9d4   : > { %6091 = vmatmul.msk.bf16.gmra.mxu3 %vm3058_vm1, %v9589_v21 }
 0x9d7   : > { %v3453_v17 = vpop.f32.mrf.mxu3 }
 0x9d8   : > { %v3643_v5 = vmul.f32 %v3560_v38, %v3453_v17 }
 0x9df   : > { %v3455_v41 = vpop.f32.mrf.mxu3 }
 0x9e0   : > { %v3644_v30 = vmul.f32 %v8663_v55, %v3455_v41  ;;  %v3568_v55 = vpop.permute.xlu1 %3567 }
 0x9e2   : > { %v3669_v13 = vpack.c.bf16 %v3644_v30, %v3643_v5 }
 0x9e4   : > { %6092 = vmatmul.msk.bf16.gmra.mxu3 %vm3058_vm1, %v9590_v43 }
 0x9e7   : > { %v3458_v58 = vpop.f32.mrf.mxu3 }
 0x9e8   : > { %v3645_v23 = vmul.f32 %v3564_v11, %v3458_v58  ;;  %v3668_v11 = vpack.c.bf16 %v3642_v25, %v3641_v47 }
 0x9ef   : > { %v3460_v27 = vpop.f32.mrf.mxu3 }
 0x9f0   : > { %v3646_v33 = vmul.f32 %v3566_v46, %v3460_v27  ;;  %v3570_v46 = vpop.permute.xlu0 %3569 }
 0x9f2   : > { %v3670_v59 = vpack.c.bf16 %v3646_v33, %v3645_v23  ;;  %v9596_v23 = vld [vmem:[#allocation27_spill] sm:$0xff] }
 0x9f4   : > { %3679 = vmatpush.bf16.msra.mxu0 %v3670_v59  ;;  %6290 = vmatmul.msk.bf16.vlgmr.msrb.gmra.mxu3 %vm1332_vm9, %v9591_v42  ;;  %v9597_v59 = vld [vmem:[#allocation42_spill] sm:$0xff]  ;;  %v9598_v42 = vld [vmem:[#allocation43_spill] sm:$0xff] }
 0x9f7   : > { %v3463_v40 = vpop.f32.mrf.mxu3 }
 0x9f8   : > { %3680 = vmatpush.bf16.msra.mxu0 %v3669_v13  ;;  %v3647_v1 = vmul.f32 %v3568_v55, %v3463_v40 }
 0x9fc   : > { %3681 = vmatpush.bf16.msra.mxu0 %v3668_v11 }
 0x9ff   : > { %v3465_v36 = vpop.f32.mrf.mxu3 }
 0xa00   : > { %v3648_v21 = vmul.f32 %v3570_v46, %v3465_v36  ;;  %3682 = vmatpush.bf16.msra.mxu0 %v3667_v29  ;;  %v9606_v36 = vld [vmem:[#allocation48_spill] sm:$0xff] }
 0xa02   : > { %v3671_v17 = vpack.c.bf16 %v3648_v21, %v3647_v1  ;;  %v9608_v21 = vld [vmem:[#allocation49_spill] sm:$0xff] }
 0xa04   : > { %3683 = vmatpush.bf16.msra.mxu0 %v3666_v4  ;;  %6291 = vmatmul.msk.bf16.gmra.mxu3 %vm1332_vm9, %v9592_v32 }
 0xa07   : > { %v3468_v48 = vpop.f32.mrf.mxu3 }
 0xa08   : > { %3684 = vmatpush.bf16.msra.mxu0 %v3665_v26  ;;  %v3649_v15 = vmul.f32 %v3572_v39, %v3468_v48 }
 0xa0c   : > { %3685 = vmatpush.bf16.msra.mxu0 %v3664_v63 }
 0xa0f   : > { %v3470_v24 = vpop.f32.mrf.mxu3 }
 0xa10   : > { %v3650_v7 = vmul.f32 %v3574_v34, %v3470_v24  ;;  %3686 = vmatpush.bf16.msra.mxu0 %v3663_v37  ;;  %v9614_v24 = vld [vmem:[#allocation51_spill] sm:$0xff] }
 0xa12   : > { %v3672_v4 = vpack.c.bf16 %v3650_v7, %v3649_v15  ;;  %v6443_v15 = vld [vmem:[%s9391_s5 + $0x58] sm:$0xff]  ;;  %v6442_v7 = vld [vmem:[%s9391_s5 + $0x50] sm:$0xff] }
 0xa13   : > { %3687 = vmatmul.bf16.vlgmr.msra.gmra.mxu0 %v8525_v9 }
 0xa14   : > { %6292 = vmatmul.msk.bf16.gmra.mxu3 %vm1332_vm9, %v9593_v54 }
 0xa17   : > { %v3473_v44 = vpop.f32.mrf.mxu3 }
 0xa18   : > { %v3651_v26 = vmul.f32 %v3576_v8, %v3473_v44  ;;  %v9611_v8 = vld [vmem:[#allocation50_spill] sm:$0xff] }
 0xa1f   : > { %v3475_v6 = vpop.f32.mrf.mxu3 }
 0xa20   : > { %v3652_v41 = vmul.f32 %v3578_v53, %v3475_v6 }
 0xa22   : > { %v3673_v52 = vpack.c.bf16 %v3652_v41, %v3651_v26 }
 0xa24   : > { %6293 = vmatmul.msk.bf16.gmra.mxu3 %vm1332_vm9, %v9594_v16  ;;  %v6508_v16 = vld [vmem:[%s9396_s10 + $0x8] ss:$0 sm:$0xff] }
 0xa27   : > { %v3478_v63 = vpop.f32.mrf.mxu3 }
 0xa28   : > { %v3653_v43 = vmul.f32 %v3580_v31, %v3478_v63 }
 0xa2f   : > { %v3480_v38 = vpop.f32.mrf.mxu3 }
 0xa30   : > { %v3654_v58 = vmul.f32 %v3582_v57, %v3480_v38 }
 0xa32   : > { %v3674_v19 = vpack.c.bf16 %v3654_v58, %v3653_v43 }
 0xa34   : > { %6294 = vmatmul.msk.bf16.gmra.mxu3 %vm1332_vm9, %v9595_v51  ;;  %v6445_v51 = vld [vmem:[%s9391_s5 + $0x88] sm:$0xff] }
 0xa37   : > { %v3483_v37 = vpop.f32.mrf.mxu3 }
 0xa3f   : > { %v3485_v27 = vpop.f32.mrf.mxu3 }
 0xa40   : > { %v3656_v29 = vmul.f32 %v3586_v20, %v3485_v27 }
 0xa44   : > { %6295 = vmatmul.msk.bf16.gmra.mxu3 %vm1332_vm9, %v9596_v23  ;;  %v6444_v23 = vld [vmem:[%s9391_s5 + $0x80] sm:$0xff] }
 0xa47   : > { %v3488_v33 = vpop.f32.mrf.mxu3 }
 0xa48   : > { %v3657_v55 = vmul.f32 %v8707_v2, %v3488_v33 }
 0xa4f   : > { %v3490_v30 = vpop.f32.mrf.mxu3 }
 0xa50   : > { %v3658_v11 = vmul.f32 %v8698_v61, %v3490_v30  ;;  %v9601_v61 = vld [vmem:[#allocation46_spill] sm:$0xff] }
 0xa52   : > { %v3676_v46 = vpack.c.bf16 %v3658_v11, %v3657_v55 }
 0xa54   : > { %6296 = vmatmul.msk.bf16.gmra.mxu3 %vm1332_vm9, %v9597_v59 }
 0xa57   : > { %v3493_v53 = vpop.f32.mrf.mxu3 }
 0xa58   : > { %v3659_v47 = vmul.f32 %v8715_v56, %v3493_v53  ;;  %v9603_v56 = vld [vmem:[#allocation47_spill] sm:$0xff] }
 0xa5f   : > { %v3495_v5 = vpop.f32.mrf.mxu3 }
 0xa60   : > { %v3660_v13 = vmul.f32 %v8709_v35, %v3495_v5  ;;  %v9600_v35 = vld [vmem:[#allocation45_spill] sm:$0xff] }
 0xa62   : > { %v3677_v50 = vpack.c.bf16 %v3660_v13, %v3659_v47 }
 0xa64   : > { %6297 = vmatmul.msk.bf16.gmra.mxu3 %vm1332_vm9, %v9598_v42 }
 0xa67   : > { %v3498_v31 = vpop.f32.mrf.mxu3 }
 0xa68   : > { %v3661_v39 = vmul.f32 %v8705_v18, %v3498_v31  ;;  %v3655_v18 = vmul.f32 %v8711_v62, %v3483_v37 }
 0xa6f   : > { %v3500_v57 = vpop.f32.mrf.mxu3 }
 0xa70   : > { %v3662_v25 = vmul.f32 %v8717_v49, %v3500_v57  ;;  %v3675_v49 = vpack.c.bf16 %v3656_v29, %v3655_v18  ;;  %v6446_v18 = vld [vmem:[%s9391_s5 + $0x30] sm:$0xff] }
 0xa72   : > { %v3678_v40 = vpack.c.bf16 %v3662_v25, %v3661_v39 }
 0xa74   : > { %3693 = vmatpush.bf16.msrb.mxu0 %v3678_v40  ;;  %6298 = vmatmul.msk.bf16.gmra.mxu3 %vm1332_vm9, %v9599_v45 }
 0xa77   : > { %v8761_v2 = vpop.f32.mrf.mxu3 }
 0xa78   : > { %3694 = vmatpush.bf16.msrb.mxu0 %v3677_v50  ;;  %9602 = vst [vmem:[#allocation57_spill] sm:$0xff] %v8761_v2 }
 0xa7c   : > { %3695 = vmatpush.bf16.msrb.mxu0 %v3676_v46  ;;  %v6447_v46 = vld [vmem:[%s9391_s5 + $0x38] sm:$0xff] }
 0xa7f   : > { %v8765_v62 = vpop.f32.mrf.mxu3 }
 0xa80   : > { %3696 = vmatpush.bf16.msrb.mxu0 %v3675_v49  ;;  %9604 = vst [vmem:[#allocation60_spill] sm:$0xff] %v8765_v62 }
 0xa84   : > { %3697 = vmatpush.bf16.msrb.mxu0 %v3674_v19  ;;  %6299 = vmatmul.msk.bf16.gmra.mxu3 %vm1332_vm9, %v9600_v35  ;;  %v6509_v35 = vld [vmem:[%s9396_s10 + $0xb] ss:$0 sm:$0xff] }
 0xa87   : > { %v8767_v20 = vpop.f32.mrf.mxu3 }
 0xa88   : > { %3698 = vmatpush.bf16.msrb.mxu0 %v3673_v52  ;;  %9605 = vst [vmem:[#allocation54_spill] sm:$0xff] %v8767_v20 }
 0xa8c   : > { %3699 = vmatpush.bf16.msrb.mxu0 %v3672_v4 }
 0xa8f   : > { %v8771_v1 = vpop.f32.mrf.mxu3 }
 0xa90   : > { %3700 = vmatpush.bf16.msrb.mxu0 %v3671_v17  ;;  %9607 = vst [vmem:[#allocation53_spill] sm:$0xff] %v8771_v1  ;;  %v3688_v4 = vpop.f32.mrf.mxu0 }
 0xa93   : > { %3701 = vmatmul.bf16.vlgmr.msrb.gmra.mxu0 %v8566_v28 }
 0xa94   : > { %6300 = vmatmul.msk.bf16.gmra.mxu3 %vm1332_vm9, %v9601_v61  ;;  %3736 = vmatpush.bf16.msra.mxu0 %v6443_v15 }
 0xa97   : > { %v8775_v17 = vpop.f32.mrf.mxu3 }
 0xa98   : > { %9609 = vst [vmem:[#allocation52_spill] sm:$0xff] %v8775_v17  ;;  %3737 = vmatpush.bf16.msra.mxu0 %v6442_v7  ;;  %v3690_v54 = vpop.f32.mrf.mxu0 }
 0xa9c   : > { %3793 = vmatpush.bf16.msrb.mxu0 %v6445_v51 }
 0xa9f   : > { %v8777_v32 = vpop.f32.mrf.mxu3 }
 0xaa0   : > { %9610 = vst [vmem:[#allocation22_spill] sm:$0xff] %v8777_v32  ;;  %3794 = vmatpush.bf16.msrb.mxu0 %v6444_v23 }
 0xaa4   : > { %6301 = vmatmul.msk.bf16.gmra.mxu3 %vm1332_vm9, %v9603_v56 }
 0xaa7   : > { %v8781_v48 = vpop.f32.mrf.mxu3 }
 0xaa8   : > { %9612 = vst [vmem:[#allocation23_spill] sm:$0xff] %v8781_v48  ;;  %v8917_v48 = vld [vmem:[%s8016_s16 + $0x58] sm:$0xff] }
 0xaaf   : > { %v8783_v34 = vpop.f32.mrf.mxu3 }
 0xab0   : > { %9613 = vst [vmem:[#allocation55_spill] sm:$0xff] %v8783_v34 }
 0xab4   : > { %6302 = vmatmul.msk.bf16.gmra.mxu3 %vm1332_vm9, %v9606_v36 }
 0xac4   : > { %6303 = vmatmul.msk.bf16.gmra.mxu3 %vm1332_vm9, %v9608_v21 }
 0xad4   : > { %6304 = vmatmul.msk.bf16.gmra.mxu3 %vm1332_vm9, %v9611_v8 }
 0xae4   : > { %6305 = vmatmul.msk.bf16.gmra.mxu3 %vm1332_vm9, %v9614_v24 }
 0xb10   : > { %v3702_v44 = vpop.f32.mrf.mxu0 }
 0xb11   : > { %v3703_v26 = vadd.f32 %v3702_v44, %v3688_v4 }
 0xb18   : > { %v3704_v6 = vpop.f32.mrf.mxu0 }
 0xb19   : > { %v3705_v41 = vadd.f32 %v3704_v6, %v3690_v54 }
 0xb1b   : > { %v3712_v52 = vpack.c.bf16 %v3705_v41, %v3703_v26  ;;  %v8842_v41 = vpop.permute.xlu0 %3984 }
 0xb1d   : > { %6105 = vmatmul.msk.bf16.vlgmr.msra.gmra.mxu0 %vm1332_vm9, %v3712_v52 }
 0xb1e   : > { %3830 = vmatpush.bf16.msra.mxu0 %v6447_v46 }
 0xb22   : > { %3831 = vmatpush.bf16.msra.mxu0 %v6446_v18 }
 0xb9a   : > { %v3739_v63 = vpop.f32.mrf.mxu0 }
 0xb9b   : > { %v3740_v38 = vadd.f32 %v6508_v16, %v3739_v63  ;;  %v8850_v63 = vpop.permute.xlu0 %3958 }
 0xb9d   : > { %v3746_v43 = vand.u32 2147483647, %v3740_v38  ;;  %v3744_v25 = vmax.f32 %v3740_v38, 0.0 }
 0xb9f   : > { %v3748_v58 = vsub.f32 0.0, %v3746_v43 }
 0xba1   : > { %v3750_v19 = vmul.f32 1.442695, %v3748_v58 }
 0xba2   : > { %v3741_v37 = vpop.f32.mrf.mxu0 }
 0xba3   : > { %6715 = vpow2.f32 %v3750_v19  ;;  %v3742_v27 = vadd.f32 %v6508_v16, %v3741_v37  ;;  %v8856_v58 = vpop.permute.xlu0 %3952  ;;  %v8859_v19 = vld [vmem:[%s8016_s16 + $0x28] sm:$0xff] }
 0xba5   : > { %v3747_v33 = vand.u32 2147483647, %v3742_v27  ;;  %v3745_v47 = vmax.f32 %v3742_v27, 0.0 }
 0xba7   : > { %v3749_v30 = vsub.f32 0.0, %v3747_v33 }
 0xba9   : > { %v6716_v59 = vpop.eup %6715  ;;  %v3752_v53 = vmul.f32 1.442695, %v3749_v30  ;;  %v8874_v30 = vld [vmem:[%s8016_s16 + $0x30] sm:$0xff] }
 0xbaa   : > { %v3754_v5 = vadd.f32 1.0, %v6716_v59 }
 0xbab   : > { %6717 = vpow2.f32 %v3752_v53  ;;  %v8867_v27 = vpop.permute.xlu0 %3978 }
 0xbac   : > { %6719 = vlog2.f32 %v3754_v5 }
 0xbb1   : > { %v6718_v42 = vpop.eup %6717 }
 0xbb2   : > { %v3755_v31 = vadd.f32 1.0, %v6718_v42  ;;  %v6720_v57 = vpop.eup %6719 }
 0xbb3   : > { %v3757_v39 = vmul.f32 0.6931472, %v6720_v57  ;;  %v8878_v59 = vpop.permute.xlu0 %3972  ;;  %v8885_v57 = vld [vmem:[%s8016_s16 + $0x38] sm:$0xff] }
 0xbb4   : > { %6721 = vlog2.f32 %v3755_v31 }
 0xbb5   : > { %v3760_v40 = vadd.f32 %v3757_v39, %v3744_v25 }
 0xbb7   : > { %v6106_v50 = vadd.f32 -0.6931472, %v3760_v40 }
 0xbba   : > { %v6722_v13 = vpop.eup %6721 }
 0xbbb   : > { %v3759_v45 = vmul.f32 0.6931472, %v6722_v13  ;;  %v8882_v42 = vpop.permute.xlu0 %3946 }
 0xbbd   : > { %v3761_v11 = vadd.f32 %v3759_v45, %v3745_v47  ;;  %v8892_v45 = vld [vmem:[%s8016_s16 + $0x40] sm:$0xff] }
 0xbbf   : > { %v6107_v55 = vadd.f32 -0.6931472, %v3761_v11 }
 0xbc1   : > { %v3769_v29 = vpack.c.bf16 %v6107_v55, %v6106_v50 }
 0xbc3   : > { %6120 = vmatmul.msk.bf16.vlgmr.msrb.gmra.mxu0 %vm1332_vm9, %v3769_v29  ;;  %v3941_v25 = vpop.permute.xlu0 %3940 }
 0xbcb   : > { %v8896_v11 = vpop.permute.xlu0 %3966 }
 0xc40   : > { %v3796_v49 = vpop.f32.mrf.mxu0 }
 0xc41   : > { %v3797_v61 = vadd.f32 %v6509_v35, %v3796_v49 }
 0xc43   : > { %v8814_v21 = vadd.f32 %v3797_v61, %v8622_v14  ;;  %v8826_v14 = vpop.permute.xlu2 %3988 }
 0xc48   : > { %v3798_v56 = vpop.f32.mrf.mxu0 }
 0xc49   : > { %v3799_v36 = vadd.f32 %v6509_v35, %v3798_v56  ;;  %v8904_v35 = vpop.permute.xlu0 %3960  ;;  %v8907_v56 = vld [vmem:[%s8016_s16 + $0x48] sm:$0xff] }
 0xc4b   : > { %v8817_v8 = vadd.f32 %v3799_v36, %v8625_v22  ;;  %v8830_v22 = vpop.permute.xlu1 %3956  ;;  %v8832_v54 = vpop.permute.xlu2 %3986 }
 0xc4d   : > { %v3808_v24 = vpack.c.bf16 %v8817_v8, %v8814_v21 }
 0xc4f   : > { %6133 = vmatmul.msk.bf16.vlgmr.msra.gmra.mxu0 %vm1332_vm9, %v3808_v24 }
 0xc51   : > { %v3935_v36 = vpop.permute.xlu0 %3934 }
 0xc53   : > { %v8834_v44 = vpop.permute.xlu1 %3982  ;;  %v8838_v6 = vpop.permute.xlu2 %3980 }
 0xc5b   : > { %v8840_v26 = vpop.permute.xlu1 %3976  ;;  %v8844_v52 = vpop.permute.xlu2 %3954 }
 0xc63   : > { %v8846_v16 = vpop.permute.xlu1 %3950  ;;  %v8852_v38 = vpop.permute.xlu2 %3948 }
 0xc6b   : > { %v8854_v43 = vpop.permute.xlu1 %3944  ;;  %v8863_v51 = vpop.permute.xlu2 %3974 }
 0xc73   : > { %v8865_v37 = vpop.permute.xlu1 %3990  ;;  %v8869_v23 = vpop.permute.xlu2 %3968 }
 0xc7b   : > { %v8871_v33 = vpop.permute.xlu1 %3970  ;;  %v3943_v53 = vpop.permute.xlu2 %3942 }
 0xc83   : > { %v8880_v5 = vpop.permute.xlu1 %3964  ;;  %v3937_v31 = vpop.permute.xlu2 %3936 }
 0xc8b   : > { %v3939_v39 = vpop.permute.xlu1 %3938  ;;  %v8889_v13 = vpop.permute.xlu2 %3962 }
 0xc93   : > { %v3933_v40 = vpop.permute.xlu1 %3932  ;;  %v3929_v50 = vpop.permute.xlu2 %3928 }
 0xc9b   : > { %v3931_v55 = vpop.permute.xlu1 %3930 }
 0xccc   : > { %v3833_v15 = vpop.f32.mrf.mxu0 }
 0xcd4   : > { %v3835_v7 = vpop.f32.mrf.mxu0 }
 0xcd5   : > { %v3838_v4 = vpack.c.bf16 %v3835_v7, %v3833_v15 }
 0xcd7   : > { %3846 = vmatpush.bf16.msrb.mxu0 %v3838_v4 }
 0xcda   : > { %6134 = vmatmul.msk.bf16.vlgmr.msrb.gmra.mxu0 %vm3058_vm1, %v8631_v3 }
 0xcea   : > { %6135 = vmatmul.msk.bf16.gmra.mxu0 %vm3058_vm1, %v8636_v60 }
 0xcfa   : > { %6136 = vmatmul.msk.bf16.gmra.mxu0 %vm3058_vm1, %v8641_v0 }
 0xd0a   : > { %6137 = vmatmul.msk.bf16.gmra.mxu0 %vm3058_vm1, %v8646_v12 }
 0xd1a   : > { %6138 = vmatmul.msk.bf16.gmra.mxu0 %vm3058_vm1, %v8651_v10 }
 0xd2a   : > { %6139 = vmatmul.msk.bf16.gmra.mxu0 %vm3058_vm1, %v8859_v19 }
 0xd3a   : > { %6140 = vmatmul.msk.bf16.gmra.mxu0 %vm3058_vm1, %v8874_v30 }
 0xd4a   : > { %6141 = vmatmul.msk.bf16.gmra.mxu0 %vm3058_vm1, %v8885_v57 }
 0xd57   : > { %v3848_v47 = vpop.f32.mrf.mxu0 }
 0xd58   : > { %v8898_v46 = vmul.f32 %v3929_v50, %v3848_v47  ;;  %v8912_v50 = vld [vmem:[%s8016_s16 + $0x50] sm:$0xff] }
 0xd5a   : > { %6142 = vmatmul.msk.bf16.gmra.mxu0 %vm3058_vm1, %v8892_v45 }
 0xd5f   : > { %v3850_v29 = vpop.f32.mrf.mxu0 }
 0xd60   : > { %v8900_v18 = vmul.f32 %v3931_v55, %v3850_v29 }
 0xd62   : > { %v4056_v49 = vpack.c.bf16 %v8900_v18, %v8898_v46 }
 0xd67   : > { %v3853_v61 = vpop.f32.mrf.mxu0 }
 0xd68   : > { %v4026_v15 = vmul.f32 %v3933_v40, %v3853_v61 }
 0xd6a   : > { %6143 = vmatmul.msk.bf16.gmra.mxu0 %vm3058_vm1, %v8907_v56 }
 0xd6f   : > { %v3855_v24 = vpop.f32.mrf.mxu0 }
 0xd70   : > { %v4027_v7 = vmul.f32 %v3935_v36, %v3855_v24 }
 0xd72   : > { %v4057_v4 = vpack.c.bf16 %v4027_v7, %v4026_v15  ;;  %v8922_v7 = vld [vmem:[%s8016_s16 + $0x60] sm:$0xff] }
 0xd77   : > { %v3858_v47 = vpop.f32.mrf.mxu0 }
 0xd78   : > { %v4028_v29 = vmul.f32 %v3937_v31, %v3858_v47  ;;  %v8927_v47 = vld [vmem:[%s8016_s16 + $0x68] sm:$0xff] }
 0xd79   : > { %9615 = vst [vmem:[#allocation56_spill] sm:$0xff] %v8927_v47 }
 0xd7a   : > { %6144 = vmatmul.msk.bf16.gmra.mxu0 %vm3058_vm1, %v8912_v50 }
 0xd7f   : > { %v3860_v55 = vpop.f32.mrf.mxu0 }
 0xd80   : > { %v4029_v46 = vmul.f32 %v3939_v39, %v3860_v55 }
 0xd82   : > { %v4058_v18 = vpack.c.bf16 %v4029_v46, %v4028_v29  ;;  %v8932_v46 = vld [vmem:[%s8016_s16 + $0x70] sm:$0xff] }
 0xd83   : > { %9616 = vst [vmem:[#allocation58_spill] sm:$0xff] %v8932_v46 }
 0xd87   : > { %v3863_v34 = vpop.f32.mrf.mxu0 }
 0xd88   : > { %v4030_v61 = vmul.f32 %v3941_v25, %v3863_v34  ;;  %v8937_v25 = vld [vmem:[%s8016_s16 + $0x78] sm:$0xff] }
 0xd89   : > { %9617 = vst [vmem:[#allocation59_spill] sm:$0xff] %v8937_v25 }
 0xd8a   : > { %6145 = vmatmul.msk.bf16.gmra.mxu0 %vm3058_vm1, %v8917_v48 }
 0xd8f   : > { %v3865_v40 = vpop.f32.mrf.mxu0 }
 0xd90   : > { %v4031_v36 = vmul.f32 %v3943_v53, %v3865_v40 }
 0xd92   : > { %v4059_v24 = vpack.c.bf16 %v4031_v36, %v4030_v61 }
 0xd97   : > { %v3868_v15 = vpop.f32.mrf.mxu0 }
 0xd9a   : > { %6146 = vmatmul.msk.bf16.gmra.mxu0 %vm3058_vm1, %v8922_v7 }
 0xd9f   : > { %v3870_v31 = vpop.f32.mrf.mxu0 }
 0xda7   : > { %v3873_v39 = vpop.f32.mrf.mxu0 }
 0xdaa   : > { %6147 = vmatmul.msk.bf16.gmra.mxu0 %vm3058_vm1, %v8927_v47 }
 0xdaf   : > { %v3875_v55 = vpop.f32.mrf.mxu0 }
 0xdb0   : > { %v4035_v20 = vmul.f32 %v8846_v16, %v3875_v55 }
 0xdb7   : > { %v3878_v29 = vpop.f32.mrf.mxu0 }
 0xdb8   : > { %v4036_v1 = vmul.f32 %v8856_v58, %v3878_v29 }
 0xdba   : > { %6148 = vmatmul.msk.bf16.gmra.mxu0 %vm3058_vm1, %v8932_v46  ;;  %v4034_v46 = vmul.f32 %v8852_v38, %v3873_v39 }
 0xdbc   : > { %v4061_v47 = vpack.c.bf16 %v4035_v20, %v4034_v46 }
 0xdbf   : > { %v3880_v34 = vpop.f32.mrf.mxu0 }
 0xdc0   : > { %v4037_v32 = vmul.f32 %v8844_v52, %v3880_v34 }
 0xdc2   : > { %v4062_v62 = vpack.c.bf16 %v4037_v32, %v4036_v1 }
 0xdc7   : > { %v3883_v53 = vpop.f32.mrf.mxu0 }
 0xdc8   : > { %v4038_v61 = vmul.f32 %v8830_v22, %v3883_v53  ;;  %v4032_v22 = vmul.f32 %v8854_v43, %v3868_v15 }
 0xdca   : > { %6149 = vmatmul.msk.bf16.gmra.mxu0 %vm3058_vm1, %v8937_v25  ;;  %v4033_v25 = vmul.f32 %v8882_v42, %v3870_v31 }
 0xdcf   : > { %v3885_v40 = vpop.f32.mrf.mxu0 }
 0xdd0   : > { %v4039_v36 = vmul.f32 %v8850_v63, %v3885_v40  ;;  %v4060_v63 = vpack.c.bf16 %v4033_v25, %v4032_v22 }
 0xdd2   : > { %v4063_v17 = vpack.c.bf16 %v4039_v36, %v4038_v61 }
 0xdd4   : > { %4072 = vmatpush.bf16.msra.mxu1 %v4063_v17 }
 0xdd7   : > { %v3888_v2 = vpop.f32.mrf.mxu0 }
 0xdd8   : > { %4073 = vmatpush.bf16.msra.mxu1 %v4062_v62 }
 0xddc   : > { %4074 = vmatpush.bf16.msra.mxu1 %v4061_v47 }
 0xddf   : > { %v3890_v53 = vpop.f32.mrf.mxu0 }
 0xde0   : > { %4075 = vmatpush.bf16.msra.mxu1 %v4060_v63 }
 0xde4   : > { %4076 = vmatpush.bf16.msra.mxu1 %v4059_v24 }
 0xde7   : > { %v3893_v52 = vpop.f32.mrf.mxu0 }
 0xde8   : > { %4077 = vmatpush.bf16.msra.mxu1 %v4058_v18 }
 0xdec   : > { %4078 = vmatpush.bf16.msra.mxu1 %v4057_v4 }
 0xdef   : > { %v3895_v17 = vpop.f32.mrf.mxu0 }
 0xdf0   : > { %4079 = vmatpush.bf16.msra.mxu1 %v4056_v49 }
 0xdf3   : > { %4080 = vmatmul.bf16.vlgmr.msra.gmra.mxu1 %v8525_v9 }
 0xdf7   : > { %v3898_v1 = vpop.f32.mrf.mxu0 }
 0xdff   : > { %v3900_v32 = vpop.f32.mrf.mxu0 }
 0xe07   : > { %v3903_v62 = vpop.f32.mrf.mxu0 }
 0xe0f   : > { %v3905_v16 = vpop.f32.mrf.mxu0 }
 0xe17   : > { %v3908_v38 = vpop.f32.mrf.mxu0 }
 0xe18   : > { %v4048_v25 = vmul.f32 %v8840_v26, %v3908_v38  ;;  %v4041_v26 = vmul.f32 %v8889_v13, %v3890_v53 }
 0xe1f   : > { %v3910_v20 = vpop.f32.mrf.mxu0 }
 0xe20   : > { %v4049_v46 = vmul.f32 %v8867_v27, %v3910_v20  ;;  %v4042_v27 = vmul.f32 %v8880_v5, %v3893_v52  ;;  %v6450_v20 = vld [vmem:[%s9391_s5 + $0x90] sm:$0xff] }
 0xe27   : > { %v3913_v58 = vpop.f32.mrf.mxu0 }
 0xe28   : > { %v4050_v29 = vmul.f32 %v8838_v6, %v3913_v58  ;;  %v4043_v6 = vmul.f32 %v8896_v11, %v3895_v17 }
 0xe2a   : > { %v4065_v36 = vpack.c.bf16 %v4043_v6, %v4042_v27 }
 0xe2f   : > { %v3915_v43 = vpop.f32.mrf.mxu0 }
 0xe30   : > { %v4051_v47 = vmul.f32 %v8834_v44, %v3915_v43  ;;  %v4044_v44 = vmul.f32 %v8869_v23, %v3898_v1  ;;  %v6449_v23 = vld [vmem:[%s9391_s5 + $0x68] sm:$0xff] }
 0xe31   : > { %4129 = vmatpush.bf16.msrb.mxu1 %v6449_v23 }
 0xe32   : > { %v4069_v34 = vpack.c.bf16 %v4051_v47, %v4050_v29 }
 0xe37   : > { %v3918_v42 = vpop.f32.mrf.mxu0 }
 0xe38   : > { %v4052_v9 = vmul.f32 %v8842_v41, %v3918_v42  ;;  %v4045_v41 = vmul.f32 %v8871_v33, %v3900_v32  ;;  %v6448_v33 = vld [vmem:[%s9391_s5 + $0x60] sm:$0xff] }
 0xe39   : > { %4130 = vmatpush.bf16.msrb.mxu1 %v6448_v33 }
 0xe3a   : > { %v4066_v61 = vpack.c.bf16 %v4045_v41, %v4044_v44 }
 0xe3f   : > { %v3920_v15 = vpop.f32.mrf.mxu0 }
 0xe40   : > { %v4053_v49 = vmul.f32 %v8832_v54, %v3920_v15  ;;  %v4046_v54 = vmul.f32 %v8878_v59, %v3903_v62  ;;  %v6451_v62 = vld [vmem:[%s9391_s5 + $0x98] sm:$0xff] }
 0xe42   : > { %v4070_v55 = vpack.c.bf16 %v4053_v49, %v4052_v9 }
 0xe47   : > { %v3923_v31 = vpop.f32.mrf.mxu0 }
 0xe48   : > { %v4054_v24 = vmul.f32 %v8826_v14, %v3923_v31  ;;  %v4047_v14 = vmul.f32 %v8863_v51, %v3905_v16  ;;  %v4040_v51 = vmul.f32 %v8904_v35, %v3888_v2 }
 0xe4a   : > { %v4067_v40 = vpack.c.bf16 %v4047_v14, %v4046_v54  ;;  %v4064_v59 = vpack.c.bf16 %v4041_v26, %v4040_v51  ;;  %v6511_v54 = vld [vmem:[%s9396_s10 + $0xc] ss:$0 sm:$0xff]  ;;  %v6452_v26 = vld [vmem:[%s8992_s24] sm:$0xff]  ;;  %v6458_v51 = vld [vmem:[%s8992_s24 + $0x30] sm:$0xff] }
 0xe4f   : > { %v3925_v39 = vpop.f32.mrf.mxu0 }
 0xe50   : > { %v4055_v4 = vmul.f32 %v8865_v37, %v3925_v39  ;;  %v4068_v37 = vpack.c.bf16 %v4049_v46, %v4048_v25 }
 0xe52   : > { %v4071_v18 = vpack.c.bf16 %v4055_v4, %v4054_v24 }
 0xe54   : > { %4086 = vmatpush.bf16.msra.mxu2 %v4071_v18 }
 0xe58   : > { %4087 = vmatpush.bf16.msra.mxu2 %v4070_v55 }
 0xe5c   : > { %4088 = vmatpush.bf16.msra.mxu2 %v4069_v34 }
 0xe60   : > { %4089 = vmatpush.bf16.msra.mxu2 %v4068_v37 }
 0xe64   : > { %4090 = vmatpush.bf16.msra.mxu2 %v4067_v40 }
 0xe68   : > { %4091 = vmatpush.bf16.msra.mxu2 %v4066_v61 }
 0xe6c   : > { %4092 = vmatpush.bf16.msra.mxu2 %v4065_v36  ;;  %v6453_v36 = vld [vmem:[%s8992_s24 + $0x8] sm:$0xff] }
 0xe70   : > { %4093 = vmatpush.bf16.msra.mxu2 %v4064_v59  ;;  %v4081_v5 = vpop.f32.mrf.mxu1 }
 0xe73   : > { %4094 = vmatmul.bf16.vlgmr.msra.gmra.mxu2 %v8566_v28  ;;  %v6510_v28 = vld [vmem:[%s9396_s10 + $0x9] ss:$0 sm:$0xff] }
 0xe74   : > { %4186 = vmatpush.bf16.msrb.mxu2 %v6451_v62 }
 0xe78   : > { %v4083_v11 = vpop.f32.mrf.mxu1  ;;  %4187 = vmatpush.bf16.msrb.mxu2 %v6450_v20 }
 0xef6   : > { %v4095_v13 = vpop.f32.mrf.mxu2 }
 0xef7   : > { %v4096_v2 = vadd.f32 %v4095_v13, %v4081_v5 }
 0xefe   : > { %v4097_v22 = vpop.f32.mrf.mxu2 }
 0xeff   : > { %v4098_v35 = vadd.f32 %v4097_v22, %v4083_v11  ;;  %v6461_v11 = vld [vmem:[%s8992_s24 + $0x48] sm:$0xff] }
 0xf01   : > { %v4105_v63 = vpack.c.bf16 %v4098_v35, %v4096_v2 }
 0xf03   : > { %6162 = vmatmul.msk.bf16.vlgmr.msrb.gmra.mxu1 %vm1332_vm9, %v4105_v63 }
 0xf80   : > { %v4132_v53 = vpop.f32.mrf.mxu1 }
 0xf81   : > { %v4133_v52 = vadd.f32 %v6510_v28, %v4132_v53  ;;  %v6462_v53 = vld [vmem:[%s8992_s24 + $0x50] sm:$0xff] }
 0xf83   : > { %v4139_v17 = vand.u32 2147483647, %v4133_v52  ;;  %v4137_v18 = vmax.f32 %v4133_v52, 0.0 }
 0xf85   : > { %v4141_v1 = vsub.f32 0.0, %v4139_v17 }
 0xf87   : > { %v4143_v32 = vmul.f32 1.442695, %v4141_v1 }
 0xf88   : > { %v4134_v16 = vpop.f32.mrf.mxu1 }
 0xf89   : > { %6723 = vpow2.f32 %v4143_v32  ;;  %v4135_v38 = vadd.f32 %v6510_v28, %v4134_v16 }
 0xf8b   : > { %v4140_v58 = vand.u32 2147483647, %v4135_v38  ;;  %v4138_v55 = vmax.f32 %v4135_v38, 0.0  ;;  %v6463_v38 = vld [vmem:[%s8992_s24 + $0x58] sm:$0xff] }
 0xf8d   : > { %v4142_v43 = vsub.f32 0.0, %v4140_v58 }
 0xf8f   : > { %v6724_v42 = vpop.eup %6723  ;;  %v4145_v15 = vmul.f32 1.442695, %v4142_v43 }
 0xf90   : > { %v4147_v31 = vadd.f32 1.0, %v6724_v42 }
 0xf91   : > { %6725 = vpow2.f32 %v4145_v15 }
 0xf92   : > { %6727 = vlog2.f32 %v4147_v31 }
 0xf97   : > { %v6726_v39 = vpop.eup %6725 }
 0xf98   : > { %v4148_v24 = vadd.f32 1.0, %v6726_v39  ;;  %v6728_v4 = vpop.eup %6727  ;;  %v6464_v39 = vld [vmem:[%s8992_s24 + $0x60] sm:$0xff] }
 0xf99   : > { %v4150_v49 = vmul.f32 0.6931472, %v6728_v4 }
 0xf9a   : > { %6729 = vlog2.f32 %v4148_v24 }
 0xf9b   : > { %v4153_v47 = vadd.f32 %v4150_v49, %v4137_v18 }
 0xf9d   : > { %v6163_v34 = vadd.f32 -0.6931472, %v4153_v47 }
 0xfa0   : > { %v6730_v9 = vpop.eup %6729 }
 0xfa1   : > { %v4152_v29 = vmul.f32 0.6931472, %v6730_v9 }
 0xfa3   : > { %v4154_v46 = vadd.f32 %v4152_v29, %v4138_v55  ;;  %v6465_v55 = vld [vmem:[%s8992_s24 + $0x68] sm:$0xff] }
 0xfa5   : > { %v6164_v25 = vadd.f32 -0.6931472, %v4154_v46 }
 0xfa7   : > { %v4162_v14 = vpack.c.bf16 %v6164_v25, %v6163_v34  ;;  %v9618_v34 = vld [vmem:[#allocation56_spill] sm:$0xff] }
 0xfa9   : > { %6177 = vmatmul.msk.bf16.vlgmr.msrb.gmra.mxu2 %vm1332_vm9, %v4162_v14 }
0x102c   : > { %v4189_v37 = vpop.f32.mrf.mxu2 }
0x102d   : > { %v4190_v41 = vadd.f32 %v6511_v54, %v4189_v37 }
0x102f   : > { %v4194_v6 = vadd.f32 %v4190_v41, %v8814_v21  ;;  %v6454_v21 = vld [vmem:[%s8992_s24 + $0x10] sm:$0xff] }
0x1030   : > { %v6466_v41 = vld [vmem:[%s8992_s24 + $0x70] sm:$0xff] }
0x1034   : > { %v4191_v40 = vpop.f32.mrf.mxu2 }
0x1035   : > { %v4192_v44 = vadd.f32 %v6511_v54, %v4191_v40 }
0x1037   : > { %v4195_v61 = vadd.f32 %v4192_v44, %v8817_v8  ;;  %v6455_v8 = vld [vmem:[%s8992_s24 + $0x18] sm:$0xff] }
0x1039   : > { %v4196_v27 = vpack.c.bf16 %v4195_v61, %v4194_v6  ;;  %v6473_v6 = vld [vmem:[%s9391_s5 + $0xc8] sm:$0xff]  ;;  %v9619_v61 = vld [vmem:[#allocation58_spill] sm:$0xff] }
0x103b   : > { %4204 = vmatpush.bf16.msra.mxu1 %v4196_v27  ;;  %4453 = vmatpush.bf16.msra.mxu2 %v4196_v27 }
0x103e   : > { %6258 = vmatmul.msk.bf16.vlgmr.msra.gmra.mxu2 %vm3058_vm1, %v6452_v26  ;;  %6178 = vmatmul.msk.bf16.vlgmr.msra.gmra.mxu1 %vm3058_vm1, %v8631_v3  ;;  %v6456_v3 = vld [vmem:[%s8992_s24 + $0x20] sm:$0xff] }
0x103f   : > { %4998 = vmatpush.bf16.msrb.mxu1 %v6473_v6 }
0x104e   : > { %6259 = vmatmul.msk.bf16.gmra.mxu2 %vm3058_vm1, %v6453_v36  ;;  %6179 = vmatmul.msk.bf16.gmra.mxu1 %vm3058_vm1, %v8636_v60  ;;  %v6457_v60 = vld [vmem:[%s8992_s24 + $0x28] sm:$0xff] }
0x105e   : > { %6260 = vmatmul.msk.bf16.gmra.mxu2 %vm3058_vm1, %v6454_v21  ;;  %6180 = vmatmul.msk.bf16.gmra.mxu1 %vm3058_vm1, %v8641_v0  ;;  %v6469_v0 = vld [vmem:[%s9391_s5 + $0xa8] sm:$0xff] }
0x105f   : > { %4760 = vmatpush.bf16.msra.mxu0 %v6469_v0 }
0x106e   : > { %6261 = vmatmul.msk.bf16.gmra.mxu2 %vm3058_vm1, %v6455_v8  ;;  %6181 = vmatmul.msk.bf16.gmra.mxu1 %vm3058_vm1, %v8646_v12  ;;  %v6459_v12 = vld [vmem:[%s8992_s24 + $0x38] sm:$0xff] }
0x107e   : > { %6262 = vmatmul.msk.bf16.gmra.mxu2 %vm3058_vm1, %v6456_v3  ;;  %6182 = vmatmul.msk.bf16.gmra.mxu1 %vm3058_vm1, %v8651_v10  ;;  %v6468_v10 = vld [vmem:[%s9391_s5 + $0xa0] sm:$0xff]  ;;  %v6467_v3 = vld [vmem:[%s8992_s24 + $0x78] sm:$0xff] }
0x107f   : > { %4761 = vmatpush.bf16.msra.mxu0 %v6468_v10 }
0x108e   : > { %6263 = vmatmul.msk.bf16.gmra.mxu2 %vm3058_vm1, %v6457_v60  ;;  %6183 = vmatmul.msk.bf16.gmra.mxu1 %vm3058_vm1, %v8859_v19  ;;  %v6460_v19 = vld [vmem:[%s8992_s24 + $0x40] sm:$0xff] }
0x109e   : > { %6264 = vmatmul.msk.bf16.gmra.mxu2 %vm3058_vm1, %v6458_v51  ;;  %6184 = vmatmul.msk.bf16.gmra.mxu1 %vm3058_vm1, %v8874_v30  ;;  %v9620_v51 = vld [vmem:[#allocation59_spill] sm:$0xff] }
0x10ae   : > { %6265 = vmatmul.msk.bf16.gmra.mxu2 %vm3058_vm1, %v6459_v12  ;;  %6185 = vmatmul.msk.bf16.gmra.mxu1 %vm3058_vm1, %v8885_v57 }
0x10bb   : > { %v4206_v59 = vpop.f32.mrf.mxu1 }
0x10be   : > { %6266 = vmatmul.msk.bf16.gmra.mxu2 %vm3058_vm1, %v6460_v19  ;;  %6186 = vmatmul.msk.bf16.gmra.mxu1 %vm3058_vm1, %v8892_v45 }
0x10c1   : > { %v4455_v23 = vpop.f32.mrf.mxu2 }
0x10c2   : > { %v4535_v5 = vmul.f32 %v4455_v23, %v4206_v59 }
0x10c3   : > { %v4208_v30 = vpop.f32.mrf.mxu1 }
0x10c9   : > { %v4457_v33 = vpop.f32.mrf.mxu2 }
0x10ca   : > { %v4536_v13 = vmul.f32 %v4457_v33, %v4208_v30 }
0x10cb   : > { %v4211_v22 = vpop.f32.mrf.mxu1 }
0x10cc   : > { %v4572_v2 = vpack.c.bf16 %v4536_v13, %v4535_v5  ;;  %v6472_v5 = vld [vmem:[%s9391_s5 + $0xc0] sm:$0xff] }
0x10cd   : > { %4999 = vmatpush.bf16.msrb.mxu1 %v6472_v5 }
0x10ce   : > { %6267 = vmatmul.msk.bf16.gmra.mxu2 %vm3058_vm1, %v6461_v11  ;;  %6314 = vmatmul.msk.bf16.vlgmr.msra.gmra.mxu0 %vm1332_vm9, %v4572_v2 }
0x10cf   : > { %6187 = vmatmul.msk.bf16.gmra.mxu1 %vm3058_vm1, %v8907_v56 }
0x10d1   : > { %v4460_v57 = vpop.f32.mrf.mxu2 }
0x10d2   : > { %v4537_v63 = vmul.f32 %v4460_v57, %v4211_v22 }
0x10d3   : > { %v4213_v35 = vpop.f32.mrf.mxu1 }
0x10d9   : > { %v4462_v45 = vpop.f32.mrf.mxu2 }
0x10da   : > { %v4538_v28 = vmul.f32 %v4462_v45, %v4213_v35 }
0x10db   : > { %v4216_v52 = vpop.f32.mrf.mxu1 }
0x10dc   : > { %v4573_v17 = vpack.c.bf16 %v4538_v28, %v4537_v63  ;;  %v9621_v28 = vld [vmem:[#allocation57_spill] sm:$0xff] }
0x10de   : > { %6268 = vmatmul.msk.bf16.gmra.mxu2 %vm3058_vm1, %v6462_v53  ;;  %6315 = vmatmul.msk.bf16.gmra.mxu0 %vm1332_vm9, %v4573_v17 }
0x10df   : > { %6188 = vmatmul.msk.bf16.gmra.mxu1 %vm3058_vm1, %v8912_v50 }
0x10e1   : > { %v4465_v1 = vpop.f32.mrf.mxu2 }
0x10e2   : > { %v4539_v62 = vmul.f32 %v4465_v1, %v4216_v52  ;;  %v9085_v52 = vld [vmem:[%s9396_s10 + $0xd] ss:$0 sm:$0xff] }
0x10e3   : > { %v4218_v32 = vpop.f32.mrf.mxu1 }
0x10e9   : > { %v4467_v56 = vpop.f32.mrf.mxu2 }
0x10ea   : > { %v4540_v16 = vmul.f32 %v4467_v56, %v4218_v32  ;;  %v9622_v56 = vld [vmem:[#allocation60_spill] sm:$0xff] }
0x10eb   : > { %v4221_v20 = vpop.f32.mrf.mxu1 }
0x10ec   : > { %v4574_v58 = vpack.c.bf16 %v4540_v16, %v4539_v62 }
0x10ee   : > { %6269 = vmatmul.msk.bf16.gmra.mxu2 %vm3058_vm1, %v6463_v38  ;;  %6316 = vmatmul.msk.bf16.gmra.mxu0 %vm1332_vm9, %v4574_v58 }
0x10ef   : > { %6189 = vmatmul.msk.bf16.gmra.mxu1 %vm3058_vm1, %v8917_v48 }
0x10f1   : > { %v4470_v43 = vpop.f32.mrf.mxu2 }
0x10f2   : > { %v4541_v15 = vmul.f32 %v4470_v43, %v4221_v20 }
0x10f3   : > { %v4223_v42 = vpop.f32.mrf.mxu1 }
0x10f9   : > { %v4472_v50 = vpop.f32.mrf.mxu2 }
0x10fa   : > { %v4542_v31 = vmul.f32 %v4472_v50, %v4223_v42 }
0x10fb   : > { %v4226_v24 = vpop.f32.mrf.mxu1 }
0x10fc   : > { %v4575_v4 = vpack.c.bf16 %v4542_v31, %v4541_v15 }
0x10fe   : > { %6270 = vmatmul.msk.bf16.gmra.mxu2 %vm3058_vm1, %v6464_v39  ;;  %6317 = vmatmul.msk.bf16.gmra.mxu0 %vm1332_vm9, %v4575_v4  ;;  %v4634_v4 = vpop.f32.mrf.mxu3 }
0x10ff   : > { %6190 = vmatmul.msk.bf16.gmra.mxu1 %vm3058_vm1, %v8922_v7 }
0x1101   : > { %v4475_v49 = vpop.f32.mrf.mxu2 }
0x1102   : > { %v4543_v9 = vmul.f32 %v4475_v49, %v4226_v24  ;;  %v9623_v49 = vld [vmem:[#allocation54_spill] sm:$0xff] }
0x1103   : > { %v4228_v18 = vpop.f32.mrf.mxu1 }
0x1109   : > { %v4477_v48 = vpop.f32.mrf.mxu2 }
0x110a   : > { %v4544_v47 = vmul.f32 %v4477_v48, %v4228_v18 }
0x110b   : > { %v4231_v29 = vpop.f32.mrf.mxu1 }
0x110c   : > { %v4576_v46 = vpack.c.bf16 %v4544_v47, %v4543_v9 }
0x110e   : > { %6271 = vmatmul.msk.bf16.gmra.mxu2 %vm3058_vm1, %v6465_v55  ;;  %6318 = vmatmul.msk.bf16.gmra.mxu0 %vm1332_vm9, %v4576_v46  ;;  %v9624_v55 = vld [vmem:[#allocation53_spill] sm:$0xff] }
0x110f   : > { %6191 = vmatmul.msk.bf16.gmra.mxu1 %vm3058_vm1, %v9618_v34 }
0x1111   : > { %v4480_v25 = vpop.f32.mrf.mxu2 }
0x1112   : > { %v4545_v7 = vmul.f32 %v4480_v25, %v4231_v29  ;;  %v4636_v25 = vpop.f32.mrf.mxu3 }
0x1113   : > { %v4233_v14 = vpop.f32.mrf.mxu1 }
0x1119   : > { %v4482_v37 = vpop.f32.mrf.mxu2 }
0x111a   : > { %v4546_v54 = vmul.f32 %v4482_v37, %v4233_v14 }
0x111b   : > { %v4236_v40 = vpop.f32.mrf.mxu1 }
0x111c   : > { %v4577_v44 = vpack.c.bf16 %v4546_v54, %v4545_v7 }
0x111e   : > { %6272 = vmatmul.msk.bf16.gmra.mxu2 %vm3058_vm1, %v6466_v41  ;;  %6319 = vmatmul.msk.bf16.gmra.mxu0 %vm1332_vm9, %v4577_v44 }
0x111f   : > { %6192 = vmatmul.msk.bf16.gmra.mxu1 %vm3058_vm1, %v9619_v61 }
0x1121   : > { %v4485_v27 = vpop.f32.mrf.mxu2 }
0x1122   : > { %v4547_v21 = vmul.f32 %v4485_v27, %v4236_v40  ;;  %v9625_v27 = vld [vmem:[#allocation52_spill] sm:$0xff] }
0x1123   : > { %v4238_v26 = vpop.f32.mrf.mxu1 }
0x1129   : > { %v4487_v36 = vpop.f32.mrf.mxu2 }
0x112a   : > { %v4548_v8 = vmul.f32 %v4487_v36, %v4238_v26  ;;  %v4639_v36 = vpop.f32.mrf.mxu3 }
0x112b   : > { %v4241_v60 = vpop.f32.mrf.mxu1 }
0x112c   : > { %v4578_v0 = vpack.c.bf16 %v4548_v8, %v4547_v21 }
0x112e   : > { %6273 = vmatmul.msk.bf16.gmra.mxu2 %vm3058_vm1, %v6467_v3  ;;  %6320 = vmatmul.msk.bf16.gmra.mxu0 %vm1332_vm9, %v4578_v0 }
0x112f   : > { %6193 = vmatmul.msk.bf16.gmra.mxu1 %vm3058_vm1, %v9620_v51 }
0x1131   : > { %v4490_v12 = vpop.f32.mrf.mxu2 }
0x1132   : > { %v4549_v59 = vmul.f32 %v4490_v12, %v4241_v60  ;;  %v9626_v60 = vld [vmem:[#allocation22_spill] sm:$0xff]  ;;  %v4641_v5 = vpop.f32.mrf.mxu3 }
0x1133   : > { %v4243_v10 = vpop.f32.mrf.mxu1 }
0x1139   : > { %v4492_v19 = vpop.f32.mrf.mxu2 }
0x113a   : > { %v4550_v23 = vmul.f32 %v4492_v19, %v4243_v10 }
0x113b   : > { %v4246_v30 = vpop.f32.mrf.mxu1 }
0x113c   : > { %v4579_v33 = vpack.c.bf16 %v4550_v23, %v4549_v59 }
0x113e   : > { %6321 = vmatmul.msk.bf16.gmra.mxu0 %vm1332_vm9, %v4579_v33 }
0x1141   : > { %v4495_v13 = vpop.f32.mrf.mxu2 }
0x1142   : > { %v4551_v2 = vmul.f32 %v4495_v13, %v4246_v30 }
0x1143   : > { %v4248_v11 = vpop.f32.mrf.mxu1 }
0x1149   : > { %v4497_v22 = vpop.f32.mrf.mxu2 }
0x114a   : > { %v4552_v57 = vmul.f32 %v4497_v22, %v4248_v11 }
0x114b   : > { %v4763_v35 = vpop.f32.mrf.mxu0 }
0x114c   : > { %v4580_v45 = vpack.c.bf16 %v4552_v57, %v4551_v2  ;;  %v4251_v63 = vpop.f32.mrf.mxu1  ;;  %v4764_v53 = vadd.f32 %v4763_v35, %v9621_v28  ;;  %v9627_v2 = vld [vmem:[#allocation23_spill] sm:$0xff] }
0x114d   : > { %v9628_v28 = vld [vmem:[#allocation55_spill] sm:$0xff] }
0x114e   : > { %6322 = vmatmul.msk.bf16.gmra.mxu0 %vm1332_vm9, %v4580_v45  ;;  %v4845_v32 = vadd.f32 %v9085_v52, %v4764_v53 }
0x1150   : > { %v4877_v20 = vmax.f32 %v4845_v32, 0.0 }
0x1151   : > { %v4500_v17 = vpop.f32.mrf.mxu2 }
0x1152   : > { %v4553_v42 = vmul.f32 %v4500_v17, %v4251_v63 }
0x1153   : > { %v4765_v1 = vpop.f32.mrf.mxu0 }
0x1154   : > { %v4766_v62 = vadd.f32 %v4765_v1, %v9622_v56  ;;  %v4253_v16 = vpop.f32.mrf.mxu1  ;;  %v4644_v1 = vpop.f32.mrf.mxu3 }
0x1156   : > { %v4846_v38 = vadd.f32 %v9085_v52, %v4766_v62 }
0x1158   : > { %v4878_v58 = vmax.f32 %v4846_v38, 0.0 }
0x1159   : > { %v4502_v43 = vpop.f32.mrf.mxu2 }
0x115a   : > { %v4914_v50 = vpack.c.bf16 %v4878_v58, %v4877_v20  ;;  %v4554_v15 = vmul.f32 %v4502_v43, %v4253_v16 }
0x115b   : > { %v4768_v31 = vpop.f32.mrf.mxu0 }
0x115c   : > { %v4581_v39 = vpack.c.bf16 %v4554_v15, %v4553_v42  ;;  %6342 = vmatmul.msk.bf16.vlgmr.msrb.gmra.mxu1 %vm1332_vm9, %v4914_v50  ;;  %v4256_v24 = vpop.f32.mrf.mxu1  ;;  %v4769_v18 = vadd.f32 %v4768_v31, %v9623_v49  ;;  %v4646_v15 = vpop.f32.mrf.mxu3 }
0x115e   : > { %6323 = vmatmul.msk.bf16.gmra.mxu0 %vm1332_vm9, %v4581_v39  ;;  %v4847_v47 = vadd.f32 %v9085_v52, %v4769_v18 }
0x1160   : > { %v4879_v14 = vmax.f32 %v4847_v47, 0.0 }
0x1161   : > { %v4505_v48 = vpop.f32.mrf.mxu2 }
0x1162   : > { %v4555_v54 = vmul.f32 %v4505_v48, %v4256_v24 }
0x1163   : > { %v4770_v9 = vpop.f32.mrf.mxu0 }
0x1164   : > { %v4771_v29 = vadd.f32 %v4770_v9, %v9624_v55  ;;  %v4258_v46 = vpop.f32.mrf.mxu1 }
0x1166   : > { %v4848_v34 = vadd.f32 %v9085_v52, %v4771_v29  ;;  %v4649_v29 = vpop.f32.mrf.mxu3 }
0x1168   : > { %v4880_v37 = vmax.f32 %v4848_v34, 0.0 }
0x1169   : > { %v4507_v7 = vpop.f32.mrf.mxu2 }
0x116a   : > { %v4915_v41 = vpack.c.bf16 %v4880_v37, %v4879_v14  ;;  %v4556_v40 = vmul.f32 %v4507_v7, %v4258_v46 }
0x116b   : > { %v4773_v44 = vpop.f32.mrf.mxu0 }
0x116c   : > { %v4582_v6 = vpack.c.bf16 %v4556_v40, %v4555_v54  ;;  %6343 = vmatmul.msk.bf16.gmra.mxu1 %vm1332_vm9, %v4915_v41  ;;  %v4261_v61 = vpop.f32.mrf.mxu1  ;;  %v4774_v26 = vadd.f32 %v4773_v44, %v9625_v27 }
0x116e   : > { %6324 = vmatmul.msk.bf16.gmra.mxu0 %vm1332_vm9, %v4582_v6  ;;  %v4849_v3 = vadd.f32 %v9085_v52, %v4774_v26 }
0x1170   : > { %v4881_v10 = vmax.f32 %v4849_v3, 0.0 }
0x1171   : > { %v4510_v21 = vpop.f32.mrf.mxu2 }
0x1172   : > { %v4557_v23 = vmul.f32 %v4510_v21, %v4261_v61 }
0x1173   : > { %v4775_v8 = vpop.f32.mrf.mxu0 }
0x1174   : > { %v4776_v0 = vadd.f32 %v4775_v8, %v9626_v60  ;;  %v4263_v51 = vpop.f32.mrf.mxu1 }
0x1176   : > { %v4850_v12 = vadd.f32 %v9085_v52, %v4776_v0 }
0x1178   : > { %v4882_v19 = vmax.f32 %v4850_v12, 0.0  ;;  %v6475_v12 = vld [vmem:[%s9391_s5 + $0xd8] sm:$0xff] }
0x1179   : > { %v4512_v59 = vpop.f32.mrf.mxu2  ;;  %5202 = vmatpush.bf16.msrb.mxu2 %v6475_v12 }
0x117a   : > { %v4916_v30 = vpack.c.bf16 %v4882_v19, %v4881_v10  ;;  %v4558_v33 = vmul.f32 %v4512_v59, %v4263_v51 }
0x117b   : > { %v4778_v13 = vpop.f32.mrf.mxu0 }
0x117c   : > { %v4583_v11 = vpack.c.bf16 %v4558_v33, %v4557_v23  ;;  %6344 = vmatmul.msk.bf16.gmra.mxu1 %vm1332_vm9, %v4916_v30  ;;  %v4266_v22 = vpop.f32.mrf.mxu1  ;;  %v4779_v57 = vadd.f32 %v4778_v13, %v9627_v2 }
0x117e   : > { %6325 = vmatmul.msk.bf16.gmra.mxu0 %vm1332_vm9, %v4583_v11  ;;  %v4851_v63 = vadd.f32 %v9085_v52, %v4779_v57 }
0x1180   : > { %v4883_v56 = vmax.f32 %v4851_v63, 0.0 }
0x1181   : > { %v4515_v35 = vpop.f32.mrf.mxu2 }
0x1182   : > { %v4559_v38 = vmul.f32 %v4515_v35, %v4266_v22 }
0x1183   : > { %v4780_v45 = vpop.f32.mrf.mxu0 }
0x1184   : > { %v4781_v53 = vadd.f32 %v4780_v45, %v9628_v28  ;;  %v4268_v17 = vpop.f32.mrf.mxu1 }
0x1186   : > { %v4852_v32 = vadd.f32 %v9085_v52, %v4781_v53 }
0x1188   : > { %v4884_v62 = vmax.f32 %v4852_v32, 0.0 }
0x1189   : > { %v4517_v16 = vpop.f32.mrf.mxu2 }
0x118a   : > { %v4917_v20 = vpack.c.bf16 %v4884_v62, %v4883_v56  ;;  %v4560_v58 = vmul.f32 %v4517_v16, %v4268_v17 }
0x118b   : > { %v4783_v43 = vpop.f32.mrf.mxu0 }
0x118c   : > { %v4584_v42 = vpack.c.bf16 %v4560_v58, %v4559_v38  ;;  %6345 = vmatmul.msk.bf16.gmra.mxu1 %vm1332_vm9, %v4917_v20  ;;  %v4271_v50 = vpop.f32.mrf.mxu1  ;;  %v4784_v31 = vadd.f32 %v4783_v43, %v4634_v4 }
0x118e   : > { %6326 = vmatmul.msk.bf16.gmra.mxu0 %vm1332_vm9, %v4584_v42  ;;  %v4853_v49 = vadd.f32 %v9085_v52, %v4784_v31 }
0x1190   : > { %v4885_v47 = vmax.f32 %v4853_v49, 0.0 }
0x1191   : > { %v4520_v39 = vpop.f32.mrf.mxu2 }
0x1192   : > { %v4561_v34 = vmul.f32 %v4520_v39, %v4271_v50  ;;  %v6474_v50 = vld [vmem:[%s9391_s5 + $0xd0] sm:$0xff] }
0x1193   : > { %v4785_v24 = vpop.f32.mrf.mxu0  ;;  %5203 = vmatpush.bf16.msrb.mxu2 %v6474_v50 }
0x1194   : > { %v4786_v18 = vadd.f32 %v4785_v24, %v4636_v25  ;;  %v4273_v48 = vpop.f32.mrf.mxu1  ;;  %v4651_v25 = vpop.f32.mrf.mxu3 }
0x1196   : > { %v4854_v9 = vadd.f32 %v9085_v52, %v4786_v18 }
0x1198   : > { %v4886_v55 = vmax.f32 %v4854_v9, 0.0 }
0x1199   : > { %v4522_v46 = vpop.f32.mrf.mxu2 }
0x119a   : > { %v4918_v14 = vpack.c.bf16 %v4886_v55, %v4885_v47  ;;  %v4562_v37 = vmul.f32 %v4522_v46, %v4273_v48 }
0x119b   : > { %v4788_v7 = vpop.f32.mrf.mxu0 }
0x119c   : > { %v4585_v54 = vpack.c.bf16 %v4562_v37, %v4561_v34  ;;  %6346 = vmatmul.msk.bf16.gmra.mxu1 %vm1332_vm9, %v4918_v14  ;;  %v4276_v4 = vpop.f32.mrf.mxu1  ;;  %v4789_v41 = vadd.f32 %v4788_v7, %v4639_v36  ;;  %v4654_v19 = vpop.f32.mrf.mxu3  ;;  %v9136_v14 = vld [vmem:[%s9396_s10 + $0xe] ss:$0 sm:$0xff] }
0x119e   : > { %6327 = vmatmul.msk.bf16.gmra.mxu0 %vm1332_vm9, %v4585_v54  ;;  %v4855_v6 = vadd.f32 %v9085_v52, %v4789_v41 }
0x11a0   : > { %v4887_v21 = vmax.f32 %v4855_v6, 0.0 }
0x11a1   : > { %v4525_v40 = vpop.f32.mrf.mxu2 }
0x11a2   : > { %v4563_v60 = vmul.f32 %v4525_v40, %v4276_v4 }
0x11a3   : > { %v4790_v44 = vpop.f32.mrf.mxu0 }
0x11a4   : > { %v4791_v61 = vadd.f32 %v4790_v44, %v4641_v5  ;;  %v4278_v27 = vpop.f32.mrf.mxu1  ;;  %v4656_v22 = vpop.f32.mrf.mxu3 }
0x11a6   : > { %v4856_v26 = vadd.f32 %v9085_v52, %v4791_v61 }
0x11a8   : > { %v4888_v8 = vmax.f32 %v4856_v26, 0.0 }
0x11a9   : > { %v4527_v3 = vpop.f32.mrf.mxu2 }
0x11aa   : > { %v4919_v0 = vpack.c.bf16 %v4888_v8, %v4887_v21  ;;  %v4564_v51 = vmul.f32 %v4527_v3, %v4278_v27 }
0x11ab   : > { %v4793_v36 = vpop.f32.mrf.mxu0 }
0x11ac   : > { %v4586_v10 = vpack.c.bf16 %v4564_v51, %v4563_v60  ;;  %6347 = vmatmul.msk.bf16.gmra.mxu1 %vm1332_vm9, %v4919_v0  ;;  %v4281_v59 = vpop.f32.mrf.mxu1  ;;  %v4794_v23 = vadd.f32 %v4793_v36, %v4644_v1  ;;  %v4659_v56 = vpop.f32.mrf.mxu3 }
0x11ae   : > { %6328 = vmatmul.msk.bf16.gmra.mxu0 %vm1332_vm9, %v4586_v10  ;;  %v4857_v5 = vadd.f32 %v9085_v52, %v4794_v23 }
0x11b0   : > { %v4889_v2 = vmax.f32 %v4857_v5, 0.0 }
0x11b1   : > { %v4530_v30 = vpop.f32.mrf.mxu2 }
0x11b2   : > { %v4565_v63 = vmul.f32 %v4530_v30, %v4281_v59 }
0x11b3   : > { %v4795_v33 = vpop.f32.mrf.mxu0 }
0x11b4   : > { %v4796_v13 = vadd.f32 %v4795_v33, %v4646_v15  ;;  %v4283_v35 = vpop.f32.mrf.mxu1  ;;  %v4661_v15 = vpop.f32.mrf.mxu3 }
0x11b6   : > { %v4858_v11 = vadd.f32 %v9085_v52, %v4796_v13 }
0x11b8   : > { %v4890_v57 = vmax.f32 %v4858_v11, 0.0 }
0x11b9   : > { %v4532_v45 = vpop.f32.mrf.mxu2 }
0x11ba   : > { %v4920_v28 = vpack.c.bf16 %v4890_v57, %v4889_v2  ;;  %v4566_v53 = vmul.f32 %v4532_v45, %v4283_v35 }
0x11bb   : > { %v4798_v17 = vpop.f32.mrf.mxu0 }
0x11bc   : > { %v4587_v32 = vpack.c.bf16 %v4566_v53, %v4565_v63  ;;  %6348 = vmatmul.msk.bf16.gmra.mxu1 %vm1332_vm9, %v4920_v28  ;;  %v4799_v1 = vadd.f32 %v4798_v17, %v4649_v29  ;;  %v4664_v48 = vpop.f32.mrf.mxu3 }
0x11be   : > { %6329 = vmatmul.msk.bf16.gmra.mxu0 %vm1332_vm9, %v4587_v32  ;;  %v4859_v16 = vadd.f32 %v9085_v52, %v4799_v1 }
0x11c0   : > { %v4891_v58 = vmax.f32 %v4859_v16, 0.0 }
0x11c3   : > { %v4800_v62 = vpop.f32.mrf.mxu0 }
0x11c4   : > { %v4801_v38 = vadd.f32 %v4800_v62, %v4651_v25  ;;  %v4666_v37 = vpop.f32.mrf.mxu3 }
0x11c6   : > { %v4860_v20 = vadd.f32 %v9085_v52, %v4801_v38 }
0x11c8   : > { %v4892_v43 = vmax.f32 %v4860_v20, 0.0 }
0x11ca   : > { %v4921_v42 = vpack.c.bf16 %v4892_v43, %v4891_v58 }
0x11cb   : > { %v4803_v31 = vpop.f32.mrf.mxu0 }
0x11cc   : > { %6349 = vmatmul.msk.bf16.gmra.mxu1 %vm1332_vm9, %v4921_v42  ;;  %v4804_v39 = vadd.f32 %v4803_v31, %v4654_v19  ;;  %v4669_v3 = vpop.f32.mrf.mxu3 }
0x11ce   : > { %v4861_v49 = vadd.f32 %v9085_v52, %v4804_v39 }
0x11d0   : > { %v4893_v47 = vmax.f32 %v4861_v49, 0.0 }
0x11d3   : > { %v4805_v24 = vpop.f32.mrf.mxu0 }
0x11d4   : > { %v4806_v18 = vadd.f32 %v4805_v24, %v4656_v22  ;;  %v4671_v59 = vpop.f32.mrf.mxu3 }
0x11d6   : > { %v4862_v9 = vadd.f32 %v9085_v52, %v4806_v18 }
0x11d8   : > { %v4894_v55 = vmax.f32 %v4862_v9, 0.0 }
0x11d9   : > { %v5001_v29 = vpop.f32.mrf.mxu1 }
0x11da   : > { %v4922_v46 = vpack.c.bf16 %v4894_v55, %v4893_v47  ;;  %v5002_v7 = vadd.f32 %v9136_v14, %v5001_v29 }
0x11db   : > { %v4808_v34 = vpop.f32.mrf.mxu0 }
0x11dc   : > { %6350 = vmatmul.msk.bf16.gmra.mxu1 %vm1332_vm9, %v4922_v46  ;;  %v4809_v54 = vadd.f32 %v4808_v34, %v4659_v56  ;;  %v5081_v25 = vmax.f32 %v5002_v7, 0.0  ;;  %v4674_v28 = vpop.f32.mrf.mxu3 }
0x11de   : > { %v4863_v44 = vadd.f32 %v9085_v52, %v4809_v54 }
0x11e0   : > { %v4895_v21 = vmax.f32 %v4863_v44, 0.0 }
0x11e1   : > { %v5003_v4 = vpop.f32.mrf.mxu1 }
0x11e2   : > { %v5004_v41 = vadd.f32 %v9136_v14, %v5003_v4 }
0x11e3   : > { %v4810_v40 = vpop.f32.mrf.mxu0 }
0x11e4   : > { %v5082_v6 = vmax.f32 %v5004_v41, 0.0  ;;  %v4811_v61 = vadd.f32 %v4810_v40, %v4661_v15  ;;  %v4676_v42 = vpop.f32.mrf.mxu3 }
0x11e6   : > { %v5118_v27 = vpack.c.bf16 %v5082_v6, %v5081_v25  ;;  %v4864_v26 = vadd.f32 %v9085_v52, %v4811_v61 }
0x11e8   : > { %v4896_v8 = vmax.f32 %v4864_v26, 0.0  ;;  %6370 = vmatmul.msk.bf16.vlgmr.msrb.gmra.mxu2 %vm1332_vm9, %v5118_v27 }
0x11e9   : > { %v5006_v60 = vpop.f32.mrf.mxu1 }
0x11ea   : > { %v4923_v0 = vpack.c.bf16 %v4896_v8, %v4895_v21  ;;  %v5007_v12 = vadd.f32 %v9136_v14, %v5006_v60 }
0x11eb   : > { %v4813_v51 = vpop.f32.mrf.mxu0 }
0x11ec   : > { %6351 = vmatmul.msk.bf16.gmra.mxu1 %vm1332_vm9, %v4923_v0  ;;  %v4814_v36 = vadd.f32 %v4813_v51, %v4664_v48  ;;  %v5083_v30 = vmax.f32 %v5007_v12, 0.0  ;;  %v4679_v48 = vpop.f32.mrf.mxu3 }
0x11ee   : > { %v4865_v33 = vadd.f32 %v9085_v52, %v4814_v36 }
0x11f0   : > { %v4897_v2 = vmax.f32 %v4865_v33, 0.0 }
0x11f1   : > { %v5008_v10 = vpop.f32.mrf.mxu1 }
0x11f2   : > { %v5009_v19 = vadd.f32 %v9136_v14, %v5008_v10 }
0x11f3   : > { %v4815_v23 = vpop.f32.mrf.mxu0 }
0x11f4   : > { %v5084_v5 = vmax.f32 %v5009_v19, 0.0  ;;  %v4816_v13 = vadd.f32 %v4815_v23, %v4666_v37  ;;  %v4681_v44 = vpop.f32.mrf.mxu3 }
0x11f6   : > { %v5119_v11 = vpack.c.bf16 %v5084_v5, %v5083_v30  ;;  %v4866_v22 = vadd.f32 %v9085_v52, %v4816_v13 }
0x11f8   : > { %v4898_v57 = vmax.f32 %v4866_v22, 0.0  ;;  %6371 = vmatmul.msk.bf16.gmra.mxu2 %vm1332_vm9, %v5119_v11 }
0x11f9   : > { %v5011_v35 = vpop.f32.mrf.mxu1 }
0x11fa   : > { %v4924_v45 = vpack.c.bf16 %v4898_v57, %v4897_v2  ;;  %v5012_v53 = vadd.f32 %v9136_v14, %v5011_v35 }
0x11fb   : > { %v4818_v63 = vpop.f32.mrf.mxu0 }
0x11fc   : > { %6352 = vmatmul.msk.bf16.gmra.mxu1 %vm1332_vm9, %v4924_v45  ;;  %v4819_v17 = vadd.f32 %v4818_v63, %v4669_v3  ;;  %v5085_v62 = vmax.f32 %v5012_v53, 0.0  ;;  %v4684_v12 = vpop.f32.mrf.mxu3 }
0x11fe   : > { %v4867_v16 = vadd.f32 %v9085_v52, %v4819_v17 }
0x1200   : > { %v4899_v50 = vmax.f32 %v4867_v16, 0.0 }
0x1201   : > { %v5013_v32 = vpop.f32.mrf.mxu1 }
0x1202   : > { %v5014_v1 = vadd.f32 %v9136_v14, %v5013_v32 }
0x1203   : > { %v4820_v56 = vpop.f32.mrf.mxu0 }
0x1204   : > { %v5086_v38 = vmax.f32 %v5014_v1, 0.0  ;;  %v4821_v20 = vadd.f32 %v4820_v56, %v4671_v59  ;;  %v4686_v5 = vpop.f32.mrf.mxu3 }
0x1206   : > { %v5120_v58 = vpack.c.bf16 %v5086_v38, %v5085_v62  ;;  %v4868_v43 = vadd.f32 %v9085_v52, %v4821_v20 }
0x1208   : > { %v4900_v15 = vmax.f32 %v4868_v43, 0.0  ;;  %6372 = vmatmul.msk.bf16.gmra.mxu2 %vm1332_vm9, %v5120_v58 }
0x1209   : > { %v5016_v31 = vpop.f32.mrf.mxu1 }
0x120a   : > { %v4925_v39 = vpack.c.bf16 %v4900_v15, %v4899_v50  ;;  %v5017_v49 = vadd.f32 %v9136_v14, %v5016_v31 }
0x120b   : > { %v4823_v24 = vpop.f32.mrf.mxu0 }
0x120c   : > { %6353 = vmatmul.msk.bf16.gmra.mxu1 %vm1332_vm9, %v4925_v39  ;;  %v4824_v18 = vadd.f32 %v4823_v24, %v4674_v28  ;;  %v5087_v29 = vmax.f32 %v5017_v49, 0.0  ;;  %v4689_v56 = vpop.f32.mrf.mxu3 }
0x120e   : > { %v4869_v46 = vadd.f32 %v9085_v52, %v4824_v18 }
0x1210   : > { %v4901_v4 = vmax.f32 %v4869_v46, 0.0 }
0x1211   : > { %v5018_v9 = vpop.f32.mrf.mxu1 }
0x1212   : > { %v5019_v47 = vadd.f32 %v9136_v14, %v5018_v9 }
0x1213   : > { %v4825_v55 = vpop.f32.mrf.mxu0 }
0x1214   : > { %v5088_v34 = vmax.f32 %v5019_v47, 0.0  ;;  %v4826_v37 = vadd.f32 %v4825_v55, %v4676_v42  ;;  %v4691_v50 = vpop.f32.mrf.mxu3 }
0x1216   : > { %v5121_v7 = vpack.c.bf16 %v5088_v34, %v5087_v29  ;;  %v4870_v54 = vadd.f32 %v9085_v52, %v4826_v37 }
0x1218   : > { %v4902_v41 = vmax.f32 %v4870_v54, 0.0  ;;  %6373 = vmatmul.msk.bf16.gmra.mxu2 %vm1332_vm9, %v5121_v7 }
0x1219   : > { %v5021_v40 = vpop.f32.mrf.mxu1 }
0x121a   : > { %v4926_v25 = vpack.c.bf16 %v4902_v41, %v4901_v4  ;;  %v5022_v61 = vadd.f32 %v9136_v14, %v5021_v40 }
0x121b   : > { %v4828_v6 = vpop.f32.mrf.mxu0 }
0x121c   : > { %6354 = vmatmul.msk.bf16.gmra.mxu1 %vm1332_vm9, %v4926_v25  ;;  %v4829_v27 = vadd.f32 %v4828_v6, %v4679_v48  ;;  %v5089_v3 = vmax.f32 %v5022_v61, 0.0 }
0x121e   : > { %v4871_v60 = vadd.f32 %v9085_v52, %v4829_v27 }
0x1220   : > { %v4903_v19 = vmax.f32 %v4871_v60, 0.0 }
0x1221   : > { %v5023_v26 = vpop.f32.mrf.mxu1 }
0x1222   : > { %v5024_v21 = vadd.f32 %v9136_v14, %v5023_v26 }
0x1223   : > { %v4830_v8 = vpop.f32.mrf.mxu0 }
0x1224   : > { %v5090_v0 = vmax.f32 %v5024_v21, 0.0  ;;  %v4831_v51 = vadd.f32 %v4830_v8, %v4681_v44  ;;  %v5285_v44 = vlaneseq  ;;  %v9190_v21 = vld [vmem:[%s9396_s10 + $0xf] ss:$0 sm:$0xff] }
0x1226   : > { %v5122_v36 = vpack.c.bf16 %v5090_v0, %v5089_v3  ;;  %v4872_v10 = vadd.f32 %v9085_v52, %v4831_v51  ;;  %v5286_v26 = vand.u32 127, %v5285_v44  ;;  %v5290_v0 = vpop.permute.xlu0 %5289  ;;  %v9629_v51 = vmov 0.0  }
0x1228   : > { %v4904_v59 = vmax.f32 %v4872_v10, 0.0  ;;  %6374 = vmatmul.msk.bf16.gmra.mxu2 %vm1332_vm9, %v5122_v36  ;;  %vm5479_vm2 = vcmp.eq.s32.totalorder %v5286_v26, 3  ;;  %v9630_v10 = vld [vmem:[#allocation14_spill] sm:$0xff] }
0x1229   : > { %v5026_v23 = vpop.f32.mrf.mxu1 }
0x122a   : > { %v4927_v30 = vpack.c.bf16 %v4904_v59, %v4903_v19  ;;  %v5027_v13 = vadd.f32 %v9136_v14, %v5026_v23 }
0x122b   : > { %v4833_v33 = vpop.f32.mrf.mxu0 }
0x122c   : > { %6355 = vmatmul.msk.bf16.gmra.mxu1 %vm1332_vm9, %v4927_v30  ;;  %v4834_v11 = vadd.f32 %v4833_v33, %v4684_v12  ;;  %v5091_v35 = vmax.f32 %v5027_v13, 0.0  ;;  %v9194_v12 = vsel %vm5479_vm2, 1.0, %v9629_v51 }
0x122d   : > { %v5482_v19 = vmul.f32 %v9194_v12, %v9630_v10 }
0x122e   : > { %v4873_v45 = vadd.f32 %v9085_v52, %v4834_v11 }
0x1230   : > { %v4905_v32 = vmax.f32 %v4873_v45, 0.0  ;;  %v9631_v45 = vld [vmem:[#allocation17_spill] sm:$0xff] }
0x1231   : > { %v5028_v22 = vpop.f32.mrf.mxu1 }
0x1232   : > { %v5029_v2 = vadd.f32 %v9136_v14, %v5028_v22 }
0x1233   : > { %v4835_v57 = vpop.f32.mrf.mxu0 }
0x1234   : > { %v5092_v63 = vmax.f32 %v5029_v2, 0.0  ;;  %v4836_v28 = vadd.f32 %v4835_v57, %v4686_v5  ;;  %v5295_v2 = vpop.permute.xlu2 %5294 }
0x1236   : > { %v5123_v53 = vpack.c.bf16 %v5092_v63, %v5091_v35  ;;  %v4874_v17 = vadd.f32 %v9085_v52, %v4836_v28  ;;  %v5483_v63 = vmul.f32 %v9194_v12, %v9631_v45 }
0x1238   : > { %v4906_v1 = vmax.f32 %v4874_v17, 0.0  ;;  %6375 = vmatmul.msk.bf16.gmra.mxu2 %vm1332_vm9, %v5123_v53 }
0x1239   : > { %v5031_v62 = vpop.f32.mrf.mxu1 }
0x123a   : > { %v4928_v16 = vpack.c.bf16 %v4906_v1, %v4905_v32  ;;  %v5032_v20 = vadd.f32 %v9136_v14, %v5031_v62  ;;  %v5300_v1 = vpop.permute.xlu1 %5299  ;;  %v9632_v62 = vld [vmem:[#allocation2_spill] sm:$0xff] }
0x123b   : > { %v4838_v38 = vpop.f32.mrf.mxu0 }
0x123c   : > { %6356 = vmatmul.msk.bf16.gmra.mxu1 %vm1332_vm9, %v4928_v16  ;;  %v4839_v58 = vadd.f32 %v4838_v38, %v4689_v56  ;;  %v5093_v31 = vmax.f32 %v5032_v20, 0.0  ;;  %v5484_v16 = vmul.f32 %v9194_v12, %v9632_v62 }
0x123e   : > { %v4875_v39 = vadd.f32 %v9085_v52, %v4839_v58 }
0x1240   : > { %v4907_v9 = vmax.f32 %v4875_v39, 0.0  ;;  %v5305_v39 = vpop.permute.xlu0 %5304 }
0x1241   : > { %v5033_v43 = vpop.f32.mrf.mxu1 }
0x1242   : > { %v5034_v42 = vadd.f32 %v9136_v14, %v5033_v43 }
0x1243   : > { %v4840_v15 = vpop.f32.mrf.mxu0 }
0x1244   : > { %v5094_v24 = vmax.f32 %v5034_v42, 0.0  ;;  %v4841_v49 = vadd.f32 %v4840_v15, %v4691_v50 }
0x1246   : > { %v5124_v18 = vpack.c.bf16 %v5094_v24, %v5093_v31  ;;  %v4876_v48 = vadd.f32 %v9085_v52, %v4841_v49 }
0x1248   : > { %v4908_v47 = vmax.f32 %v4876_v48, 0.0  ;;  %6376 = vmatmul.msk.bf16.gmra.mxu2 %vm1332_vm9, %v5124_v18  ;;  %v9633_v18 = vld [vmem:[#allocation3_spill] sm:$0xff]  ;;  %v5320_v10 = vpop.permute.xlu0 %5319 }
0x1249   : > { %v5036_v55 = vpop.f32.mrf.mxu1  ;;  %v5485_v48 = vmul.f32 %v9194_v12, %v9633_v18 }
0x124a   : > { %v4929_v29 = vpack.c.bf16 %v4908_v47, %v4907_v9  ;;  %v5037_v46 = vadd.f32 %v9136_v14, %v5036_v55 }
0x124c   : > { %6357 = vmatmul.msk.bf16.gmra.mxu1 %vm1332_vm9, %v4929_v29  ;;  %v5095_v7 = vmax.f32 %v5037_v46, 0.0  ;;  %v5310_v46 = vpop.permute.xlu2 %5309 }
0x1251   : > { %v5038_v34 = vpop.f32.mrf.mxu1 }
0x1252   : > { %v5039_v37 = vadd.f32 %v9136_v14, %v5038_v34 }
0x1254   : > { %v5096_v54 = vmax.f32 %v5039_v37, 0.0  ;;  %v9634_v37 = vld [vmem:[#allocation4_spill] sm:$0xff] }
0x1256   : > { %v5125_v4 = vpack.c.bf16 %v5096_v54, %v5095_v7  ;;  %v5486_v7 = vmul.f32 %v9194_v12, %v9634_v37 }
0x1258   : > { %6377 = vmatmul.msk.bf16.gmra.mxu2 %vm1332_vm9, %v5125_v4 }
0x1259   : > { %v5041_v41 = vpop.f32.mrf.mxu1 }
0x125a   : > { %v5042_v52 = vadd.f32 %v9136_v14, %v5041_v41 }
0x125c   : > { %v5097_v6 = vmax.f32 %v5042_v52, 0.0 }
0x1261   : > { %v5043_v40 = vpop.f32.mrf.mxu1 }
0x1262   : > { %v5044_v25 = vadd.f32 %v9136_v14, %v5043_v40 }
0x1264   : > { %v5098_v61 = vmax.f32 %v5044_v25, 0.0 }
0x1266   : > { %v5126_v27 = vpack.c.bf16 %v5098_v61, %v5097_v6  ;;  %v5315_v61 = vpop.permute.xlu1 %5314 }
0x1268   : > { %6378 = vmatmul.msk.bf16.gmra.mxu2 %vm1332_vm9, %v5126_v27 }
0x1269   : > { %v5046_v8 = vpop.f32.mrf.mxu1 }
0x126a   : > { %v5047_v59 = vadd.f32 %v9136_v14, %v5046_v8  ;;  %v9635_v8 = vld [vmem:[#allocation5_spill] sm:$0xff] }
0x126b   : > { %v5205_v3 = vpop.f32.mrf.mxu2 }
0x126c   : > { %v5206_v60 = vadd.f32 %v9190_v21, %v5205_v3  ;;  %v5099_v13 = vmax.f32 %v5047_v59, 0.0  ;;  %v5487_v3 = vmul.f32 %v9194_v12, %v9635_v8  ;;  %v9636_v59 = vld [vmem:[#allocation7_spill] sm:$0xff] }
0x126e   : > { %v5447_v36 = vmul.f32 %v5290_v0, %v5206_v60  ;;  %v5330_v62 = vpop.permute.xlu1 %5329 }
0x1270   : > { %v5514_v23 = vadd.f32 %v5482_v19, %v5447_v36 }
0x1271   : > { %v5048_v30 = vpop.f32.mrf.mxu1 }
0x1272   : > { %5546 = vst.msk [vmem:[%s9203_s27] sm:$0xff] %vm1332_vm9, %v5514_v23  ;;  %v5049_v33 = vadd.f32 %v9136_v14, %v5048_v30  ;;  %v5488_v23 = vmul.f32 %v9194_v12, %v9636_v59 }
0x1273   : > { %v5207_v5 = vpop.f32.mrf.mxu2 }
0x1274   : > { %v5100_v11 = vmax.f32 %v5049_v33, 0.0  ;;  %v5208_v22 = vadd.f32 %v9190_v21, %v5207_v5 }
0x1276   : > { %v5127_v57 = vpack.c.bf16 %v5100_v11, %v5099_v13  ;;  %v5448_v35 = vmul.f32 %v5295_v2, %v5208_v22 }
0x1278   : > { %v5515_v28 = vadd.f32 %v5483_v63, %v5448_v35  ;;  %6379 = vmatmul.msk.bf16.gmra.mxu2 %vm1332_vm9, %v5127_v57  ;;  %v5325_v35 = vpop.permute.xlu2 %5324 }
0x1279   : > { %v5051_v53 = vpop.f32.mrf.mxu1 }
0x127a   : > { %5547 = vst.msk [vmem:[%s9203_s27 + $0x8] sm:$0xff] %vm1332_vm9, %v5515_v28  ;;  %v5052_v38 = vadd.f32 %v9136_v14, %v5051_v53  ;;  %v9637_v28 = vld [vmem:[#allocation6_spill] sm:$0xff] }
0x127b   : > { %v5210_v17 = vpop.f32.mrf.mxu2  ;;  %v5489_v53 = vmul.f32 %v9194_v12, %v9637_v28 }
0x127c   : > { %v5211_v32 = vadd.f32 %v9190_v21, %v5210_v17  ;;  %v5101_v50 = vmax.f32 %v5052_v38, 0.0  ;;  %v9638_v38 = vld [vmem:[#allocation8_spill] sm:$0xff] }
0x127e   : > { %v5449_v56 = vmul.f32 %v5300_v1, %v5211_v32 }
0x1280   : > { %v5516_v20 = vadd.f32 %v5484_v16, %v5449_v56  ;;  %v5340_v37 = vpop.permute.xlu2 %5339 }
0x1281   : > { %v5053_v58 = vpop.f32.mrf.mxu1 }
0x1282   : > { %5548 = vst.msk [vmem:[%s9203_s27 + $0x10] sm:$0xff] %vm1332_vm9, %v5516_v20  ;;  %v5054_v43 = vadd.f32 %v9136_v14, %v5053_v58  ;;  %v5490_v20 = vmul.f32 %v9194_v12, %v9638_v38  ;;  %v9644_v38 = vld [vmem:[#allocation15_spill] sm:$0xff] }
0x1283   : > { %v5212_v42 = vpop.f32.mrf.mxu2 }
0x1284   : > { %v5102_v15 = vmax.f32 %v5054_v43, 0.0  ;;  %v5213_v31 = vadd.f32 %v9190_v21, %v5212_v42 }
0x1286   : > { %v5128_v24 = vpack.c.bf16 %v5102_v15, %v5101_v50  ;;  %v5450_v49 = vmul.f32 %v5305_v39, %v5213_v31 }
0x1288   : > { %v5517_v9 = vadd.f32 %v5485_v48, %v5450_v49  ;;  %6380 = vmatmul.msk.bf16.gmra.mxu2 %vm1332_vm9, %v5128_v24  ;;  %v5335_v49 = vpop.permute.xlu0 %5334 }
0x1289   : > { %v5056_v47 = vpop.f32.mrf.mxu1 }
0x128a   : > { %5549 = vst.msk [vmem:[%s9203_s27 + $0x18] sm:$0xff] %vm1332_vm9, %v5517_v9  ;;  %v5057_v54 = vadd.f32 %v9136_v14, %v5056_v47  ;;  %v9639_v9 = vld [vmem:[#allocation9_spill] sm:$0xff] }
0x128b   : > { %v5215_v55 = vpop.f32.mrf.mxu2  ;;  %v5491_v47 = vmul.f32 %v9194_v12, %v9639_v9 }
0x128c   : > { %v5216_v29 = vadd.f32 %v9190_v21, %v5215_v55  ;;  %v5103_v25 = vmax.f32 %v5057_v54, 0.0  ;;  %v9640_v54 = vld [vmem:[#allocation10_spill] sm:$0xff] }
0x128e   : > { %v5451_v34 = vmul.f32 %v5310_v46, %v5216_v29 }
0x1290   : > { %v5518_v4 = vadd.f32 %v5486_v7, %v5451_v34  ;;  %v5350_v59 = vpop.permute.xlu0 %5349 }
0x1291   : > { %v5058_v41 = vpop.f32.mrf.mxu1 }
0x1292   : > { %5550 = vst.msk [vmem:[%s9203_s27 + $0x20] sm:$0xff] %vm1332_vm9, %v5518_v4  ;;  %v5059_v52 = vadd.f32 %v9136_v14, %v5058_v41  ;;  %v5492_v4 = vmul.f32 %v9194_v12, %v9640_v54  ;;  %v9647_v54 = vld [vmem:[#allocation19_spill] sm:$0xff] }
0x1293   : > { %v5217_v40 = vpop.f32.mrf.mxu2 }
0x1294   : > { %v5104_v44 = vmax.f32 %v5059_v52, 0.0  ;;  %v5218_v6 = vadd.f32 %v9190_v21, %v5217_v40 }
0x1296   : > { %v5129_v27 = vpack.c.bf16 %v5104_v44, %v5103_v25  ;;  %v5452_v26 = vmul.f32 %v5315_v61, %v5218_v6 }
0x1298   : > { %v5519_v60 = vadd.f32 %v5487_v3, %v5452_v26  ;;  %6381 = vmatmul.msk.bf16.gmra.mxu2 %vm1332_vm9, %v5129_v27  ;;  %v5345_v26 = vpop.permute.xlu1 %5344 }
0x1299   : > { %v5061_v0 = vpop.f32.mrf.mxu1 }
0x129a   : > { %5551 = vst.msk [vmem:[%s9203_s27 + $0x28] sm:$0xff] %vm1332_vm9, %v5519_v60  ;;  %v5062_v30 = vadd.f32 %v9136_v14, %v5061_v0  ;;  %v9641_v60 = vld [vmem:[#allocation11_spill] sm:$0xff] }
0x129b   : > { %v5220_v51 = vpop.f32.mrf.mxu2  ;;  %v5493_v0 = vmul.f32 %v9194_v12, %v9641_v60 }
0x129c   : > { %v5221_v36 = vadd.f32 %v9190_v21, %v5220_v51  ;;  %v5105_v22 = vmax.f32 %v5062_v30, 0.0  ;;  %v9642_v30 = vld [vmem:[#allocation12_spill] sm:$0xff] }
0x129e   : > { %v5453_v19 = vmul.f32 %v5320_v10, %v5221_v36 }
0x12a0   : > { %v5520_v33 = vadd.f32 %v5488_v23, %v5453_v19 }
0x12a1   : > { %v5063_v5 = vpop.f32.mrf.mxu1 }
0x12a2   : > { %5552 = vst.msk [vmem:[%s9203_s27 + $0x30] sm:$0xff] %vm1332_vm9, %v5520_v33  ;;  %v5064_v13 = vadd.f32 %v9136_v14, %v5063_v5  ;;  %v5494_v33 = vmul.f32 %v9194_v12, %v9642_v30  ;;  %v9650_v30 = vld [vmem:[#allocation25_spill] sm:$0xff] }
0x12a3   : > { %v5222_v11 = vpop.f32.mrf.mxu2 }
0x12a4   : > { %v5106_v2 = vmax.f32 %v5064_v13, 0.0  ;;  %v5223_v57 = vadd.f32 %v9190_v21, %v5222_v11 }
0x12a6   : > { %v5130_v45 = vpack.c.bf16 %v5106_v2, %v5105_v22  ;;  %v5454_v63 = vmul.f32 %v5325_v35, %v5223_v57 }
0x12a8   : > { %v5521_v17 = vadd.f32 %v5489_v53, %v5454_v63  ;;  %6382 = vmatmul.msk.bf16.gmra.mxu2 %vm1332_vm9, %v5130_v45  ;;  %v5355_v63 = vpop.permute.xlu2 %5354 }
0x12a9   : > { %v5066_v32 = vpop.f32.mrf.mxu1 }
0x12aa   : > { %5553 = vst.msk [vmem:[%s9203_s27 + $0x38] sm:$0xff] %vm1332_vm9, %v5521_v17  ;;  %v5067_v58 = vadd.f32 %v9136_v14, %v5066_v32  ;;  %v9643_v17 = vld [vmem:[#allocation13_spill] sm:$0xff] }
0x12ab   : > { %v5225_v1 = vpop.f32.mrf.mxu2  ;;  %v5495_v32 = vmul.f32 %v9194_v12, %v9643_v17 }
0x12ac   : > { %v5226_v56 = vadd.f32 %v9190_v21, %v5225_v1  ;;  %v5107_v31 = vmax.f32 %v5067_v58, 0.0 }
0x12ae   : > { %v5455_v16 = vmul.f32 %v5330_v62, %v5226_v56  ;;  %v5360_v62 = vpop.permute.xlu1 %5359 }
0x12b0   : > { %v5522_v43 = vadd.f32 %v5490_v20, %v5455_v16  ;;  %v5496_v20 = vmul.f32 %v9194_v12, %v9644_v38 }
0x12b1   : > { %v5068_v42 = vpop.f32.mrf.mxu1 }
0x12b2   : > { %5554 = vst.msk [vmem:[%s9203_s27 + $0x40] sm:$0xff] %vm1332_vm9, %v5522_v43  ;;  %v5069_v50 = vadd.f32 %v9136_v14, %v5068_v42 }
0x12b3   : > { %v5227_v15 = vpop.f32.mrf.mxu2 }
0x12b4   : > { %v5108_v39 = vmax.f32 %v5069_v50, 0.0  ;;  %v5228_v24 = vadd.f32 %v9190_v21, %v5227_v15  ;;  %v5365_v50 = vpop.permute.xlu0 %5364 }
0x12b6   : > { %v5131_v18 = vpack.c.bf16 %v5108_v39, %v5107_v31  ;;  %v5456_v48 = vmul.f32 %v5335_v49, %v5228_v24  ;;  %v9645_v31 = vld [vmem:[#allocation16_spill] sm:$0xff] }
0x12b7   : > { %v5497_v39 = vmul.f32 %v9194_v12, %v9645_v31 }
0x12b8   : > { %v5523_v55 = vadd.f32 %v5491_v47, %v5456_v48  ;;  %6383 = vmatmul.msk.bf16.gmra.mxu2 %vm1332_vm9, %v5131_v18  ;;  %v5370_v48 = vpop.permute.xlu2 %5369  ;;  %v9646_v47 = vld [vmem:[#allocation18_spill] sm:$0xff] }
0x12b9   : > { %v5071_v29 = vpop.f32.mrf.mxu1 }
0x12ba   : > { %5555 = vst.msk [vmem:[%s9203_s27 + $0x48] sm:$0xff] %vm1332_vm9, %v5523_v55  ;;  %v5072_v41 = vadd.f32 %v9136_v14, %v5071_v29  ;;  %v5498_v55 = vmul.f32 %v9194_v12, %v9646_v47 }
0x12bb   : > { %v5230_v46 = vpop.f32.mrf.mxu2 }
0x12bc   : > { %v5231_v34 = vadd.f32 %v9190_v21, %v5230_v46  ;;  %v5109_v6 = vmax.f32 %v5072_v41, 0.0 }
0x12be   : > { %v5457_v7 = vmul.f32 %v5340_v37, %v5231_v34  ;;  %v5375_v37 = vpop.permute.xlu1 %5374 }
0x12c0   : > { %v5524_v52 = vadd.f32 %v5492_v4, %v5457_v7  ;;  %v5499_v4 = vmul.f32 %v9194_v12, %v9647_v54 }
0x12c1   : > { %v5073_v40 = vpop.f32.mrf.mxu1 }
0x12c2   : > { %5556 = vst.msk [vmem:[%s9203_s27 + $0x50] sm:$0xff] %vm1332_vm9, %v5524_v52  ;;  %v5074_v25 = vadd.f32 %v9136_v14, %v5073_v40 }
0x12c3   : > { %v5232_v44 = vpop.f32.mrf.mxu2 }
0x12c4   : > { %v5110_v61 = vmax.f32 %v5074_v25, 0.0  ;;  %v5233_v27 = vadd.f32 %v9190_v21, %v5232_v44  ;;  %v5380_v25 = vpop.permute.xlu0 %5379 }
0x12c6   : > { %v5132_v8 = vpack.c.bf16 %v5110_v61, %v5109_v6  ;;  %v5458_v3 = vmul.f32 %v5345_v26, %v5233_v27  ;;  %v9648_v6 = vld [vmem:[#allocation20_spill] sm:$0xff] }
0x12c7   : > { %v5500_v61 = vmul.f32 %v9194_v12, %v9648_v6 }
0x12c8   : > { %v5525_v51 = vadd.f32 %v5493_v0, %v5458_v3  ;;  %6384 = vmatmul.msk.bf16.gmra.mxu2 %vm1332_vm9, %v5132_v8  ;;  %v5385_v3 = vpop.permute.xlu2 %5384  ;;  %v9649_v0 = vld [vmem:[#allocation21_spill] sm:$0xff] }
0x12c9   : > { %v5076_v36 = vpop.f32.mrf.mxu1 }
0x12ca   : > { %5557 = vst.msk [vmem:[%s9203_s27 + $0x58] sm:$0xff] %vm1332_vm9, %v5525_v51  ;;  %v5077_v5 = vadd.f32 %v9136_v14, %v5076_v36  ;;  %v5501_v51 = vmul.f32 %v9194_v12, %v9649_v0 }
0x12cb   : > { %v5235_v10 = vpop.f32.mrf.mxu2 }
0x12cc   : > { %v5236_v19 = vadd.f32 %v9190_v21, %v5235_v10  ;;  %v5111_v57 = vmax.f32 %v5077_v5, 0.0 }
0x12ce   : > { %v5459_v23 = vmul.f32 %v5350_v59, %v5236_v19  ;;  %v5390_v59 = vpop.permute.xlu1 %5389 }
0x12d0   : > { %v5526_v13 = vadd.f32 %v5494_v33, %v5459_v23  ;;  %v5502_v33 = vmul.f32 %v9194_v12, %v9650_v30 }
0x12d1   : > { %v5078_v11 = vpop.f32.mrf.mxu1 }
0x12d2   : > { %5558 = vst.msk [vmem:[%s9203_s27 + $0x60] sm:$0xff] %vm1332_vm9, %v5526_v13  ;;  %v5079_v22 = vadd.f32 %v9136_v14, %v5078_v11 }
0x12d3   : > { %v5237_v2 = vpop.f32.mrf.mxu2 }
0x12d4   : > { %v5112_v35 = vmax.f32 %v5079_v22, 0.0  ;;  %v5238_v45 = vadd.f32 %v9190_v21, %v5237_v2  ;;  %v5395_v22 = vpop.permute.xlu0 %5394 }
0x12d6   : > { %v5133_v28 = vpack.c.bf16 %v5112_v35, %v5111_v57  ;;  %v5460_v53 = vmul.f32 %v5355_v63, %v5238_v45  ;;  %v9651_v57 = vld [vmem:[#allocation24_spill] sm:$0xff] }
0x12d7   : > { %v5503_v35 = vmul.f32 %v9194_v12, %v9651_v57 }
0x12d8   : > { %v5527_v1 = vadd.f32 %v5495_v32, %v5460_v53  ;;  %6385 = vmatmul.msk.bf16.gmra.mxu2 %vm1332_vm9, %v5133_v28  ;;  %v5400_v53 = vpop.permute.xlu2 %5399  ;;  %v9652_v32 = vld [vmem:[#allocation31_spill] sm:$0xff] }
0x12da   : > { %5559 = vst.msk [vmem:[%s9203_s27 + $0x68] sm:$0xff] %vm1332_vm9, %v5527_v1  ;;  %v5504_v1 = vmul.f32 %v9194_v12, %v9652_v32 }
0x12db   : > { %v5240_v56 = vpop.f32.mrf.mxu2 }
0x12dc   : > { %v5241_v14 = vadd.f32 %v9190_v21, %v5240_v56 }
0x12de   : > { %v5461_v16 = vmul.f32 %v5360_v62, %v5241_v14 }
0x12e0   : > { %v5528_v58 = vadd.f32 %v5496_v20, %v5461_v16  ;;  %v5405_v16 = vpop.permute.xlu1 %5404  ;;  %v9653_v20 = vld [vmem:[#allocation33_spill] sm:$0xff] }
0x12e2   : > { %5560 = vst.msk [vmem:[%s9203_s27 + $0x70] sm:$0xff] %vm1332_vm9, %v5528_v58  ;;  %v5505_v58 = vmul.f32 %v9194_v12, %v9653_v20 }
0x12e3   : > { %v5242_v43 = vpop.f32.mrf.mxu2 }
0x12e4   : > { %v5243_v42 = vadd.f32 %v9190_v21, %v5242_v43 }
0x12e6   : > { %v5462_v15 = vmul.f32 %v5365_v50, %v5243_v42 }
0x12e8   : > { %v5529_v24 = vadd.f32 %v5497_v39, %v5462_v15  ;;  %v5410_v15 = vpop.permute.xlu0 %5409  ;;  %v9654_v39 = vld [vmem:[#allocation34_spill] sm:$0xff] }
0x12ea   : > { %5561 = vst.msk [vmem:[%s9203_s27 + $0x78] sm:$0xff] %vm1332_vm9, %v5529_v24  ;;  %v5506_v24 = vmul.f32 %v9194_v12, %v9654_v39 }
0x12eb   : > { %v5245_v49 = vpop.f32.mrf.mxu2 }
0x12ec   : > { %v5246_v18 = vadd.f32 %v9190_v21, %v5245_v49 }
0x12ee   : > { %v5463_v9 = vmul.f32 %v5370_v48, %v5246_v18 }
0x12f0   : > { %v5530_v29 = vadd.f32 %v5498_v55, %v5463_v9  ;;  %v5415_v9 = vpop.permute.xlu2 %5414  ;;  %v9655_v55 = vld [vmem:[#allocation35_spill] sm:$0xff] }
0x12f2   : > { %5562 = vst.msk [vmem:[%s9203_s27 + $0x80] sm:$0xff] %vm1332_vm9, %v5530_v29  ;;  %v5507_v29 = vmul.f32 %v9194_v12, %v9655_v55 }
0x12f3   : > { %v5247_v46 = vpop.f32.mrf.mxu2 }
0x12f4   : > { %v5248_v34 = vadd.f32 %v9190_v21, %v5247_v46 }
0x12f6   : > { %v5464_v7 = vmul.f32 %v5375_v37, %v5248_v34 }
0x12f8   : > { %v5531_v41 = vadd.f32 %v5499_v4, %v5464_v7  ;;  %v5420_v7 = vpop.permute.xlu1 %5419  ;;  %v9656_v4 = vld [vmem:[#allocation36_spill] sm:$0xff] }
0x12fa   : > { %5563 = vst.msk [vmem:[%s9203_s27 + $0x88] sm:$0xff] %vm1332_vm9, %v5531_v41  ;;  %v5508_v41 = vmul.f32 %v9194_v12, %v9656_v4 }
0x12fb   : > { %v5250_v52 = vpop.f32.mrf.mxu2 }
0x12fc   : > { %v5251_v40 = vadd.f32 %v9190_v21, %v5250_v52 }
0x12fe   : > { %v5465_v44 = vmul.f32 %v5380_v25, %v5251_v40 }
0x1300   : > { %v5532_v27 = vadd.f32 %v5500_v61, %v5465_v44  ;;  %v5425_v44 = vpop.permute.xlu0 %5424  ;;  %v9657_v61 = vld [vmem:[#allocation37_spill] sm:$0xff] }
0x1302   : > { %5564 = vst.msk [vmem:[%s9203_s27 + $0x90] sm:$0xff] %vm1332_vm9, %v5532_v27  ;;  %v5509_v27 = vmul.f32 %v9194_v12, %v9657_v61 }
0x1303   : > { %v5252_v26 = vpop.f32.mrf.mxu2 }
0x1304   : > { %v5253_v8 = vadd.f32 %v9190_v21, %v5252_v26 }
0x1306   : > { %v5466_v60 = vmul.f32 %v5385_v3, %v5253_v8 }
0x1308   : > { %v5533_v36 = vadd.f32 %v5501_v51, %v5466_v60  ;;  %v5430_v60 = vpop.permute.xlu2 %5429  ;;  %v9658_v51 = vld [vmem:[#allocation39_spill] sm:$0xff] }
0x130a   : > { %5565 = vst.msk [vmem:[%s9203_s27 + $0x98] sm:$0xff] %vm1332_vm9, %v5533_v36  ;;  %v5510_v36 = vmul.f32 %v9194_v12, %v9658_v51 }
0x130b   : > { %v5255_v10 = vpop.f32.mrf.mxu2 }
0x130c   : > { %v5256_v19 = vadd.f32 %v9190_v21, %v5255_v10 }
0x130e   : > { %v5467_v23 = vmul.f32 %v5390_v59, %v5256_v19 }
0x1310   : > { %v5534_v5 = vadd.f32 %v5502_v33, %v5467_v23  ;;  %v5435_v23 = vpop.permute.xlu1 %5434  ;;  %v9659_v33 = vld [vmem:[#allocation38_spill] sm:$0xff] }
0x1312   : > { %5566 = vst.msk [vmem:[%s9203_s27 + $0xa0] sm:$0xff] %vm1332_vm9, %v5534_v5  ;;  %v5511_v5 = vmul.f32 %v9194_v12, %v9659_v33 }
0x1313   : > { %v5257_v13 = vpop.f32.mrf.mxu2 }
0x1314   : > { %v5258_v11 = vadd.f32 %v9190_v21, %v5257_v13 }
0x1316   : > { %v5468_v2 = vmul.f32 %v5395_v22, %v5258_v11 }
0x1318   : > { %v5535_v45 = vadd.f32 %v5503_v35, %v5468_v2  ;;  %v5440_v2 = vpop.permute.xlu0 %5439  ;;  %v9660_v35 = vld [vmem:[#allocation40_spill] sm:$0xff] }
0x131a   : > { %5567 = vst.msk [vmem:[%s9203_s27 + $0xa8] sm:$0xff] %vm1332_vm9, %v5535_v45  ;;  %v5512_v45 = vmul.f32 %v9194_v12, %v9660_v35 }
0x131b   : > { %v5260_v63 = vpop.f32.mrf.mxu2 }
0x131c   : > { %v5261_v28 = vadd.f32 %v9190_v21, %v5260_v63 }
0x131e   : > { %v5469_v17 = vmul.f32 %v5400_v53, %v5261_v28 }
0x1320   : > { %v5536_v56 = vadd.f32 %v5504_v1, %v5469_v17  ;;  %v5445_v17 = vpop.permute.xlu2 %5444  ;;  %v9661_v1 = vld [vmem:[#allocation41_spill] sm:$0xff] }
0x1322   : > { %5568 = vst.msk [vmem:[%s9203_s27 + $0xb0] sm:$0xff] %vm1332_vm9, %v5536_v56  ;;  %v5513_v56 = vmul.f32 %v9194_v12, %v9661_v1 }
0x1323   : > { %v5262_v14 = vpop.f32.mrf.mxu2 }
0x1324   : > { %v5263_v62 = vadd.f32 %v9190_v21, %v5262_v14 }
0x1326   : > { %v5470_v38 = vmul.f32 %v5405_v16, %v5263_v62 }
0x1328   : > { %v5537_v43 = vadd.f32 %v5505_v58, %v5470_v38 }
0x132a   : > { %5569 = vst.msk [vmem:[%s9203_s27 + $0xb8] sm:$0xff] %vm1332_vm9, %v5537_v43 }
0x132b   : > { %v5265_v42 = vpop.f32.mrf.mxu2 }
0x132c   : > { %v5266_v50 = vadd.f32 %v9190_v21, %v5265_v42 }
0x132e   : > { %v5471_v31 = vmul.f32 %v5410_v15, %v5266_v50 }
0x1330   : > { %v5538_v49 = vadd.f32 %v5506_v24, %v5471_v31 }
0x1332   : > { %5570 = vst.msk [vmem:[%s9203_s27 + $0xc0] sm:$0xff] %vm1332_vm9, %v5538_v49 }
0x1333   : > { %v5267_v18 = vpop.f32.mrf.mxu2 }
0x1334   : > { %v5268_v48 = vadd.f32 %v9190_v21, %v5267_v18 }
0x1336   : > { %v5472_v47 = vmul.f32 %v5415_v9, %v5268_v48 }
0x1338   : > { %v5539_v46 = vadd.f32 %v5507_v29, %v5472_v47 }
0x133a   : > { %5571 = vst.msk [vmem:[%s9203_s27 + $0xc8] sm:$0xff] %vm1332_vm9, %v5539_v46 }
0x133b   : > { %v5270_v34 = vpop.f32.mrf.mxu2 }
0x133c   : > { %v5271_v37 = vadd.f32 %v9190_v21, %v5270_v34 }
0x133e   : > { %v5473_v54 = vmul.f32 %v5420_v7, %v5271_v37 }
0x1340   : > { %v5540_v52 = vadd.f32 %v5508_v41, %v5473_v54 }
0x1342   : > { %5572 = vst.msk [vmem:[%s9203_s27 + $0xd0] sm:$0xff] %vm1332_vm9, %v5540_v52 }
0x1343   : > { %v5272_v40 = vpop.f32.mrf.mxu2 }
0x1344   : > { %v5273_v25 = vadd.f32 %v9190_v21, %v5272_v40 }
0x1346   : > { %v5474_v6 = vmul.f32 %v5425_v44, %v5273_v25 }
0x1348   : > { %v5541_v26 = vadd.f32 %v5509_v27, %v5474_v6 }
0x134a   : > { %5573 = vst.msk [vmem:[%s9203_s27 + $0xd8] sm:$0xff] %vm1332_vm9, %v5541_v26 }
0x134b   : > { %v5275_v8 = vpop.f32.mrf.mxu2 }
0x134c   : > { %v5276_v3 = vadd.f32 %v9190_v21, %v5275_v8 }
0x134e   : > { %v5475_v0 = vmul.f32 %v5430_v60, %v5276_v3 }
0x1350   : > { %v5542_v10 = vadd.f32 %v5510_v36, %v5475_v0 }
0x1352   : > { %5574 = vst.msk [vmem:[%s9203_s27 + $0xe0] sm:$0xff] %vm1332_vm9, %v5542_v10 }
0x1353   : > { %v5277_v19 = vpop.f32.mrf.mxu2 }
0x1354   : > { %v5278_v59 = vadd.f32 %v9190_v21, %v5277_v19 }
0x1356   : > { %v5476_v30 = vmul.f32 %v5435_v23, %v5278_v59 }
0x1358   : > { %v5543_v13 = vadd.f32 %v5511_v5, %v5476_v30 }
0x135a   : > { %5575 = vst.msk [vmem:[%s9203_s27 + $0xe8] sm:$0xff] %vm1332_vm9, %v5543_v13 }
0x135b   : > { %v5280_v11 = vpop.f32.mrf.mxu2 }
0x135c   : > { %v5281_v22 = vadd.f32 %v9190_v21, %v5280_v11 }
0x135e   : > { %v5477_v57 = vmul.f32 %v5440_v2, %v5281_v22 }
0x1360   : > { %v5544_v63 = vadd.f32 %v5512_v45, %v5477_v57 }
0x1362   : > { %5576 = vst.msk [vmem:[%s9203_s27 + $0xf0] sm:$0xff] %vm1332_vm9, %v5544_v63 }
0x1363   : > { %v5282_v28 = vpop.f32.mrf.mxu2 }
0x1364   : > { %v5283_v53 = vadd.f32 %v9190_v21, %v5282_v28 }
0x1366   : > { %v5478_v32 = vmul.f32 %v5445_v17, %v5283_v53 }
0x1368   : > { %v5545_v14 = vadd.f32 %v5513_v56, %v5478_v32 }
0x136a   : > { %5577 = vst.msk [vmem:[%s9203_s27 + $0xf8] sm:$0xff] %vm1332_vm9, %v5545_v14 }
0x136b PF: > { %s21_s17 = sadd.s32 1, %s6820_s17  }
0x136c   : > { %p18_p4 = scmp.ge.s32.totalorder %s21_s17, 4  }
0x136e   :  { %20 = sbr.rel (!%p18_p4) target bundleno = 1 (0x1), region = 120 }

</bundles_post_ra>
